<compile_context>
chip_gen: v7x
topology: tpu7x:2x2x1
jax: 0.10.0
libtpu: 0.0.40
codegen_flags: <defaults>
</compile_context>

<pallas_src>
import functools
import math

import jax
import jax.numpy as jnp
from jax.experimental import pallas as pl
from jax.experimental.pallas import tpu as pltpu

NUM_CLASSES = 80
NUM_ATTRIB = 5 + NUM_CLASSES                          # 85
NUM_ANCHORS_PER_SCALE = 3
LAST_LAYER_DIM = NUM_ANCHORS_PER_SCALE * NUM_ATTRIB   # 255
LEAKY_SLOPE = 0.1
BN_EPS = 1e-5


def _round_up(x, m):
    return (x + m - 1) // m * m


# =============================================================================
# Fused DetectionBlock kernel: one grid step == one image, all 7 layers.
# =============================================================================
def _detection_block_kernel(
        x_ref,                                                   # (1,H,W,Cin)  bf16
        w1_ref, sb1_ref, w2_ref, sb2_ref, w3_ref, sb3_ref,       # weights / (scale;bias)
        w4_ref, sb4_ref, w5_ref, sb5_ref, w6_ref, sb6_ref,
        w7_ref, sb7_ref,
        out_ref, br_ref,                                         # (1,H,Wp,Nout_p) f32, (1,H,Wp,hid_p) f32
        pbuf_ref, acc_ref,                                       # scratch: haloed bf16 input, f32 accumulator
        *, H, W, Wp):
    Mext = H * Wp                        # extended row count (valid cols are w < W)
    C_pb = pbuf_ref.shape[-1]

    def leaky(y):
        return jnp.where(y >= 0, y, LEAKY_SLOPE * y)

    def fused_1x1(x2d, w_ref, sb_ref, act):
        """x2d:(M,K) bf16 @ w:(K,N) bf16, f32 acc, *scale + bias, opt LeakyReLU."""
        sb = sb_ref[...]
        y = jnp.dot(x2d, w_ref[...], preferred_element_type=jnp.float32)
        y = y * sb[0:1, :] + sb[1:2, :]
        return leaky(y) if act else y

    def to_haloed(a2d, row_w):
        """Write the valid (H, W) interior of a flat activation into the
        zero-haloed buffer at offset (+1, +1); halo stays zero."""
        a3d = a2d.reshape(H, row_w, a2d.shape[-1])[:, :W, :]
        pbuf_ref[1:H + 1, 1:W + 1, :] = a3d.astype(pbuf_ref.dtype)

    def fused_3x3(w_ref, sb_ref):
        """3x3/stride1/pad1 conv via 9 row-offset matmuls on the flattened
        haloed buffer (single layout-preserving reshape, Wp % 8 == 0)."""
        xflat = pbuf_ref[...].reshape((H + 3) * Wp, C_pb)
        for di in range(3):
            for dj in range(3):
                off = di * Wp + dj
                t = jnp.dot(xflat[off:off + Mext, :], w_ref[di * 3 + dj],
                            preferred_element_type=jnp.float32)
                if di == 0 and dj == 0:
                    acc_ref[...] = t          # first tap: '=' (no zero-init pass)
                else:
                    acc_ref[...] += t
        sb = sb_ref[...]
        y = acc_ref[...] * sb[0:1, :] + sb[1:2, :]
        return leaky(y).astype(jnp.bfloat16)

    # Zero the halo (whole buffer) for this image; the interior is always fully
    # rewritten before each 3x3 layer reads it, so one clear per step suffices.
    pbuf_ref[...] = jnp.zeros_like(pbuf_ref)

    # block1 (1x1) directly on the raw NHWC input tile.
    x0 = x_ref[0].reshape(H * W, x_ref.shape[-1])
    a1 = fused_1x1(x0, w1_ref, sb1_ref, act=True)
    to_haloed(a1, W)

    a2 = fused_3x3(w2_ref, sb2_ref)                                        # block2 (3x3)
    a3 = fused_1x1(a2, w3_ref, sb3_ref, act=True)                          # block3 (1x1)
    to_haloed(a3, Wp)

    a4 = fused_3x3(w4_ref, sb4_ref)                                        # block4 (3x3)
    a5 = fused_1x1(a4, w5_ref, sb5_ref, act=True)                          # block5 (1x1) = branch
    br_ref[0] = a5.reshape(H, Wp, a5.shape[-1]).astype(br_ref.dtype)
    to_haloed(a5, Wp)

    a6 = fused_3x3(w6_ref, sb6_ref)                                        # block6 (3x3)
    a7 = fused_1x1(a6, w7_ref, sb7_ref, act=False)                         # conv_out (1x1 + bias)
    out_ref[0] = a7.reshape(H, Wp, a7.shape[-1]).astype(out_ref.dtype)


# =============================================================================
# Forward wrapper (matches the PyTorch module: returns (x, branch) in NCHW)
# =============================================================================
@functools.partial(jax.jit, static_argnames=('hid',))
def detection_block_forward(x_nchw, params, *, hid):
    B, Cin, H, W = x_nchw.shape
    hid_p = params['b1']['w'].shape[-1]
    out_p = params['b2']['w'].shape[-1]
    nout_p = params['conv_out']['w'].shape[-1]
    Wp = _round_up(W + 2, 8)        # haloed width, padded to the sublane tile
    Hh = H + 3                      # top halo + image + bottom halo + 1 overrun row
    Mext = H * Wp

    # TODO(synk): the NCHW<->NHWC boundary transposes could be folded into the
    #             kernel DMAs; at these sizes they are negligible XLA copies.
    x_nhwc = jnp.transpose(x_nchw, (0, 2, 3, 1)).astype(jnp.bfloat16)

    args = [x_nhwc]
    in_specs = [pl.BlockSpec((1, H, W, Cin), lambda b: (b, 0, 0, 0))]
    for name in ('b1', 'b2', 'b3', 'b4', 'b5', 'b6', 'conv_out'):
        w, sb = params[name]['w'], params[name]['sb']
        if w.ndim == 3:   # 3x3 layer: (9, cin_p, cout_p), constant index => DMA'd once
            in_specs.append(pl.BlockSpec(w.shape, lambda b: (0, 0, 0)))
        else:             # 1x1 layer: (cin_p, cout_p)
            in_specs.append(pl.BlockSpec(w.shape, lambda b: (0, 0)))
        in_specs.append(pl.BlockSpec(sb.shape, lambda b: (0, 0)))
        args += [w, sb]

    out_ext, br_ext = pl.pallas_call(
        functools.partial(_detection_block_kernel, H=H, W=W, Wp=Wp),
        out_shape=(jax.ShapeDtypeStruct((B, H, Wp, nout_p), jnp.float32),
                   jax.ShapeDtypeStruct((B, H, Wp, hid_p), jnp.float32)),
        grid_spec=pltpu.PrefetchScalarGridSpec(
            num_scalar_prefetch=0,
            grid=(B,),
            in_specs=in_specs,
            out_specs=[pl.BlockSpec((1, H, Wp, nout_p), lambda b: (b, 0, 0, 0)),
                       pl.BlockSpec((1, H, Wp, hid_p), lambda b: (b, 0, 0, 0))],
            scratch_shapes=[pltpu.VMEM((Hh, Wp, hid_p), jnp.bfloat16),
                            pltpu.VMEM((Mext, out_p), jnp.float32)],
        ),
        compiler_params=pltpu.CompilerParams(
            dimension_semantics=("parallel",)),   # B>=2 => both v7x TensorCores
    )(*args)

    out = jnp.transpose(out_ext[:, :, :W, :LAST_LAYER_DIM], (0, 3, 1, 2))
    branch = jnp.transpose(br_ext[:, :, :W, :hid], (0, 3, 1, 2))
    return out.astype(jnp.float32), branch.astype(jnp.float32)


# =============================================================================
# Deterministic synthetic parameter construction (no checkpoint loading).
# Weights are channel-padded ONCE here, so the forward path never pads.
# =============================================================================
class ParamGen:
    def __init__(self, seed):
        self._key = jax.random.PRNGKey(seed)

    def next(self):
        self._key, k = jax.random.split(self._key)
        return k


def _convblock_params(pg, cin, cout, k, cin_pad, cout_pad):
    """Conv2d(bias=False) + folded eval-mode BN + LeakyReLU(0.1)."""
    fan_in = cin * k * k
    std = math.sqrt(2.0 / fan_in)                       # ~kaiming_normal_
    w = std * jax.random.normal(pg.next(), (k * k, cin, cout), jnp.float32)
    gamma = 1.0 + 0.02 * jax.random.normal(pg.next(), (cout,), jnp.float32)
    scale = gamma / jnp.sqrt(1.0 + BN_EPS)              # BN fold (eval mode)
    bias = jnp.zeros((cout,), jnp.float32)
    w = jnp.pad(w, ((0, 0), (0, cin_pad - cin), (0, cout_pad - cout)))
    sb = jnp.stack([jnp.pad(scale, (0, cout_pad - cout)),
                    jnp.pad(bias, (0, cout_pad - cout))])        # (2, cout_pad)
    if k == 1:
        w = w[0]
    return dict(w=w.astype(jnp.bfloat16), sb=sb)


def _conv_out_params(pg, cin, cout, cin_pad, cout_pad):
    """Detection-head 1x1 Conv2d with bias, no BN/activation."""
    std = 1e-2 / math.sqrt(cin)
    w = std * jax.random.normal(pg.next(), (cin, cout), jnp.float32)
    bound = 1.0 / math.sqrt(cin)
    b = jax.random.uniform(pg.next(), (cout,), jnp.float32, -bound, bound)
    w = jnp.pad(w, ((0, cin_pad - cin), (0, cout_pad - cout)))
    sb = jnp.stack([jnp.pad(jnp.ones((cout,), jnp.float32), (0, cout_pad - cout)),
                    jnp.pad(b, (0, cout_pad - cout))])
    return dict(w=w.astype(jnp.bfloat16), sb=sb)


def build_detection_block_params(seed, in_dim, out_dim):
    assert out_dim % 2 == 0, f'The output dimension {out_dim} is not even'
    hid = out_dim // 2
    hid_p = _round_up(hid, 128)
    out_p = _round_up(out_dim, 128)
    nout_p = _round_up(LAST_LAYER_DIM, 128)
    pg = ParamGen(seed)
    return dict(
        b1=_convblock_params(pg, in_dim, hid, 1, in_dim, hid_p),
        b2=_convblock_params(pg, hid, out_dim, 3, hid_p, out_p),
        b3=_convblock_params(pg, out_dim, hid, 1, out_p, hid_p),
        b4=_convblock_params(pg, hid, out_dim, 3, hid_p, out_p),
        b5=_convblock_params(pg, out_dim, hid, 1, out_p, hid_p),
        b6=_convblock_params(pg, hid, out_dim, 3, hid_p, out_p),
        conv_out=_conv_out_params(pg, out_dim, LAST_LAYER_DIM, out_p, nout_p),
    )


# =============================================================================
if __name__ == "__main__":
    B, IN_DIM, OUT_DIM, H = 2, 256, 256, 8
    key = jax.random.PRNGKey(0)
    x = jax.random.normal(key, (B, IN_DIM, H, H), jnp.float32)       # NCHW
    params = build_detection_block_params(seed=0, in_dim=IN_DIM, out_dim=OUT_DIM)

    out, branch = detection_block_forward(x, params, hid=OUT_DIM // 2)
    out = jax.block_until_ready(out)
    branch = jax.block_until_ready(branch)

    assert out.shape == (B, LAST_LAYER_DIM, H, H), out.shape
    assert branch.shape == (B, OUT_DIM // 2, H, H), branch.shape
    assert bool(jnp.isfinite(out).all())
    assert bool(jnp.isfinite(branch).all())
    print("KERNEL_OK")
</pallas_src>

<mosaic_0001>
module attributes {stable_mosaic.version = 11 : i64} {
  func.func @_detection_block_kernel(%arg0: i32, %arg1: memref<1x8x8x256xbf16, #tpu.memory_space<vmem>>, %arg2: memref<256x128xbf16, #tpu.memory_space<vmem>>, %arg3: memref<2x128xf32, #tpu.memory_space<vmem>>, %arg4: memref<9x128x256xbf16, #tpu.memory_space<vmem>>, %arg5: memref<2x256xf32, #tpu.memory_space<vmem>>, %arg6: memref<256x128xbf16, #tpu.memory_space<vmem>>, %arg7: memref<2x128xf32, #tpu.memory_space<vmem>>, %arg8: memref<9x128x256xbf16, #tpu.memory_space<vmem>>, %arg9: memref<2x256xf32, #tpu.memory_space<vmem>>, %arg10: memref<256x128xbf16, #tpu.memory_space<vmem>>, %arg11: memref<2x128xf32, #tpu.memory_space<vmem>>, %arg12: memref<9x128x256xbf16, #tpu.memory_space<vmem>>, %arg13: memref<2x256xf32, #tpu.memory_space<vmem>>, %arg14: memref<256x256xbf16, #tpu.memory_space<vmem>>, %arg15: memref<2x256xf32, #tpu.memory_space<vmem>>, %arg16: memref<1x8x16x256xf32, #tpu.memory_space<vmem>>, %arg17: memref<1x8x16x128xf32, #tpu.memory_space<vmem>>, %arg18: memref<11x16x128xbf16, #tpu.memory_space<vmem>>, %arg19: memref<128x256xf32, #tpu.memory_space<vmem>>) attributes {dimension_semantics = [#tpu.dimension_semantics<parallel>], iteration_bounds = array<i64: 2>, scalar_prefetch = 0 : i64, scratch_operands = 2 : i64, tpu.core_type = #tpu.core_type<tc>, window_params = [{transform_indices = @transform_0, window_bounds = array<i64: 1, 8, 8, 256>}, {pipeline_mode = #tpu.pipeline_mode<synchronous>, transform_indices = @transform_1, window_bounds = array<i64: 256, 128>}, {pipeline_mode = #tpu.pipeline_mode<synchronous>, transform_indices = @transform_2, window_bounds = array<i64: 2, 128>}, {pipeline_mode = #tpu.pipeline_mode<synchronous>, transform_indices = @transform_3, window_bounds = array<i64: 9, 128, 256>}, {pipeline_mode = #tpu.pipeline_mode<synchronous>, transform_indices = @transform_4, window_bounds = array<i64: 2, 256>}, {pipeline_mode = #tpu.pipeline_mode<synchronous>, transform_indices = @transform_5, window_bounds = array<i64: 256, 128>}, {pipeline_mode = #tpu.pipeline_mode<synchronous>, transform_indices = @transform_6, window_bounds = array<i64: 2, 128>}, {pipeline_mode = #tpu.pipeline_mode<synchronous>, transform_indices = @transform_7, window_bounds = array<i64: 9, 128, 256>}, {pipeline_mode = #tpu.pipeline_mode<synchronous>, transform_indices = @transform_8, window_bounds = array<i64: 2, 256>}, {pipeline_mode = #tpu.pipeline_mode<synchronous>, transform_indices = @transform_9, window_bounds = array<i64: 256, 128>}, {pipeline_mode = #tpu.pipeline_mode<synchronous>, transform_indices = @transform_10, window_bounds = array<i64: 2, 128>}, {pipeline_mode = #tpu.pipeline_mode<synchronous>, transform_indices = @transform_11, window_bounds = array<i64: 9, 128, 256>}, {pipeline_mode = #tpu.pipeline_mode<synchronous>, transform_indices = @transform_12, window_bounds = array<i64: 2, 256>}, {pipeline_mode = #tpu.pipeline_mode<synchronous>, transform_indices = @transform_13, window_bounds = array<i64: 256, 256>}, {pipeline_mode = #tpu.pipeline_mode<synchronous>, transform_indices = @transform_14, window_bounds = array<i64: 2, 256>}, {transform_indices = @transform_15, window_bounds = array<i64: 1, 8, 16, 256>}, {transform_indices = @transform_16, window_bounds = array<i64: 1, 8, 16, 128>}]} {
    %cst = arith.constant 0.000000e+00 : bf16
    %0 = vector.broadcast %cst : bf16 to vector<11x16x128xbf16>
    %c0 = arith.constant 0 : index
    %c0_0 = arith.constant 0 : index
    %c0_1 = arith.constant 0 : index
    %1 = vector.load %arg18[%c0, %c0_0, %c0_1] : memref<11x16x128xbf16, #tpu.memory_space<vmem>>, vector<11x16x128xbf16>
    tpu.vector_store %arg18[%c0, %c0_0, %c0_1], %0 {strides = array<i32>} : memref<11x16x128xbf16, #tpu.memory_space<vmem>>, vector<11x16x128xbf16>,
    %c0_2 = arith.constant 0 : index
    %c0_3 = arith.constant 0 : index
    %c0_4 = arith.constant 0 : index
    %c0_5 = arith.constant 0 : index
    %2 = vector.load %arg1[%c0_2, %c0_3, %c0_4, %c0_5] : memref<1x8x8x256xbf16, #tpu.memory_space<vmem>>, vector<1x8x8x256xbf16>
    %3 = vector.shape_cast %2 : vector<1x8x8x256xbf16> to vector<8x8x256xbf16>
    %4 = vector.shape_cast %3 : vector<8x8x256xbf16> to vector<64x256xbf16>
    %c0_6 = arith.constant 0 : index
    %c0_7 = arith.constant 0 : index
    %5 = vector.load %arg3[%c0_6, %c0_7] : memref<2x128xf32, #tpu.memory_space<vmem>>, vector<2x128xf32>
    %c0_8 = arith.constant 0 : index
    %c0_9 = arith.constant 0 : index
    %6 = vector.load %arg2[%c0_8, %c0_9] : memref<256x128xbf16, #tpu.memory_space<vmem>>, vector<256x128xbf16>
    %cst_10 = arith.constant dense<0.000000e+00> : vector<64x128xf32>
    %7 = tpu.matmul %4, %6, %cst_10 {dimension_numbers = #tpu.dot_dimension_numbers<[1], [0], [0], [1], [0, 0, 1, 1], [], []>} : vector<64x256xbf16>, vector<256x128xbf16>, vector<64x128xf32> -> vector<64x128xf32>
    %8 = vector.extract_strided_slice %5 {offsets = [0, 0], sizes = [1, 128], strides = [1, 1]} : vector<2x128xf32> to vector<1x128xf32>
    %9 = vector.broadcast %8 : vector<1x128xf32> to vector<64x128xf32>
    %10 = arith.mulf %7, %9 : vector<64x128xf32>
    %11 = vector.extract_strided_slice %5 {offsets = [1, 0], sizes = [1, 128], strides = [1, 1]} : vector<2x128xf32> to vector<1x128xf32>
    %12 = vector.broadcast %11 : vector<1x128xf32> to vector<64x128xf32>
    %13 = arith.addf %10, %12 : vector<64x128xf32>
    %cst_11 = arith.constant 0.000000e+00 : f32
    %14 = vector.broadcast %cst_11 : f32 to vector<64x128xf32>
    %15 = arith.cmpf oge, %13, %14 : vector<64x128xf32>
    %cst_12 = arith.constant 1.000000e-01 : f32
    %16 = vector.broadcast %cst_12 : f32 to vector<64x128xf32>
    %17 = arith.mulf %16, %13 : vector<64x128xf32>
    %18 = arith.select %15, %13, %17 : vector<64x128xi1>, vector<64x128xf32>
    %19 = vector.shape_cast %18 : vector<64x128xf32> to vector<8x8x128xf32>
    %20 = arith.truncf %19 : vector<8x8x128xf32> to vector<8x8x128xbf16>
    %c1 = arith.constant 1 : index
    %c1_13 = arith.constant 1 : index
    %c0_14 = arith.constant 0 : index
    %21 = vector.load %arg18[%c1, %c1_13, %c0_14] : memref<11x16x128xbf16, #tpu.memory_space<vmem>>, vector<8x8x128xbf16>
    tpu.vector_store %arg18[%c1, %c1_13, %c0_14], %20 {strides = array<i32>} : memref<11x16x128xbf16, #tpu.memory_space<vmem>>, vector<8x8x128xbf16>,
    %c0_15 = arith.constant 0 : index
    %c0_16 = arith.constant 0 : index
    %c0_17 = arith.constant 0 : index
    %22 = vector.load %arg18[%c0_15, %c0_16, %c0_17] : memref<11x16x128xbf16, #tpu.memory_space<vmem>>, vector<11x16x128xbf16>
    %23 = vector.shape_cast %22 : vector<11x16x128xbf16> to vector<176x128xbf16>
    %24 = vector.extract_strided_slice %23 {offsets = [0, 0], sizes = [128, 128], strides = [1, 1]} : vector<176x128xbf16> to vector<128x128xbf16>
    %c0_18 = arith.constant 0 : index
    %c0_19 = arith.constant 0 : index
    %c0_20 = arith.constant 0 : index
    %25 = vector.load %arg4[%c0_18, %c0_19, %c0_20] : memref<9x128x256xbf16, #tpu.memory_space<vmem>>, vector<1x128x256xbf16>
    %26 = vector.shape_cast %25 : vector<1x128x256xbf16> to vector<128x256xbf16>
    %cst_21 = arith.constant dense<0.000000e+00> : vector<128x256xf32>
    %27 = tpu.matmul %24, %26, %cst_21 {dimension_numbers = #tpu.dot_dimension_numbers<[1], [0], [0], [1], [0, 0, 1, 1], [], []>} : vector<128x128xbf16>, vector<128x256xbf16>, vector<128x256xf32> -> vector<128x256xf32>
    %c0_22 = arith.constant 0 : index
    %c0_23 = arith.constant 0 : index
    %28 = vector.load %arg19[%c0_22, %c0_23] : memref<128x256xf32, #tpu.memory_space<vmem>>, vector<128x256xf32>
    tpu.vector_store %arg19[%c0_22, %c0_23], %27 {strides = array<i32>} : memref<128x256xf32, #tpu.memory_space<vmem>>, vector<128x256xf32>,
    %29 = vector.extract_strided_slice %23 {offsets = [1, 0], sizes = [128, 128], strides = [1, 1]} : vector<176x128xbf16> to vector<128x128xbf16>
    %c1_24 = arith.constant 1 : index
    %c0_25 = arith.constant 0 : index
    %c0_26 = arith.constant 0 : index
    %30 = vector.load %arg4[%c1_24, %c0_25, %c0_26] : memref<9x128x256xbf16, #tpu.memory_space<vmem>>, vector<1x128x256xbf16>
    %31 = vector.shape_cast %30 : vector<1x128x256xbf16> to vector<128x256xbf16>
    %cst_27 = arith.constant dense<0.000000e+00> : vector<128x256xf32>
    %32 = tpu.matmul %29, %31, %cst_27 {dimension_numbers = #tpu.dot_dimension_numbers<[1], [0], [0], [1], [0, 0, 1, 1], [], []>} : vector<128x128xbf16>, vector<128x256xbf16>, vector<128x256xf32> -> vector<128x256xf32>
    %c0_28 = arith.constant 0 : index
    %c0_29 = arith.constant 0 : index
    %33 = vector.load %arg19[%c0_28, %c0_29] : memref<128x256xf32, #tpu.memory_space<vmem>>, vector<128x256xf32>
    %34 = arith.addf %33, %32 : vector<128x256xf32>
    %c0_30 = arith.constant 0 : index
    %c0_31 = arith.constant 0 : index
    %35 = vector.load %arg19[%c0_30, %c0_31] : memref<128x256xf32, #tpu.memory_space<vmem>>, vector<128x256xf32>
    tpu.vector_store %arg19[%c0_30, %c0_31], %34 {strides = array<i32>} : memref<128x256xf32, #tpu.memory_space<vmem>>, vector<128x256xf32>,
    %36 = vector.extract_strided_slice %23 {offsets = [2, 0], sizes = [128, 128], strides = [1, 1]} : vector<176x128xbf16> to vector<128x128xbf16>
    %c2 = arith.constant 2 : index
    %c0_32 = arith.constant 0 : index
    %c0_33 = arith.constant 0 : index
    %37 = vector.load %arg4[%c2, %c0_32, %c0_33] : memref<9x128x256xbf16, #tpu.memory_space<vmem>>, vector<1x128x256xbf16>
    %38 = vector.shape_cast %37 : vector<1x128x256xbf16> to vector<128x256xbf16>
    %cst_34 = arith.constant dense<0.000000e+00> : vector<128x256xf32>
    %39 = tpu.matmul %36, %38, %cst_34 {dimension_numbers = #tpu.dot_dimension_numbers<[1], [0], [0], [1], [0, 0, 1, 1], [], []>} : vector<128x128xbf16>, vector<128x256xbf16>, vector<128x256xf32> -> vector<128x256xf32>
    %c0_35 = arith.constant 0 : index
    %c0_36 = arith.constant 0 : index
    %40 = vector.load %arg19[%c0_35, %c0_36] : memref<128x256xf32, #tpu.memory_space<vmem>>, vector<128x256xf32>
    %41 = arith.addf %40, %39 : vector<128x256xf32>
    %c0_37 = arith.constant 0 : index
    %c0_38 = arith.constant 0 : index
    %42 = vector.load %arg19[%c0_37, %c0_38] : memref<128x256xf32, #tpu.memory_space<vmem>>, vector<128x256xf32>
    tpu.vector_store %arg19[%c0_37, %c0_38], %41 {strides = array<i32>} : memref<128x256xf32, #tpu.memory_space<vmem>>, vector<128x256xf32>,
    %43 = vector.extract_strided_slice %23 {offsets = [16, 0], sizes = [128, 128], strides = [1, 1]} : vector<176x128xbf16> to vector<128x128xbf16>
    %c3 = arith.constant 3 : index
    %c0_39 = arith.constant 0 : index
    %c0_40 = arith.constant 0 : index
    %44 = vector.load %arg4[%c3, %c0_39, %c0_40] : memref<9x128x256xbf16, #tpu.memory_space<vmem>>, vector<1x128x256xbf16>
    %45 = vector.shape_cast %44 : vector<1x128x256xbf16> to vector<128x256xbf16>
    %cst_41 = arith.constant dense<0.000000e+00> : vector<128x256xf32>
    %46 = tpu.matmul %43, %45, %cst_41 {dimension_numbers = #tpu.dot_dimension_numbers<[1], [0], [0], [1], [0, 0, 1, 1], [], []>} : vector<128x128xbf16>, vector<128x256xbf16>, vector<128x256xf32> -> vector<128x256xf32>
    %c0_42 = arith.constant 0 : index
    %c0_43 = arith.constant 0 : index
    %47 = vector.load %arg19[%c0_42, %c0_43] : memref<128x256xf32, #tpu.memory_space<vmem>>, vector<128x256xf32>
    %48 = arith.addf %47, %46 : vector<128x256xf32>
    %c0_44 = arith.constant 0 : index
    %c0_45 = arith.constant 0 : index
    %49 = vector.load %arg19[%c0_44, %c0_45] : memref<128x256xf32, #tpu.memory_space<vmem>>, vector<128x256xf32>
    tpu.vector_store %arg19[%c0_44, %c0_45], %48 {strides = array<i32>} : memref<128x256xf32, #tpu.memory_space<vmem>>, vector<128x256xf32>,
    %50 = vector.extract_strided_slice %23 {offsets = [17, 0], sizes = [128, 128], strides = [1, 1]} : vector<176x128xbf16> to vector<128x128xbf16>
    %c4 = arith.constant 4 : index
    %c0_46 = arith.constant 0 : index
    %c0_47 = arith.constant 0 : index
    %51 = vector.load %arg4[%c4, %c0_46, %c0_47] : memref<9x128x256xbf16, #tpu.memory_space<vmem>>, vector<1x128x256xbf16>
    %52 = vector.shape_cast %51 : vector<1x128x256xbf16> to vector<128x256xbf16>
    %cst_48 = arith.constant dense<0.000000e+00> : vector<128x256xf32>
    %53 = tpu.matmul %50, %52, %cst_48 {dimension_numbers = #tpu.dot_dimension_numbers<[1], [0], [0], [1], [0, 0, 1, 1], [], []>} : vector<128x128xbf16>, vector<128x256xbf16>, vector<128x256xf32> -> vector<128x256xf32>
    %c0_49 = arith.constant 0 : index
    %c0_50 = arith.constant 0 : index
    %54 = vector.load %arg19[%c0_49, %c0_50] : memref<128x256xf32, #tpu.memory_space<vmem>>, vector<128x256xf32>
    %55 = arith.addf %54, %53 : vector<128x256xf32>
    %c0_51 = arith.constant 0 : index
    %c0_52 = arith.constant 0 : index
    %56 = vector.load %arg19[%c0_51, %c0_52] : memref<128x256xf32, #tpu.memory_space<vmem>>, vector<128x256xf32>
    tpu.vector_store %arg19[%c0_51, %c0_52], %55 {strides = array<i32>} : memref<128x256xf32, #tpu.memory_space<vmem>>, vector<128x256xf32>,
    %57 = vector.extract_strided_slice %23 {offsets = [18, 0], sizes = [128, 128], strides = [1, 1]} : vector<176x128xbf16> to vector<128x128xbf16>
    %c5 = arith.constant 5 : index
    %c0_53 = arith.constant 0 : index
    %c0_54 = arith.constant 0 : index
    %58 = vector.load %arg4[%c5, %c0_53, %c0_54] : memref<9x128x256xbf16, #tpu.memory_space<vmem>>, vector<1x128x256xbf16>
    %59 = vector.shape_cast %58 : vector<1x128x256xbf16> to vector<128x256xbf16>
    %cst_55 = arith.constant dense<0.000000e+00> : vector<128x256xf32>
    %60 = tpu.matmul %57, %59, %cst_55 {dimension_numbers = #tpu.dot_dimension_numbers<[1], [0], [0], [1], [0, 0, 1, 1], [], []>} : vector<128x128xbf16>, vector<128x256xbf16>, vector<128x256xf32> -> vector<128x256xf32>
    %c0_56 = arith.constant 0 : index
    %c0_57 = arith.constant 0 : index
    %61 = vector.load %arg19[%c0_56, %c0_57] : memref<128x256xf32, #tpu.memory_space<vmem>>, vector<128x256xf32>
    %62 = arith.addf %61, %60 : vector<128x256xf32>
    %c0_58 = arith.constant 0 : index
    %c0_59 = arith.constant 0 : index
    %63 = vector.load %arg19[%c0_58, %c0_59] : memref<128x256xf32, #tpu.memory_space<vmem>>, vector<128x256xf32>
    tpu.vector_store %arg19[%c0_58, %c0_59], %62 {strides = array<i32>} : memref<128x256xf32, #tpu.memory_space<vmem>>, vector<128x256xf32>,
    %64 = vector.extract_strided_slice %23 {offsets = [32, 0], sizes = [128, 128], strides = [1, 1]} : vector<176x128xbf16> to vector<128x128xbf16>
    %c6 = arith.constant 6 : index
    %c0_60 = arith.constant 0 : index
    %c0_61 = arith.constant 0 : index
    %65 = vector.load %arg4[%c6, %c0_60, %c0_61] : memref<9x128x256xbf16, #tpu.memory_space<vmem>>, vector<1x128x256xbf16>
    %66 = vector.shape_cast %65 : vector<1x128x256xbf16> to vector<128x256xbf16>
    %cst_62 = arith.constant dense<0.000000e+00> : vector<128x256xf32>
    %67 = tpu.matmul %64, %66, %cst_62 {dimension_numbers = #tpu.dot_dimension_numbers<[1], [0], [0], [1], [0, 0, 1, 1], [], []>} : vector<128x128xbf16>, vector<128x256xbf16>, vector<128x256xf32> -> vector<128x256xf32>
    %c0_63 = arith.constant 0 : index
    %c0_64 = arith.constant 0 : index
    %68 = vector.load %arg19[%c0_63, %c0_64] : memref<128x256xf32, #tpu.memory_space<vmem>>, vector<128x256xf32>
    %69 = arith.addf %68, %67 : vector<128x256xf32>
    %c0_65 = arith.constant 0 : index
    %c0_66 = arith.constant 0 : index
    %70 = vector.load %arg19[%c0_65, %c0_66] : memref<128x256xf32, #tpu.memory_space<vmem>>, vector<128x256xf32>
    tpu.vector_store %arg19[%c0_65, %c0_66], %69 {strides = array<i32>} : memref<128x256xf32, #tpu.memory_space<vmem>>, vector<128x256xf32>,
    %71 = vector.extract_strided_slice %23 {offsets = [33, 0], sizes = [128, 128], strides = [1, 1]} : vector<176x128xbf16> to vector<128x128xbf16>
    %c7 = arith.constant 7 : index
    %c0_67 = arith.constant 0 : index
    %c0_68 = arith.constant 0 : index
    %72 = vector.load %arg4[%c7, %c0_67, %c0_68] : memref<9x128x256xbf16, #tpu.memory_space<vmem>>, vector<1x128x256xbf16>
    %73 = vector.shape_cast %72 : vector<1x128x256xbf16> to vector<128x256xbf16>
    %cst_69 = arith.constant dense<0.000000e+00> : vector<128x256xf32>
    %74 = tpu.matmul %71, %73, %cst_69 {dimension_numbers = #tpu.dot_dimension_numbers<[1], [0], [0], [1], [0, 0, 1, 1], [], []>} : vector<128x128xbf16>, vector<128x256xbf16>, vector<128x256xf32> -> vector<128x256xf32>
    %c0_70 = arith.constant 0 : index
    %c0_71 = arith.constant 0 : index
    %75 = vector.load %arg19[%c0_70, %c0_71] : memref<128x256xf32, #tpu.memory_space<vmem>>, vector<128x256xf32>
    %76 = arith.addf %75, %74 : vector<128x256xf32>
    %c0_72 = arith.constant 0 : index
    %c0_73 = arith.constant 0 : index
    %77 = vector.load %arg19[%c0_72, %c0_73] : memref<128x256xf32, #tpu.memory_space<vmem>>, vector<128x256xf32>
    tpu.vector_store %arg19[%c0_72, %c0_73], %76 {strides = array<i32>} : memref<128x256xf32, #tpu.memory_space<vmem>>, vector<128x256xf32>,
    %78 = vector.extract_strided_slice %23 {offsets = [34, 0], sizes = [128, 128], strides = [1, 1]} : vector<176x128xbf16> to vector<128x128xbf16>
    %c8 = arith.constant 8 : index
    %c0_74 = arith.constant 0 : index
    %c0_75 = arith.constant 0 : index
    %79 = vector.load %arg4[%c8, %c0_74, %c0_75] : memref<9x128x256xbf16, #tpu.memory_space<vmem>>, vector<1x128x256xbf16>
    %80 = vector.shape_cast %79 : vector<1x128x256xbf16> to vector<128x256xbf16>
    %cst_76 = arith.constant dense<0.000000e+00> : vector<128x256xf32>
    %81 = tpu.matmul %78, %80, %cst_76 {dimension_numbers = #tpu.dot_dimension_numbers<[1], [0], [0], [1], [0, 0, 1, 1], [], []>} : vector<128x128xbf16>, vector<128x256xbf16>, vector<128x256xf32> -> vector<128x256xf32>
    %c0_77 = arith.constant 0 : index
    %c0_78 = arith.constant 0 : index
    %82 = vector.load %arg19[%c0_77, %c0_78] : memref<128x256xf32, #tpu.memory_space<vmem>>, vector<128x256xf32>
    %83 = arith.addf %82, %81 : vector<128x256xf32>
    %c0_79 = arith.constant 0 : index
    %c0_80 = arith.constant 0 : index
    %84 = vector.load %arg19[%c0_79, %c0_80] : memref<128x256xf32, #tpu.memory_space<vmem>>, vector<128x256xf32>
    tpu.vector_store %arg19[%c0_79, %c0_80], %83 {strides = array<i32>} : memref<128x256xf32, #tpu.memory_space<vmem>>, vector<128x256xf32>,
    %c0_81 = arith.constant 0 : index
    %c0_82 = arith.constant 0 : index
    %85 = vector.load %arg5[%c0_81, %c0_82] : memref<2x256xf32, #tpu.memory_space<vmem>>, vector<2x256xf32>
    %c0_83 = arith.constant 0 : index
    %c0_84 = arith.constant 0 : index
    %86 = vector.load %arg19[%c0_83, %c0_84] : memref<128x256xf32, #tpu.memory_space<vmem>>, vector<128x256xf32>
    %87 = vector.extract_strided_slice %85 {offsets = [0, 0], sizes = [1, 256], strides = [1, 1]} : vector<2x256xf32> to vector<1x256xf32>
    %88 = vector.broadcast %87 : vector<1x256xf32> to vector<128x256xf32>
    %89 = arith.mulf %86, %88 : vector<128x256xf32>
    %90 = vector.extract_strided_slice %85 {offsets = [1, 0], sizes = [1, 256], strides = [1, 1]} : vector<2x256xf32> to vector<1x256xf32>
    %91 = vector.broadcast %90 : vector<1x256xf32> to vector<128x256xf32>
    %92 = arith.addf %89, %91 : vector<128x256xf32>
    %cst_85 = arith.constant 0.000000e+00 : f32
    %93 = vector.broadcast %cst_85 : f32 to vector<128x256xf32>
    %94 = arith.cmpf oge, %92, %93 : vector<128x256xf32>
    %cst_86 = arith.constant 1.000000e-01 : f32
    %95 = vector.broadcast %cst_86 : f32 to vector<128x256xf32>
    %96 = arith.mulf %95, %92 : vector<128x256xf32>
    %97 = arith.select %94, %92, %96 : vector<128x256xi1>, vector<128x256xf32>
    %98 = arith.truncf %97 : vector<128x256xf32> to vector<128x256xbf16>
    %c0_87 = arith.constant 0 : index
    %c0_88 = arith.constant 0 : index
    %99 = vector.load %arg7[%c0_87, %c0_88] : memref<2x128xf32, #tpu.memory_space<vmem>>, vector<2x128xf32>
    %c0_89 = arith.constant 0 : index
    %c0_90 = arith.constant 0 : index
    %100 = vector.load %arg6[%c0_89, %c0_90] : memref<256x128xbf16, #tpu.memory_space<vmem>>, vector<256x128xbf16>
    %cst_91 = arith.constant dense<0.000000e+00> : vector<128x128xf32>
    %101 = tpu.matmul %98, %100, %cst_91 {dimension_numbers = #tpu.dot_dimension_numbers<[1], [0], [0], [1], [0, 0, 1, 1], [], []>} : vector<128x256xbf16>, vector<256x128xbf16>, vector<128x128xf32> -> vector<128x128xf32>
    %102 = vector.extract_strided_slice %99 {offsets = [0, 0], sizes = [1, 128], strides = [1, 1]} : vector<2x128xf32> to vector<1x128xf32>
    %103 = vector.broadcast %102 : vector<1x128xf32> to vector<128x128xf32>
    %104 = arith.mulf %101, %103 : vector<128x128xf32>
    %105 = vector.extract_strided_slice %99 {offsets = [1, 0], sizes = [1, 128], strides = [1, 1]} : vector<2x128xf32> to vector<1x128xf32>
    %106 = vector.broadcast %105 : vector<1x128xf32> to vector<128x128xf32>
    %107 = arith.addf %104, %106 : vector<128x128xf32>
    %cst_92 = arith.constant 0.000000e+00 : f32
    %108 = vector.broadcast %cst_92 : f32 to vector<128x128xf32>
    %109 = arith.cmpf oge, %107, %108 : vector<128x128xf32>
    %cst_93 = arith.constant 1.000000e-01 : f32
    %110 = vector.broadcast %cst_93 : f32 to vector<128x128xf32>
    %111 = arith.mulf %110, %107 : vector<128x128xf32>
    %112 = arith.select %109, %107, %111 : vector<128x128xi1>, vector<128x128xf32>
    %113 = vector.shape_cast %112 : vector<128x128xf32> to vector<8x16x128xf32>
    %114 = vector.extract_strided_slice %113 {offsets = [0, 0, 0], sizes = [8, 8, 128], strides = [1, 1, 1]} : vector<8x16x128xf32> to vector<8x8x128xf32>
    %115 = arith.truncf %114 : vector<8x8x128xf32> to vector<8x8x128xbf16>
    %c1_94 = arith.constant 1 : index
    %c1_95 = arith.constant 1 : index
    %c0_96 = arith.constant 0 : index
    %116 = vector.load %arg18[%c1_94, %c1_95, %c0_96] : memref<11x16x128xbf16, #tpu.memory_space<vmem>>, vector<8x8x128xbf16>
    tpu.vector_store %arg18[%c1_94, %c1_95, %c0_96], %115 {strides = array<i32>} : memref<11x16x128xbf16, #tpu.memory_space<vmem>>, vector<8x8x128xbf16>,
    %c0_97 = arith.constant 0 : index
    %c0_98 = arith.constant 0 : index
    %c0_99 = arith.constant 0 : index
    %117 = vector.load %arg18[%c0_97, %c0_98, %c0_99] : memref<11x16x128xbf16, #tpu.memory_space<vmem>>, vector<11x16x128xbf16>
    %118 = vector.shape_cast %117 : vector<11x16x128xbf16> to vector<176x128xbf16>
    %119 = vector.extract_strided_slice %118 {offsets = [0, 0], sizes = [128, 128], strides = [1, 1]} : vector<176x128xbf16> to vector<128x128xbf16>
    %c0_100 = arith.constant 0 : index
    %c0_101 = arith.constant 0 : index
    %c0_102 = arith.constant 0 : index
    %120 = vector.load %arg8[%c0_100, %c0_101, %c0_102] : memref<9x128x256xbf16, #tpu.memory_space<vmem>>, vector<1x128x256xbf16>
    %121 = vector.shape_cast %120 : vector<1x128x256xbf16> to vector<128x256xbf16>
    %cst_103 = arith.constant dense<0.000000e+00> : vector<128x256xf32>
    %122 = tpu.matmul %119, %121, %cst_103 {dimension_numbers = #tpu.dot_dimension_numbers<[1], [0], [0], [1], [0, 0, 1, 1], [], []>} : vector<128x128xbf16>, vector<128x256xbf16>, vector<128x256xf32> -> vector<128x256xf32>
    %c0_104 = arith.constant 0 : index
    %c0_105 = arith.constant 0 : index
    %123 = vector.load %arg19[%c0_104, %c0_105] : memref<128x256xf32, #tpu.memory_space<vmem>>, vector<128x256xf32>
    tpu.vector_store %arg19[%c0_104, %c0_105], %122 {strides = array<i32>} : memref<128x256xf32, #tpu.memory_space<vmem>>, vector<128x256xf32>,
    %124 = vector.extract_strided_slice %118 {offsets = [1, 0], sizes = [128, 128], strides = [1, 1]} : vector<176x128xbf16> to vector<128x128xbf16>
    %c1_106 = arith.constant 1 : index
    %c0_107 = arith.constant 0 : index
    %c0_108 = arith.constant 0 : index
    %125 = vector.load %arg8[%c1_106, %c0_107, %c0_108] : memref<9x128x256xbf16, #tpu.memory_space<vmem>>, vector<1x128x256xbf16>
    %126 = vector.shape_cast %125 : vector<1x128x256xbf16> to vector<128x256xbf16>
    %cst_109 = arith.constant dense<0.000000e+00> : vector<128x256xf32>
    %127 = tpu.matmul %124, %126, %cst_109 {dimension_numbers = #tpu.dot_dimension_numbers<[1], [0], [0], [1], [0, 0, 1, 1], [], []>} : vector<128x128xbf16>, vector<128x256xbf16>, vector<128x256xf32> -> vector<128x256xf32>
    %c0_110 = arith.constant 0 : index
    %c0_111 = arith.constant 0 : index
    %128 = vector.load %arg19[%c0_110, %c0_111] : memref<128x256xf32, #tpu.memory_space<vmem>>, vector<128x256xf32>
    %129 = arith.addf %128, %127 : vector<128x256xf32>
    %c0_112 = arith.constant 0 : index
    %c0_113 = arith.constant 0 : index
    %130 = vector.load %arg19[%c0_112, %c0_113] : memref<128x256xf32, #tpu.memory_space<vmem>>, vector<128x256xf32>
    tpu.vector_store %arg19[%c0_112, %c0_113], %129 {strides = array<i32>} : memref<128x256xf32, #tpu.memory_space<vmem>>, vector<128x256xf32>,
    %131 = vector.extract_strided_slice %118 {offsets = [2, 0], sizes = [128, 128], strides = [1, 1]} : vector<176x128xbf16> to vector<128x128xbf16>
    %c2_114 = arith.constant 2 : index
    %c0_115 = arith.constant 0 : index
    %c0_116 = arith.constant 0 : index
    %132 = vector.load %arg8[%c2_114, %c0_115, %c0_116] : memref<9x128x256xbf16, #tpu.memory_space<vmem>>, vector<1x128x256xbf16>
    %133 = vector.shape_cast %132 : vector<1x128x256xbf16> to vector<128x256xbf16>
    %cst_117 = arith.constant dense<0.000000e+00> : vector<128x256xf32>
    %134 = tpu.matmul %131, %133, %cst_117 {dimension_numbers = #tpu.dot_dimension_numbers<[1], [0], [0], [1], [0, 0, 1, 1], [], []>} : vector<128x128xbf16>, vector<128x256xbf16>, vector<128x256xf32> -> vector<128x256xf32>
    %c0_118 = arith.constant 0 : index
    %c0_119 = arith.constant 0 : index
    %135 = vector.load %arg19[%c0_118, %c0_119] : memref<128x256xf32, #tpu.memory_space<vmem>>, vector<128x256xf32>
    %136 = arith.addf %135, %134 : vector<128x256xf32>
    %c0_120 = arith.constant 0 : index
    %c0_121 = arith.constant 0 : index
    %137 = vector.load %arg19[%c0_120, %c0_121] : memref<128x256xf32, #tpu.memory_space<vmem>>, vector<128x256xf32>
    tpu.vector_store %arg19[%c0_120, %c0_121], %136 {strides = array<i32>} : memref<128x256xf32, #tpu.memory_space<vmem>>, vector<128x256xf32>,
    %138 = vector.extract_strided_slice %118 {offsets = [16, 0], sizes = [128, 128], strides = [1, 1]} : vector<176x128xbf16> to vector<128x128xbf16>
    %c3_122 = arith.constant 3 : index
    %c0_123 = arith.constant 0 : index
    %c0_124 = arith.constant 0 : index
    %139 = vector.load %arg8[%c3_122, %c0_123, %c0_124] : memref<9x128x256xbf16, #tpu.memory_space<vmem>>, vector<1x128x256xbf16>
    %140 = vector.shape_cast %139 : vector<1x128x256xbf16> to vector<128x256xbf16>
    %cst_125 = arith.constant dense<0.000000e+00> : vector<128x256xf32>
    %141 = tpu.matmul %138, %140, %cst_125 {dimension_numbers = #tpu.dot_dimension_numbers<[1], [0], [0], [1], [0, 0, 1, 1], [], []>} : vector<128x128xbf16>, vector<128x256xbf16>, vector<128x256xf32> -> vector<128x256xf32>
    %c0_126 = arith.constant 0 : index
    %c0_127 = arith.constant 0 : index
    %142 = vector.load %arg19[%c0_126, %c0_127] : memref<128x256xf32, #tpu.memory_space<vmem>>, vector<128x256xf32>
    %143 = arith.addf %142, %141 : vector<128x256xf32>
    %c0_128 = arith.constant 0 : index
    %c0_129 = arith.constant 0 : index
    %144 = vector.load %arg19[%c0_128, %c0_129] : memref<128x256xf32, #tpu.memory_space<vmem>>, vector<128x256xf32>
    tpu.vector_store %arg19[%c0_128, %c0_129], %143 {strides = array<i32>} : memref<128x256xf32, #tpu.memory_space<vmem>>, vector<128x256xf32>,
    %145 = vector.extract_strided_slice %118 {offsets = [17, 0], sizes = [128, 128], strides = [1, 1]} : vector<176x128xbf16> to vector<128x128xbf16>
    %c4_130 = arith.constant 4 : index
    %c0_131 = arith.constant 0 : index
    %c0_132 = arith.constant 0 : index
    %146 = vector.load %arg8[%c4_130, %c0_131, %c0_132] : memref<9x128x256xbf16, #tpu.memory_space<vmem>>, vector<1x128x256xbf16>
    %147 = vector.shape_cast %146 : vector<1x128x256xbf16> to vector<128x256xbf16>
    %cst_133 = arith.constant dense<0.000000e+00> : vector<128x256xf32>
    %148 = tpu.matmul %145, %147, %cst_133 {dimension_numbers = #tpu.dot_dimension_numbers<[1], [0], [0], [1], [0, 0, 1, 1], [], []>} : vector<128x128xbf16>, vector<128x256xbf16>, vector<128x256xf32> -> vector<128x256xf32>
    %c0_134 = arith.constant 0 : index
    %c0_135 = arith.constant 0 : index
    %149 = vector.load %arg19[%c0_134, %c0_135] : memref<128x256xf32, #tpu.memory_space<vmem>>, vector<128x256xf32>
    %150 = arith.addf %149, %148 : vector<128x256xf32>
    %c0_136 = arith.constant 0 : index
    %c0_137 = arith.constant 0 : index
    %151 = vector.load %arg19[%c0_136, %c0_137] : memref<128x256xf32, #tpu.memory_space<vmem>>, vector<128x256xf32>
    tpu.vector_store %arg19[%c0_136, %c0_137], %150 {strides = array<i32>} : memref<128x256xf32, #tpu.memory_space<vmem>>, vector<128x256xf32>,
    %152 = vector.extract_strided_slice %118 {offsets = [18, 0], sizes = [128, 128], strides = [1, 1]} : vector<176x128xbf16> to vector<128x128xbf16>
    %c5_138 = arith.constant 5 : index
    %c0_139 = arith.constant 0 : index
    %c0_140 = arith.constant 0 : index
    %153 = vector.load %arg8[%c5_138, %c0_139, %c0_140] : memref<9x128x256xbf16, #tpu.memory_space<vmem>>, vector<1x128x256xbf16>
    %154 = vector.shape_cast %153 : vector<1x128x256xbf16> to vector<128x256xbf16>
    %cst_141 = arith.constant dense<0.000000e+00> : vector<128x256xf32>
    %155 = tpu.matmul %152, %154, %cst_141 {dimension_numbers = #tpu.dot_dimension_numbers<[1], [0], [0], [1], [0, 0, 1, 1], [], []>} : vector<128x128xbf16>, vector<128x256xbf16>, vector<128x256xf32> -> vector<128x256xf32>
    %c0_142 = arith.constant 0 : index
    %c0_143 = arith.constant 0 : index
    %156 = vector.load %arg19[%c0_142, %c0_143] : memref<128x256xf32, #tpu.memory_space<vmem>>, vector<128x256xf32>
    %157 = arith.addf %156, %155 : vector<128x256xf32>
    %c0_144 = arith.constant 0 : index
    %c0_145 = arith.constant 0 : index
    %158 = vector.load %arg19[%c0_144, %c0_145] : memref<128x256xf32, #tpu.memory_space<vmem>>, vector<128x256xf32>
    tpu.vector_store %arg19[%c0_144, %c0_145], %157 {strides = array<i32>} : memref<128x256xf32, #tpu.memory_space<vmem>>, vector<128x256xf32>,
    %159 = vector.extract_strided_slice %118 {offsets = [32, 0], sizes = [128, 128], strides = [1, 1]} : vector<176x128xbf16> to vector<128x128xbf16>
    %c6_146 = arith.constant 6 : index
    %c0_147 = arith.constant 0 : index
    %c0_148 = arith.constant 0 : index
    %160 = vector.load %arg8[%c6_146, %c0_147, %c0_148] : memref<9x128x256xbf16, #tpu.memory_space<vmem>>, vector<1x128x256xbf16>
    %161 = vector.shape_cast %160 : vector<1x128x256xbf16> to vector<128x256xbf16>
    %cst_149 = arith.constant dense<0.000000e+00> : vector<128x256xf32>
    %162 = tpu.matmul %159, %161, %cst_149 {dimension_numbers = #tpu.dot_dimension_numbers<[1], [0], [0], [1], [0, 0, 1, 1], [], []>} : vector<128x128xbf16>, vector<128x256xbf16>, vector<128x256xf32> -> vector<128x256xf32>
    %c0_150 = arith.constant 0 : index
    %c0_151 = arith.constant 0 : index
    %163 = vector.load %arg19[%c0_150, %c0_151] : memref<128x256xf32, #tpu.memory_space<vmem>>, vector<128x256xf32>
    %164 = arith.addf %163, %162 : vector<128x256xf32>
    %c0_152 = arith.constant 0 : index
    %c0_153 = arith.constant 0 : index
    %165 = vector.load %arg19[%c0_152, %c0_153] : memref<128x256xf32, #tpu.memory_space<vmem>>, vector<128x256xf32>
    tpu.vector_store %arg19[%c0_152, %c0_153], %164 {strides = array<i32>} : memref<128x256xf32, #tpu.memory_space<vmem>>, vector<128x256xf32>,
    %166 = vector.extract_strided_slice %118 {offsets = [33, 0], sizes = [128, 128], strides = [1, 1]} : vector<176x128xbf16> to vector<128x128xbf16>
    %c7_154 = arith.constant 7 : index
    %c0_155 = arith.constant 0 : index
    %c0_156 = arith.constant 0 : index
    %167 = vector.load %arg8[%c7_154, %c0_155, %c0_156] : memref<9x128x256xbf16, #tpu.memory_space<vmem>>, vector<1x128x256xbf16>
    %168 = vector.shape_cast %167 : vector<1x128x256xbf16> to vector<128x256xbf16>
    %cst_157 = arith.constant dense<0.000000e+00> : vector<128x256xf32>
    %169 = tpu.matmul %166, %168, %cst_157 {dimension_numbers = #tpu.dot_dimension_numbers<[1], [0], [0], [1], [0, 0, 1, 1], [], []>} : vector<128x128xbf16>, vector<128x256xbf16>, vector<128x256xf32> -> vector<128x256xf32>
    %c0_158 = arith.constant 0 : index
    %c0_159 = arith.constant 0 : index
    %170 = vector.load %arg19[%c0_158, %c0_159] : memref<128x256xf32, #tpu.memory_space<vmem>>, vector<128x256xf32>
    %171 = arith.addf %170, %169 : vector<128x256xf32>
    %c0_160 = arith.constant 0 : index
    %c0_161 = arith.constant 0 : index
    %172 = vector.load %arg19[%c0_160, %c0_161] : memref<128x256xf32, #tpu.memory_space<vmem>>, vector<128x256xf32>
    tpu.vector_store %arg19[%c0_160, %c0_161], %171 {strides = array<i32>} : memref<128x256xf32, #tpu.memory_space<vmem>>, vector<128x256xf32>,
    %173 = vector.extract_strided_slice %118 {offsets = [34, 0], sizes = [128, 128], strides = [1, 1]} : vector<176x128xbf16> to vector<128x128xbf16>
    %c8_162 = arith.constant 8 : index
    %c0_163 = arith.constant 0 : index
    %c0_164 = arith.constant 0 : index
    %174 = vector.load %arg8[%c8_162, %c0_163, %c0_164] : memref<9x128x256xbf16, #tpu.memory_space<vmem>>, vector<1x128x256xbf16>
    %175 = vector.shape_cast %174 : vector<1x128x256xbf16> to vector<128x256xbf16>
    %cst_165 = arith.constant dense<0.000000e+00> : vector<128x256xf32>
    %176 = tpu.matmul %173, %175, %cst_165 {dimension_numbers = #tpu.dot_dimension_numbers<[1], [0], [0], [1], [0, 0, 1, 1], [], []>} : vector<128x128xbf16>, vector<128x256xbf16>, vector<128x256xf32> -> vector<128x256xf32>
    %c0_166 = arith.constant 0 : index
    %c0_167 = arith.constant 0 : index
    %177 = vector.load %arg19[%c0_166, %c0_167] : memref<128x256xf32, #tpu.memory_space<vmem>>, vector<128x256xf32>
    %178 = arith.addf %177, %176 : vector<128x256xf32>
    %c0_168 = arith.constant 0 : index
    %c0_169 = arith.constant 0 : index
    %179 = vector.load %arg19[%c0_168, %c0_169] : memref<128x256xf32, #tpu.memory_space<vmem>>, vector<128x256xf32>
    tpu.vector_store %arg19[%c0_168, %c0_169], %178 {strides = array<i32>} : memref<128x256xf32, #tpu.memory_space<vmem>>, vector<128x256xf32>,
    %c0_170 = arith.constant 0 : index
    %c0_171 = arith.constant 0 : index
    %180 = vector.load %arg9[%c0_170, %c0_171] : memref<2x256xf32, #tpu.memory_space<vmem>>, vector<2x256xf32>
    %c0_172 = arith.constant 0 : index
    %c0_173 = arith.constant 0 : index
    %181 = vector.load %arg19[%c0_172, %c0_173] : memref<128x256xf32, #tpu.memory_space<vmem>>, vector<128x256xf32>
    %182 = vector.extract_strided_slice %180 {offsets = [0, 0], sizes = [1, 256], strides = [1, 1]} : vector<2x256xf32> to vector<1x256xf32>
    %183 = vector.broadcast %182 : vector<1x256xf32> to vector<128x256xf32>
    %184 = arith.mulf %181, %183 : vector<128x256xf32>
    %185 = vector.extract_strided_slice %180 {offsets = [1, 0], sizes = [1, 256], strides = [1, 1]} : vector<2x256xf32> to vector<1x256xf32>
    %186 = vector.broadcast %185 : vector<1x256xf32> to vector<128x256xf32>
    %187 = arith.addf %184, %186 : vector<128x256xf32>
    %cst_174 = arith.constant 0.000000e+00 : f32
    %188 = vector.broadcast %cst_174 : f32 to vector<128x256xf32>
    %189 = arith.cmpf oge, %187, %188 : vector<128x256xf32>
    %cst_175 = arith.constant 1.000000e-01 : f32
    %190 = vector.broadcast %cst_175 : f32 to vector<128x256xf32>
    %191 = arith.mulf %190, %187 : vector<128x256xf32>
    %192 = arith.select %189, %187, %191 : vector<128x256xi1>, vector<128x256xf32>
    %193 = arith.truncf %192 : vector<128x256xf32> to vector<128x256xbf16>
    %c0_176 = arith.constant 0 : index
    %c0_177 = arith.constant 0 : index
    %194 = vector.load %arg11[%c0_176, %c0_177] : memref<2x128xf32, #tpu.memory_space<vmem>>, vector<2x128xf32>
    %c0_178 = arith.constant 0 : index
    %c0_179 = arith.constant 0 : index
    %195 = vector.load %arg10[%c0_178, %c0_179] : memref<256x128xbf16, #tpu.memory_space<vmem>>, vector<256x128xbf16>
    %cst_180 = arith.constant dense<0.000000e+00> : vector<128x128xf32>
    %196 = tpu.matmul %193, %195, %cst_180 {dimension_numbers = #tpu.dot_dimension_numbers<[1], [0], [0], [1], [0, 0, 1, 1], [], []>} : vector<128x256xbf16>, vector<256x128xbf16>, vector<128x128xf32> -> vector<128x128xf32>
    %197 = vector.extract_strided_slice %194 {offsets = [0, 0], sizes = [1, 128], strides = [1, 1]} : vector<2x128xf32> to vector<1x128xf32>
    %198 = vector.broadcast %197 : vector<1x128xf32> to vector<128x128xf32>
    %199 = arith.mulf %196, %198 : vector<128x128xf32>
    %200 = vector.extract_strided_slice %194 {offsets = [1, 0], sizes = [1, 128], strides = [1, 1]} : vector<2x128xf32> to vector<1x128xf32>
    %201 = vector.broadcast %200 : vector<1x128xf32> to vector<128x128xf32>
    %202 = arith.addf %199, %201 : vector<128x128xf32>
    %cst_181 = arith.constant 0.000000e+00 : f32
    %203 = vector.broadcast %cst_181 : f32 to vector<128x128xf32>
    %204 = arith.cmpf oge, %202, %203 : vector<128x128xf32>
    %cst_182 = arith.constant 1.000000e-01 : f32
    %205 = vector.broadcast %cst_182 : f32 to vector<128x128xf32>
    %206 = arith.mulf %205, %202 : vector<128x128xf32>
    %207 = arith.select %204, %202, %206 : vector<128x128xi1>, vector<128x128xf32>
    %208 = vector.shape_cast %207 : vector<128x128xf32> to vector<8x16x128xf32>
    %c0_183 = arith.constant 0 : index
    %c0_184 = arith.constant 0 : index
    %c0_185 = arith.constant 0 : index
    %c0_186 = arith.constant 0 : index
    %209 = vector.load %arg17[%c0_183, %c0_184, %c0_185, %c0_186] : memref<1x8x16x128xf32, #tpu.memory_space<vmem>>, vector<1x8x16x128xf32>
    %210 = vector.shape_cast %209 : vector<1x8x16x128xf32> to vector<8x16x128xf32>
    %211 = vector.shape_cast %208 : vector<8x16x128xf32> to vector<1x8x16x128xf32>
    tpu.vector_store %arg17[%c0_183, %c0_184, %c0_185, %c0_186], %211 {strides = array<i32>} : memref<1x8x16x128xf32, #tpu.memory_space<vmem>>, vector<1x8x16x128xf32>,
    %212 = vector.shape_cast %207 : vector<128x128xf32> to vector<8x16x128xf32>
    %213 = vector.extract_strided_slice %212 {offsets = [0, 0, 0], sizes = [8, 8, 128], strides = [1, 1, 1]} : vector<8x16x128xf32> to vector<8x8x128xf32>
    %214 = arith.truncf %213 : vector<8x8x128xf32> to vector<8x8x128xbf16>
    %c1_187 = arith.constant 1 : index
    %c1_188 = arith.constant 1 : index
    %c0_189 = arith.constant 0 : index
    %215 = vector.load %arg18[%c1_187, %c1_188, %c0_189] : memref<11x16x128xbf16, #tpu.memory_space<vmem>>, vector<8x8x128xbf16>
    tpu.vector_store %arg18[%c1_187, %c1_188, %c0_189], %214 {strides = array<i32>} : memref<11x16x128xbf16, #tpu.memory_space<vmem>>, vector<8x8x128xbf16>,
    %c0_190 = arith.constant 0 : index
    %c0_191 = arith.constant 0 : index
    %c0_192 = arith.constant 0 : index
    %216 = vector.load %arg18[%c0_190, %c0_191, %c0_192] : memref<11x16x128xbf16, #tpu.memory_space<vmem>>, vector<11x16x128xbf16>
    %217 = vector.shape_cast %216 : vector<11x16x128xbf16> to vector<176x128xbf16>
    %218 = vector.extract_strided_slice %217 {offsets = [0, 0], sizes = [128, 128], strides = [1, 1]} : vector<176x128xbf16> to vector<128x128xbf16>
    %c0_193 = arith.constant 0 : index
    %c0_194 = arith.constant 0 : index
    %c0_195 = arith.constant 0 : index
    %219 = vector.load %arg12[%c0_193, %c0_194, %c0_195] : memref<9x128x256xbf16, #tpu.memory_space<vmem>>, vector<1x128x256xbf16>
    %220 = vector.shape_cast %219 : vector<1x128x256xbf16> to vector<128x256xbf16>
    %cst_196 = arith.constant dense<0.000000e+00> : vector<128x256xf32>
    %221 = tpu.matmul %218, %220, %cst_196 {dimension_numbers = #tpu.dot_dimension_numbers<[1], [0], [0], [1], [0, 0, 1, 1], [], []>} : vector<128x128xbf16>, vector<128x256xbf16>, vector<128x256xf32> -> vector<128x256xf32>
    %c0_197 = arith.constant 0 : index
    %c0_198 = arith.constant 0 : index
    %222 = vector.load %arg19[%c0_197, %c0_198] : memref<128x256xf32, #tpu.memory_space<vmem>>, vector<128x256xf32>
    tpu.vector_store %arg19[%c0_197, %c0_198], %221 {strides = array<i32>} : memref<128x256xf32, #tpu.memory_space<vmem>>, vector<128x256xf32>,
    %223 = vector.extract_strided_slice %217 {offsets = [1, 0], sizes = [128, 128], strides = [1, 1]} : vector<176x128xbf16> to vector<128x128xbf16>
    %c1_199 = arith.constant 1 : index
    %c0_200 = arith.constant 0 : index
    %c0_201 = arith.constant 0 : index
    %224 = vector.load %arg12[%c1_199, %c0_200, %c0_201] : memref<9x128x256xbf16, #tpu.memory_space<vmem>>, vector<1x128x256xbf16>
    %225 = vector.shape_cast %224 : vector<1x128x256xbf16> to vector<128x256xbf16>
    %cst_202 = arith.constant dense<0.000000e+00> : vector<128x256xf32>
    %226 = tpu.matmul %223, %225, %cst_202 {dimension_numbers = #tpu.dot_dimension_numbers<[1], [0], [0], [1], [0, 0, 1, 1], [], []>} : vector<128x128xbf16>, vector<128x256xbf16>, vector<128x256xf32> -> vector<128x256xf32>
    %c0_203 = arith.constant 0 : index
    %c0_204 = arith.constant 0 : index
    %227 = vector.load %arg19[%c0_203, %c0_204] : memref<128x256xf32, #tpu.memory_space<vmem>>, vector<128x256xf32>
    %228 = arith.addf %227, %226 : vector<128x256xf32>
    %c0_205 = arith.constant 0 : index
    %c0_206 = arith.constant 0 : index
    %229 = vector.load %arg19[%c0_205, %c0_206] : memref<128x256xf32, #tpu.memory_space<vmem>>, vector<128x256xf32>
    tpu.vector_store %arg19[%c0_205, %c0_206], %228 {strides = array<i32>} : memref<128x256xf32, #tpu.memory_space<vmem>>, vector<128x256xf32>,
    %230 = vector.extract_strided_slice %217 {offsets = [2, 0], sizes = [128, 128], strides = [1, 1]} : vector<176x128xbf16> to vector<128x128xbf16>
    %c2_207 = arith.constant 2 : index
    %c0_208 = arith.constant 0 : index
    %c0_209 = arith.constant 0 : index
    %231 = vector.load %arg12[%c2_207, %c0_208, %c0_209] : memref<9x128x256xbf16, #tpu.memory_space<vmem>>, vector<1x128x256xbf16>
    %232 = vector.shape_cast %231 : vector<1x128x256xbf16> to vector<128x256xbf16>
    %cst_210 = arith.constant dense<0.000000e+00> : vector<128x256xf32>
    %233 = tpu.matmul %230, %232, %cst_210 {dimension_numbers = #tpu.dot_dimension_numbers<[1], [0], [0], [1], [0, 0, 1, 1], [], []>} : vector<128x128xbf16>, vector<128x256xbf16>, vector<128x256xf32> -> vector<128x256xf32>
    %c0_211 = arith.constant 0 : index
    %c0_212 = arith.constant 0 : index
    %234 = vector.load %arg19[%c0_211, %c0_212] : memref<128x256xf32, #tpu.memory_space<vmem>>, vector<128x256xf32>
    %235 = arith.addf %234, %233 : vector<128x256xf32>
    %c0_213 = arith.constant 0 : index
    %c0_214 = arith.constant 0 : index
    %236 = vector.load %arg19[%c0_213, %c0_214] : memref<128x256xf32, #tpu.memory_space<vmem>>, vector<128x256xf32>
    tpu.vector_store %arg19[%c0_213, %c0_214], %235 {strides = array<i32>} : memref<128x256xf32, #tpu.memory_space<vmem>>, vector<128x256xf32>,
    %237 = vector.extract_strided_slice %217 {offsets = [16, 0], sizes = [128, 128], strides = [1, 1]} : vector<176x128xbf16> to vector<128x128xbf16>
    %c3_215 = arith.constant 3 : index
    %c0_216 = arith.constant 0 : index
    %c0_217 = arith.constant 0 : index
    %238 = vector.load %arg12[%c3_215, %c0_216, %c0_217] : memref<9x128x256xbf16, #tpu.memory_space<vmem>>, vector<1x128x256xbf16>
    %239 = vector.shape_cast %238 : vector<1x128x256xbf16> to vector<128x256xbf16>
    %cst_218 = arith.constant dense<0.000000e+00> : vector<128x256xf32>
    %240 = tpu.matmul %237, %239, %cst_218 {dimension_numbers = #tpu.dot_dimension_numbers<[1], [0], [0], [1], [0, 0, 1, 1], [], []>} : vector<128x128xbf16>, vector<128x256xbf16>, vector<128x256xf32> -> vector<128x256xf32>
    %c0_219 = arith.constant 0 : index
    %c0_220 = arith.constant 0 : index
    %241 = vector.load %arg19[%c0_219, %c0_220] : memref<128x256xf32, #tpu.memory_space<vmem>>, vector<128x256xf32>
    %242 = arith.addf %241, %240 : vector<128x256xf32>
    %c0_221 = arith.constant 0 : index
    %c0_222 = arith.constant 0 : index
    %243 = vector.load %arg19[%c0_221, %c0_222] : memref<128x256xf32, #tpu.memory_space<vmem>>, vector<128x256xf32>
    tpu.vector_store %arg19[%c0_221, %c0_222], %242 {strides = array<i32>} : memref<128x256xf32, #tpu.memory_space<vmem>>, vector<128x256xf32>,
    %244 = vector.extract_strided_slice %217 {offsets = [17, 0], sizes = [128, 128], strides = [1, 1]} : vector<176x128xbf16> to vector<128x128xbf16>
    %c4_223 = arith.constant 4 : index
    %c0_224 = arith.constant 0 : index
    %c0_225 = arith.constant 0 : index
    %245 = vector.load %arg12[%c4_223, %c0_224, %c0_225] : memref<9x128x256xbf16, #tpu.memory_space<vmem>>, vector<1x128x256xbf16>
    %246 = vector.shape_cast %245 : vector<1x128x256xbf16> to vector<128x256xbf16>
    %cst_226 = arith.constant dense<0.000000e+00> : vector<128x256xf32>
    %247 = tpu.matmul %244, %246, %cst_226 {dimension_numbers = #tpu.dot_dimension_numbers<[1], [0], [0], [1], [0, 0, 1, 1], [], []>} : vector<128x128xbf16>, vector<128x256xbf16>, vector<128x256xf32> -> vector<128x256xf32>
    %c0_227 = arith.constant 0 : index
    %c0_228 = arith.constant 0 : index
    %248 = vector.load %arg19[%c0_227, %c0_228] : memref<128x256xf32, #tpu.memory_space<vmem>>, vector<128x256xf32>
    %249 = arith.addf %248, %247 : vector<128x256xf32>
    %c0_229 = arith.constant 0 : index
    %c0_230 = arith.constant 0 : index
    %250 = vector.load %arg19[%c0_229, %c0_230] : memref<128x256xf32, #tpu.memory_space<vmem>>, vector<128x256xf32>
    tpu.vector_store %arg19[%c0_229, %c0_230], %249 {strides = array<i32>} : memref<128x256xf32, #tpu.memory_space<vmem>>, vector<128x256xf32>,
    %251 = vector.extract_strided_slice %217 {offsets = [18, 0], sizes = [128, 128], strides = [1, 1]} : vector<176x128xbf16> to vector<128x128xbf16>
    %c5_231 = arith.constant 5 : index
    %c0_232 = arith.constant 0 : index
    %c0_233 = arith.constant 0 : index
    %252 = vector.load %arg12[%c5_231, %c0_232, %c0_233] : memref<9x128x256xbf16, #tpu.memory_space<vmem>>, vector<1x128x256xbf16>
    %253 = vector.shape_cast %252 : vector<1x128x256xbf16> to vector<128x256xbf16>
    %cst_234 = arith.constant dense<0.000000e+00> : vector<128x256xf32>
    %254 = tpu.matmul %251, %253, %cst_234 {dimension_numbers = #tpu.dot_dimension_numbers<[1], [0], [0], [1], [0, 0, 1, 1], [], []>} : vector<128x128xbf16>, vector<128x256xbf16>, vector<128x256xf32> -> vector<128x256xf32>
    %c0_235 = arith.constant 0 : index
    %c0_236 = arith.constant 0 : index
    %255 = vector.load %arg19[%c0_235, %c0_236] : memref<128x256xf32, #tpu.memory_space<vmem>>, vector<128x256xf32>
    %256 = arith.addf %255, %254 : vector<128x256xf32>
    %c0_237 = arith.constant 0 : index
    %c0_238 = arith.constant 0 : index
    %257 = vector.load %arg19[%c0_237, %c0_238] : memref<128x256xf32, #tpu.memory_space<vmem>>, vector<128x256xf32>
    tpu.vector_store %arg19[%c0_237, %c0_238], %256 {strides = array<i32>} : memref<128x256xf32, #tpu.memory_space<vmem>>, vector<128x256xf32>,
    %258 = vector.extract_strided_slice %217 {offsets = [32, 0], sizes = [128, 128], strides = [1, 1]} : vector<176x128xbf16> to vector<128x128xbf16>
    %c6_239 = arith.constant 6 : index
    %c0_240 = arith.constant 0 : index
    %c0_241 = arith.constant 0 : index
    %259 = vector.load %arg12[%c6_239, %c0_240, %c0_241] : memref<9x128x256xbf16, #tpu.memory_space<vmem>>, vector<1x128x256xbf16>
    %260 = vector.shape_cast %259 : vector<1x128x256xbf16> to vector<128x256xbf16>
    %cst_242 = arith.constant dense<0.000000e+00> : vector<128x256xf32>
    %261 = tpu.matmul %258, %260, %cst_242 {dimension_numbers = #tpu.dot_dimension_numbers<[1], [0], [0], [1], [0, 0, 1, 1], [], []>} : vector<128x128xbf16>, vector<128x256xbf16>, vector<128x256xf32> -> vector<128x256xf32>
    %c0_243 = arith.constant 0 : index
    %c0_244 = arith.constant 0 : index
    %262 = vector.load %arg19[%c0_243, %c0_244] : memref<128x256xf32, #tpu.memory_space<vmem>>, vector<128x256xf32>
    %263 = arith.addf %262, %261 : vector<128x256xf32>
    %c0_245 = arith.constant 0 : index
    %c0_246 = arith.constant 0 : index
    %264 = vector.load %arg19[%c0_245, %c0_246] : memref<128x256xf32, #tpu.memory_space<vmem>>, vector<128x256xf32>
    tpu.vector_store %arg19[%c0_245, %c0_246], %263 {strides = array<i32>} : memref<128x256xf32, #tpu.memory_space<vmem>>, vector<128x256xf32>,
    %265 = vector.extract_strided_slice %217 {offsets = [33, 0], sizes = [128, 128], strides = [1, 1]} : vector<176x128xbf16> to vector<128x128xbf16>
    %c7_247 = arith.constant 7 : index
    %c0_248 = arith.constant 0 : index
    %c0_249 = arith.constant 0 : index
    %266 = vector.load %arg12[%c7_247, %c0_248, %c0_249] : memref<9x128x256xbf16, #tpu.memory_space<vmem>>, vector<1x128x256xbf16>
    %267 = vector.shape_cast %266 : vector<1x128x256xbf16> to vector<128x256xbf16>
    %cst_250 = arith.constant dense<0.000000e+00> : vector<128x256xf32>
    %268 = tpu.matmul %265, %267, %cst_250 {dimension_numbers = #tpu.dot_dimension_numbers<[1], [0], [0], [1], [0, 0, 1, 1], [], []>} : vector<128x128xbf16>, vector<128x256xbf16>, vector<128x256xf32> -> vector<128x256xf32>
    %c0_251 = arith.constant 0 : index
    %c0_252 = arith.constant 0 : index
    %269 = vector.load %arg19[%c0_251, %c0_252] : memref<128x256xf32, #tpu.memory_space<vmem>>, vector<128x256xf32>
    %270 = arith.addf %269, %268 : vector<128x256xf32>
    %c0_253 = arith.constant 0 : index
    %c0_254 = arith.constant 0 : index
    %271 = vector.load %arg19[%c0_253, %c0_254] : memref<128x256xf32, #tpu.memory_space<vmem>>, vector<128x256xf32>
    tpu.vector_store %arg19[%c0_253, %c0_254], %270 {strides = array<i32>} : memref<128x256xf32, #tpu.memory_space<vmem>>, vector<128x256xf32>,
    %272 = vector.extract_strided_slice %217 {offsets = [34, 0], sizes = [128, 128], strides = [1, 1]} : vector<176x128xbf16> to vector<128x128xbf16>
    %c8_255 = arith.constant 8 : index
    %c0_256 = arith.constant 0 : index
    %c0_257 = arith.constant 0 : index
    %273 = vector.load %arg12[%c8_255, %c0_256, %c0_257] : memref<9x128x256xbf16, #tpu.memory_space<vmem>>, vector<1x128x256xbf16>
    %274 = vector.shape_cast %273 : vector<1x128x256xbf16> to vector<128x256xbf16>
    %cst_258 = arith.constant dense<0.000000e+00> : vector<128x256xf32>
    %275 = tpu.matmul %272, %274, %cst_258 {dimension_numbers = #tpu.dot_dimension_numbers<[1], [0], [0], [1], [0, 0, 1, 1], [], []>} : vector<128x128xbf16>, vector<128x256xbf16>, vector<128x256xf32> -> vector<128x256xf32>
    %c0_259 = arith.constant 0 : index
    %c0_260 = arith.constant 0 : index
    %276 = vector.load %arg19[%c0_259, %c0_260] : memref<128x256xf32, #tpu.memory_space<vmem>>, vector<128x256xf32>
    %277 = arith.addf %276, %275 : vector<128x256xf32>
    %c0_261 = arith.constant 0 : index
    %c0_262 = arith.constant 0 : index
    %278 = vector.load %arg19[%c0_261, %c0_262] : memref<128x256xf32, #tpu.memory_space<vmem>>, vector<128x256xf32>
    tpu.vector_store %arg19[%c0_261, %c0_262], %277 {strides = array<i32>} : memref<128x256xf32, #tpu.memory_space<vmem>>, vector<128x256xf32>,
    %c0_263 = arith.constant 0 : index
    %c0_264 = arith.constant 0 : index
    %279 = vector.load %arg13[%c0_263, %c0_264] : memref<2x256xf32, #tpu.memory_space<vmem>>, vector<2x256xf32>
    %c0_265 = arith.constant 0 : index
    %c0_266 = arith.constant 0 : index
    %280 = vector.load %arg19[%c0_265, %c0_266] : memref<128x256xf32, #tpu.memory_space<vmem>>, vector<128x256xf32>
    %281 = vector.extract_strided_slice %279 {offsets = [0, 0], sizes = [1, 256], strides = [1, 1]} : vector<2x256xf32> to vector<1x256xf32>
    %282 = vector.broadcast %281 : vector<1x256xf32> to vector<128x256xf32>
    %283 = arith.mulf %280, %282 : vector<128x256xf32>
    %284 = vector.extract_strided_slice %279 {offsets = [1, 0], sizes = [1, 256], strides = [1, 1]} : vector<2x256xf32> to vector<1x256xf32>
    %285 = vector.broadcast %284 : vector<1x256xf32> to vector<128x256xf32>
    %286 = arith.addf %283, %285 : vector<128x256xf32>
    %cst_267 = arith.constant 0.000000e+00 : f32
    %287 = vector.broadcast %cst_267 : f32 to vector<128x256xf32>
    %288 = arith.cmpf oge, %286, %287 : vector<128x256xf32>
    %cst_268 = arith.constant 1.000000e-01 : f32
    %289 = vector.broadcast %cst_268 : f32 to vector<128x256xf32>
    %290 = arith.mulf %289, %286 : vector<128x256xf32>
    %291 = arith.select %288, %286, %290 : vector<128x256xi1>, vector<128x256xf32>
    %292 = arith.truncf %291 : vector<128x256xf32> to vector<128x256xbf16>
    %c0_269 = arith.constant 0 : index
    %c0_270 = arith.constant 0 : index
    %293 = vector.load %arg15[%c0_269, %c0_270] : memref<2x256xf32, #tpu.memory_space<vmem>>, vector<2x256xf32>
    %c0_271 = arith.constant 0 : index
    %c0_272 = arith.constant 0 : index
    %294 = vector.load %arg14[%c0_271, %c0_272] : memref<256x256xbf16, #tpu.memory_space<vmem>>, vector<256x256xbf16>
    %cst_273 = arith.constant dense<0.000000e+00> : vector<128x256xf32>
    %295 = tpu.matmul %292, %294, %cst_273 {dimension_numbers = #tpu.dot_dimension_numbers<[1], [0], [0], [1], [0, 0, 1, 1], [], []>} : vector<128x256xbf16>, vector<256x256xbf16>, vector<128x256xf32> -> vector<128x256xf32>
    %296 = vector.extract_strided_slice %293 {offsets = [0, 0], sizes = [1, 256], strides = [1, 1]} : vector<2x256xf32> to vector<1x256xf32>
    %297 = vector.broadcast %296 : vector<1x256xf32> to vector<128x256xf32>
    %298 = arith.mulf %295, %297 : vector<128x256xf32>
    %299 = vector.extract_strided_slice %293 {offsets = [1, 0], sizes = [1, 256], strides = [1, 1]} : vector<2x256xf32> to vector<1x256xf32>
    %300 = vector.broadcast %299 : vector<1x256xf32> to vector<128x256xf32>
    %301 = arith.addf %298, %300 : vector<128x256xf32>
    %302 = vector.shape_cast %301 : vector<128x256xf32> to vector<8x16x256xf32>
    %c0_274 = arith.constant 0 : index
    %c0_275 = arith.constant 0 : index
    %c0_276 = arith.constant 0 : index
    %c0_277 = arith.constant 0 : index
    %303 = vector.load %arg16[%c0_274, %c0_275, %c0_276, %c0_277] : memref<1x8x16x256xf32, #tpu.memory_space<vmem>>, vector<1x8x16x256xf32>
    %304 = vector.shape_cast %303 : vector<1x8x16x256xf32> to vector<8x16x256xf32>
    %305 = vector.shape_cast %302 : vector<8x16x256xf32> to vector<1x8x16x256xf32>
    tpu.vector_store %arg16[%c0_274, %c0_275, %c0_276, %c0_277], %305 {strides = array<i32>} : memref<1x8x16x256xf32, #tpu.memory_space<vmem>>, vector<1x8x16x256xf32>,
    return
  }
  func.func @transform_0(%arg0: i32) -> (i32, i32, i32, i32) {
    %c0_i32 = arith.constant 0 : i32
    %c0_i32_0 = arith.constant 0 : i32
    %c0_i32_1 = arith.constant 0 : i32
    %c0_i32_2 = arith.constant 0 : i32
    return %arg0, %c0_i32, %c0_i32_0, %c0_i32_1 : i32, i32, i32, i32
  }
  func.func @transform_1(%arg0: i32) -> (i32, i32) {
    %c0_i32 = arith.constant 0 : i32
    %c0_i32_0 = arith.constant 0 : i32
    %c0_i32_1 = arith.constant 0 : i32
    return %c0_i32, %c0_i32_0 : i32, i32
  }
  func.func @transform_2(%arg0: i32) -> (i32, i32) {
    %c0_i32 = arith.constant 0 : i32
    %c0_i32_0 = arith.constant 0 : i32
    %c0_i32_1 = arith.constant 0 : i32
    return %c0_i32, %c0_i32_0 : i32, i32
  }
  func.func @transform_3(%arg0: i32) -> (i32, i32, i32) {
    %c0_i32 = arith.constant 0 : i32
    %c0_i32_0 = arith.constant 0 : i32
    %c0_i32_1 = arith.constant 0 : i32
    %c0_i32_2 = arith.constant 0 : i32
    return %c0_i32, %c0_i32_0, %c0_i32_1 : i32, i32, i32
  }
  func.func @transform_4(%arg0: i32) -> (i32, i32) {
    %c0_i32 = arith.constant 0 : i32
    %c0_i32_0 = arith.constant 0 : i32
    %c0_i32_1 = arith.constant 0 : i32
    return %c0_i32, %c0_i32_0 : i32, i32
  }
  func.func @transform_5(%arg0: i32) -> (i32, i32) {
    %c0_i32 = arith.constant 0 : i32
    %c0_i32_0 = arith.constant 0 : i32
    %c0_i32_1 = arith.constant 0 : i32
    return %c0_i32, %c0_i32_0 : i32, i32
  }
  func.func @transform_6(%arg0: i32) -> (i32, i32) {
    %c0_i32 = arith.constant 0 : i32
    %c0_i32_0 = arith.constant 0 : i32
    %c0_i32_1 = arith.constant 0 : i32
    return %c0_i32, %c0_i32_0 : i32, i32
  }
  func.func @transform_7(%arg0: i32) -> (i32, i32, i32) {
    %c0_i32 = arith.constant 0 : i32
    %c0_i32_0 = arith.constant 0 : i32
    %c0_i32_1 = arith.constant 0 : i32
    %c0_i32_2 = arith.constant 0 : i32
    return %c0_i32, %c0_i32_0, %c0_i32_1 : i32, i32, i32
  }
  func.func @transform_8(%arg0: i32) -> (i32, i32) {
    %c0_i32 = arith.constant 0 : i32
    %c0_i32_0 = arith.constant 0 : i32
    %c0_i32_1 = arith.constant 0 : i32
    return %c0_i32, %c0_i32_0 : i32, i32
  }
  func.func @transform_9(%arg0: i32) -> (i32, i32) {
    %c0_i32 = arith.constant 0 : i32
    %c0_i32_0 = arith.constant 0 : i32
    %c0_i32_1 = arith.constant 0 : i32
    return %c0_i32, %c0_i32_0 : i32, i32
  }
  func.func @transform_10(%arg0: i32) -> (i32, i32) {
    %c0_i32 = arith.constant 0 : i32
    %c0_i32_0 = arith.constant 0 : i32
    %c0_i32_1 = arith.constant 0 : i32
    return %c0_i32, %c0_i32_0 : i32, i32
  }
  func.func @transform_11(%arg0: i32) -> (i32, i32, i32) {
    %c0_i32 = arith.constant 0 : i32
    %c0_i32_0 = arith.constant 0 : i32
    %c0_i32_1 = arith.constant 0 : i32
    %c0_i32_2 = arith.constant 0 : i32
    return %c0_i32, %c0_i32_0, %c0_i32_1 : i32, i32, i32
  }
  func.func @transform_12(%arg0: i32) -> (i32, i32) {
    %c0_i32 = arith.constant 0 : i32
    %c0_i32_0 = arith.constant 0 : i32
    %c0_i32_1 = arith.constant 0 : i32
    return %c0_i32, %c0_i32_0 : i32, i32
  }
  func.func @transform_13(%arg0: i32) -> (i32, i32) {
    %c0_i32 = arith.constant 0 : i32
    %c0_i32_0 = arith.constant 0 : i32
    %c0_i32_1 = arith.constant 0 : i32
    return %c0_i32, %c0_i32_0 : i32, i32
  }
  func.func @transform_14(%arg0: i32) -> (i32, i32) {
    %c0_i32 = arith.constant 0 : i32
    %c0_i32_0 = arith.constant 0 : i32
    %c0_i32_1 = arith.constant 0 : i32
    return %c0_i32, %c0_i32_0 : i32, i32
  }
  func.func @transform_15(%arg0: i32) -> (i32, i32, i32, i32) {
    %c0_i32 = arith.constant 0 : i32
    %c0_i32_0 = arith.constant 0 : i32
    %c0_i32_1 = arith.constant 0 : i32
    %c0_i32_2 = arith.constant 0 : i32
    return %arg0, %c0_i32, %c0_i32_0, %c0_i32_1 : i32, i32, i32, i32
  }
  func.func @transform_16(%arg0: i32) -> (i32, i32, i32, i32) {
    %c0_i32 = arith.constant 0 : i32
    %c0_i32_0 = arith.constant 0 : i32
    %c0_i32_1 = arith.constant 0 : i32
    %c0_i32_2 = arith.constant 0 : i32
    return %arg0, %c0_i32, %c0_i32_0, %c0_i32_1 : i32, i32, i32, i32
  }
}

</mosaic_0001>

<bundles_post_ra>
// kernel: detection_block_forward.1
= control target key start
LH: loop header
LB: loop body
LE: loop exit
PB: predicated region body
PF: predicated region fallthrough
CT: control target
= control target key end

     0   :  { %s16054_s0 = inlined_call_operand.vmem [shape: bf16[2,8,8,256], index: 0, kind: input, shape index: {}]   ;;  %s16055_s1 = inlined_call_operand.vmem [shape: bf16[256,128], index: 1, kind: input, shape index: {}]   ;;  %s16056_s2 = inlined_call_operand.vmem [shape: f32[2,128], index: 2, kind: input, shape index: {}]   ;;  %s16057_s3 = inlined_call_operand.hbm [shape: bf16[9,128,256], index: 3, kind: input, shape index: {}]   ;;  %s16058_s4 = inlined_call_operand.vmem [shape: f32[2,256], index: 4, kind: input, shape index: {}]   ;;  %s16059_s5 = inlined_call_operand.hbm [shape: bf16[256,128], index: 5, kind: input, shape index: {}]   ;;  %s16060_s6 = inlined_call_operand.vmem [shape: f32[2,128], index: 6, kind: input, shape index: {}]   ;;  %s16061_s7 = inlined_call_operand.hbm [shape: bf16[9,128,256], index: 7, kind: input, shape index: {}]   ;;  %s16062_s8 = inlined_call_operand.vmem [shape: f32[2,256], index: 8, kind: input, shape index: {}]   ;;  %s16063_s9 = inlined_call_operand.hbm [shape: bf16[256,128], index: 9, kind: input, shape index: {}]   ;;  %s16064_s10 = inlined_call_operand.vmem [shape: f32[2,128], index: 10, kind: input, shape index: {}]   ;;  %s16065_s11 = inlined_call_operand.hbm [shape: bf16[9,128,256], index: 11, kind: input, shape index: {}]   ;;  %s16066_s12 = inlined_call_operand.vmem [shape: f32[2,256], index: 12, kind: input, shape index: {}]   ;;  %s16067_s13 = inlined_call_operand.vmem [shape: bf16[256,256], index: 13, kind: input, shape index: {}]   ;;  %s16068_s14 = inlined_call_operand.vmem [shape: f32[2,256], index: 14, kind: input, shape index: {}]   ;;  %s16069_s15 = inlined_call_operand.vmem [shape: f32[2,8,16,256], index: 15, kind: output, shape index: {0}]   ;;  %s16070_s16 = inlined_call_operand.vmem [shape: f32[2,8,16,128], index: 16, kind: output, shape index: {1}]  }
   0x1   :  { %16074 = sst [smem:[#allocation16_spill]] %s16054_s0 }
   0x2   :  { %16075 = sst [smem:[#allocation17_spill]] %s16066_s12 }
   0x3   :  { %16076 = sst [smem:[#allocation18_spill]] %s16068_s14 }
   0x4   :  { %16077 = sst [smem:[#allocation19_spill]] %s16069_s15 }
   0x5   :  { %22 = vsyncpa [#allocation5], 0 }
   0x6   :  { %23 = vsyncpa [#allocation7], 0 }
   0x7   :  { %24 = vsyncpa [#allocation10], 0  ;;  %s14217_s21 = smov 0  }
   0x8 LB: > { %16078 = sst [smem:[#allocation15_spill]] %s14120_s21  ;;  %s14122_s22 = smov [#allocation6]   ;;  %s14120_s21 = sphi %s14217_s21, %s30_s21  }
   0x9   : > { %s441_s23 = sshll.u32 %s14122_s22, 4  ;;  %s14223_s24 = sadd.s32 4294967295, %s14120_s21   ;;  %s14228_s23 = int_to_ptr.vmem [resolvable:$true] %s441_s23 }
   0xa   : > { %p11625_p0 = scmp.ge.s32.totalorder %s14120_s21, 1  ;;  %p407_p1 = scmp.lt.s32.totalorder %s14120_s21, 3 }
   0xb   : > { %p16072_p2 = scmp.eq.s32.totalorder %s14223_s24, 0  ;;  %s14123_s26 = smov [#allocation9]  }
   0xc   : > { %p14230_p3 = pnand %p11625_p0, %p407_p1  ;;  %s473_s27 = sshll.u32 %s14123_s26, 4  ;;  %s14236_s27 = int_to_ptr.vmem [resolvable:$true] %s473_s27 }
   0xd   : > { %s14124_s29 = smov [#allocation4]   ;;  %s13962_s18 = scalar_lea.hbm %s16059_s5, 2048 }
   0xe   : > { %s16079_s25 = scalar_select %p14230_p3, 1, 0 }
   0xf   : > { %p13157_p4 = pneg %p14230_p3  ;;  %s425_s30 = sshll.u32 %s14124_s29, 4  ;;  %s14244_s30 = int_to_ptr.vmem [resolvable:$true] %s425_s30 }
  0x10   : > { %p13963_p6 = scmp.ne.s32.totalorder %s16059_s5, %s13962_s18  ;;  %p13969_p10 = scmp.lt.u32.totalorder %s13962_s18, %s16059_s5 }
  0x11   : > { %p14240_p5 = pnand %p16072_p2, %p13157_p4 }
  0x13   : > { %p14254_p7 = pneg %p14240_p5 }
  0x15   : > { %p13965_p8 = pnand %p14254_p7, %p13963_p6 }
  0x17   : > { %p13966_p9 = pneg %p13965_p8 }
  0x19   : > { %p13971_p11 = pnand %p13969_p10, %p13966_p9 }
  0x1b   : > { %13974 = shalt.err (!%p13971_p11)
}
  0x1c   : > { %s13975_s0 = scalar_lea.vmem %s14228_s23, 2048  ;;  %p13983_p1 = scmp.lt.s32.totalorder %s14228_s23, %s14228_s23 }
  0x1d   : > { %p13976_p12 = scmp.ne.s32.totalorder %s14228_s23, %s13975_s0  ;;  %p13984_p4 = scmp.lt.s32.totalorder %s13975_s0, %s13975_s0 }
  0x1f   : > { %p13978_p13 = pnand %p13976_p12, %p14254_p7  ;;  %p13985_p6 = por %p13984_p4, %p13983_p1 }
  0x21   : > { %p13979_p0 = pneg %p13978_p13 }
  0x23   : > { %p13986_p8 = pnand %p13985_p6, %p13979_p0 }
  0x25   : > { %13989 = shalt.err (!%p13986_p8)
}
  0x26   : > { %s14125_s17 = smov 64   ;;  %s14126_s18 = smov 4  }
  0x27   : > { %13163 = dma.hbm_to_vmem [thread:$0]  (!%p14240_p5), %s16059_s5, 2048, %s14228_s23, [#allocation7], %s14125_s17, %s14125_s17, %s14126_s18  }
  0x28   : > { %s13990_s21 = scalar_lea.hbm %s16063_s9, 2048 }
  0x29   : > { %p13991_p9 = scmp.ne.s32.totalorder %s16063_s9, %s13990_s21  ;;  %p13997_p12 = scmp.lt.u32.totalorder %s13990_s21, %s16063_s9 }
  0x2b   : > { %p13993_p10 = pnand %p13991_p9, %p14254_p7 }
  0x2d   : > { %p13994_p11 = pneg %p13993_p10 }
  0x2f   : > { %p13999_p13 = pnand %p13997_p12, %p13994_p11 }
  0x31   : > { %14002 = shalt.err (!%p13999_p13)
}
  0x32   : > { %s14003_s23 = scalar_lea.vmem %s14236_s27, 2048  ;;  %p14011_p6 = scmp.lt.s32.totalorder %s14236_s27, %s14236_s27 }
  0x33   : > { %p14004_p0 = scmp.ne.s32.totalorder %s14236_s27, %s14003_s23  ;;  %p14012_p8 = scmp.lt.s32.totalorder %s14003_s23, %s14003_s23 }
  0x35   : > { %p14006_p1 = pnand %p14004_p0, %p14254_p7  ;;  %p14013_p9 = por %p14012_p8, %p14011_p6 }
  0x37   : > { %p14007_p4 = pneg %p14006_p1 }
  0x39   : > { %p14014_p10 = pnand %p14013_p9, %p14007_p4 }
  0x3b   : > { %14017 = shalt.err (!%p14014_p10)
}
  0x3c   : > { %13169 = dma.hbm_to_vmem [thread:$0]  (!%p14240_p5), %s16063_s9, 2048, %s14236_s27, [#allocation10], %s14125_s17, %s14125_s17, %s14126_s18  }
  0x3d   : > { %s14018_s19 = scalar_lea.hbm %s16057_s3, 18432 }
  0x3e   : > { %p14019_p11 = scmp.ne.s32.totalorder %s16057_s3, %s14018_s19  ;;  %p14025_p0 = scmp.lt.u32.totalorder %s14018_s19, %s16057_s3 }
  0x40   : > { %p14021_p12 = pnand %p14019_p11, %p14254_p7 }
  0x42   : > { %p14022_p13 = pneg %p14021_p12 }
  0x44   : > { %p14027_p1 = pnand %p14025_p0, %p14022_p13 }
  0x46   : > { %14030 = shalt.err (!%p14027_p1)
}
  0x47   : > { %s14031_s27 = scalar_lea.vmem %s14244_s30, 18432  ;;  %p14039_p9 = scmp.lt.s32.totalorder %s14244_s30, %s14244_s30 }
  0x48   : > { %p14032_p4 = scmp.ne.s32.totalorder %s14244_s30, %s14031_s27  ;;  %p14040_p10 = scmp.lt.s32.totalorder %s14031_s27, %s14031_s27 }
  0x4a   : > { %p14034_p6 = pnand %p14032_p4, %p14254_p7  ;;  %p14041_p11 = por %p14040_p10, %p14039_p9 }
  0x4c   : > { %p14035_p8 = pneg %p14034_p6 }
  0x4e   : > { %p14042_p12 = pnand %p14041_p11, %p14035_p8 }
  0x50   : > { %14045 = shalt.err (!%p14042_p12)
}
  0x51   : > { %s14127_s17 = smov 128   ;;  %s14128_s18 = smov 8  }
  0x52   : > { %13160 = dma.hbm_to_vmem [thread:$0]  (!%p14240_p5), %s16057_s3, 18432, %s14244_s30, [#allocation5], %s14127_s17, %s14127_s17, %s14128_s18  }
  0x53   : > { %s14129_s14 = smov [#allocation8]   ;;  %s14130_s21 = smov [#allocation11]  }
  0x54   : > { %s457_s15 = sshll.u32 %s14129_s14, 4  ;;  %s489_s19 = sshll.u32 %s14130_s21, 4  ;;  %s458_s15 = int_to_ptr.vmem [resolvable:$true] %s457_s15  ;;  %s14324_s19 = int_to_ptr.vmem [resolvable:$true] %s489_s19 }
  0x55   : > { %s14046_s29 = scalar_lea.hbm %s16061_s7, 18432 }
  0x56   : > { %p14047_p13 = scmp.ne.s32.totalorder %s16061_s7, %s14046_s29  ;;  %p14053_p4 = scmp.lt.u32.totalorder %s14046_s29, %s16061_s7 }
  0x58   : > { %p14049_p0 = pnand %p14047_p13, %p14254_p7 }
  0x5a   : > { %p14050_p1 = pneg %p14049_p0 }
  0x5c   : > { %p14055_p6 = pnand %p14053_p4, %p14050_p1 }
  0x5e   : > { %14058 = shalt.err (!%p14055_p6)
}
  0x5f   : > { %s14059_s12 = scalar_lea.vmem %s458_s15, 18432  ;;  %p14067_p11 = scmp.lt.s32.totalorder %s458_s15, %s458_s15 }
  0x60   : > { %p14060_p8 = scmp.ne.s32.totalorder %s458_s15, %s14059_s12  ;;  %p14068_p12 = scmp.lt.s32.totalorder %s14059_s12, %s14059_s12 }
  0x62   : > { %p14062_p9 = pnand %p14060_p8, %p14254_p7  ;;  %p14069_p2 = por %p14068_p12, %p14067_p11 }
  0x64   : > { %p14063_p10 = pneg %p14062_p9 }
  0x66   : > { %p14070_p3 = pnand %p14069_p2, %p14063_p10 }
  0x68   : > { %14073 = shalt.err (!%p14070_p3)
}
  0x69   : > { %13166 = dma.hbm_to_vmem [thread:$0]  (!%p14240_p5), %s16061_s7, 18432, %s458_s15, [#allocation7], %s14127_s17, %s14127_s17, %s14128_s18  }
  0x6a   : > { %s14074_s29 = scalar_lea.hbm %s16065_s11, 18432 }
  0x6b   : > { %p14075_p13 = scmp.ne.s32.totalorder %s16065_s11, %s14074_s29  ;;  %p14081_p0 = scmp.lt.u32.totalorder %s14074_s29, %s16065_s11 }
  0x6d   : > { %p14077_p2 = pnand %p14075_p13, %p14254_p7 }
  0x6f   : > { %p14078_p3 = pneg %p14077_p2 }
  0x71   : > { %p14083_p1 = pnand %p14081_p0, %p14078_p3 }
  0x73   : > { %14086 = shalt.err (!%p14083_p1)
}
  0x74   : > { %s14087_s15 = scalar_lea.vmem %s14324_s19, 18432  ;;  %p14095_p9 = scmp.lt.s32.totalorder %s14324_s19, %s14324_s19 }
  0x75   : > { %p14088_p4 = scmp.ne.s32.totalorder %s14324_s19, %s14087_s15  ;;  %p14096_p10 = scmp.lt.s32.totalorder %s14087_s15, %s14087_s15 }
  0x77   : > { %p14090_p6 = pnand %p14088_p4, %p14254_p7  ;;  %p14097_p11 = por %p14096_p10, %p14095_p9 }
  0x79   : > { %p14091_p8 = pneg %p14090_p6 }
  0x7b   : > { %p14098_p12 = pnand %p14097_p11, %p14091_p8 }
  0x7d   : > { %14101 = shalt.err (!%p14098_p12)
}
  0x7e   : > { %13172 = dma.hbm_to_vmem [thread:$0]  (!%p14240_p5), %s16065_s11, 18432, %s14324_s19, [#allocation10], %s14127_s17, %s14127_s17, %s14128_s18  }
  0x7f   : > { %p16082_p13 = scmp.ne.s32.totalorder %s16079_s25, 0 }
  0x80   : > { %p16083_p7 = scmp.eq.s32.totalorder (!%p16082_p13), %s14223_s24, 0 }
  0x81   : > { %522 = sbr.rel (%p16082_p13) target bundleno = 3118 (0xc2e), region = 80 }
  0x88   : > { %14107 = dma.done.wait (%p16083_p7), [#allocation5], 18432   ;;  %p16084_p2 = pmov %p16083_p7 }
  0x8a   : > { %14109 = vsyncadd (%p16084_p2), [#allocation5], 4294948864  ;;  %p16085_p3 = pmov %p16084_p2 }
  0x8b   : > { %p16086_p0 = pmov %p16084_p2 }
  0x8c   : > { %14111 = dma.done.wait (%p16085_p3), [#allocation7], 20480  }
  0x8d   : > { %14113 = vsyncadd (%p16086_p0), [#allocation7], 4294946816  ;;  %p16087_p1 = pmov %p16086_p0 }
  0x8e   : > { %p16088_p5 = pmov %p16086_p0 }
  0x8f   : > { %14115 = dma.done.wait (%p16087_p1), [#allocation10], 20480  }
  0x90   : > { %14117 = vsyncadd (%p16088_p5), [#allocation10], 4294946816  ;;  %v13201_v0 = vld [vmem:[%s16055_s1 + $0x40] sm:$0xff]   ;;  %v13203_v2 = vld [vmem:[%s16055_s1 + $0x48] sm:$0xff]   ;;  %p593_p4 = scmp.lt.s32.totalorder %s14223_s24, 1  ;;  %s16089_s18 = sld [smem:[#allocation16_spill]] }
  0x91   : > { %v13202_v1 = vld [vmem:[%s16055_s1] sm:$0xff]   ;;  %12169 = vmatprep.subr.bf16.mxu0 %v13201_v0  ;;  %v13204_v3 = vld [vmem:[%s16055_s1 + $0x8] sm:$0xff]   ;;  %v13205_v4 = vld [vmem:[%s16055_s1 + $0x50] sm:$0xff]   ;;  %v14131_v32 = vmov 0   ;;  %vm983_vm2 = vcmask 1044480   ;;  %vm1671_vm12 = vcmask 1046528  }
  0x92   : > { %12170 = vmatpush3.bf16.msra.mxu0 %v13202_v1  ;;  %v13206_v5 = vld [vmem:[%s16055_s1 + $0x10] sm:$0xff]   ;;  %s16097_s24 = smov (!%p593_p4, %s14223_s24), 1  ;;  %v13207_v6 = vld [vmem:[%s16055_s1 + $0x58] sm:$0xff]   ;;  %v13209_v8 = vld [vmem:[%s16055_s1 + $0x60] sm:$0xff]   ;;  %610 = vst [vmem:[#allocation2 + $0x8] sm:$0xff] %v14131_v32  ;;  %2430 = vmatprep.mubr.bf16.mxu1 %v14131_v32  ;;  %s16092_s12 = sld [smem:[#allocation17_spill]] }
  0x93   : > { %12171 = vmatprep.subr.bf16.mxu0 %v13203_v2  ;;  %v13208_v7 = vld [vmem:[%s16055_s1 + $0x18] sm:$0xff]   ;;  %s12166_s14 = sshll.u32 %s16097_s24, 6  ;;  %v13210_v9 = vld [vmem:[%s16055_s1 + $0x20] sm:$0xff]   ;;  %v13211_v10 = vld [vmem:[%s16055_s1 + $0x68] sm:$0xff]   ;;  %609 = vst [vmem:[#allocation2] sm:$0xff] %v14131_v32  ;;  %s12168_s30 = sshll.u32 %s16097_s24, 7 }
  0x94   : > { %v13212_v12 = vld [vmem:[%s16055_s1 + $0x28] sm:$0xff]   ;;  %v13213_v13 = vld [vmem:[%s16055_s1 + $0x70] sm:$0xff]   ;;  %v13215_v15 = vld [vmem:[%s16055_s1 + $0x78] sm:$0xff]   ;;  %611 = vst [vmem:[#allocation2 + $0x10] sm:$0xff] %v14131_v32  ;;  %vm984_vm3 = vsmask.f32 4354 }
  0x95   : > { %v13214_v14 = vld [vmem:[%s16055_s1 + $0x30] sm:$0xff]   ;;  %v13216_v16 = vld [vmem:[%s16055_s1 + $0x38] sm:$0xff]   ;;  %612 = vst [vmem:[#allocation2 + $0x18] sm:$0xff] %v14131_v32  ;;  %613 = vst [vmem:[#allocation2 + $0x20] sm:$0xff] %v14131_v32  ;;  %vm1279_vm10 = vsmask.f32 7424 }
  0x96   : > { %12172 = vmatpush3.bf16.msra.mxu0 %v13204_v3  ;;  %s14422_s19 = scalar_lea.vmem %s16089_s18, %s12166_s14  ;;  %v13231_v17 = vld [vmem:[#allocation4 + $0x4] ss:$8 sps:$4 sm:$0xff]   ;;  %v13229_v20 = vld [vmem:[#allocation4] ss:$8 sps:$4 sm:$0xff]   ;;  %v13234_v21 = vld [vmem:[#allocation4 + $0x14] ss:$8 sps:$4 sm:$0xff]   ;;  %s15360_s14 = scalar_lea.vmem %s16070_s16, %s12168_s30 }
  0x97   : > { %12173 = vmatprep.subr.bf16.mxu0 %v13205_v4  ;;  %v13219_v11 = vld [vmem:[%s14422_s19 + $0x4] ss:$8 sps:$4 sm:$0xff]   ;;  %v13217_v18 = vld [vmem:[%s14422_s19] ss:$8 sps:$4 sm:$0xff]   ;;  %v13220_v19 = vld [vmem:[%s14422_s19 + $0x14] ss:$8 sps:$4 sm:$0xff]  }
  0x98   : > { %829 = vmatprep.mubr.bf16.mxu0 %v13219_v11  ;;  %v13232_v22 = vld [vmem:[#allocation4 + $0x10] ss:$8 sps:$4 sm:$0xff]   ;;  %v13237_v23 = vld [vmem:[#allocation4 + $0x24] ss:$8 sps:$4 sm:$0xff]   ;;  %v13235_v26 = vld [vmem:[#allocation4 + $0x20] ss:$8 sps:$4 sm:$0xff]  }
  0x99   : > { %v13222_v24 = vld [vmem:[%s14422_s19 + $0x10] ss:$8 sps:$4 sm:$0xff]   ;;  %v13223_v25 = vld [vmem:[%s14422_s19 + $0x24] ss:$8 sps:$4 sm:$0xff]   ;;  %v13225_v27 = vld [vmem:[%s14422_s19 + $0x20] ss:$8 sps:$4 sm:$0xff]  }
  0x9a   : > { %12174 = vmatpush3.bf16.msra.mxu0 %v13206_v5  ;;  %v13226_v28 = vld [vmem:[%s14422_s19 + $0x34] ss:$8 sps:$4 sm:$0xff]   ;;  %v13228_v29 = vld [vmem:[%s14422_s19 + $0x30] ss:$8 sps:$4 sm:$0xff]   ;;  %614 = vst [vmem:[#allocation2 + $0x28] sm:$0xff] %v14131_v32  ;;  %615 = vst [vmem:[#allocation2 + $0x30] sm:$0xff] %v14131_v32 }
  0x9b   : > { %12175 = vmatprep.subr.bf16.mxu0 %v13207_v6  ;;  %v13240_v30 = vld [vmem:[#allocation4 + $0x34] ss:$8 sps:$4 sm:$0xff]   ;;  %v13238_v31 = vld [vmem:[#allocation4 + $0x30] ss:$8 sps:$4 sm:$0xff]   ;;  %616 = vst [vmem:[#allocation2 + $0x38] sm:$0xff] %v14131_v32  ;;  %617 = vst [vmem:[#allocation2 + $0x40] sm:$0xff] %v14131_v32 }
  0x9c   : > { %v13241_v33 = vld [vmem:[#allocation4 + $0x204] ss:$8 sps:$4 sm:$0xff]   ;;  %v13243_v34 = vld [vmem:[#allocation4 + $0x200] ss:$8 sps:$4 sm:$0xff]   ;;  %v13247_v37 = vld [vmem:[#allocation4 + $0x214] ss:$8 sps:$4 sm:$0xff]  }
  0x9d   : > { %v13246_v35 = vld [vmem:[#allocation4 + $0x44] ss:$8 sps:$4 sm:$0xff]   ;;  %2398 = vmatprep.subr.bf16.mxu1 %v13241_v33  ;;  %v13244_v36 = vld [vmem:[#allocation4 + $0x40] ss:$8 sps:$4 sm:$0xff]   ;;  %v13249_v38 = vld [vmem:[#allocation4 + $0x210] ss:$8 sps:$4 sm:$0xff]  }
  0x9e   : > { %12176 = vmatpush3.bf16.msra.mxu0 %v13208_v7  ;;  %2399 = vmatpush1.bf16.msra.mxu1 %v13243_v34  ;;  %v13252_v39 = vld [vmem:[#allocation4 + $0x54] ss:$8 sps:$4 sm:$0xff]   ;;  %v13250_v40 = vld [vmem:[#allocation4 + $0x50] ss:$8 sps:$4 sm:$0xff]   ;;  %v13253_v41 = vld [vmem:[#allocation4 + $0x224] ss:$8 sps:$4 sm:$0xff]  }
  0x9f   : > { %12177 = vmatprep.subr.bf16.mxu0 %v13209_v8  ;;  %2400 = vmatprep.subr.bf16.mxu1 %v13247_v37  ;;  %v13255_v42 = vld [vmem:[#allocation4 + $0x220] ss:$8 sps:$4 sm:$0xff]   ;;  %v13258_v43 = vld [vmem:[#allocation4 + $0x64] ss:$8 sps:$4 sm:$0xff]   ;;  %v13259_v45 = vld [vmem:[#allocation4 + $0x234] ss:$8 sps:$4 sm:$0xff]  }
  0xa0   : > { %v13256_v44 = vld [vmem:[#allocation4 + $0x60] ss:$8 sps:$4 sm:$0xff]   ;;  %v13261_v46 = vld [vmem:[#allocation4 + $0x230] ss:$8 sps:$4 sm:$0xff]   ;;  %v13264_v47 = vld [vmem:[#allocation4 + $0x74] ss:$8 sps:$4 sm:$0xff]  }
  0xa1   : > { %v13262_v48 = vld [vmem:[#allocation4 + $0x70] ss:$8 sps:$4 sm:$0xff]   ;;  %v13265_v49 = vld [vmem:[#allocation4 + $0x244] ss:$8 sps:$4 sm:$0xff]   ;;  %v13267_v50 = vld [vmem:[#allocation4 + $0x240] ss:$8 sps:$4 sm:$0xff]  }
  0xa2   : > { %12178 = vmatpush3.bf16.msra.mxu0 %v13210_v9  ;;  %2401 = vmatpush1.bf16.msra.mxu1 %v13249_v38  ;;  %v13268_v51 = vld [vmem:[#allocation4 + $0x254] ss:$8 sps:$4 sm:$0xff]   ;;  %v13270_v52 = vld [vmem:[#allocation4 + $0x250] ss:$8 sps:$4 sm:$0xff]   ;;  %v13271_v53 = vld [vmem:[#allocation4 + $0x264] ss:$8 sps:$4 sm:$0xff]  }
  0xa3   : > { %12179 = vmatprep.subr.bf16.mxu0 %v13211_v10  ;;  %2402 = vmatprep.subr.bf16.mxu1 %v13253_v41  ;;  %v13273_v54 = vld [vmem:[#allocation4 + $0x260] ss:$8 sps:$4 sm:$0xff]   ;;  %v13274_v55 = vld [vmem:[#allocation4 + $0x274] ss:$8 sps:$4 sm:$0xff]   ;;  %v13276_v56 = vld [vmem:[#allocation4 + $0x270] ss:$8 sps:$4 sm:$0xff]   ;;  %v862_v10 = vlaneseq }
  0xa4   : > { %v13279_v57 = vld [vmem:[#allocation4 + $0x284] ss:$8 sps:$4 sm:$0xff]   ;;  %v13286_v59 = vld [vmem:[#allocation4 + $0x80] ss:$8 sps:$4 sm:$0xff]   ;;  %v13291_v60 = vld [vmem:[#allocation4 + $0x94] ss:$8 sps:$4 sm:$0xff]  }
  0xa5   : > { %v13288_v58 = vld [vmem:[#allocation4 + $0x84] ss:$8 sps:$4 sm:$0xff]   ;;  %v13289_v61 = vld [vmem:[#allocation4 + $0x90] ss:$8 sps:$4 sm:$0xff]   ;;  %v13295_v63 = vld [vmem:[#allocation4 + $0xa0] ss:$8 sps:$4 sm:$0xff]  }
  0xa6   : > { %12180 = vmatpush3.bf16.msra.mxu0 %v13212_v12  ;;  %2403 = vmatpush1.bf16.msra.mxu1 %v13255_v42  ;;  %v13297_v62 = vld [vmem:[#allocation4 + $0xa4] ss:$8 sps:$4 sm:$0xff]   ;;  %v13300_v0 = vld [vmem:[#allocation4 + $0xb4] ss:$8 sps:$4 sm:$0xff]   ;;  %v13298_v1 = vld [vmem:[#allocation4 + $0xb0] ss:$8 sps:$4 sm:$0xff]  }
  0xa7   : > { %12181 = vmatprep.subr.bf16.mxu0 %v13213_v13  ;;  %2404 = vmatprep.subr.bf16.mxu1 %v13259_v45  ;;  %v13306_v2 = vld [vmem:[#allocation4 + $0xc4] ss:$8 sps:$4 sm:$0xff]   ;;  %v13304_v3 = vld [vmem:[#allocation4 + $0xc0] ss:$8 sps:$4 sm:$0xff]   ;;  %v13309_v4 = vld [vmem:[#allocation4 + $0xd4] ss:$8 sps:$4 sm:$0xff]  }
  0xa8   : > { %v13307_v5 = vld [vmem:[#allocation4 + $0xd0] ss:$8 sps:$4 sm:$0xff]   ;;  %v13315_v6 = vld [vmem:[#allocation4 + $0xe4] ss:$8 sps:$4 sm:$0xff]   ;;  %v13313_v7 = vld [vmem:[#allocation4 + $0xe0] ss:$8 sps:$4 sm:$0xff]  }
  0xa9   : > { %v13318_v8 = vld [vmem:[#allocation4 + $0xf4] ss:$8 sps:$4 sm:$0xff]   ;;  %v13316_v9 = vld [vmem:[#allocation4 + $0xf0] ss:$8 sps:$4 sm:$0xff]   ;;  %v13336_v11 = vld [vmem:[#allocation4 + $0x104] ss:$8 sps:$4 sm:$0xff]  }
  0xaa   : > { %12182 = vmatpush3.bf16.msra.mxu0 %v13214_v14  ;;  %2405 = vmatpush1.bf16.msra.mxu1 %v13261_v46  ;;  %v14466_v12 = vshrl.u32 %v862_v10, 7  ;;  %v628_v14 = vld [vmem:[%s16056_s2] sm:$0x3]  ;;  %vm14490_vm4 = vmand %vm983_vm2, %vm984_vm3  ;;  %s16093_s28 = sld [smem:[#allocation18_spill]]  ;;  %s12167_s22 = sshll.u32 %s16097_s24, 8 }
  0xab   : > { %12183 = vmatprep.subr.bf16.mxu0 %v13215_v15  ;;  %2406 = vmatprep.subr.bf16.mxu1 %v13265_v49  ;;  %v986_v49 = vld [vmem:[#allocation2 + $0x8] sm:$0x1f]  ;;  %s16094_s19 = sld [smem:[#allocation19_spill]] }
  0xac   : > { %v14469_v13 = vsub.s32 0, %v14466_v12  ;;  %v14475_v15 = vsub.s32 1, %v14466_v12 }
  0xae   : > { %12184 = vmatpush3.bf16.msra.mxu0 %v13216_v16  ;;  %2407 = vmatpush1.bf16.msra.mxu1 %v13267_v50 }
  0xaf   : > { %1117 = vmatprep.subr.bf16.mxu0 %v13231_v17  ;;  %2408 = vmatprep.subr.bf16.mxu1 %v13268_v51  ;;  %v14478_v17 = vrot.slane %v628_v14, %v14469_v13 }
  0xb1   : > { %830 = vmatmul.mubr.bf16.vlgmr.msra.gmra.mrb[0].mxu0 %v13217_v18  ;;  %s15954_s21 = scalar_lea.vmem %s16094_s19, %s12167_s22 }
  0xb2   : > { %837 = vmatprep.mubr.bf16.mxu0 %v13220_v19  ;;  %1118 = vmatpush1.bf16.msra.mxu0 %v13229_v20  ;;  %v14481_v20 = vrot.slane %v628_v14, %v14475_v15 }
  0xb3   : > { %1119 = vmatprep.subr.bf16.mxu0 %v13234_v21  ;;  %2409 = vmatpush1.bf16.msra.mxu1 %v13270_v52 }
  0xb4   : > { %2410 = vmatprep.subr.bf16.mxu1 %v13271_v53 }
  0xb6   : > { %1120 = vmatpush1.bf16.msra.mxu0 %v13232_v22 }
  0xb7   : > { %1121 = vmatprep.subr.bf16.mxu0 %v13237_v23  ;;  %2411 = vmatpush1.bf16.msra.mxu1 %v13273_v54 }
  0xb8   : > { %2412 = vmatprep.subr.bf16.mxu1 %v13274_v55 }
  0xb9   : > { %838 = vmatmul.mubr.bf16.gmra.mrb[4].mxu0 %v13222_v24 }
  0xba   : > { %845 = vmatprep.mubr.bf16.mxu0 %v13223_v25  ;;  %1122 = vmatpush1.bf16.msra.mxu0 %v13235_v26 }
  0xbb   : > { %1123 = vmatprep.subr.bf16.mxu0 %v13240_v30  ;;  %2413 = vmatpush1.bf16.msra.mxu1 %v13276_v56 }
  0xbc   : > { %2708 = vmatprep.subr.bf16.mxu1 %v13279_v57  ;;  %v989_v57 = vld [vmem:[#allocation2 + $0x10] sm:$0x1f] }
  0xbe   : > { %1124 = vmatpush1.bf16.msra.mxu0 %v13238_v31 }
  0xbf   : > { %1125 = vmatprep.subr.bf16.mxu0 %v13246_v35 }
  0xc1   : > { %846 = vmatmul.mubr.bf16.gmra.mrb[8].mxu0 %v13225_v27 }
  0xc2   : > { %853 = vmatprep.mubr.bf16.mxu0 %v13226_v28  ;;  %1126 = vmatpush1.bf16.msra.mxu0 %v13244_v36 }
  0xc3   : > { %1127 = vmatprep.subr.bf16.mxu0 %v13252_v39 }
  0xc6   : > { %1128 = vmatpush1.bf16.msra.mxu0 %v13250_v40 }
  0xc7   : > { %1129 = vmatprep.subr.bf16.mxu0 %v13258_v43 }
  0xc9   : > { %854 = vmatmul.mubr.bf16.gmra.mrb[12].mxu0 %v13228_v29 }
  0xca   : > { %1149 = vmatprep.mubr.bf16.mxu0 %v14131_v32  ;;  %1130 = vmatpush1.bf16.msra.mxu0 %v13256_v44 }
  0xcb   : > { %1131 = vmatprep.subr.bf16.mxu0 %v13264_v47 }
  0xce   : > { %1132 = vmatpush1.bf16.msra.mxu0 %v13262_v48 }
  0xcf   : > { %1436 = vmatprep.subr.bf16.mxu0 %v13288_v58 }
  0xd1   : > { %1150 = vmatmul.mubr.bf16.vlgmr.msra.gmra.mrb[16].mxu0 %v14131_v32 }
  0xd2   : > { %1159 = vmatprep.mubr.bf16.mxu0 %v14131_v32  ;;  %1437 = vmatpush1.bf16.msra.mxu0 %v13286_v59 }
  0xd3   : > { %1438 = vmatprep.subr.bf16.mxu0 %v13291_v60 }
  0xd6   : > { %1439 = vmatpush1.bf16.msra.mxu0 %v13289_v61 }
  0xd7   : > { %1440 = vmatprep.subr.bf16.mxu0 %v13297_v62 }
  0xda   : > { %1441 = vmatpush1.bf16.msra.mxu0 %v13295_v63 }
  0xdb   : > { %1442 = vmatprep.subr.bf16.mxu0 %v13300_v0 }
  0xde   : > { %1443 = vmatpush1.bf16.msra.mxu0 %v13298_v1 }
  0xdf   : > { %1444 = vmatprep.subr.bf16.mxu0 %v13306_v2 }
  0xe2   : > { %1445 = vmatpush1.bf16.msra.mxu0 %v13304_v3 }
  0xe3   : > { %1446 = vmatprep.subr.bf16.mxu0 %v13309_v4 }
  0xe6   : > { %1447 = vmatpush1.bf16.msra.mxu0 %v13307_v5 }
  0xe7   : > { %1448 = vmatprep.subr.bf16.mxu0 %v13315_v6 }
  0xea   : > { %1449 = vmatpush1.bf16.msra.mxu0 %v13313_v7 }
  0xeb   : > { %1450 = vmatprep.subr.bf16.mxu0 %v13318_v8 }
  0xee   : > { %1451 = vmatpush1.bf16.msra.mxu0 %v13316_v9 }
  0xef   : > { %1777 = vmatprep.subr.bf16.mxu0 %v13336_v11 }
 0x184   : > { %v12185_v16 = vpop.f32.mrb[0].mxu0 }
 0x185   : > { %v12186_v18 = vpop.f32.mrb[1].mxu0 }
 0x186   : > { %v12187_v19 = vadd.f32 %v12186_v18, %v12185_v16  ;;  %v12188_v21 = vpop.f32.mrb[2].mxu0  ;;  %v992_v16 = vld [vmem:[#allocation2 + $0x18] sm:$0x1f] }
 0x187   : > { %v12189_v22 = vpop.f32.mrb[3].mxu0 }
 0x188   : > { %v866_v23 = vmul.f32 %v12187_v19, %v14478_v17  ;;  %v12190_v24 = vadd.f32 %v12189_v22, %v12188_v21 }
 0x18a   : > { %v878_v25 = vadd.f32 %v14481_v20, %v866_v23  ;;  %v867_v26 = vmul.f32 %v12190_v24, %v14478_v17 }
 0x18c   : > { %vm886_vm0 = vcmp.ge.f32.partialorder %v878_v25, 0.0  ;;  %v894_v27 = vmul.f32 0.1, %v878_v25  ;;  %v879_v28 = vadd.f32 %v14481_v20, %v867_v26  ;;  %v12191_v29 = vpop.f32.mrb[4].mxu0  ;;  %v995_v26 = vld [vmem:[#allocation2 + $0x20] sm:$0x1f] }
 0x18d   : > { %v12192_v30 = vpop.f32.mrb[5].mxu0 }
 0x18e   : > { %v902_v31 = vsel %vm886_vm0, %v878_v25, %v894_v27  ;;  %vm887_vm1 = vcmp.ge.f32.partialorder %v879_v28, 0.0  ;;  %v895_v33 = vmul.f32 0.1, %v879_v28  ;;  %v12193_v34 = vadd.f32 %v12192_v30, %v12191_v29  ;;  %v12194_v35 = vpop.f32.mrb[6].mxu0 }
 0x18f   : > { %v910_v36 = vpack.c.bf16 %v902_v31, %v902_v31  ;;  %v12195_v37 = vpop.f32.mrb[7].mxu0 }
 0x190   : > { %v903_v38 = vsel %vm887_vm1, %v879_v28, %v895_v33  ;;  %v868_v39 = vmul.f32 %v12193_v34, %v14478_v17  ;;  %v12196_v40 = vadd.f32 %v12195_v37, %v12194_v35 }
 0x191   : > { %v919_v41 = vshrl.u32 %v910_v36, 16  ;;  %v911_v42 = vpack.c.bf16 %v903_v38, %v903_v38  ;;  %v922_v46 = vshll.u32 %v910_v36, 16 }
 0x192   : > { %v880_v43 = vadd.f32 %v14481_v20, %v868_v39  ;;  %v869_v44 = vmul.f32 %v12196_v40, %v14478_v17 }
 0x193   : > { %v921_v45 = vrot.slane %v919_v41, 7  ;;  %v926_v47 = vshrl.u32 %v911_v42, 16  ;;  %v929_v55 = vshll.u32 %v911_v42, 16 }
 0x194   : > { %vm888_vm5 = vcmp.ge.f32.partialorder %v880_v43, 0.0  ;;  %v896_v50 = vmul.f32 0.1, %v880_v43  ;;  %v881_v51 = vadd.f32 %v14481_v20, %v869_v44  ;;  %v12197_v52 = vpop.f32.mrb[8].mxu0 }
 0x195   : > { %v924_v53 = vor.u32 %v922_v46, %v921_v45  ;;  %v928_v54 = vrot.slane %v926_v47, 7  ;;  %v12198_v56 = vpop.f32.mrb[9].mxu0 }
 0x196   : > { %v904_v58 = vsel %vm888_vm5, %v880_v43, %v896_v50  ;;  %vm889_vm6 = vcmp.ge.f32.partialorder %v881_v51, 0.0  ;;  %v897_v59 = vmul.f32 0.1, %v881_v51  ;;  %v12199_v60 = vadd.f32 %v12198_v56, %v12197_v52  ;;  %v12200_v61 = vpop.f32.mrb[10].mxu0  ;;  %v998_v52 = vld [vmem:[#allocation2 + $0x28] sm:$0x1f] }
 0x197   : > { %v987_v62 = vsel %vm14490_vm4, %v924_v53, %v986_v49  ;;  %v931_v63 = vor.u32 %v929_v55, %v928_v54  ;;  %v912_v0 = vpack.c.bf16 %v904_v58, %v904_v58  ;;  %v12201_v1 = vpop.f32.mrb[11].mxu0  ;;  %v13277_v56 = vld [vmem:[#allocation4 + $0x280] ss:$8 sps:$4 sm:$0xff]  }
 0x198   : > { %988 = vst [vmem:[#allocation2 + $0x8] sm:$0x1f] %v987_v62  ;;  %v905_v2 = vsel %vm889_vm6, %v881_v51, %v897_v59  ;;  %v870_v3 = vmul.f32 %v12199_v60, %v14478_v17  ;;  %v12202_v4 = vadd.f32 %v12201_v1, %v12200_v61  ;;  %v13282_v62 = vld [vmem:[#allocation4 + $0x294] ss:$8 sps:$4 sm:$0xff]  }
 0x199   : > { %v990_v5 = vsel %vm14490_vm4, %v931_v63, %v989_v57  ;;  %v933_v6 = vshrl.u32 %v912_v0, 16  ;;  %v913_v7 = vpack.c.bf16 %v905_v2, %v905_v2  ;;  %v936_v11 = vshll.u32 %v912_v0, 16  ;;  %v1001_v63 = vld [vmem:[#allocation2 + $0x30] sm:$0x1f] }
 0x19a   : > { %991 = vst [vmem:[#allocation2 + $0x10] sm:$0x1f] %v990_v5  ;;  %v882_v8 = vadd.f32 %v14481_v20, %v870_v3  ;;  %v871_v9 = vmul.f32 %v12202_v4, %v14478_v17 }
 0x19b   : > { %v935_v10 = vrot.slane %v933_v6, 7  ;;  %v940_v14 = vshrl.u32 %v913_v7, 16  ;;  %v943_v24 = vshll.u32 %v913_v7, 16 }
 0x19c   : > { %vm890_vm7 = vcmp.ge.f32.partialorder %v882_v8, 0.0  ;;  %v898_v18 = vmul.f32 0.1, %v882_v8  ;;  %v883_v19 = vadd.f32 %v14481_v20, %v871_v9  ;;  %v12203_v21 = vpop.f32.mrb[12].mxu0 }
 0x19d   : > { %v938_v22 = vor.u32 %v936_v11, %v935_v10  ;;  %v942_v23 = vrot.slane %v940_v14, 7  ;;  %v12204_v25 = vpop.f32.mrb[13].mxu0  ;;  %v13285_v11 = vld [vmem:[#allocation4 + $0x2a4] ss:$8 sps:$4 sm:$0xff]  }
 0x19e   : > { %v906_v27 = vsel %vm890_vm7, %v882_v8, %v898_v18  ;;  %vm891_vm8 = vcmp.ge.f32.partialorder %v883_v19, 0.0  ;;  %v899_v28 = vmul.f32 0.1, %v883_v19  ;;  %v12205_v29 = vadd.f32 %v12204_v25, %v12203_v21  ;;  %v12206_v30 = vpop.f32.mrb[14].mxu0  ;;  %v1004_v21 = vld [vmem:[#allocation2 + $0x38] sm:$0x1f] }
 0x19f   : > { %v993_v31 = vsel %vm14490_vm4, %v938_v22, %v992_v16  ;;  %v945_v33 = vor.u32 %v943_v24, %v942_v23  ;;  %v914_v34 = vpack.c.bf16 %v906_v27, %v906_v27  ;;  %v14505_v35 = vld [vmem:[#allocation2 + $0x8] sm:$0xff]  ;;  %v12207_v36 = vpop.f32.mrb[15].mxu0 }
 0x1a0   : > { %994 = vst [vmem:[#allocation2 + $0x18] sm:$0x1f] %v993_v31  ;;  %v907_v37 = vsel %vm891_vm8, %v883_v19, %v899_v28  ;;  %v872_v38 = vmul.f32 %v12205_v29, %v14478_v17  ;;  %1160 = vmatmul.mubr.bf16.gmra.mrb[20].mxu0 %v14505_v35  ;;  %v1288_v39 = vshll.u32 %v14505_v35, 16  ;;  %v1292_v40 = vshrl.u32 %v14505_v35, 16 }
 0x1a1   : > { %v996_v41 = vsel %vm14490_vm4, %v945_v33, %v995_v26  ;;  %v947_v42 = vshrl.u32 %v914_v34, 16  ;;  %v950_v43 = vshll.u32 %v914_v34, 16  ;;  %v915_v44 = vpack.c.bf16 %v907_v37, %v907_v37  ;;  %1169 = vmatprep.mubr.bf16.mxu0 %v14131_v32  ;;  %v14514_v45 = vld [vmem:[#allocation2 + $0x10] sm:$0xff]  ;;  %v13283_v26 = vld [vmem:[#allocation4 + $0x2a0] ss:$8 sps:$4 sm:$0xff]  }
 0x1a2   : > { %997 = vst [vmem:[#allocation2 + $0x20] sm:$0x1f] %v996_v41  ;;  %v884_v46 = vadd.f32 %v14481_v20, %v872_v38  ;;  %v14517_v47 = vrot.slane %v1288_v39, 1  ;;  %v1296_v49 = vshll.u32 %v14514_v45, 16  ;;  %v12208_v50 = vadd.f32 %v12207_v36, %v12206_v30  ;;  %v14548_v33 = vld [vmem:[#allocation2] sm:$0xff] }
 0x1a3   : > { %v949_v51 = vrot.slane %v947_v42, 7  ;;  %v954_v53 = vshrl.u32 %v915_v44, 16  ;;  %v957_v54 = vshll.u32 %v915_v44, 16  ;;  %v1300_v14 = vshrl.u32 %v14514_v45, 16  ;;  %v13292_v37 = vld [vmem:[#allocation4 + $0x2b0] ss:$8 sps:$4 sm:$0xff]  }
 0x1a4   : > { %vm892_vm9 = vcmp.ge.f32.partialorder %v884_v46, 0.0  ;;  %v900_v55 = vmul.f32 0.1, %v884_v46  ;;  %v1294_v57 = vor.u32 %v1292_v40, %v14517_v47  ;;  %v1298_v58 = vrot.slane %v1296_v49, 1  ;;  %v1007_v38 = vld [vmem:[#allocation2 + $0x40] sm:$0x1f] }
 0x1a5   : > { %v952_v59 = vor.u32 %v950_v43, %v949_v51  ;;  %v956_v60 = vrot.slane %v954_v53, 7  ;;  %v873_v61 = vmul.f32 %v12208_v50, %v14478_v17  ;;  %v13280_v17 = vld [vmem:[#allocation4 + $0x290] ss:$8 sps:$4 sm:$0xff]   ;;  %v13303_v41 = vld [vmem:[#allocation4 + $0x2c4] ss:$8 sps:$4 sm:$0xff]  }
 0x1a6   : > { %v908_v0 = vsel %vm892_vm9, %v884_v46, %v900_v55  ;;  %v14523_v1 = vsel %vm1279_vm10, %v1294_v57, %v1298_v58  ;;  %v1302_v23 = vor.u32 %v1300_v14, %v1298_v58  ;;  %v13301_v46 = vld [vmem:[#allocation4 + $0x2c0] ss:$8 sps:$4 sm:$0xff]   ;;  %v13312_v51 = vld [vmem:[#allocation4 + $0x2d4] ss:$8 sps:$4 sm:$0xff]   ;;  %v13321_v55 = vld [vmem:[#allocation4 + $0x2e4] ss:$8 sps:$4 sm:$0xff]  }
 0x1a7   : > { %v999_v2 = vsel %vm14490_vm4, %v952_v59, %v998_v52  ;;  %v959_v3 = vor.u32 %v957_v54, %v956_v60  ;;  %v916_v4 = vpack.c.bf16 %v908_v0, %v908_v0  ;;  %2431 = vmatmul.mubr.bf16.vlgmr.msra.gmra.mrb[0].mxu1 %v14523_v1  ;;  %v885_v5 = vadd.f32 %v14481_v20, %v873_v61  ;;  %v14529_v6 = vld [vmem:[#allocation2 + $0x18] sm:$0xff]  ;;  %v13310_v52 = vld [vmem:[#allocation4 + $0x2d0] ss:$8 sps:$4 sm:$0xff]   ;;  %v13324_v61 = vld [vmem:[#allocation4 + $0x2f4] ss:$8 sps:$4 sm:$0xff]  }
 0x1a8   : > { %1000 = vst [vmem:[#allocation2 + $0x28] sm:$0x1f] %v999_v2  ;;  %2709 = vmatpush1.bf16.msra.mxu1 %v13277_v56  ;;  %1170 = vmatmul.mubr.bf16.gmra.mrb[24].mxu0 %v14514_v45  ;;  %v1304_v7 = vshll.u32 %v14529_v6, 16  ;;  %v1308_v34 = vshrl.u32 %v14529_v6, 16  ;;  %v13319_v58 = vld [vmem:[#allocation4 + $0x2e0] ss:$8 sps:$4 sm:$0xff]  }
 0x1a9   : > { %v1002_v8 = vsel %vm14490_vm4, %v959_v3, %v1001_v63  ;;  %v961_v9 = vshrl.u32 %v916_v4, 16  ;;  %v964_v10 = vshll.u32 %v916_v4, 16  ;;  %vm893_vm11 = vcmp.ge.f32.partialorder %v885_v5, 0.0  ;;  %2440 = vmatprep.mubr.bf16.mxu1 %v14131_v32  ;;  %2710 = vmatprep.subr.bf16.mxu1 %v13282_v62  ;;  %v14538_v19 = vld [vmem:[#allocation2 + $0x20] sm:$0xff]  ;;  %v13322_v63 = vld [vmem:[#allocation4 + $0x2f0] ss:$8 sps:$4 sm:$0xff]  }
 0x1aa   : > { %1003 = vst [vmem:[#allocation2 + $0x30] sm:$0x1f] %v1002_v8  ;;  %v901_v20 = vmul.f32 0.1, %v885_v5  ;;  %1179 = vmatprep.mubr.bf16.mxu0 %v14131_v32  ;;  %v1306_v16 = vrot.slane %v1304_v7, 1  ;;  %v1312_v28 = vshll.u32 %v14538_v19, 16 }
 0x1ab   : > { %v963_v18 = vrot.slane %v961_v9, 7  ;;  %v13294_v32 = vld [vmem:[#allocation4 + $0x2b4] ss:$8 sps:$4 sm:$0xff]   ;;  %v1316_v53 = vshrl.u32 %v14538_v19, 16  ;;  %v13327_v2 = vld [vmem:[#allocation4 + $0x304] ss:$8 sps:$4 sm:$0xff]  }
 0x1ac   : > { %v909_v22 = vsel %vm893_vm11, %v885_v5, %v901_v20  ;;  %2711 = vmatpush1.bf16.msra.mxu1 %v13280_v17  ;;  %v14541_v27 = vsel %vm1279_vm10, %v1302_v23, %v1306_v16  ;;  %v1310_v39 = vor.u32 %v1308_v34, %v1306_v16  ;;  %v1314_v40 = vrot.slane %v1312_v28, 1  ;;  %v13345_v34 = vld [vmem:[#allocation4 + $0x124] ss:$8 sps:$4 sm:$0xff]  }
 0x1ad   : > { %v966_v24 = vor.u32 %v964_v10, %v963_v18  ;;  %v917_v25 = vpack.c.bf16 %v909_v22, %v909_v22  ;;  %2712 = vmatprep.subr.bf16.mxu1 %v13285_v11  ;;  %v1283_v9 = vshll.u32 %v14548_v33, 16  ;;  %v1281_v16 = vshrl.u32 %v14548_v33, 16 }
 0x1ae   : > { %v14558_v49 = vsel %vm1279_vm10, %v1310_v39, %v1314_v40  ;;  %v1318_v56 = vor.u32 %v1316_v53, %v1314_v40  ;;  %v1675_v39 = vrot.slane %v14514_v45, 1  ;;  %v13354_v40 = vld [vmem:[#allocation4 + $0x144] ss:$8 sps:$4 sm:$0xff]   ;;  %v1677_v53 = vrot.slane %v14529_v6, 1 }
 0x1af   : > { %v1005_v29 = vsel %vm14490_vm4, %v966_v24, %v1004_v21  ;;  %v968_v30 = vshrl.u32 %v917_v25, 16  ;;  %v971_v31 = vshll.u32 %v917_v25, 16  ;;  %2441 = vmatmul.mubr.bf16.gmra.mrb[4].mxu1 %v14541_v27  ;;  %v14553_v43 = vld [vmem:[#allocation2 + $0x28] sm:$0xff]  ;;  %v14596_v18 = vrot.slane %v1283_v9, 1  ;;  %v13334_v25 = vld [vmem:[#allocation4 + $0x100] ss:$8 sps:$4 sm:$0xff]  }
 0x1b0   : > { %1006 = vst [vmem:[#allocation2 + $0x38] sm:$0x1f] %v1005_v29  ;;  %1180 = vmatmul.mubr.bf16.gmra.mrb[28].mxu0 %v14529_v6  ;;  %2450 = vmatprep.mubr.bf16.mxu1 %v14548_v33  ;;  %v1320_v50 = vshll.u32 %v14553_v43, 16  ;;  %v1324_v60 = vshrl.u32 %v14553_v43, 16  ;;  %v13360_v9 = vld [vmem:[#allocation4 + $0x354] ss:$8 sps:$4 sm:$0xff]  }
 0x1b1   : > { %v970_v36 = vrot.slane %v968_v30, 7  ;;  %1189 = vmatprep.mubr.bf16.mxu0 %v14548_v33  ;;  %2713 = vmatpush1.bf16.msra.mxu1 %v13283_v26  ;;  %v14566_v57 = vld [vmem:[#allocation2 + $0x30] sm:$0xff]  ;;  %v14604_v23 = vor.u32 %v14596_v18, %v1281_v16  ;;  %v13369_v16 = vld [vmem:[#allocation4 + $0x364] ss:$8 sps:$4 sm:$0xff]  }
 0x1b2   : > { %2714 = vmatprep.subr.bf16.mxu1 %v13294_v32  ;;  %v1322_v54 = vrot.slane %v1320_v50, 1  ;;  %v1328_v62 = vshll.u32 %v14566_v57, 16  ;;  %v1332_v7 = vshrl.u32 %v14566_v57, 16  ;;  %v13339_v32 = vld [vmem:[#allocation4 + $0x114] ss:$8 sps:$4 sm:$0xff]  }
 0x1b3   : > { %v973_v42 = vor.u32 %v971_v31, %v970_v36  ;;  %v1291_v29 = vsel %vm1279_vm10, %v14604_v23, %v14517_v47  ;;  %v13337_v30 = vld [vmem:[#allocation4 + $0x110] ss:$8 sps:$4 sm:$0xff]   ;;  %v13343_v36 = vld [vmem:[#allocation4 + $0x120] ss:$8 sps:$4 sm:$0xff]   ;;  %v13357_v50 = vld [vmem:[#allocation4 + $0x154] ss:$8 sps:$4 sm:$0xff]  }
 0x1b4   : > { %v14569_v59 = vsel %vm1279_vm10, %v1318_v56, %v1322_v54  ;;  %v1326_v0 = vor.u32 %v1324_v60, %v1322_v54  ;;  %v1330_v4 = vrot.slane %v1328_v62, 1  ;;  %v13346_v47 = vld [vmem:[#allocation4 + $0x130] ss:$8 sps:$4 sm:$0xff]   ;;  %v13331_v56 = vld [vmem:[#allocation4 + $0x320] ss:$8 sps:$4 sm:$0xff]  }
 0x1b5   : > { %v1008_v44 = vsel %vm14490_vm4, %v973_v42, %v1007_v38  ;;  %2715 = vmatpush1.bf16.msra.mxu1 %v13292_v37  ;;  %v13348_v38 = vld [vmem:[#allocation4 + $0x134] ss:$8 sps:$4 sm:$0xff]   ;;  %v1673_v42 = vrot.slane %v14505_v35, 1  ;;  %v13355_v54 = vld [vmem:[#allocation4 + $0x150] ss:$8 sps:$4 sm:$0xff]  }
 0x1b6   : > { %1009 = vst [vmem:[#allocation2 + $0x40] sm:$0x1f] %v1008_v44  ;;  %2716 = vmatprep.subr.bf16.mxu1 %v13303_v41  ;;  %v14580_v5 = vsel %vm1279_vm10, %v1326_v0, %v1330_v4  ;;  %v1334_v10 = vor.u32 %v1332_v7, %v1330_v4  ;;  %v13325_v41 = vld [vmem:[#allocation4 + $0x300] ss:$8 sps:$4 sm:$0xff]   ;;  %v13330_v44 = vld [vmem:[#allocation4 + $0x314] ss:$8 sps:$4 sm:$0xff]  }
 0x1b7   : > { %2451 = vmatmul.mubr.bf16.gmra.mrb[8].mxu1 %v14558_v49  ;;  %v14577_v3 = vld [vmem:[#allocation2 + $0x38] sm:$0xff]  ;;  %v13342_v60 = vld [vmem:[#allocation4 + $0x334] ss:$8 sps:$4 sm:$0xff]   ;;  %v1679_v0 = vrot.slane %v14538_v19, 1  ;;  %v13364_v4 = vld [vmem:[#allocation4 + $0x170] ss:$8 sps:$4 sm:$0xff]  }
 0x1b8   : > { %1190 = vmatmul.mubr.bf16.gmra.mrb[32].mxu0 %v14538_v19  ;;  %2460 = vmatprep.mubr.bf16.mxu1 %v14548_v33  ;;  %v1336_v17 = vshll.u32 %v14577_v3, 16  ;;  %v1340_v14 = vshrl.u32 %v14577_v3, 16  ;;  %v13366_v62 = vld [vmem:[#allocation4 + $0x174] ss:$8 sps:$4 sm:$0xff]   ;;  %v13349_v7 = vld [vmem:[#allocation4 + $0x340] ss:$8 sps:$4 sm:$0xff]  }
 0x1b9   : > { %1199 = vmatprep.mubr.bf16.mxu0 %v14548_v33  ;;  %2717 = vmatpush1.bf16.msra.mxu1 %v13301_v46  ;;  %v13352_v46 = vld [vmem:[#allocation4 + $0x140] ss:$8 sps:$4 sm:$0xff]  }
 0x1ba   : > { %2718 = vmatprep.subr.bf16.mxu1 %v13312_v51  ;;  %v1338_v8 = vrot.slane %v1336_v17, 1  ;;  %v13328_v51 = vld [vmem:[#allocation4 + $0x310] ss:$8 sps:$4 sm:$0xff]   ;;  %v13384_v17 = vld [vmem:[#allocation4 + $0x184] ss:$8 sps:$4 sm:$0xff]  }
 0x1bc   : > { %v14592_v20 = vsel %vm1279_vm10, %v1334_v10, %v1338_v8  ;;  %v1342_v22 = vor.u32 %v1340_v14, %v1338_v8  ;;  %v14645_v8 = vsel %vm1671_vm12, %v1677_v53, %v1679_v0  ;;  %v13358_v10 = vld [vmem:[#allocation4 + $0x350] ss:$8 sps:$4 sm:$0xff]   ;;  %v1681_v14 = vrot.slane %v14553_v43, 1 }
 0x1bd   : > { %2719 = vmatpush1.bf16.msra.mxu1 %v13310_v52  ;;  %v14589_v11 = vld [vmem:[#allocation2 + $0x40] sm:$0xff] }
 0x1be   : > { %2720 = vmatprep.subr.bf16.mxu1 %v13321_v55  ;;  %v1344_v21 = vshll.u32 %v14589_v11, 16  ;;  %v2309_v28 = vshrl.u32 %v14589_v11, 16  ;;  %v13333_v52 = vld [vmem:[#allocation4 + $0x324] ss:$8 sps:$4 sm:$0xff]  }
 0x1bf   : > { %2461 = vmatmul.mubr.bf16.gmra.mrb[12].mxu1 %v14569_v59  ;;  %v13363_v55 = vld [vmem:[#allocation4 + $0x164] ss:$8 sps:$4 sm:$0xff]  }
 0x1c0   : > { %1200 = vmatmul.mubr.bf16.gmra.mrb[36].mxu0 %v14553_v43  ;;  %2470 = vmatprep.mubr.bf16.mxu1 %v14548_v33  ;;  %v1346_v24 = vrot.slane %v1344_v21, 1  ;;  %v13367_v21 = vld [vmem:[#allocation4 + $0x360] ss:$8 sps:$4 sm:$0xff]  }
 0x1c1   : > { %1209 = vmatprep.mubr.bf16.mxu0 %v14548_v33  ;;  %2721 = vmatpush1.bf16.msra.mxu1 %v13319_v58  ;;  %v14637_v58 = vsel %vm1671_vm12, %v1675_v39, %v1677_v53  ;;  %v13373_v53 = vld [vmem:[#allocation4 + $0x380] ss:$8 sps:$4 sm:$0xff]  }
 0x1c2   : > { %2722 = vmatprep.subr.bf16.mxu1 %v13324_v61  ;;  %v14607_v26 = vsel %vm1279_vm10, %v1342_v22, %v1346_v24  ;;  %v2311_v31 = vor.u32 %v2309_v28, %v1346_v24  ;;  %v13361_v61 = vld [vmem:[#allocation4 + $0x160] ss:$8 sps:$4 sm:$0xff]   ;;  %v14653_v22 = vsel %vm1671_vm12, %v1679_v0, %v1681_v14  ;;  %v13372_v24 = vld [vmem:[#allocation4 + $0x374] ss:$8 sps:$4 sm:$0xff]   ;;  %v1683_v28 = vrot.slane %v14566_v57, 1 }
 0x1c3   : > { %v13390_v0 = vld [vmem:[#allocation4 + $0x3b4] ss:$8 sps:$4 sm:$0xff]  }
 0x1c4   : > { %v14618_v37 = vsel %vm1279_vm10, %v2311_v31, %v14596_v18 }
 0x1c5   : > { %2723 = vmatpush1.bf16.msra.mxu1 %v13322_v63  ;;  %v13340_v63 = vld [vmem:[#allocation4 + $0x330] ss:$8 sps:$4 sm:$0xff]  }
 0x1c6   : > { %3014 = vmatprep.subr.bf16.mxu1 %v13327_v2  ;;  %v13351_v2 = vld [vmem:[#allocation4 + $0x344] ss:$8 sps:$4 sm:$0xff]  }
 0x1c7   : > { %2471 = vmatmul.mubr.bf16.gmra.mrb[16].mxu1 %v14580_v5 }
 0x1c8   : > { %1210 = vmatmul.mubr.bf16.gmra.mrb[40].mxu0 %v14566_v57  ;;  %2480 = vmatprep.mubr.bf16.mxu1 %v14548_v33 }
 0x1c9   : > { %1219 = vmatprep.mubr.bf16.mxu0 %v14548_v33 }
 0x1cf   : > { %2481 = vmatmul.mubr.bf16.gmra.mrb[20].mxu1 %v14592_v20 }
 0x1d0   : > { %1220 = vmatmul.mubr.bf16.gmra.mrb[44].mxu0 %v14577_v3  ;;  %2490 = vmatprep.mubr.bf16.mxu1 %v14548_v33 }
 0x1d1   : > { %1468 = vmatprep.mubr.bf16.mxu0 %v14548_v33 }
 0x1d7   : > { %2491 = vmatmul.mubr.bf16.gmra.mrb[24].mxu1 %v14607_v26 }
 0x1d8   : > { %1469 = vmatmul.mubr.bf16.vlgmr.msra.gmra.mrb[16].mxu0 %v1291_v29  ;;  %2500 = vmatprep.mubr.bf16.mxu1 %v14548_v33  ;;  %v14661_v29 = vsel %vm1671_vm12, %v1681_v14, %v1683_v28  ;;  %v13408_v14 = vld [vmem:[#allocation4 + $0x3d4] ss:$8 sps:$4 sm:$0xff]  }
 0x1d9   : > { %1478 = vmatprep.mubr.bf16.mxu0 %v14548_v33  ;;  %1778 = vmatpush1.bf16.msra.mxu0 %v13334_v25  ;;  %v13370_v25 = vld [vmem:[#allocation4 + $0x370] ss:$8 sps:$4 sm:$0xff]  }
 0x1da   : > { %1779 = vmatprep.subr.bf16.mxu0 %v13339_v32  ;;  %v13375_v32 = vld [vmem:[#allocation4 + $0x384] ss:$8 sps:$4 sm:$0xff]  }
 0x1dd   : > { %1780 = vmatpush1.bf16.msra.mxu0 %v13337_v30  ;;  %v1685_v30 = vrot.slane %v14577_v3, 1 }
 0x1de   : > { %1781 = vmatprep.subr.bf16.mxu0 %v13345_v34  ;;  %v1687_v34 = vrot.slane %v14589_v11, 1 }
 0x1df   : > { %2501 = vmatmul.mubr.bf16.gmra.mrb[28].mxu1 %v14618_v37  ;;  %v14669_v31 = vsel %vm1671_vm12, %v1683_v28, %v1685_v30  ;;  %v13418_v28 = vld [vmem:[#allocation4 + $0x3f0] ss:$8 sps:$4 sm:$0xff]  }
 0x1e0   : > { %1479 = vmatmul.mubr.bf16.gmra.mrb[20].mxu0 %v14523_v1  ;;  %2740 = vmatprep.mubr.bf16.mxu1 %v14548_v33  ;;  %v14629_v1 = vsel %vm1671_vm12, %v1673_v42, %v1675_v39  ;;  %v13387_v39 = vld [vmem:[#allocation4 + $0x194] ss:$8 sps:$4 sm:$0xff]  }
 0x1e1   : > { %1488 = vmatprep.mubr.bf16.mxu0 %v14548_v33  ;;  %1782 = vmatpush1.bf16.msra.mxu0 %v13343_v36  ;;  %v14677_v36 = vrot.slane %v14548_v33, 1 }
 0x1e2   : > { %1783 = vmatprep.subr.bf16.mxu0 %v13348_v38  ;;  %v13382_v38 = vld [vmem:[#allocation4 + $0x180] ss:$8 sps:$4 sm:$0xff]  }
 0x1e5   : > { %1784 = vmatpush1.bf16.msra.mxu0 %v13346_v47  ;;  %v14680_v47 = vsel %vm1671_vm12, %v1685_v30, %v1687_v34  ;;  %v13421_v30 = vld [vmem:[#allocation4 + $0x400] ss:$8 sps:$4 sm:$0xff]  }
 0x1e6   : > { %1785 = vmatprep.subr.bf16.mxu0 %v13354_v40  ;;  %v1674_v40 = vsel %vm1671_vm12, %v14677_v36, %v1673_v42  ;;  %v13394_v42 = vld [vmem:[#allocation4 + $0x1b0] ss:$8 sps:$4 sm:$0xff]  }
 0x1e7   : > { %2741 = vmatmul.mubr.bf16.vlgmr.msra.gmra.mrb[0].mxu1 %v14629_v1 }
 0x1e8   : > { %3015 = vmatpush1.bf16.msra.mxu1 %v13325_v41  ;;  %1489 = vmatmul.mubr.bf16.gmra.mrb[24].mxu0 %v14541_v27  ;;  %v13385_v41 = vld [vmem:[#allocation4 + $0x190] ss:$8 sps:$4 sm:$0xff]  }
 0x1e9   : > { %2750 = vmatprep.mubr.bf16.mxu1 %v14548_v33  ;;  %3016 = vmatprep.subr.bf16.mxu1 %v13330_v44  ;;  %v13393_v44 = vld [vmem:[#allocation4 + $0x1a4] ss:$8 sps:$4 sm:$0xff]  }
 0x1ea   : > { %1498 = vmatprep.mubr.bf16.mxu0 %v14548_v33  ;;  %1786 = vmatpush1.bf16.msra.mxu0 %v13352_v46  ;;  %v13391_v46 = vld [vmem:[#allocation4 + $0x1a0] ss:$8 sps:$4 sm:$0xff]  }
 0x1eb   : > { %1787 = vmatprep.subr.bf16.mxu0 %v13357_v50  ;;  %v14691_v50 = vsel %vm1671_vm12, %v1687_v34, %v14677_v36  ;;  %v13426_v34 = vld [vmem:[#allocation4 + $0x414] ss:$8 sps:$4 sm:$0xff]  }
 0x1ec   : > { %3017 = vmatpush1.bf16.msra.mxu1 %v13328_v51  ;;  %v13396_v51 = vld [vmem:[#allocation4 + $0x1b4] ss:$8 sps:$4 sm:$0xff]  }
 0x1ed   : > { %3018 = vmatprep.subr.bf16.mxu1 %v13333_v52  ;;  %v13402_v52 = vld [vmem:[#allocation4 + $0x1c4] ss:$8 sps:$4 sm:$0xff]  }
 0x1ee   : > { %1788 = vmatpush1.bf16.msra.mxu0 %v13355_v54  ;;  %v13378_v54 = vld [vmem:[#allocation4 + $0x394] ss:$8 sps:$4 sm:$0xff]  }
 0x1ef   : > { %2751 = vmatmul.mubr.bf16.gmra.mrb[4].mxu1 %v14637_v58  ;;  %1789 = vmatprep.subr.bf16.mxu0 %v13363_v55  ;;  %v13400_v55 = vld [vmem:[#allocation4 + $0x1c0] ss:$8 sps:$4 sm:$0xff]  }
 0x1f0   : > { %1499 = vmatmul.mubr.bf16.gmra.mrb[28].mxu0 %v14558_v49  ;;  %2760 = vmatprep.mubr.bf16.mxu1 %v14548_v33 }
 0x1f1   : > { %1508 = vmatprep.mubr.bf16.mxu0 %v14548_v33  ;;  %3019 = vmatpush1.bf16.msra.mxu1 %v13331_v56  ;;  %v13405_v56 = vld [vmem:[#allocation4 + $0x1d4] ss:$8 sps:$4 sm:$0xff]  }
 0x1f2   : > { %3020 = vmatprep.subr.bf16.mxu1 %v13342_v60  ;;  %1790 = vmatpush1.bf16.msra.mxu0 %v13361_v61  ;;  %v13381_v60 = vld [vmem:[#allocation4 + $0x3a4] ss:$8 sps:$4 sm:$0xff]   ;;  %v13403_v61 = vld [vmem:[#allocation4 + $0x1d0] ss:$8 sps:$4 sm:$0xff]  }
 0x1f3   : > { %1791 = vmatprep.subr.bf16.mxu0 %v13366_v62  ;;  %v13411_v62 = vld [vmem:[#allocation4 + $0x1e4] ss:$8 sps:$4 sm:$0xff]  }
 0x1f5   : > { %3021 = vmatpush1.bf16.msra.mxu1 %v13340_v63  ;;  %v13379_v63 = vld [vmem:[#allocation4 + $0x3a0] ss:$8 sps:$4 sm:$0xff]  }
 0x1f6   : > { %3022 = vmatprep.subr.bf16.mxu1 %v13351_v2  ;;  %1792 = vmatpush1.bf16.msra.mxu0 %v13364_v4  ;;  %v13409_v2 = vld [vmem:[#allocation4 + $0x1e0] ss:$8 sps:$4 sm:$0xff]   ;;  %v13414_v4 = vld [vmem:[#allocation4 + $0x1f4] ss:$8 sps:$4 sm:$0xff]  }
 0x1f7   : > { %2761 = vmatmul.mubr.bf16.gmra.mrb[8].mxu1 %v14645_v8  ;;  %2083 = vmatprep.subr.bf16.mxu0 %v13384_v17  ;;  %v13388_v17 = vld [vmem:[#allocation4 + $0x3b0] ss:$8 sps:$4 sm:$0xff]  }
 0x1f8   : > { %1509 = vmatmul.mubr.bf16.gmra.mrb[32].mxu0 %v14569_v59  ;;  %2770 = vmatprep.mubr.bf16.mxu1 %v14548_v33 }
 0x1f9   : > { %1518 = vmatprep.mubr.bf16.mxu0 %v14548_v33  ;;  %3023 = vmatpush1.bf16.msra.mxu1 %v13349_v7  ;;  %v13399_v7 = vld [vmem:[#allocation4 + $0x3c4] ss:$8 sps:$4 sm:$0xff]  }
 0x1fa   : > { %3024 = vmatprep.subr.bf16.mxu1 %v13360_v9  ;;  %v13412_v9 = vld [vmem:[#allocation4 + $0x1f0] ss:$8 sps:$4 sm:$0xff]  }
 0x1fd   : > { %3025 = vmatpush1.bf16.msra.mxu1 %v13358_v10  ;;  %v13397_v10 = vld [vmem:[#allocation4 + $0x3c0] ss:$8 sps:$4 sm:$0xff]  }
 0x1fe   : > { %3026 = vmatprep.subr.bf16.mxu1 %v13369_v16  ;;  %v13406_v16 = vld [vmem:[#allocation4 + $0x3d0] ss:$8 sps:$4 sm:$0xff]  }
 0x1ff   : > { %2771 = vmatmul.mubr.bf16.gmra.mrb[12].mxu1 %v14653_v22 }
 0x200   : > { %1519 = vmatmul.mubr.bf16.gmra.mrb[36].mxu0 %v14580_v5  ;;  %2780 = vmatprep.mubr.bf16.mxu1 %v14548_v33 }
 0x201   : > { %1528 = vmatprep.mubr.bf16.mxu0 %v14548_v33  ;;  %3027 = vmatpush1.bf16.msra.mxu1 %v13367_v21  ;;  %v13417_v21 = vld [vmem:[#allocation4 + $0x3e4] ss:$8 sps:$4 sm:$0xff]  }
 0x202   : > { %3028 = vmatprep.subr.bf16.mxu1 %v13372_v24  ;;  %v13415_v24 = vld [vmem:[#allocation4 + $0x3e0] ss:$8 sps:$4 sm:$0xff]  }
 0x205   : > { %3029 = vmatpush1.bf16.msra.mxu1 %v13370_v25  ;;  %v13420_v25 = vld [vmem:[#allocation4 + $0x3f4] ss:$8 sps:$4 sm:$0xff]  }
 0x206   : > { %3329 = vmatprep.subr.bf16.mxu1 %v13375_v32  ;;  %v13423_v32 = vld [vmem:[#allocation4 + $0x404] ss:$8 sps:$4 sm:$0xff]  }
 0x207   : > { %2781 = vmatmul.mubr.bf16.gmra.mrb[16].mxu1 %v14661_v29 }
 0x208   : > { %1529 = vmatmul.mubr.bf16.gmra.mrb[40].mxu0 %v14592_v20  ;;  %2790 = vmatprep.mubr.bf16.mxu1 %v14548_v33 }
 0x209   : > { %1538 = vmatprep.mubr.bf16.mxu0 %v14548_v33 }
 0x20f   : > { %2791 = vmatmul.mubr.bf16.gmra.mrb[20].mxu1 %v14669_v31 }
 0x210   : > { %1539 = vmatmul.mubr.bf16.gmra.mrb[44].mxu0 %v14607_v26  ;;  %2800 = vmatprep.mubr.bf16.mxu1 %v14548_v33 }
 0x211   : > { %1809 = vmatprep.mubr.bf16.mxu0 %v14548_v33 }
 0x217   : > { %2801 = vmatmul.mubr.bf16.gmra.mrb[24].mxu1 %v14680_v47 }
 0x218   : > { %1810 = vmatmul.mubr.bf16.vlgmr.msra.gmra.mrb[16].mxu0 %v1674_v40  ;;  %2810 = vmatprep.mubr.bf16.mxu1 %v14548_v33  ;;  %v13433_v40 = vld [vmem:[#allocation4 + $0x440] ss:$8 sps:$4 sm:$0xff]  }
 0x219   : > { %1819 = vmatprep.mubr.bf16.mxu0 %v14548_v33  ;;  %2084 = vmatpush1.bf16.msra.mxu0 %v13382_v38  ;;  %v13429_v38 = vld [vmem:[#allocation4 + $0x424] ss:$8 sps:$4 sm:$0xff]  }
 0x21a   : > { %2085 = vmatprep.subr.bf16.mxu0 %v13387_v39  ;;  %v13432_v39 = vld [vmem:[#allocation4 + $0x434] ss:$8 sps:$4 sm:$0xff]  }
 0x21d   : > { %2086 = vmatpush1.bf16.msra.mxu0 %v13385_v41  ;;  %v13438_v41 = vld [vmem:[#allocation4 + $0x454] ss:$8 sps:$4 sm:$0xff]  }
 0x21e   : > { %2087 = vmatprep.subr.bf16.mxu0 %v13393_v44  ;;  %v13439_v44 = vld [vmem:[#allocation4 + $0x460] ss:$8 sps:$4 sm:$0xff]  }
 0x21f   : > { %2811 = vmatmul.mubr.bf16.gmra.mrb[28].mxu1 %v14691_v50 }
 0x220   : > { %1820 = vmatmul.mubr.bf16.gmra.mrb[20].mxu0 %v14629_v1  ;;  %3046 = vmatprep.mubr.bf16.mxu1 %v14548_v33  ;;  %v13376_v1 = vld [vmem:[#allocation4 + $0x390] ss:$8 sps:$4 sm:$0xff]  }
 0x221   : > { %1829 = vmatprep.mubr.bf16.mxu0 %v14548_v33  ;;  %2088 = vmatpush1.bf16.msra.mxu0 %v13391_v46  ;;  %v13444_v46 = vld [vmem:[#allocation4 + $0x474] ss:$8 sps:$4 sm:$0xff]  }
 0x222   : > { %2089 = vmatprep.subr.bf16.mxu0 %v13396_v51  ;;  %v13460_v51 = vld [vmem:[#allocation6 + $0x38] sm:$0xff]  }
 0x225   : > { %2090 = vmatpush1.bf16.msra.mxu0 %v13394_v42 }
 0x226   : > { %2091 = vmatprep.subr.bf16.mxu0 %v13402_v52 }
 0x227   : > { %3047 = vmatmul.mubr.bf16.vlgmr.msra.gmra.mrb[0].mxu1 %v14514_v45 }
 0x228   : > { %3330 = vmatpush1.bf16.msra.mxu1 %v13373_v53  ;;  %1830 = vmatmul.mubr.bf16.gmra.mrb[24].mxu0 %v14637_v58 }
 0x229   : > { %3056 = vmatprep.mubr.bf16.mxu1 %v14548_v33  ;;  %3331 = vmatprep.subr.bf16.mxu1 %v13378_v54 }
 0x22a   : > { %1839 = vmatprep.mubr.bf16.mxu0 %v14548_v33  ;;  %2092 = vmatpush1.bf16.msra.mxu0 %v13400_v55 }
 0x22b   : > { %2093 = vmatprep.subr.bf16.mxu0 %v13405_v56 }
 0x22c   : > { %3332 = vmatpush1.bf16.msra.mxu1 %v13376_v1 }
 0x22d   : > { %3333 = vmatprep.subr.bf16.mxu1 %v13381_v60 }
 0x22e   : > { %2094 = vmatpush1.bf16.msra.mxu0 %v13403_v61 }
 0x22f   : > { %3057 = vmatmul.mubr.bf16.gmra.mrb[4].mxu1 %v14529_v6  ;;  %2095 = vmatprep.subr.bf16.mxu0 %v13411_v62 }
 0x230   : > { %1840 = vmatmul.mubr.bf16.gmra.mrb[28].mxu0 %v14645_v8  ;;  %3066 = vmatprep.mubr.bf16.mxu1 %v14548_v33 }
 0x231   : > { %1849 = vmatprep.mubr.bf16.mxu0 %v14548_v33  ;;  %3334 = vmatpush1.bf16.msra.mxu1 %v13379_v63 }
 0x232   : > { %3335 = vmatprep.subr.bf16.mxu1 %v13390_v0  ;;  %2096 = vmatpush1.bf16.msra.mxu0 %v13409_v2  ;;  %v13463_v2 = vld [vmem:[#allocation8 + $0x4] ss:$8 sps:$4 sm:$0xff]  }
 0x233   : > { %2097 = vmatprep.subr.bf16.mxu0 %v13414_v4 }
 0x235   : > { %3336 = vmatpush1.bf16.msra.mxu1 %v13388_v17 }
 0x236   : > { %3337 = vmatprep.subr.bf16.mxu1 %v13399_v7  ;;  %2098 = vmatpush1.bf16.msra.mxu0 %v13412_v9 }
 0x237   : > { %3067 = vmatmul.mubr.bf16.gmra.mrb[8].mxu1 %v14538_v19 }
 0x238   : > { %1850 = vmatmul.mubr.bf16.gmra.mrb[32].mxu0 %v14653_v22  ;;  %3076 = vmatprep.mubr.bf16.mxu1 %v14548_v33 }
 0x239   : > { %1859 = vmatprep.mubr.bf16.mxu0 %v14548_v33  ;;  %3338 = vmatpush1.bf16.msra.mxu1 %v13397_v10 }
 0x23a   : > { %3339 = vmatprep.subr.bf16.mxu1 %v13408_v14 }
 0x23d   : > { %3340 = vmatpush1.bf16.msra.mxu1 %v13406_v16 }
 0x23e   : > { %3341 = vmatprep.subr.bf16.mxu1 %v13417_v21 }
 0x23f   : > { %3077 = vmatmul.mubr.bf16.gmra.mrb[12].mxu1 %v14553_v43 }
 0x240   : > { %1860 = vmatmul.mubr.bf16.gmra.mrb[36].mxu0 %v14661_v29  ;;  %3086 = vmatprep.mubr.bf16.mxu1 %v14548_v33 }
 0x241   : > { %1869 = vmatprep.mubr.bf16.mxu0 %v14548_v33  ;;  %3342 = vmatpush1.bf16.msra.mxu1 %v13415_v24 }
 0x242   : > { %3343 = vmatprep.subr.bf16.mxu1 %v13420_v25 }
 0x245   : > { %3344 = vmatpush1.bf16.msra.mxu1 %v13418_v28 }
 0x246   : > { %3639 = vmatprep.subr.bf16.mxu1 %v13423_v32 }
 0x247   : > { %3087 = vmatmul.mubr.bf16.gmra.mrb[16].mxu1 %v14566_v57 }
 0x248   : > { %1870 = vmatmul.mubr.bf16.gmra.mrb[40].mxu0 %v14669_v31  ;;  %3096 = vmatprep.mubr.bf16.mxu1 %v14548_v33 }
 0x249   : > { %1879 = vmatprep.mubr.bf16.mxu0 %v14548_v33 }
 0x24f   : > { %3097 = vmatmul.mubr.bf16.gmra.mrb[20].mxu1 %v14577_v3 }
 0x250   : > { %1880 = vmatmul.mubr.bf16.gmra.mrb[44].mxu0 %v14680_v47  ;;  %3106 = vmatprep.mubr.bf16.mxu1 %v14548_v33 }
 0x251   : > { %2115 = vmatprep.mubr.bf16.mxu0 %v14548_v33 }
 0x257   : > { %3107 = vmatmul.mubr.bf16.gmra.mrb[24].mxu1 %v14589_v11 }
 0x258   : > { %2116 = vmatmul.mubr.bf16.vlgmr.msra.gmra.mrb[16].mxu0 %v14505_v35  ;;  %3116 = vmatprep.mubr.bf16.mxu1 %v14548_v33  ;;  %v13424_v35 = vld [vmem:[#allocation4 + $0x410] ss:$8 sps:$4 sm:$0xff]  }
 0x259   : > { %2125 = vmatprep.mubr.bf16.mxu0 %v14548_v33 }
 0x25f   : > { %3117 = vmatmul.mubr.bf16.gmra.mrb[28].mxu1 %v14548_v33 }
 0x260   : > { %2126 = vmatmul.mubr.bf16.gmra.mrb[20].mxu0 %v14514_v45  ;;  %3361 = vmatprep.mubr.bf16.mxu1 %v14548_v33  ;;  %v13427_v45 = vld [vmem:[#allocation4 + $0x420] ss:$8 sps:$4 sm:$0xff]  }
 0x261   : > { %2135 = vmatprep.mubr.bf16.mxu0 %v14548_v33 }
 0x267   : > { %3362 = vmatmul.mubr.bf16.vlgmr.msra.gmra.mrb[0].mxu1 %v14541_v27  ;;  %v13435_v27 = vld [vmem:[#allocation4 + $0x444] ss:$8 sps:$4 sm:$0xff]  }
 0x268   : > { %3640 = vmatpush1.bf16.msra.mxu1 %v13421_v30  ;;  %2136 = vmatmul.mubr.bf16.gmra.mrb[24].mxu0 %v14529_v6  ;;  %v13430_v6 = vld [vmem:[#allocation4 + $0x430] ss:$8 sps:$4 sm:$0xff]  }
 0x269   : > { %3371 = vmatprep.mubr.bf16.mxu1 %v14548_v33  ;;  %3641 = vmatprep.subr.bf16.mxu1 %v13426_v34 }
 0x26a   : > { %2145 = vmatprep.mubr.bf16.mxu0 %v14548_v33 }
 0x26c   : > { %3642 = vmatpush1.bf16.msra.mxu1 %v13424_v35 }
 0x26d   : > { %3643 = vmatprep.subr.bf16.mxu1 %v13429_v38 }
 0x26f   : > { %3372 = vmatmul.mubr.bf16.gmra.mrb[4].mxu1 %v14558_v49  ;;  %v13441_v49 = vld [vmem:[#allocation4 + $0x464] ss:$8 sps:$4 sm:$0xff]  }
 0x270   : > { %2146 = vmatmul.mubr.bf16.gmra.mrb[28].mxu0 %v14538_v19  ;;  %3381 = vmatprep.mubr.bf16.mxu1 %v14548_v33  ;;  %v13436_v19 = vld [vmem:[#allocation4 + $0x450] ss:$8 sps:$4 sm:$0xff]  }
 0x271   : > { %2155 = vmatprep.mubr.bf16.mxu0 %v14548_v33  ;;  %3644 = vmatpush1.bf16.msra.mxu1 %v13427_v45 }
 0x272   : > { %3645 = vmatprep.subr.bf16.mxu1 %v13432_v39 }
 0x275   : > { %3646 = vmatpush1.bf16.msra.mxu1 %v13430_v6 }
 0x276   : > { %3647 = vmatprep.subr.bf16.mxu1 %v13435_v27 }
 0x277   : > { %3382 = vmatmul.mubr.bf16.gmra.mrb[8].mxu1 %v14569_v59  ;;  %v13445_v59 = vld [vmem:[#allocation6 + $0x40] sm:$0xff]  }
 0x278   : > { %2156 = vmatmul.mubr.bf16.gmra.mrb[32].mxu0 %v14553_v43  ;;  %3391 = vmatprep.mubr.bf16.mxu1 %v14548_v33  ;;  %v13442_v43 = vld [vmem:[#allocation4 + $0x470] ss:$8 sps:$4 sm:$0xff]  }
 0x279   : > { %2165 = vmatprep.mubr.bf16.mxu0 %v14548_v33  ;;  %3648 = vmatpush1.bf16.msra.mxu1 %v13433_v40  ;;  %v3848_v40 = vld [vmem:[%s16058_s4] sm:$0xf] }
 0x27a   : > { %3649 = vmatprep.subr.bf16.mxu1 %v13438_v41  ;;  %12209 = vmatprep.subr.bf16.mxu0 %v13445_v59  ;;  %v14835_v41 = vsub.s32 2, %v14466_v12 }
 0x27d   : > { %3650 = vmatpush1.bf16.msra.mxu1 %v13436_v19  ;;  %v14838_v19 = vsub.s32 3, %v14466_v12 }
 0x27e   : > { %3651 = vmatprep.subr.bf16.mxu1 %v13441_v49  ;;  %v3885_v49 = vrot.slane %v3848_v40, %v14469_v13 }
 0x27f   : > { %3392 = vmatmul.mubr.bf16.gmra.mrb[12].mxu1 %v14580_v5  ;;  %v13447_v5 = vld [vmem:[#allocation6 + $0x48] sm:$0xff]  }
 0x280   : > { %2166 = vmatmul.mubr.bf16.gmra.mrb[36].mxu0 %v14566_v57  ;;  %3401 = vmatprep.mubr.bf16.mxu1 %v14548_v33  ;;  %v3247_v57 = vsel %vm1279_vm10, %v14604_v23, %v14596_v18  ;;  %v13450_v18 = vld [vmem:[#allocation6 + $0x10] sm:$0xff]  }
 0x281   : > { %2175 = vmatprep.mubr.bf16.mxu0 %v14548_v33  ;;  %3652 = vmatpush1.bf16.msra.mxu1 %v13439_v44  ;;  %v3889_v44 = vrot.slane %v3848_v40, %v14835_v41 }
 0x282   : > { %3653 = vmatprep.subr.bf16.mxu1 %v13444_v46  ;;  %v3935_v46 = vrot.slane %v3848_v40, %v14475_v15 }
 0x285   : > { %3654 = vmatpush1.bf16.msra.mxu1 %v13442_v43  ;;  %v3939_v43 = vrot.slane %v3848_v40, %v14838_v19 }
 0x287   : > { %3402 = vmatmul.mubr.bf16.gmra.mrb[16].mxu1 %v14592_v20  ;;  %v13449_v20 = vld [vmem:[#allocation6 + $0x50] sm:$0xff]  }
 0x288   : > { %2176 = vmatmul.mubr.bf16.gmra.mrb[40].mxu0 %v14577_v3  ;;  %3411 = vmatprep.mubr.bf16.mxu1 %v14548_v33  ;;  %v13446_v3 = vld [vmem:[#allocation6] sm:$0xff]  }
 0x289   : > { %2185 = vmatprep.mubr.bf16.mxu0 %v14548_v33  ;;  %12210 = vmatpush3.bf16.msra.mxu0 %v13446_v3  ;;  %v14848_v3 = vrot.slane %v3889_v44, %v14469_v13 }
 0x28a   : > { %12211 = vmatprep.subr.bf16.mxu0 %v13447_v5 }
 0x28f   : > { %3412 = vmatmul.mubr.bf16.gmra.mrb[20].mxu1 %v14607_v26  ;;  %v3557_v26 = vsel %vm1671_vm12, %v14677_v36, %v14677_v36 }
 0x290   : > { %2186 = vmatmul.mubr.bf16.gmra.mrb[44].mxu0 %v14589_v11  ;;  %3421 = vmatprep.mubr.bf16.mxu1 %v14548_v33  ;;  %v13448_v11 = vld [vmem:[#allocation6 + $0x8] sm:$0xff]  }
 0x291   : > { %12212 = vmatpush3.bf16.msra.mxu0 %v13448_v11  ;;  %v14851_v11 = vrot.slane %v3935_v46, %v14475_v15 }
 0x292   : > { %12213 = vmatprep.subr.bf16.mxu0 %v13449_v20 }
 0x295   : > { %12214 = vmatpush3.bf16.msra.mxu0 %v13450_v18  ;;  %v14854_v18 = vrot.slane %v3939_v43, %v14475_v15 }
 0x297   : > { %3422 = vmatmul.mubr.bf16.gmra.mrb[24].mxu1 %v14618_v37  ;;  %v13451_v37 = vld [vmem:[#allocation6 + $0x58] sm:$0xff]  }
 0x298   : > { %3431 = vmatprep.mubr.bf16.mxu1 %v14548_v33  ;;  %12215 = vmatprep.subr.bf16.mxu0 %v13451_v37 }
 0x29f   : > { %3432 = vmatmul.mubr.bf16.gmra.mrb[28].mxu1 %v3247_v57  ;;  %v14845_v57 = vrot.slane %v3885_v49, %v14469_v13 }
 0x2a0   : > { %3671 = vmatprep.mubr.bf16.mxu1 %v14548_v33 }
 0x2a7   : > { %3672 = vmatmul.mubr.bf16.vlgmr.msra.gmra.mrb[0].mxu1 %v14637_v58  ;;  %v13452_v58 = vld [vmem:[#allocation6 + $0x18] sm:$0xff]  }
 0x2a8   : > { %3681 = vmatprep.mubr.bf16.mxu1 %v14548_v33  ;;  %12216 = vmatpush3.bf16.msra.mxu0 %v13452_v58 }
 0x2af   : > { %3682 = vmatmul.mubr.bf16.gmra.mrb[4].mxu1 %v14645_v8  ;;  %v13453_v8 = vld [vmem:[#allocation6 + $0x60] sm:$0xff]  }
 0x2b0   : > { %3691 = vmatprep.mubr.bf16.mxu1 %v14548_v33  ;;  %12217 = vmatprep.subr.bf16.mxu0 %v13453_v8 }
 0x2b7   : > { %3692 = vmatmul.mubr.bf16.gmra.mrb[8].mxu1 %v14653_v22  ;;  %v13454_v22 = vld [vmem:[#allocation6 + $0x20] sm:$0xff]  }
 0x2b8   : > { %3701 = vmatprep.mubr.bf16.mxu1 %v14548_v33  ;;  %12218 = vmatpush3.bf16.msra.mxu0 %v13454_v22 }
 0x2bf   : > { %3702 = vmatmul.mubr.bf16.gmra.mrb[12].mxu1 %v14661_v29  ;;  %v13455_v29 = vld [vmem:[#allocation6 + $0x68] sm:$0xff]  }
 0x2c0   : > { %3711 = vmatprep.mubr.bf16.mxu1 %v14548_v33  ;;  %12219 = vmatprep.subr.bf16.mxu0 %v13455_v29 }
 0x2c7   : > { %3712 = vmatmul.mubr.bf16.gmra.mrb[16].mxu1 %v14669_v31  ;;  %v13456_v31 = vld [vmem:[#allocation6 + $0x28] sm:$0xff]  }
 0x2c8   : > { %3721 = vmatprep.mubr.bf16.mxu1 %v14548_v33  ;;  %12220 = vmatpush3.bf16.msra.mxu0 %v13456_v31 }
 0x2cf   : > { %3722 = vmatmul.mubr.bf16.gmra.mrb[20].mxu1 %v14680_v47  ;;  %v13457_v47 = vld [vmem:[#allocation6 + $0x70] sm:$0xff]  }
 0x2d0   : > { %3731 = vmatprep.mubr.bf16.mxu1 %v14548_v33  ;;  %12221 = vmatprep.subr.bf16.mxu0 %v13457_v47 }
 0x2d7   : > { %3732 = vmatmul.mubr.bf16.gmra.mrb[24].mxu1 %v14691_v50  ;;  %v13459_v50 = vld [vmem:[#allocation6 + $0x78] sm:$0xff]  }
 0x2d8   : > { %3741 = vmatprep.mubr.bf16.mxu1 %v14548_v33  ;;  %v13458_v33 = vld [vmem:[#allocation6 + $0x30] sm:$0xff]  }
 0x2d9   : > { %12222 = vmatpush3.bf16.msra.mxu0 %v13458_v33 }
 0x2da   : > { %12223 = vmatprep.subr.bf16.mxu0 %v13459_v50 }
 0x2dd   : > { %12224 = vmatpush3.bf16.msra.mxu0 %v13460_v51 }
 0x2de   : > { %4563 = vmatprep.subr.bf16.mxu0 %v13463_v2 }
 0x2df   : > { %3742 = vmatmul.mubr.bf16.gmra.mrb[28].mxu1 %v3557_v26 }
 0x32b   : > { %v2117_v42 = vpop.f32.mrb[16].mxu0 }
 0x32c   : > { %v2119_v52 = vpop.f32.mrb[17].mxu0 }
 0x32d   : > { %v2121_v53 = vpop.f32.mrb[18].mxu0 }
 0x32e   : > { %v2123_v54 = vpop.f32.mrb[19].mxu0 }
 0x333   : > { %v14775_v55 = vpop.f32.mrb[20].mxu0 }
 0x334   : > { %v14777_v56 = vpop.f32.mrb[21].mxu0 }
 0x335   : > { %v14779_v1 = vpop.f32.mrb[22].mxu0 }
 0x336   : > { %v14781_v60 = vpop.f32.mrb[23].mxu0 }
 0x33b   : > { %v14783_v61 = vpop.f32.mrb[24].mxu0 }
 0x33c   : > { %v14785_v62 = vpop.f32.mrb[25].mxu0 }
 0x33d   : > { %v14787_v63 = vpop.f32.mrb[26].mxu0 }
 0x33e   : > { %v14789_v0 = vpop.f32.mrb[27].mxu0 }
 0x343   : > { %v14791_v4 = vpop.f32.mrb[28].mxu0 }
 0x344   : > { %v14793_v17 = vpop.f32.mrb[29].mxu0 }
 0x345   : > { %v14795_v7 = vpop.f32.mrb[30].mxu0 }
 0x346   : > { %v14797_v9 = vpop.f32.mrb[31].mxu0 }
 0x34b   : > { %v14799_v10 = vpop.f32.mrb[32].mxu0 }
 0x34c   : > { %v14801_v14 = vpop.f32.mrb[33].mxu0 }
 0x34d   : > { %v14803_v16 = vpop.f32.mrb[34].mxu0 }
 0x34e   : > { %v14805_v21 = vpop.f32.mrb[35].mxu0 }
 0x353   : > { %v14807_v24 = vpop.f32.mrb[36].mxu0 }
 0x354   : > { %v14809_v25 = vpop.f32.mrb[37].mxu0 }
 0x355   : > { %v14811_v28 = vpop.f32.mrb[38].mxu0 }
 0x356   : > { %v14813_v32 = vpop.f32.mrb[39].mxu0 }
 0x35b   : > { %v14815_v30 = vpop.f32.mrb[40].mxu0 }
 0x35c   : > { %v14817_v34 = vpop.f32.mrb[41].mxu0 }
 0x35d   : > { %v14819_v35 = vpop.f32.mrb[42].mxu0 }
 0x35e   : > { %v14821_v38 = vpop.f32.mrb[43].mxu0 }
 0x363   : > { %v14823_v45 = vpop.f32.mrb[44].mxu0 }
 0x364   : > { %v14825_v39 = vpop.f32.mrb[45].mxu0 }
 0x365   : > { %v14827_v6 = vpop.f32.mrb[46].mxu0 }
 0x366   : > { %v14829_v27 = vpop.f32.mrb[47].mxu0 }
 0x37a   : > { %v3673_v59 = vpop.f32.mrb[0].mxu1 }
 0x37b   : > { %v12369_v5 = vadd.f32 %v3673_v59, %v2117_v42  ;;  %v3675_v12 = vpop.f32.mrb[1].mxu1 }
 0x37c   : > { %v12370_v20 = vadd.f32 %v3675_v12, %v2119_v52  ;;  %v3677_v26 = vpop.f32.mrb[2].mxu1 }
 0x37d   : > { %v3900_v37 = vmul.f32 %v12369_v5, %v14845_v57  ;;  %v12371_v58 = vadd.f32 %v3677_v26, %v2121_v53  ;;  %v3679_v8 = vpop.f32.mrb[3].mxu1 }
 0x37e   : > { %v3901_v22 = vmul.f32 %v12370_v20, %v14848_v3  ;;  %v12372_v29 = vadd.f32 %v3679_v8, %v2123_v54 }
 0x37f   : > { %v3950_v31 = vadd.f32 %v14851_v11, %v3900_v37  ;;  %v3902_v47 = vmul.f32 %v12371_v58, %v14845_v57 }
 0x380   : > { %v3951_v33 = vadd.f32 %v14854_v18, %v3901_v22  ;;  %v3903_v50 = vmul.f32 %v12372_v29, %v14848_v3 }
 0x381   : > { %vm3982_vm13 = vcmp.ge.f32.partialorder %v3950_v31, 0.0  ;;  %v4014_v51 = vmul.f32 0.1, %v3950_v31  ;;  %v3952_v42 = vadd.f32 %v14851_v11, %v3902_v47  ;;  %v13461_v47 = vld [vmem:[#allocation8] ss:$8 sps:$4 sm:$0xff]  }
 0x382   : > { %v4015_v52 = vmul.f32 0.1, %v3951_v33  ;;  %v3953_v2 = vadd.f32 %v14854_v18, %v3903_v50  ;;  %v3683_v53 = vpop.f32.mrb[4].mxu1  ;;  %vm3983_vm14 = vcmp.ge.f32.partialorder %v3951_v33, 0.0 }
 0x383   : > { %vm3984_vm15 = vcmp.ge.f32.partialorder %v3952_v42, 0.0  ;;  %v4016_v40 = vmul.f32 0.1, %v3952_v42  ;;  %v12373_v54 = vadd.f32 %v3683_v53, %v14775_v55  ;;  %v3685_v49 = vpop.f32.mrb[5].mxu1  ;;  %v4046_v44 = vsel %vm3982_vm13, %v3950_v31, %v4014_v51 }
 0x384   : > { %v4017_v46 = vmul.f32 0.1, %v3953_v2  ;;  %v12374_v43 = vadd.f32 %v3685_v49, %v14777_v56  ;;  %v3687_v59 = vpop.f32.mrb[6].mxu1  ;;  %vm3985_vm0 = vcmp.ge.f32.partialorder %v3953_v2, 0.0  ;;  %v4047_v37 = vsel %vm3983_vm14, %v3951_v33, %v4015_v52  ;;  %v13464_v49 = vld [vmem:[#allocation8 + $0x10] ss:$8 sps:$4 sm:$0xff]  }
 0x385   : > { %v4048_v5 = vsel %vm3984_vm15, %v3952_v42, %v4016_v40  ;;  %v3904_v12 = vmul.f32 %v12373_v54, %v14845_v57  ;;  %v12375_v20 = vadd.f32 %v3687_v59, %v14779_v1  ;;  %v3689_v26 = vpop.f32.mrb[7].mxu1  ;;  %v13466_v42 = vld [vmem:[#allocation8 + $0x14] ss:$8 sps:$4 sm:$0xff]  }
 0x386   : > { %v4078_v58 = vpack.c.bf16 %v4048_v5, %v4046_v44  ;;  %v3905_v8 = vmul.f32 %v12374_v43, %v14848_v3  ;;  %v12376_v22 = vadd.f32 %v3689_v26, %v14781_v60  ;;  %v4049_v55 = vsel %vm3985_vm0, %v3953_v2, %v4017_v46  ;;  %v13469_v5 = vld [vmem:[#allocation8 + $0x24] ss:$8 sps:$4 sm:$0xff]  }
 0x387   : > { %v3954_v29 = vadd.f32 %v14851_v11, %v3904_v12  ;;  %v3906_v31 = vmul.f32 %v12375_v20, %v14845_v57  ;;  %v4079_v56 = vpack.c.bf16 %v4049_v55, %v4047_v37 }
 0x388   : > { %v3955_v50 = vadd.f32 %v14854_v18, %v3905_v8  ;;  %v3907_v51 = vmul.f32 %v12376_v22, %v14848_v3 }
 0x389   : > { %v4018_v1 = vmul.f32 0.1, %v3954_v29  ;;  %v3956_v33 = vadd.f32 %v14851_v11, %v3906_v31  ;;  %4255 = vmatprep.mubr.bf16.mxu0 %v4079_v56  ;;  %vm3986_vm1 = vcmp.ge.f32.partialorder %v3954_v29, 0.0  ;;  %v13467_v56 = vld [vmem:[#allocation8 + $0x20] ss:$8 sps:$4 sm:$0xff]  }
 0x38a   : > { %v4019_v52 = vmul.f32 0.1, %v3955_v50  ;;  %v3957_v60 = vadd.f32 %v14854_v18, %v3907_v51  ;;  %v3693_v2 = vpop.f32.mrb[8].mxu1  ;;  %4256 = vmatmul.mubr.bf16.vlgmr.msra.gmra.mrb[48].mxu0 %v4078_v58  ;;  %vm3987_vm2 = vcmp.ge.f32.partialorder %v3955_v50, 0.0 }
 0x38b   : > { %v4020_v53 = vmul.f32 0.1, %v3956_v33  ;;  %v12377_v40 = vadd.f32 %v3693_v2, %v14783_v61  ;;  %v3695_v54 = vpop.f32.mrb[9].mxu1  ;;  %vm3988_vm3 = vcmp.ge.f32.partialorder %v3956_v33, 0.0  ;;  %4564 = vmatpush1.bf16.msra.mxu0 %v13461_v47  ;;  %v4050_v59 = vsel %vm3986_vm1, %v3954_v29, %v4018_v1 }
 0x38c   : > { %v4021_v44 = vmul.f32 0.1, %v3957_v60  ;;  %v12378_v46 = vadd.f32 %v3695_v54, %v14785_v62  ;;  %v3697_v43 = vpop.f32.mrb[10].mxu1  ;;  %vm3989_vm5 = vcmp.ge.f32.partialorder %v3957_v60, 0.0  ;;  %4565 = vmatprep.subr.bf16.mxu0 %v13466_v42  ;;  %v4051_v61 = vsel %vm3987_vm2, %v3955_v50, %v4019_v52  ;;  %v13472_v50 = vld [vmem:[#allocation8 + $0x34] ss:$8 sps:$4 sm:$0xff]  }
 0x38d   : > { %v3908_v12 = vmul.f32 %v12377_v40, %v14845_v57  ;;  %v12379_v20 = vadd.f32 %v3697_v43, %v14787_v63  ;;  %v3699_v26 = vpop.f32.mrb[11].mxu1  ;;  %v4052_v37 = vsel %vm3988_vm3, %v3956_v33, %v4020_v53  ;;  %v13470_v53 = vld [vmem:[#allocation8 + $0x30] ss:$8 sps:$4 sm:$0xff]  }
 0x38e   : > { %v3909_v58 = vmul.f32 %v12378_v46, %v14848_v3  ;;  %v12380_v8 = vadd.f32 %v3699_v26, %v14789_v0  ;;  %v4053_v22 = vsel %vm3989_vm5, %v3957_v60, %v4021_v44  ;;  %v4080_v62 = vpack.c.bf16 %v4052_v37, %v4050_v59  ;;  %v13475_v46 = vld [vmem:[#allocation8 + $0x44] ss:$8 sps:$4 sm:$0xff]  }
 0x38f   : > { %v3958_v55 = vadd.f32 %v14851_v11, %v3908_v12  ;;  %v3910_v29 = vmul.f32 %v12379_v20, %v14845_v57  ;;  %v4081_v31 = vpack.c.bf16 %v4053_v22, %v4051_v61  ;;  %4566 = vmatpush1.bf16.msra.mxu0 %v13464_v49  ;;  %v13473_v22 = vld [vmem:[#allocation8 + $0x40] ss:$8 sps:$4 sm:$0xff]  }
 0x390   : > { %v3959_v47 = vadd.f32 %v14854_v18, %v3909_v58  ;;  %v3911_v63 = vmul.f32 %v12380_v8, %v14848_v3  ;;  %4567 = vmatprep.subr.bf16.mxu0 %v13469_v5 }
 0x391   : > { %v4022_v51 = vmul.f32 0.1, %v3958_v55  ;;  %v3960_v42 = vadd.f32 %v14851_v11, %v3910_v29  ;;  %4262 = vmatprep.mubr.bf16.mxu0 %v4081_v31  ;;  %vm3990_vm6 = vcmp.ge.f32.partialorder %v3958_v55, 0.0 }
 0x392   : > { %v4023_v0 = vmul.f32 0.1, %v3959_v47  ;;  %v3961_v1 = vadd.f32 %v14854_v18, %v3911_v63  ;;  %v3703_v33 = vpop.f32.mrb[12].mxu1  ;;  %4263 = vmatmul.mubr.bf16.gmra.mrb[52].mxu0 %v4080_v62  ;;  %vm3991_vm7 = vcmp.ge.f32.partialorder %v3959_v47, 0.0 }
 0x393   : > { %v4024_v52 = vmul.f32 0.1, %v3960_v42  ;;  %v12381_v60 = vadd.f32 %v3703_v33, %v14791_v4  ;;  %v3705_v2 = vpop.f32.mrb[13].mxu1  ;;  %vm3992_vm8 = vcmp.ge.f32.partialorder %v3960_v42, 0.0  ;;  %4568 = vmatpush1.bf16.msra.mxu0 %v13467_v56  ;;  %v4054_v44 = vsel %vm3990_vm6, %v3958_v55, %v4022_v51  ;;  %v13478_v55 = vld [vmem:[#allocation8 + $0x54] ss:$8 sps:$4 sm:$0xff]  }
 0x394   : > { %v4025_v40 = vmul.f32 0.1, %v3961_v1  ;;  %v12382_v54 = vadd.f32 %v3705_v2, %v14793_v17  ;;  %v3707_v49 = vpop.f32.mrb[14].mxu1  ;;  %vm3993_vm9 = vcmp.ge.f32.partialorder %v3961_v1, 0.0  ;;  %4569 = vmatprep.subr.bf16.mxu0 %v13472_v50  ;;  %v4055_v4 = vsel %vm3991_vm7, %v3959_v47, %v4023_v0 }
 0x395   : > { %v3912_v43 = vmul.f32 %v12381_v60, %v14845_v57  ;;  %v12383_v59 = vadd.f32 %v3707_v49, %v14795_v7  ;;  %v3709_v5 = vpop.f32.mrb[15].mxu1  ;;  %v4056_v12 = vsel %vm3992_vm8, %v3960_v42, %v4024_v52  ;;  %v13476_v42 = vld [vmem:[#allocation8 + $0x50] ss:$8 sps:$4 sm:$0xff]  }
 0x396   : > { %v3913_v20 = vmul.f32 %v12382_v54, %v14848_v3  ;;  %v12384_v26 = vadd.f32 %v3709_v5, %v14797_v9  ;;  %v4057_v61 = vsel %vm3993_vm9, %v3961_v1, %v4025_v40  ;;  %v4082_v17 = vpack.c.bf16 %v4056_v12, %v4054_v44 }
 0x397   : > { %v3962_v37 = vadd.f32 %v14851_v11, %v3912_v43  ;;  %v3914_v58 = vmul.f32 %v12383_v59, %v14845_v57  ;;  %v4083_v8 = vpack.c.bf16 %v4057_v61, %v4055_v4  ;;  %4570 = vmatpush1.bf16.msra.mxu0 %v13470_v53 }
 0x398   : > { %v3963_v62 = vadd.f32 %v14854_v18, %v3913_v20  ;;  %v3915_v7 = vmul.f32 %v12384_v26, %v14848_v3  ;;  %4571 = vmatprep.subr.bf16.mxu0 %v13475_v46 }
 0x399   : > { %v4026_v29 = vmul.f32 0.1, %v3962_v37  ;;  %v3964_v31 = vadd.f32 %v14851_v11, %v3914_v58  ;;  %4269 = vmatprep.mubr.bf16.mxu0 %v4083_v8  ;;  %vm3994_vm11 = vcmp.ge.f32.partialorder %v3962_v37, 0.0 }
 0x39a   : > { %v4027_v9 = vmul.f32 0.1, %v3963_v62  ;;  %v3965_v56 = vadd.f32 %v14854_v18, %v3915_v7  ;;  %v3713_v47 = vpop.f32.mrb[16].mxu1  ;;  %4270 = vmatmul.mubr.bf16.gmra.mrb[56].mxu0 %v4082_v17  ;;  %vm3995_vm13 = vcmp.ge.f32.partialorder %v3963_v62, 0.0 }
 0x39b   : > { %v4028_v63 = vmul.f32 0.1, %v3964_v31  ;;  %v12385_v50 = vadd.f32 %v3713_v47, %v14799_v10  ;;  %v3715_v51 = vpop.f32.mrb[17].mxu1  ;;  %vm3996_vm14 = vcmp.ge.f32.partialorder %v3964_v31, 0.0  ;;  %4572 = vmatpush1.bf16.msra.mxu0 %v13473_v22  ;;  %v4058_v52 = vsel %vm3994_vm11, %v3962_v37, %v4026_v29 }
 0x39c   : > { %v4029_v0 = vmul.f32 0.1, %v3965_v56  ;;  %v12386_v1 = vadd.f32 %v3715_v51, %v14801_v14  ;;  %v3717_v33 = vpop.f32.mrb[18].mxu1  ;;  %vm3997_vm15 = vcmp.ge.f32.partialorder %v3965_v56, 0.0  ;;  %4573 = vmatprep.subr.bf16.mxu0 %v13478_v55  ;;  %v4059_v40 = vsel %vm3995_vm13, %v3963_v62, %v4027_v9 }
 0x39d   : > { %v3916_v60 = vmul.f32 %v12385_v50, %v14845_v57  ;;  %v12387_v2 = vadd.f32 %v3717_v33, %v14803_v16  ;;  %v3719_v53 = vpop.f32.mrb[19].mxu1  ;;  %v4060_v10 = vsel %vm3996_vm14, %v3964_v31, %v4028_v63 }
 0x39e   : > { %v3917_v54 = vmul.f32 %v12386_v1, %v14848_v3  ;;  %v12388_v49 = vadd.f32 %v3719_v53, %v14805_v21  ;;  %v4061_v44 = vsel %vm3997_vm15, %v3965_v56, %v4029_v0  ;;  %v4084_v46 = vpack.c.bf16 %v4060_v10, %v4058_v52 }
 0x39f   : > { %v3966_v14 = vadd.f32 %v14851_v11, %v3916_v60  ;;  %v3918_v43 = vmul.f32 %v12387_v2, %v14845_v57  ;;  %v4085_v59 = vpack.c.bf16 %v4061_v44, %v4059_v40  ;;  %4574 = vmatpush1.bf16.msra.mxu0 %v13476_v42 }
 0x3a0   : > { %v3967_v5 = vadd.f32 %v14854_v18, %v3917_v54  ;;  %v3919_v16 = vmul.f32 %v12388_v49, %v14848_v3 }
 0x3a1   : > { %v4030_v4 = vmul.f32 0.1, %v3966_v14  ;;  %v3968_v12 = vadd.f32 %v14851_v11, %v3918_v43  ;;  %4276 = vmatprep.mubr.bf16.mxu0 %v4085_v59  ;;  %vm3998_vm0 = vcmp.ge.f32.partialorder %v3966_v14, 0.0 }
 0x3a2   : > { %v4031_v20 = vmul.f32 0.1, %v3967_v5  ;;  %v3969_v21 = vadd.f32 %v14854_v18, %v3919_v16  ;;  %v3723_v26 = vpop.f32.mrb[20].mxu1  ;;  %4277 = vmatmul.mubr.bf16.gmra.mrb[60].mxu0 %v4084_v46  ;;  %vm3999_vm1 = vcmp.ge.f32.partialorder %v3967_v5, 0.0 }
 0x3a3   : > { %v4032_v61 = vmul.f32 0.1, %v3968_v12  ;;  %v12389_v17 = vadd.f32 %v3723_v26, %v14807_v24  ;;  %v3725_v37 = vpop.f32.mrb[21].mxu1  ;;  %vm4000_vm2 = vcmp.ge.f32.partialorder %v3968_v12, 0.0  ;;  %v4062_v62 = vsel %vm3998_vm0, %v3966_v14, %v4030_v4 }
 0x3a4   : > { %v4033_v58 = vmul.f32 0.1, %v3969_v21  ;;  %v12390_v8 = vadd.f32 %v3725_v37, %v14809_v25  ;;  %v3727_v22 = vpop.f32.mrb[22].mxu1  ;;  %vm4001_vm3 = vcmp.ge.f32.partialorder %v3969_v21, 0.0  ;;  %v4063_v31 = vsel %vm3999_vm1, %v3967_v5, %v4031_v20 }
 0x3a5   : > { %v3920_v7 = vmul.f32 %v12389_v17, %v14845_v57  ;;  %v12391_v55 = vadd.f32 %v3727_v22, %v14811_v28  ;;  %v3729_v29 = vpop.f32.mrb[23].mxu1  ;;  %v4064_v9 = vsel %vm4000_vm2, %v3968_v12, %v4032_v61 }
 0x3a6   : > { %v3921_v56 = vmul.f32 %v12390_v8, %v14848_v3  ;;  %v12392_v47 = vadd.f32 %v3729_v29, %v14813_v32  ;;  %v4065_v24 = vsel %vm4001_vm3, %v3969_v21, %v4033_v58  ;;  %v4086_v63 = vpack.c.bf16 %v4064_v9, %v4062_v62 }
 0x3a7   : > { %v3970_v50 = vadd.f32 %v14851_v11, %v3920_v7  ;;  %v3922_v25 = vmul.f32 %v12391_v55, %v14845_v57  ;;  %v4087_v51 = vpack.c.bf16 %v4065_v24, %v4063_v31 }
 0x3a8   : > { %v3971_v42 = vadd.f32 %v14854_v18, %v3921_v56  ;;  %v3923_v0 = vmul.f32 %v12392_v47, %v14848_v3 }
 0x3a9   : > { %v4034_v1 = vmul.f32 0.1, %v3970_v50  ;;  %v3972_v28 = vadd.f32 %v14851_v11, %v3922_v25  ;;  %4283 = vmatprep.mubr.bf16.mxu0 %v4087_v51  ;;  %vm4002_vm5 = vcmp.ge.f32.partialorder %v3970_v50, 0.0 }
 0x3aa   : > { %v4035_v33 = vmul.f32 0.1, %v3971_v42  ;;  %v3973_v52 = vadd.f32 %v14854_v18, %v3923_v0  ;;  %v3733_v32 = vpop.f32.mrb[24].mxu1  ;;  %4284 = vmatmul.mubr.bf16.gmra.mrb[64].mxu0 %v4086_v63  ;;  %vm4003_vm6 = vcmp.ge.f32.partialorder %v3971_v42, 0.0 }
 0x3ab   : > { %v4036_v60 = vmul.f32 0.1, %v3972_v28  ;;  %v12393_v2 = vadd.f32 %v3733_v32, %v14815_v30  ;;  %v3735_v53 = vpop.f32.mrb[25].mxu1  ;;  %vm4004_vm7 = vcmp.ge.f32.partialorder %v3972_v28, 0.0  ;;  %v4066_v49 = vsel %vm4002_vm5, %v3970_v50, %v4034_v1 }
 0x3ac   : > { %v4037_v40 = vmul.f32 0.1, %v3973_v52  ;;  %v12394_v10 = vadd.f32 %v3735_v53, %v14817_v34  ;;  %v3737_v54 = vpop.f32.mrb[26].mxu1  ;;  %vm4005_vm8 = vcmp.ge.f32.partialorder %v3973_v52, 0.0  ;;  %v4067_v43 = vsel %vm4003_vm6, %v3971_v42, %v4035_v33 }
 0x3ad   : > { %v3924_v44 = vmul.f32 %v12393_v2, %v14845_v57  ;;  %v12395_v46 = vadd.f32 %v3737_v54, %v14819_v35  ;;  %v3739_v14 = vpop.f32.mrb[27].mxu1  ;;  %v4068_v59 = vsel %vm4004_vm7, %v3972_v28, %v4036_v60  ;;  %v13484_v54 = vld [vmem:[#allocation8 + $0x74] ss:$8 sps:$4 sm:$0xff]  }
 0x3ae   : > { %v3925_v5 = vmul.f32 %v12394_v10, %v14848_v3  ;;  %v12396_v16 = vadd.f32 %v3739_v14, %v14821_v38  ;;  %v4069_v30 = vsel %vm4005_vm8, %v3973_v52, %v4037_v40  ;;  %v4088_v4 = vpack.c.bf16 %v4068_v59, %v4066_v49  ;;  %v13481_v10 = vld [vmem:[#allocation8 + $0x64] ss:$8 sps:$4 sm:$0xff]   ;;  %v13482_v49 = vld [vmem:[#allocation8 + $0x70] ss:$8 sps:$4 sm:$0xff]   ;;  %v13491_v59 = vld [vmem:[#allocation8 + $0xa0] ss:$8 sps:$4 sm:$0xff]  }
 0x3af   : > { %v3974_v12 = vadd.f32 %v14851_v11, %v3924_v44  ;;  %v3926_v34 = vmul.f32 %v12395_v46, %v14845_v57  ;;  %v4089_v20 = vpack.c.bf16 %v4069_v30, %v4067_v43  ;;  %4575 = vmatprep.subr.bf16.mxu0 %v13481_v10  ;;  %v13485_v44 = vld [vmem:[#allocation8 + $0x80] ss:$8 sps:$4 sm:$0xff]   ;;  %v13487_v46 = vld [vmem:[#allocation8 + $0x84] ss:$8 sps:$4 sm:$0xff]   ;;  %v13488_v14 = vld [vmem:[#allocation8 + $0x90] ss:$8 sps:$4 sm:$0xff]  }
 0x3b0   : > { %v3975_v21 = vadd.f32 %v14854_v18, %v3925_v5  ;;  %v3927_v26 = vmul.f32 %v12396_v16, %v14848_v3  ;;  %v13490_v43 = vld [vmem:[#allocation8 + $0x94] ss:$8 sps:$4 sm:$0xff]   ;;  %v13493_v5 = vld [vmem:[#allocation8 + $0xa4] ss:$8 sps:$4 sm:$0xff]   ;;  %v13494_v16 = vld [vmem:[#allocation8 + $0xb0] ss:$8 sps:$4 sm:$0xff]  }
 0x3b1   : > { %v4038_v61 = vmul.f32 0.1, %v3974_v12  ;;  %v3976_v35 = vadd.f32 %v14851_v11, %v3926_v34  ;;  %4290 = vmatprep.mubr.bf16.mxu0 %v4089_v20  ;;  %vm4006_vm9 = vcmp.ge.f32.partialorder %v3974_v12, 0.0  ;;  %v13496_v30 = vld [vmem:[#allocation8 + $0xb4] ss:$8 sps:$4 sm:$0xff]  }
 0x3b2   : > { %v4039_v17 = vmul.f32 0.1, %v3975_v21  ;;  %v3977_v37 = vadd.f32 %v14854_v18, %v3927_v26  ;;  %v3743_v38 = vpop.f32.mrb[28].mxu1  ;;  %4291 = vmatmul.mubr.bf16.gmra.mrb[68].mxu0 %v4088_v4  ;;  %vm4007_vm11 = vcmp.ge.f32.partialorder %v3975_v21, 0.0  ;;  %v13497_v4 = vld [vmem:[#allocation8 + $0xc0] ss:$8 sps:$4 sm:$0xff]  }
 0x3b3   : > { %v4040_v58 = vmul.f32 0.1, %v3976_v35  ;;  %v12397_v8 = vadd.f32 %v3743_v38, %v14823_v45  ;;  %v3745_v22 = vpop.f32.mrb[29].mxu1  ;;  %vm4008_vm13 = vcmp.ge.f32.partialorder %v3976_v35, 0.0  ;;  %v4070_v29 = vsel %vm4006_vm9, %v3974_v12, %v4038_v61  ;;  %v13499_v12 = vld [vmem:[#allocation8 + $0xc4] ss:$8 sps:$4 sm:$0xff]  }
 0x3b4   : > { %v4041_v62 = vmul.f32 0.1, %v3977_v37  ;;  %v12398_v7 = vadd.f32 %v3745_v22, %v14825_v39  ;;  %v3747_v55 = vpop.f32.mrb[30].mxu1  ;;  %vm4009_vm14 = vcmp.ge.f32.partialorder %v3977_v37, 0.0  ;;  %v4071_v47 = vsel %vm4007_vm11, %v3975_v21, %v4039_v17  ;;  %v13500_v34 = vld [vmem:[#allocation8 + $0xd0] ss:$8 sps:$4 sm:$0xff]  }
 0x3b5   : > { %v3928_v31 = vmul.f32 %v12397_v8, %v14845_v57  ;;  %v12399_v9 = vadd.f32 %v3747_v55, %v14827_v6  ;;  %v3749_v56 = vpop.f32.mrb[31].mxu1  ;;  %v4072_v24 = vsel %vm4008_vm13, %v3976_v35, %v4040_v58  ;;  %v13502_v20 = vld [vmem:[#allocation8 + $0xd4] ss:$8 sps:$4 sm:$0xff]   ;;  %v13505_v21 = vld [vmem:[#allocation8 + $0xe4] ss:$8 sps:$4 sm:$0xff]  }
 0x3b6   : > { %v3929_v63 = vmul.f32 %v12398_v7, %v14848_v3  ;;  %v12400_v50 = vadd.f32 %v3749_v56, %v14829_v27  ;;  %v4073_v45 = vsel %vm4009_vm14, %v3977_v37, %v4041_v62  ;;  %v4090_v25 = vpack.c.bf16 %v4072_v24, %v4070_v29  ;;  %v13503_v26 = vld [vmem:[#allocation8 + $0xe0] ss:$8 sps:$4 sm:$0xff]   ;;  %v13508_v61 = vld [vmem:[#allocation8 + $0xf4] ss:$8 sps:$4 sm:$0xff]   ;;  %v13506_v35 = vld [vmem:[#allocation8 + $0xf0] ss:$8 sps:$4 sm:$0xff]  }
 0x3b7   : > { %v3978_v51 = vadd.f32 %v14851_v11, %v3928_v31  ;;  %v3930_v39 = vmul.f32 %v12399_v9, %v14845_v57  ;;  %v4091_v42 = vpack.c.bf16 %v4073_v45, %v4071_v47  ;;  %v13511_v17 = vld [vmem:[#allocation8 + $0x104] ss:$8 sps:$4 sm:$0xff]   ;;  %v4094_v37 = vld [vmem:[%s16060_s6] sm:$0x3] }
 0x3b8   : > { %v3979_v0 = vadd.f32 %v14854_v18, %v3929_v63  ;;  %v3931_v1 = vmul.f32 %v12400_v50, %v14848_v3  ;;  %v14963_v58 = vrot.slane %v4094_v37, %v14469_v13  ;;  %v14966_v62 = vrot.slane %v4094_v37, %v14475_v15 }
 0x3b9   : > { %v4042_v28 = vmul.f32 0.1, %v3978_v51  ;;  %v3980_v6 = vadd.f32 %v14851_v11, %v3930_v39  ;;  %4297 = vmatprep.mubr.bf16.mxu0 %v4091_v42  ;;  %vm4010_vm15 = vcmp.ge.f32.partialorder %v3978_v51, 0.0  ;;  %v14954_v11 = vld [vmem:[#allocation2] sm:$0xff] }
 0x3ba   : > { %v4043_v33 = vmul.f32 0.1, %v3979_v0  ;;  %v3981_v52 = vadd.f32 %v14854_v18, %v3931_v1  ;;  %4298 = vmatmul.mubr.bf16.gmra.mrb[72].mxu0 %v4090_v25  ;;  %vm4011_vm0 = vcmp.ge.f32.partialorder %v3979_v0, 0.0  ;;  %v13479_v18 = vld [vmem:[#allocation8 + $0x60] ss:$8 sps:$4 sm:$0xff]  }
 0x3bb   : > { %v4044_v27 = vmul.f32 0.1, %v3980_v6  ;;  %vm4012_vm1 = vcmp.ge.f32.partialorder %v3980_v6, 0.0  ;;  %v4074_v57 = vsel %vm4010_vm15, %v3978_v51, %v4042_v28  ;;  %4576 = vmatpush1.bf16.msra.mxu0 %v13479_v18 }
 0x3bc   : > { %v4045_v32 = vmul.f32 0.1, %v3981_v52  ;;  %vm4013_vm2 = vcmp.ge.f32.partialorder %v3981_v52, 0.0  ;;  %v4075_v2 = vsel %vm4011_vm0, %v3979_v0, %v4043_v33  ;;  %4577 = vmatprep.subr.bf16.mxu0 %v13484_v54 }
 0x3bd   : > { %v4076_v60 = vsel %vm4012_vm1, %v3980_v6, %v4044_v27  ;;  %v4432_v27 = vld [vmem:[#allocation2 + $0x8] sm:$0x1f] }
 0x3be   : > { %v4077_v53 = vsel %vm4013_vm2, %v3981_v52, %v4045_v32  ;;  %v4092_v40 = vpack.c.bf16 %v4076_v60, %v4074_v57 }
 0x3bf   : > { %v4093_v3 = vpack.c.bf16 %v4077_v53, %v4075_v2  ;;  %4578 = vmatpush1.bf16.msra.mxu0 %v13482_v49 }
 0x3c0   : > { %4881 = vmatprep.subr.bf16.mxu0 %v13487_v46 }
 0x3c1   : > { %4304 = vmatprep.mubr.bf16.mxu0 %v4093_v3 }
 0x3c2   : > { %4305 = vmatmul.mubr.bf16.gmra.mrb[76].mxu0 %v4092_v40 }
 0x3c3   : > { %4595 = vmatprep.mubr.bf16.mxu0 %v14954_v11 }
 0x3ca   : > { %4596 = vmatmul.mubr.bf16.vlgmr.msra.gmra.mrb[80].mxu0 %v14954_v11 }
 0x3cb   : > { %4605 = vmatprep.mubr.bf16.mxu0 %v14954_v11  ;;  %4882 = vmatpush1.bf16.msra.mxu0 %v13485_v44 }
 0x3cc   : > { %4883 = vmatprep.subr.bf16.mxu0 %v13490_v43 }
 0x3cf   : > { %4884 = vmatpush1.bf16.msra.mxu0 %v13488_v14 }
 0x3d0   : > { %4885 = vmatprep.subr.bf16.mxu0 %v13493_v5 }
 0x3d3   : > { %4886 = vmatpush1.bf16.msra.mxu0 %v13491_v59  ;;  %v4435_v59 = vld [vmem:[#allocation2 + $0x10] sm:$0x1f] }
 0x3d4   : > { %4887 = vmatprep.subr.bf16.mxu0 %v13496_v30 }
 0x3d7   : > { %4888 = vmatpush1.bf16.msra.mxu0 %v13494_v16 }
 0x3d8   : > { %4889 = vmatprep.subr.bf16.mxu0 %v13499_v12 }
 0x3db   : > { %4890 = vmatpush1.bf16.msra.mxu0 %v13497_v4 }
 0x3dc   : > { %4891 = vmatprep.subr.bf16.mxu0 %v13502_v20 }
 0x3df   : > { %4892 = vmatpush1.bf16.msra.mxu0 %v13500_v34 }
 0x3e0   : > { %4893 = vmatprep.subr.bf16.mxu0 %v13505_v21 }
 0x3e3   : > { %4894 = vmatpush1.bf16.msra.mxu0 %v13503_v26 }
 0x3e4   : > { %4895 = vmatprep.subr.bf16.mxu0 %v13508_v61 }
 0x3e7   : > { %4896 = vmatpush1.bf16.msra.mxu0 %v13506_v35 }
 0x3e8   : > { %5221 = vmatprep.subr.bf16.mxu0 %v13511_v17 }
 0x45d   : > { %v12225_v38 = vpop.f32.mrb[48].mxu0 }
 0x45e   : > { %v12226_v8 = vpop.f32.mrb[49].mxu0 }
 0x45f   : > { %v12227_v22 = vadd.f32 %v12226_v8, %v12225_v38  ;;  %v12228_v7 = vpop.f32.mrb[50].mxu0 }
 0x460   : > { %v12229_v55 = vpop.f32.mrb[51].mxu0  ;;  %v4438_v7 = vld [vmem:[#allocation2 + $0x18] sm:$0x1f] }
 0x461   : > { %v4316_v29 = vmul.f32 %v12227_v22, %v14963_v58 }
 0x463   : > { %v4328_v31 = vadd.f32 %v14966_v62, %v4316_v29 }
 0x465   : > { %vm4336_vm3 = vcmp.ge.f32.partialorder %v4328_v31, 0.0  ;;  %v4344_v9 = vmul.f32 0.1, %v4328_v31  ;;  %v12231_v56 = vpop.f32.mrb[52].mxu0 }
 0x466   : > { %v12232_v47 = vpop.f32.mrb[53].mxu0 }
 0x467   : > { %v4352_v24 = vsel %vm4336_vm3, %v4328_v31, %v4344_v9  ;;  %v12233_v63 = vadd.f32 %v12232_v47, %v12231_v56  ;;  %v12234_v50 = vpop.f32.mrb[54].mxu0 }
 0x468   : > { %v4360_v45 = vpack.c.bf16 %v4352_v24, %v4352_v24  ;;  %v12235_v25 = vpop.f32.mrb[55].mxu0 }
 0x469   : > { %v4317_v51 = vmul.f32 %v12233_v63, %v14963_v58 }
 0x46a   : > { %v4369_v39 = vshrl.u32 %v4360_v45, 16  ;;  %v4372_v1 = vshll.u32 %v4360_v45, 16 }
 0x46b   : > { %v4329_v42 = vadd.f32 %v14966_v62, %v4317_v51 }
 0x46c   : > { %v4371_v0 = vrot.slane %v4369_v39, 7 }
 0x46d   : > { %vm4337_vm5 = vcmp.ge.f32.partialorder %v4329_v42, 0.0  ;;  %v4345_v28 = vmul.f32 0.1, %v4329_v42  ;;  %v12237_v6 = vpop.f32.mrb[56].mxu0 }
 0x46e   : > { %v4374_v33 = vor.u32 %v4372_v1, %v4371_v0  ;;  %v12238_v52 = vpop.f32.mrb[57].mxu0 }
 0x46f   : > { %v4353_v32 = vsel %vm4337_vm5, %v4329_v42, %v4345_v28  ;;  %v12239_v57 = vadd.f32 %v12238_v52, %v12237_v6  ;;  %v12240_v60 = vpop.f32.mrb[58].mxu0  ;;  %v4441_v28 = vld [vmem:[#allocation2 + $0x20] sm:$0x1f] }
 0x470   : > { %v4433_v2 = vsel %vm14490_vm4, %v4374_v33, %v4432_v27  ;;  %v4361_v53 = vpack.c.bf16 %v4353_v32, %v4353_v32  ;;  %v12241_v40 = vpop.f32.mrb[59].mxu0 }
 0x471   : > { %4434 = vst [vmem:[#allocation2 + $0x8] sm:$0x1f] %v4433_v2  ;;  %v4318_v3 = vmul.f32 %v12239_v57, %v14963_v58 }
 0x472   : > { %v4376_v18 = vshrl.u32 %v4361_v53, 16  ;;  %v4379_v49 = vshll.u32 %v4361_v53, 16 }
 0x473   : > { %v4330_v10 = vadd.f32 %v14966_v62, %v4318_v3 }
 0x474   : > { %v4378_v54 = vrot.slane %v4376_v18, 7 }
 0x475   : > { %vm4338_vm6 = vcmp.ge.f32.partialorder %v4330_v10, 0.0  ;;  %v4346_v44 = vmul.f32 0.1, %v4330_v10  ;;  %v12243_v46 = vpop.f32.mrb[60].mxu0 }
 0x476   : > { %v4381_v14 = vor.u32 %v4379_v49, %v4378_v54  ;;  %v12244_v43 = vpop.f32.mrb[61].mxu0 }
 0x477   : > { %v4354_v5 = vsel %vm4338_vm6, %v4330_v10, %v4346_v44  ;;  %v12245_v16 = vadd.f32 %v12244_v43, %v12243_v46  ;;  %v12246_v30 = vpop.f32.mrb[62].mxu0  ;;  %v4444_v46 = vld [vmem:[#allocation2 + $0x28] sm:$0x1f] }
 0x478   : > { %v4436_v4 = vsel %vm14490_vm4, %v4381_v14, %v4435_v59  ;;  %v4362_v12 = vpack.c.bf16 %v4354_v5, %v4354_v5  ;;  %v12247_v34 = vpop.f32.mrb[63].mxu0  ;;  %v14978_v20 = vld [vmem:[#allocation2 + $0x8] sm:$0xff] }
 0x479   : > { %4437 = vst [vmem:[#allocation2 + $0x10] sm:$0x1f] %v4436_v4  ;;  %v4319_v21 = vmul.f32 %v12245_v16, %v14963_v58  ;;  %4606 = vmatmul.mubr.bf16.gmra.mrb[84].mxu0 %v14978_v20 }
 0x47a   : > { %v4383_v26 = vshrl.u32 %v4362_v12, 16  ;;  %4615 = vmatprep.mubr.bf16.mxu0 %v14954_v11  ;;  %v4386_v17 = vshll.u32 %v4362_v12, 16 }
 0x47b   : > { %v4331_v61 = vadd.f32 %v14966_v62, %v4319_v21 }
 0x47c   : > { %v4385_v35 = vrot.slane %v4383_v26, 7 }
 0x47d   : > { %vm4339_vm7 = vcmp.ge.f32.partialorder %v4331_v61, 0.0  ;;  %v4347_v37 = vmul.f32 0.1, %v4331_v61  ;;  %v12249_v38 = vpop.f32.mrb[64].mxu0 }
 0x47e   : > { %v4388_v8 = vor.u32 %v4386_v17, %v4385_v35  ;;  %v12250_v22 = vpop.f32.mrb[65].mxu0 }
 0x47f   : > { %v4355_v55 = vsel %vm4339_vm7, %v4331_v61, %v4347_v37  ;;  %v12251_v29 = vadd.f32 %v12250_v22, %v12249_v38  ;;  %v12252_v31 = vpop.f32.mrb[66].mxu0 }
 0x480   : > { %v4439_v9 = vsel %vm14490_vm4, %v4388_v8, %v4438_v7  ;;  %v4363_v56 = vpack.c.bf16 %v4355_v55, %v4355_v55  ;;  %v12253_v47 = vpop.f32.mrb[67].mxu0  ;;  %v14986_v24 = vld [vmem:[#allocation2 + $0x10] sm:$0xff] }
 0x481   : > { %4440 = vst [vmem:[#allocation2 + $0x18] sm:$0x1f] %v4439_v9  ;;  %v4320_v63 = vmul.f32 %v12251_v29, %v14963_v58  ;;  %4616 = vmatmul.mubr.bf16.gmra.mrb[88].mxu0 %v14986_v24  ;;  %v4447_v8 = vld [vmem:[#allocation2 + $0x30] sm:$0x1f] }
 0x482   : > { %v4390_v50 = vshrl.u32 %v4363_v56, 16  ;;  %4625 = vmatprep.mubr.bf16.mxu0 %v14954_v11  ;;  %v4393_v51 = vshll.u32 %v4363_v56, 16 }
 0x483   : > { %v4332_v45 = vadd.f32 %v14966_v62, %v4320_v63 }
 0x484   : > { %v4392_v25 = vrot.slane %v4390_v50, 7 }
 0x485   : > { %vm4340_vm8 = vcmp.ge.f32.partialorder %v4332_v45, 0.0  ;;  %v4348_v39 = vmul.f32 0.1, %v4332_v45  ;;  %v12255_v42 = vpop.f32.mrb[68].mxu0 }
 0x486   : > { %v4395_v0 = vor.u32 %v4393_v51, %v4392_v25  ;;  %v12256_v1 = vpop.f32.mrb[69].mxu0 }
 0x487   : > { %v4356_v6 = vsel %vm4340_vm8, %v4332_v45, %v4348_v39  ;;  %v12257_v33 = vadd.f32 %v12256_v1, %v12255_v42  ;;  %v12258_v52 = vpop.f32.mrb[70].mxu0  ;;  %v4450_v42 = vld [vmem:[#allocation2 + $0x38] sm:$0x1f] }
 0x488   : > { %v4442_v27 = vsel %vm14490_vm4, %v4395_v0, %v4441_v28  ;;  %v4364_v32 = vpack.c.bf16 %v4356_v6, %v4356_v6  ;;  %v12259_v57 = vpop.f32.mrb[71].mxu0  ;;  %v14994_v60 = vld [vmem:[#allocation2 + $0x18] sm:$0xff] }
 0x489   : > { %4443 = vst [vmem:[#allocation2 + $0x20] sm:$0x1f] %v4442_v27  ;;  %v4321_v2 = vmul.f32 %v12257_v33, %v14963_v58  ;;  %4626 = vmatmul.mubr.bf16.gmra.mrb[92].mxu0 %v14994_v60  ;;  %v4453_v27 = vld [vmem:[#allocation2 + $0x40] sm:$0x1f] }
 0x48a   : > { %v4397_v53 = vshrl.u32 %v4364_v32, 16  ;;  %4635 = vmatprep.mubr.bf16.mxu0 %v14954_v11  ;;  %v4400_v18 = vshll.u32 %v4364_v32, 16 }
 0x48b   : > { %v4333_v40 = vadd.f32 %v14966_v62, %v4321_v2  ;;  %v4733_v2 = vshll.u32 %v14978_v20, 16 }
 0x48c   : > { %v4399_v3 = vrot.slane %v4397_v53, 7 }
 0x48d   : > { %vm4341_vm9 = vcmp.ge.f32.partialorder %v4333_v40, 0.0  ;;  %v4349_v10 = vmul.f32 0.1, %v4333_v40  ;;  %v12261_v54 = vpop.f32.mrb[72].mxu0  ;;  %v4735_v53 = vrot.slane %v4733_v2, 1 }
 0x48e   : > { %v4402_v49 = vor.u32 %v4400_v18, %v4399_v3  ;;  %v12262_v44 = vpop.f32.mrb[73].mxu0  ;;  %v13514_v3 = vld [vmem:[#allocation8 + $0x114] ss:$8 sps:$4 sm:$0xff]  }
 0x48f   : > { %v4357_v14 = vsel %vm4341_vm9, %v4333_v40, %v4349_v10  ;;  %v12263_v43 = vadd.f32 %v12262_v44, %v12261_v54  ;;  %v12264_v59 = vpop.f32.mrb[74].mxu0  ;;  %v13509_v40 = vld [vmem:[#allocation8 + $0x100] ss:$8 sps:$4 sm:$0xff]   ;;  %v4736_v18 = vsel %vm1279_vm10, %v14604_v23, %v4735_v53  ;;  %v4741_v10 = vshll.u32 %v14986_v24, 16  ;;  %v13512_v54 = vld [vmem:[#allocation8 + $0x110] ss:$8 sps:$4 sm:$0xff]  }
 0x490   : > { %v4445_v5 = vsel %vm14490_vm4, %v4402_v49, %v4444_v46  ;;  %v4365_v16 = vpack.c.bf16 %v4357_v14, %v4357_v14  ;;  %v12265_v30 = vpop.f32.mrb[75].mxu0  ;;  %v15002_v4 = vld [vmem:[#allocation2 + $0x20] sm:$0xff]  ;;  %v4737_v44 = vshrl.u32 %v14978_v20, 16  ;;  %v13520_v59 = vld [vmem:[#allocation8 + $0x134] ss:$8 sps:$4 sm:$0xff]   ;;  %v4749_v23 = vshll.u32 %v14994_v60, 16 }
 0x491   : > { %4446 = vst [vmem:[#allocation2 + $0x28] sm:$0x1f] %v4445_v5  ;;  %v4322_v12 = vmul.f32 %v12263_v43, %v14963_v58  ;;  %4636 = vmatmul.mubr.bf16.gmra.mrb[96].mxu0 %v15002_v4  ;;  %v13517_v49 = vld [vmem:[#allocation8 + $0x124] ss:$8 sps:$4 sm:$0xff]   ;;  %v4743_v46 = vrot.slane %v4741_v10, 1  ;;  %v5117_v10 = vrot.slane %v14978_v20, 1 }
 0x492   : > { %v4404_v34 = vshrl.u32 %v4365_v16, 16  ;;  %4645 = vmatprep.mubr.bf16.mxu0 %v14954_v11  ;;  %v4407_v61 = vshll.u32 %v4365_v16, 16  ;;  %v4739_v14 = vor.u32 %v4737_v44, %v4735_v53  ;;  %v13515_v43 = vld [vmem:[#allocation8 + $0x120] ss:$8 sps:$4 sm:$0xff]   ;;  %v13518_v16 = vld [vmem:[#allocation8 + $0x130] ss:$8 sps:$4 sm:$0xff]  }
 0x493   : > { %v4334_v21 = vadd.f32 %v14966_v62, %v4322_v12  ;;  %v13523_v30 = vld [vmem:[#allocation8 + $0x144] ss:$8 sps:$4 sm:$0xff]   ;;  %v4745_v12 = vshrl.u32 %v14986_v24, 16  ;;  %v5118_v44 = vsel %vm1671_vm12, %v14677_v36, %v5117_v10  ;;  %v13542_v36 = vld [vmem:[#allocation8 + $0x1b0] ss:$8 sps:$4 sm:$0xff]  }
 0x494   : > { %v4406_v26 = vrot.slane %v4404_v34, 7  ;;  %v15035_v5 = vsel %vm1279_vm10, %v4739_v14, %v4743_v46  ;;  %v4751_v34 = vrot.slane %v4749_v23, 1  ;;  %v13541_v14 = vld [vmem:[#allocation8 + $0x1a4] ss:$8 sps:$4 sm:$0xff]   ;;  %v13544_v23 = vld [vmem:[#allocation8 + $0x1b4] ss:$8 sps:$4 sm:$0xff]  }
 0x495   : > { %vm4342_vm11 = vcmp.ge.f32.partialorder %v4334_v21, 0.0  ;;  %v4350_v35 = vmul.f32 0.1, %v4334_v21  ;;  %v12267_v17 = vpop.f32.mrb[76].mxu0 }
 0x496   : > { %v4409_v37 = vor.u32 %v4407_v61, %v4406_v26  ;;  %v12268_v38 = vpop.f32.mrb[77].mxu0  ;;  %v13521_v26 = vld [vmem:[#allocation8 + $0x140] ss:$8 sps:$4 sm:$0xff]   ;;  %v13526_v61 = vld [vmem:[#allocation8 + $0x154] ss:$8 sps:$4 sm:$0xff]  }
 0x497   : > { %v4358_v22 = vsel %vm4342_vm11, %v4334_v21, %v4350_v35  ;;  %v12269_v7 = vadd.f32 %v12268_v38, %v12267_v17  ;;  %v12270_v55 = vpop.f32.mrb[78].mxu0  ;;  %v4747_v21 = vor.u32 %v4745_v12, %v4743_v46  ;;  %v4757_v17 = vshll.u32 %v15002_v4, 16  ;;  %v13529_v38 = vld [vmem:[#allocation8 + $0x164] ss:$8 sps:$4 sm:$0xff]   ;;  %v13536_v46 = vld [vmem:[#allocation8 + $0x190] ss:$8 sps:$4 sm:$0xff]  }
 0x498   : > { %v4448_v29 = vsel %vm14490_vm4, %v4409_v37, %v4447_v8  ;;  %v4366_v31 = vpack.c.bf16 %v4358_v22, %v4358_v22  ;;  %v12271_v9 = vpop.f32.mrb[79].mxu0  ;;  %v15010_v56 = vld [vmem:[#allocation2 + $0x28] sm:$0xff]  ;;  %v4753_v8 = vshrl.u32 %v14994_v60, 16  ;;  %v13527_v55 = vld [vmem:[#allocation8 + $0x160] ss:$8 sps:$4 sm:$0xff]   ;;  %v5121_v12 = vrot.slane %v14994_v60, 1 }
 0x499   : > { %4449 = vst [vmem:[#allocation2 + $0x30] sm:$0x1f] %v4448_v29  ;;  %v4323_v47 = vmul.f32 %v12269_v7, %v14963_v58  ;;  %4646 = vmatmul.mubr.bf16.gmra.mrb[100].mxu0 %v15010_v56  ;;  %v15042_v35 = vsel %vm1279_vm10, %v4747_v21, %v4751_v34  ;;  %v13524_v37 = vld [vmem:[#allocation8 + $0x150] ss:$8 sps:$4 sm:$0xff]   ;;  %v4759_v22 = vrot.slane %v4757_v17, 1  ;;  %v4765_v9 = vshll.u32 %v15010_v56, 16 }
 0x49a   : > { %v4411_v63 = vshrl.u32 %v4366_v31, 16  ;;  %4655 = vmatprep.mubr.bf16.mxu0 %v14954_v11  ;;  %v4414_v25 = vshll.u32 %v4366_v31, 16  ;;  %v4755_v7 = vor.u32 %v4753_v8, %v4751_v34  ;;  %v13532_v29 = vld [vmem:[#allocation8 + $0x174] ss:$8 sps:$4 sm:$0xff]   ;;  %v13545_v34 = vld [vmem:[#allocation8 + $0x1c0] ss:$8 sps:$4 sm:$0xff]  }
 0x49b   : > { %v4335_v50 = vadd.f32 %v14966_v62, %v4323_v47  ;;  %v13530_v47 = vld [vmem:[#allocation8 + $0x170] ss:$8 sps:$4 sm:$0xff]   ;;  %v13550_v21 = vld [vmem:[#allocation8 + $0x1d4] ss:$8 sps:$4 sm:$0xff]   ;;  %v13553_v17 = vld [vmem:[#allocation8 + $0x1e4] ss:$8 sps:$4 sm:$0xff]  }
 0x49c   : > { %v4413_v45 = vrot.slane %v4411_v63, 7  ;;  %v15049_v31 = vsel %vm1279_vm10, %v4755_v7, %v4759_v22  ;;  %v13535_v63 = vld [vmem:[#allocation8 + $0x184] ss:$8 sps:$4 sm:$0xff]   ;;  %v13556_v8 = vld [vmem:[#allocation8 + $0x1f4] ss:$8 sps:$4 sm:$0xff]  }
 0x49d   : > { %vm4343_vm13 = vcmp.ge.f32.partialorder %v4335_v50, 0.0  ;;  %v4351_v51 = vmul.f32 0.1, %v4335_v50  ;;  %v13554_v7 = vld [vmem:[#allocation8 + $0x1f0] ss:$8 sps:$4 sm:$0xff]  }
 0x49e   : > { %v4416_v39 = vor.u32 %v4414_v25, %v4413_v45  ;;  %v4767_v45 = vrot.slane %v4765_v9, 1 }
 0x49f   : > { %v4359_v0 = vsel %vm4343_vm13, %v4335_v50, %v4351_v51  ;;  %v4761_v50 = vshrl.u32 %v15002_v4, 16 }
 0x4a0   : > { %v4451_v1 = vsel %vm14490_vm4, %v4416_v39, %v4450_v42  ;;  %v4367_v28 = vpack.c.bf16 %v4359_v0, %v4359_v0  ;;  %v15018_v6 = vld [vmem:[#allocation2 + $0x30] sm:$0xff]  ;;  %v4769_v42 = vshrl.u32 %v15010_v56, 16 }
 0x4a1   : > { %4452 = vst [vmem:[#allocation2 + $0x38] sm:$0x1f] %v4451_v1  ;;  %4656 = vmatmul.mubr.bf16.gmra.mrb[104].mxu0 %v15018_v6  ;;  %v4763_v25 = vor.u32 %v4761_v50, %v4759_v22  ;;  %v4773_v39 = vshll.u32 %v15018_v6, 16 }
 0x4a2   : > { %v4418_v58 = vshrl.u32 %v4367_v28, 16  ;;  %4665 = vmatprep.mubr.bf16.mxu0 %v14954_v11  ;;  %v4421_v33 = vshll.u32 %v4367_v28, 16  ;;  %v4771_v1 = vor.u32 %v4769_v42, %v4767_v45  ;;  %v13557_v42 = vld [vmem:[#allocation8 + $0x200] ss:$8 sps:$4 sm:$0xff]  }
 0x4a3   : > { %v15056_v51 = vsel %vm1279_vm10, %v4763_v25, %v4767_v45  ;;  %v4775_v0 = vrot.slane %v4773_v39, 1 }
 0x4a4   : > { %v4420_v62 = vrot.slane %v4418_v58, 7 }
 0x4a5   : > { %v15063_v28 = vsel %vm1279_vm10, %v4771_v1, %v4775_v0  ;;  %v13560_v1 = vld [vmem:[#allocation8 + $0x210] ss:$8 sps:$4 sm:$0xff]  }
 0x4a6   : > { %v4423_v52 = vor.u32 %v4421_v33, %v4420_v62  ;;  %v4777_v62 = vshrl.u32 %v15018_v6, 16 }
 0x4a8   : > { %v4454_v32 = vsel %vm14490_vm4, %v4423_v52, %v4453_v27  ;;  %v15024_v57 = vld [vmem:[#allocation2 + $0x38] sm:$0xff]  ;;  %v4779_v27 = vor.u32 %v4777_v62, %v4775_v0  ;;  %v13562_v0 = vld [vmem:[#allocation8 + $0x214] ss:$8 sps:$4 sm:$0xff]  }
 0x4a9   : > { %4455 = vst [vmem:[#allocation2 + $0x40] sm:$0x1f] %v4454_v32  ;;  %4666 = vmatmul.mubr.bf16.gmra.mrb[108].mxu0 %v15024_v57  ;;  %v4781_v58 = vshll.u32 %v15024_v57, 16  ;;  %v4785_v53 = vshrl.u32 %v15024_v57, 16  ;;  %v5129_v50 = vrot.slane %v15024_v57, 1 }
 0x4aa   : > { %4913 = vmatprep.mubr.bf16.mxu0 %v14954_v11  ;;  %v13563_v62 = vld [vmem:[#allocation8 + $0x220] ss:$8 sps:$4 sm:$0xff]  }
 0x4ab   : > { %v4783_v33 = vrot.slane %v4781_v58, 1  ;;  %v13565_v58 = vld [vmem:[#allocation8 + $0x224] ss:$8 sps:$4 sm:$0xff]  }
 0x4ad   : > { %v15072_v32 = vsel %vm1279_vm10, %v4779_v27, %v4783_v33  ;;  %v13566_v27 = vld [vmem:[#allocation8 + $0x230] ss:$8 sps:$4 sm:$0xff]  }
 0x4b0   : > { %v15069_v52 = vld [vmem:[#allocation2 + $0x40] sm:$0xff] }
 0x4b1   : > { %4914 = vmatmul.mubr.bf16.vlgmr.msra.gmra.mrb[80].mxu0 %v4736_v18  ;;  %v4789_v2 = vshll.u32 %v15069_v52, 16  ;;  %v5131_v25 = vrot.slane %v15069_v52, 1 }
 0x4b2   : > { %5222 = vmatpush1.bf16.msra.mxu0 %v13509_v40  ;;  %4923 = vmatprep.mubr.bf16.mxu0 %v14954_v11 }
 0x4b3   : > { %5223 = vmatprep.subr.bf16.mxu0 %v13514_v3  ;;  %v15078_v40 = vrot.slane %v4789_v2, 1  ;;  %v4787_v3 = vor.u32 %v4785_v53, %v4783_v33  ;;  %v15130_v39 = vsel %vm1671_vm12, %v5129_v50, %v5131_v25  ;;  %v13568_v33 = vld [vmem:[#allocation8 + $0x234] ss:$8 sps:$4 sm:$0xff]   ;;  %v13571_v2 = vld [vmem:[#allocation8 + $0x244] ss:$8 sps:$4 sm:$0xff]  }
 0x4b4   : > { %v13574_v53 = vld [vmem:[#allocation8 + $0x254] ss:$8 sps:$4 sm:$0xff]  }
 0x4b5   : > { %v15082_v18 = vsel %vm1279_vm10, %v4787_v3, %v15078_v40  ;;  %v13572_v3 = vld [vmem:[#allocation8 + $0x250] ss:$8 sps:$4 sm:$0xff]  }
 0x4b6   : > { %5224 = vmatpush1.bf16.msra.mxu0 %v13512_v54  ;;  %v13533_v54 = vld [vmem:[#allocation8 + $0x180] ss:$8 sps:$4 sm:$0xff]  }
 0x4b7   : > { %5225 = vmatprep.subr.bf16.mxu0 %v13517_v49  ;;  %v13538_v49 = vld [vmem:[#allocation8 + $0x194] ss:$8 sps:$4 sm:$0xff]  }
 0x4b9   : > { %4924 = vmatmul.mubr.bf16.gmra.mrb[84].mxu0 %v15035_v5 }
 0x4ba   : > { %4933 = vmatprep.mubr.bf16.mxu0 %v14954_v11  ;;  %5226 = vmatpush1.bf16.msra.mxu0 %v13515_v43  ;;  %v5119_v43 = vrot.slane %v14986_v24, 1 }
 0x4bb   : > { %5227 = vmatprep.subr.bf16.mxu0 %v13520_v59  ;;  %v13539_v59 = vld [vmem:[#allocation8 + $0x1a0] ss:$8 sps:$4 sm:$0xff]  }
 0x4be   : > { %5228 = vmatpush1.bf16.msra.mxu0 %v13518_v16  ;;  %v15092_v16 = vsel %vm1671_vm12, %v5117_v10, %v5119_v43  ;;  %v13577_v10 = vld [vmem:[#allocation8 + $0x264] ss:$8 sps:$4 sm:$0xff]  }
 0x4bf   : > { %5229 = vmatprep.subr.bf16.mxu0 %v13523_v30  ;;  %v13547_v30 = vld [vmem:[#allocation8 + $0x1c4] ss:$8 sps:$4 sm:$0xff]  }
 0x4c1   : > { %4934 = vmatmul.mubr.bf16.gmra.mrb[88].mxu0 %v15042_v35 }
 0x4c2   : > { %4943 = vmatprep.mubr.bf16.mxu0 %v14954_v11  ;;  %5230 = vmatpush1.bf16.msra.mxu0 %v13521_v26  ;;  %v15098_v26 = vsel %vm1671_vm12, %v5119_v43, %v5121_v12  ;;  %v13586_v43 = vld [vmem:[#allocation8 + $0x294] ss:$8 sps:$4 sm:$0xff]  }
 0x4c3   : > { %5231 = vmatprep.subr.bf16.mxu0 %v13526_v61  ;;  %v13548_v61 = vld [vmem:[#allocation8 + $0x1d0] ss:$8 sps:$4 sm:$0xff]  }
 0x4c6   : > { %5232 = vmatpush1.bf16.msra.mxu0 %v13524_v37  ;;  %v5123_v37 = vrot.slane %v15002_v4, 1 }
 0x4c7   : > { %5233 = vmatprep.subr.bf16.mxu0 %v13529_v38  ;;  %v13551_v38 = vld [vmem:[#allocation8 + $0x1e0] ss:$8 sps:$4 sm:$0xff]  }
 0x4c8   : > { %v15104_v22 = vsel %vm1671_vm12, %v5121_v12, %v5123_v37  ;;  %v13590_v12 = vld [vmem:[#allocation8 + $0x2b0] ss:$8 sps:$4 sm:$0xff]  }
 0x4c9   : > { %4944 = vmatmul.mubr.bf16.gmra.mrb[92].mxu0 %v15049_v31 }
 0x4ca   : > { %4953 = vmatprep.mubr.bf16.mxu0 %v14954_v11  ;;  %5234 = vmatpush1.bf16.msra.mxu0 %v13527_v55  ;;  %v13559_v55 = vld [vmem:[#allocation8 + $0x204] ss:$8 sps:$4 sm:$0xff]  }
 0x4cb   : > { %5235 = vmatprep.subr.bf16.mxu0 %v13532_v29  ;;  %v5125_v29 = vrot.slane %v15010_v56, 1 }
 0x4cd   : > { %v15110_v9 = vsel %vm1671_vm12, %v5123_v37, %v5125_v29  ;;  %v13599_v37 = vld [vmem:[#allocation8 + $0x2e0] ss:$8 sps:$4 sm:$0xff]  }
 0x4ce   : > { %5236 = vmatpush1.bf16.msra.mxu0 %v13530_v47  ;;  %v5127_v47 = vrot.slane %v15018_v6, 1 }
 0x4cf   : > { %5527 = vmatprep.subr.bf16.mxu0 %v13535_v63 }
 0x4d0   : > { %v15116_v63 = vsel %vm1671_vm12, %v5125_v29, %v5127_v47  ;;  %v15122_v45 = vsel %vm1671_vm12, %v5127_v47, %v5129_v50  ;;  %v5753_v29 = vshrl.u32 %v15069_v52, 16 }
 0x4d1   : > { %4954 = vmatmul.mubr.bf16.gmra.mrb[96].mxu0 %v15056_v51 }
 0x4d2   : > { %4963 = vmatprep.mubr.bf16.mxu0 %v14954_v11  ;;  %v5755_v47 = vor.u32 %v5753_v29, %v15078_v40  ;;  %v13613_v40 = vld [vmem:[#allocation8 + $0x324] ss:$8 sps:$4 sm:$0xff]   ;;  %v13682_v29 = vld [vmem:[#allocation9 + $0x10] sm:$0xff]  }
 0x4d9   : > { %4964 = vmatmul.mubr.bf16.gmra.mrb[100].mxu0 %v15063_v28 }
 0x4da   : > { %4973 = vmatprep.mubr.bf16.mxu0 %v14954_v11 }
 0x4e1   : > { %4974 = vmatmul.mubr.bf16.gmra.mrb[104].mxu0 %v15072_v32 }
 0x4e2   : > { %4983 = vmatprep.mubr.bf16.mxu0 %v14954_v11 }
 0x4e9   : > { %4984 = vmatmul.mubr.bf16.gmra.mrb[108].mxu0 %v15082_v18 }
 0x4ea   : > { %5253 = vmatprep.mubr.bf16.mxu0 %v14954_v11 }
 0x4f1   : > { %5254 = vmatmul.mubr.bf16.vlgmr.msra.gmra.mrb[80].mxu0 %v5118_v44  ;;  %v13578_v44 = vld [vmem:[#allocation8 + $0x270] ss:$8 sps:$4 sm:$0xff]  }
 0x4f2   : > { %5528 = vmatpush1.bf16.msra.mxu0 %v13533_v54  ;;  %5263 = vmatprep.mubr.bf16.mxu0 %v14954_v11  ;;  %v13575_v54 = vld [vmem:[#allocation8 + $0x260] ss:$8 sps:$4 sm:$0xff]  }
 0x4f3   : > { %5529 = vmatprep.subr.bf16.mxu0 %v13538_v49  ;;  %v13580_v49 = vld [vmem:[#allocation8 + $0x274] ss:$8 sps:$4 sm:$0xff]  }
 0x4f6   : > { %5530 = vmatpush1.bf16.msra.mxu0 %v13536_v46  ;;  %v13583_v46 = vld [vmem:[#allocation8 + $0x284] ss:$8 sps:$4 sm:$0xff]  }
 0x4f7   : > { %5531 = vmatprep.subr.bf16.mxu0 %v13541_v14  ;;  %v13581_v14 = vld [vmem:[#allocation8 + $0x280] ss:$8 sps:$4 sm:$0xff]  }
 0x4f9   : > { %5264 = vmatmul.mubr.bf16.gmra.mrb[84].mxu0 %v15092_v16 }
 0x4fa   : > { %5273 = vmatprep.mubr.bf16.mxu0 %v14954_v11  ;;  %5532 = vmatpush1.bf16.msra.mxu0 %v13539_v59  ;;  %v13584_v59 = vld [vmem:[#allocation8 + $0x290] ss:$8 sps:$4 sm:$0xff]  }
 0x4fb   : > { %5533 = vmatprep.subr.bf16.mxu0 %v13544_v23  ;;  %v13589_v23 = vld [vmem:[#allocation8 + $0x2a4] ss:$8 sps:$4 sm:$0xff]  }
 0x4fe   : > { %5534 = vmatpush1.bf16.msra.mxu0 %v13542_v36  ;;  %v13587_v36 = vld [vmem:[#allocation8 + $0x2a0] ss:$8 sps:$4 sm:$0xff]  }
 0x4ff   : > { %5535 = vmatprep.subr.bf16.mxu0 %v13547_v30  ;;  %v13592_v30 = vld [vmem:[#allocation8 + $0x2b4] ss:$8 sps:$4 sm:$0xff]  }
 0x501   : > { %5274 = vmatmul.mubr.bf16.gmra.mrb[88].mxu0 %v15098_v26 }
 0x502   : > { %5283 = vmatprep.mubr.bf16.mxu0 %v14954_v11  ;;  %5536 = vmatpush1.bf16.msra.mxu0 %v13545_v34  ;;  %v13595_v34 = vld [vmem:[#allocation8 + $0x2c4] ss:$8 sps:$4 sm:$0xff]  }
 0x503   : > { %5537 = vmatprep.subr.bf16.mxu0 %v13550_v21  ;;  %v13598_v21 = vld [vmem:[#allocation8 + $0x2d4] ss:$8 sps:$4 sm:$0xff]  }
 0x506   : > { %5538 = vmatpush1.bf16.msra.mxu0 %v13548_v61  ;;  %v13596_v61 = vld [vmem:[#allocation8 + $0x2d0] ss:$8 sps:$4 sm:$0xff]  }
 0x507   : > { %5539 = vmatprep.subr.bf16.mxu0 %v13553_v17  ;;  %v13601_v17 = vld [vmem:[#allocation8 + $0x2e4] ss:$8 sps:$4 sm:$0xff]  }
 0x509   : > { %5284 = vmatmul.mubr.bf16.gmra.mrb[92].mxu0 %v15104_v22 }
 0x50a   : > { %5293 = vmatprep.mubr.bf16.mxu0 %v14954_v11  ;;  %5540 = vmatpush1.bf16.msra.mxu0 %v13551_v38  ;;  %v13604_v38 = vld [vmem:[#allocation8 + $0x2f4] ss:$8 sps:$4 sm:$0xff]  }
 0x50b   : > { %5541 = vmatprep.subr.bf16.mxu0 %v13556_v8  ;;  %v13602_v8 = vld [vmem:[#allocation8 + $0x2f0] ss:$8 sps:$4 sm:$0xff]  }
 0x50e   : > { %5542 = vmatpush1.bf16.msra.mxu0 %v13554_v7  ;;  %v13607_v7 = vld [vmem:[#allocation8 + $0x304] ss:$8 sps:$4 sm:$0xff]  }
 0x50f   : > { %5842 = vmatprep.subr.bf16.mxu0 %v13559_v55  ;;  %v5757_v55 = vshll.u32 %v14954_v11, 16 }
 0x511   : > { %5294 = vmatmul.mubr.bf16.gmra.mrb[96].mxu0 %v15110_v9  ;;  %v15167_v50 = vrot.slane %v5757_v55, 1  ;;  %v13653_v55 = vld [vmem:[#allocation8 + $0x400] ss:$8 sps:$4 sm:$0xff]  }
 0x512   : > { %5303 = vmatprep.mubr.bf16.mxu0 %v14954_v11 }
 0x519   : > { %5304 = vmatmul.mubr.bf16.gmra.mrb[100].mxu0 %v15116_v63 }
 0x51a   : > { %5313 = vmatprep.mubr.bf16.mxu0 %v14954_v11 }
 0x521   : > { %5314 = vmatmul.mubr.bf16.gmra.mrb[104].mxu0 %v15122_v45 }
 0x522   : > { %5323 = vmatprep.mubr.bf16.mxu0 %v14954_v11 }
 0x529   : > { %5324 = vmatmul.mubr.bf16.gmra.mrb[108].mxu0 %v15130_v39 }
 0x52a   : > { %5559 = vmatprep.mubr.bf16.mxu0 %v14954_v11 }
 0x531   : > { %5560 = vmatmul.mubr.bf16.vlgmr.msra.gmra.mrb[80].mxu0 %v14978_v20  ;;  %v13569_v20 = vld [vmem:[#allocation8 + $0x240] ss:$8 sps:$4 sm:$0xff]  }
 0x532   : > { %5843 = vmatpush1.bf16.msra.mxu0 %v13557_v42  ;;  %5569 = vmatprep.mubr.bf16.mxu0 %v14954_v11  ;;  %v15171_v42 = vsel %vm1279_vm10, %v5755_v47, %v15167_v50  ;;  %v13656_v47 = vld [vmem:[#allocation8 + $0x410] ss:$8 sps:$4 sm:$0xff]  }
 0x533   : > { %5844 = vmatprep.subr.bf16.mxu0 %v13562_v0  ;;  %v13605_v0 = vld [vmem:[#allocation8 + $0x300] ss:$8 sps:$4 sm:$0xff]  }
 0x536   : > { %5845 = vmatpush1.bf16.msra.mxu0 %v13560_v1  ;;  %v13610_v1 = vld [vmem:[#allocation8 + $0x314] ss:$8 sps:$4 sm:$0xff]  }
 0x537   : > { %5846 = vmatprep.subr.bf16.mxu0 %v13565_v58  ;;  %v13608_v58 = vld [vmem:[#allocation8 + $0x310] ss:$8 sps:$4 sm:$0xff]  }
 0x539   : > { %5570 = vmatmul.mubr.bf16.gmra.mrb[84].mxu0 %v14986_v24 }
 0x53a   : > { %5579 = vmatprep.mubr.bf16.mxu0 %v14954_v11  ;;  %5847 = vmatpush1.bf16.msra.mxu0 %v13563_v62  ;;  %v13611_v62 = vld [vmem:[#allocation8 + $0x320] ss:$8 sps:$4 sm:$0xff]  }
 0x53b   : > { %5848 = vmatprep.subr.bf16.mxu0 %v13568_v33  ;;  %v13616_v33 = vld [vmem:[#allocation8 + $0x334] ss:$8 sps:$4 sm:$0xff]  }
 0x53e   : > { %5849 = vmatpush1.bf16.msra.mxu0 %v13566_v27  ;;  %v13614_v27 = vld [vmem:[#allocation8 + $0x330] ss:$8 sps:$4 sm:$0xff]  }
 0x53f   : > { %5850 = vmatprep.subr.bf16.mxu0 %v13571_v2  ;;  %v13619_v2 = vld [vmem:[#allocation8 + $0x344] ss:$8 sps:$4 sm:$0xff]  }
 0x541   : > { %5580 = vmatmul.mubr.bf16.gmra.mrb[88].mxu0 %v14994_v60 }
 0x542   : > { %5589 = vmatprep.mubr.bf16.mxu0 %v14954_v11  ;;  %5851 = vmatpush1.bf16.msra.mxu0 %v13569_v20  ;;  %v13622_v20 = vld [vmem:[#allocation8 + $0x354] ss:$8 sps:$4 sm:$0xff]  }
 0x543   : > { %5852 = vmatprep.subr.bf16.mxu0 %v13574_v53  ;;  %v13620_v53 = vld [vmem:[#allocation8 + $0x350] ss:$8 sps:$4 sm:$0xff]  }
 0x546   : > { %5853 = vmatpush1.bf16.msra.mxu0 %v13572_v3  ;;  %v13625_v3 = vld [vmem:[#allocation8 + $0x364] ss:$8 sps:$4 sm:$0xff]  }
 0x547   : > { %5854 = vmatprep.subr.bf16.mxu0 %v13577_v10  ;;  %v13623_v10 = vld [vmem:[#allocation8 + $0x360] ss:$8 sps:$4 sm:$0xff]  }
 0x549   : > { %5590 = vmatmul.mubr.bf16.gmra.mrb[92].mxu0 %v15002_v4 }
 0x54a   : > { %5599 = vmatprep.mubr.bf16.mxu0 %v14954_v11  ;;  %5855 = vmatpush1.bf16.msra.mxu0 %v13575_v54  ;;  %v13628_v54 = vld [vmem:[#allocation8 + $0x374] ss:$8 sps:$4 sm:$0xff]  }
 0x54b   : > { %5856 = vmatprep.subr.bf16.mxu0 %v13580_v49  ;;  %v13626_v49 = vld [vmem:[#allocation8 + $0x370] ss:$8 sps:$4 sm:$0xff]  }
 0x54e   : > { %5857 = vmatpush1.bf16.msra.mxu0 %v13578_v44  ;;  %v13631_v44 = vld [vmem:[#allocation8 + $0x384] ss:$8 sps:$4 sm:$0xff]  }
 0x54f   : > { %6152 = vmatprep.subr.bf16.mxu0 %v13583_v46  ;;  %v15189_v46 = vld [vmem:[#allocation2] sm:$0xff] }
 0x551   : > { %5600 = vmatmul.mubr.bf16.gmra.mrb[96].mxu0 %v15010_v56 }
 0x552   : > { %5609 = vmatprep.mubr.bf16.mxu0 %v14954_v11 }
 0x559   : > { %5610 = vmatmul.mubr.bf16.gmra.mrb[100].mxu0 %v15018_v6 }
 0x55a   : > { %5619 = vmatprep.mubr.bf16.mxu0 %v14954_v11 }
 0x561   : > { %5620 = vmatmul.mubr.bf16.gmra.mrb[104].mxu0 %v15024_v57 }
 0x562   : > { %5629 = vmatprep.mubr.bf16.mxu0 %v14954_v11 }
 0x569   : > { %5630 = vmatmul.mubr.bf16.gmra.mrb[108].mxu0 %v15069_v52 }
 0x56a   : > { %5874 = vmatprep.mubr.bf16.mxu0 %v14954_v11 }
 0x571   : > { %5875 = vmatmul.mubr.bf16.vlgmr.msra.gmra.mrb[80].mxu0 %v15035_v5  ;;  %v13593_v5 = vld [vmem:[#allocation8 + $0x2c0] ss:$8 sps:$4 sm:$0xff]  }
 0x572   : > { %6153 = vmatpush1.bf16.msra.mxu0 %v13581_v14  ;;  %5884 = vmatprep.mubr.bf16.mxu0 %v14954_v11  ;;  %v6069_v14 = vrot.slane %v15189_v46, 1 }
 0x573   : > { %6154 = vmatprep.subr.bf16.mxu0 %v13586_v43 }
 0x574   : > { %v15197_v43 = vsel %vm1671_vm12, %v5131_v25, %v6069_v14  ;;  %v13638_v25 = vld [vmem:[#allocation8 + $0x3b0] ss:$8 sps:$4 sm:$0xff]  }
 0x576   : > { %6155 = vmatpush1.bf16.msra.mxu0 %v13584_v59  ;;  %v13629_v59 = vld [vmem:[#allocation8 + $0x380] ss:$8 sps:$4 sm:$0xff]  }
 0x577   : > { %6156 = vmatprep.subr.bf16.mxu0 %v13589_v23  ;;  %v13634_v23 = vld [vmem:[#allocation8 + $0x394] ss:$8 sps:$4 sm:$0xff]  }
 0x579   : > { %5885 = vmatmul.mubr.bf16.gmra.mrb[84].mxu0 %v15042_v35 }
 0x57a   : > { %5894 = vmatprep.mubr.bf16.mxu0 %v14954_v11  ;;  %6157 = vmatpush1.bf16.msra.mxu0 %v13587_v36  ;;  %v13637_v36 = vld [vmem:[#allocation8 + $0x3a4] ss:$8 sps:$4 sm:$0xff]  }
 0x57b   : > { %6158 = vmatprep.subr.bf16.mxu0 %v13592_v30  ;;  %v13635_v30 = vld [vmem:[#allocation8 + $0x3a0] ss:$8 sps:$4 sm:$0xff]  }
 0x57e   : > { %6159 = vmatpush1.bf16.msra.mxu0 %v13590_v12  ;;  %v13640_v12 = vld [vmem:[#allocation8 + $0x3b4] ss:$8 sps:$4 sm:$0xff]  }
 0x57f   : > { %6160 = vmatprep.subr.bf16.mxu0 %v13595_v34  ;;  %v13643_v34 = vld [vmem:[#allocation8 + $0x3c4] ss:$8 sps:$4 sm:$0xff]  }
 0x581   : > { %5895 = vmatmul.mubr.bf16.gmra.mrb[88].mxu0 %v15049_v31 }
 0x582   : > { %5904 = vmatprep.mubr.bf16.mxu0 %v14954_v11  ;;  %6161 = vmatpush1.bf16.msra.mxu0 %v13593_v5  ;;  %v13646_v5 = vld [vmem:[#allocation8 + $0x3d4] ss:$8 sps:$4 sm:$0xff]  }
 0x583   : > { %6162 = vmatprep.subr.bf16.mxu0 %v13598_v21  ;;  %v13644_v21 = vld [vmem:[#allocation8 + $0x3d0] ss:$8 sps:$4 sm:$0xff]  }
 0x586   : > { %6163 = vmatpush1.bf16.msra.mxu0 %v13596_v61  ;;  %v13649_v61 = vld [vmem:[#allocation8 + $0x3e4] ss:$8 sps:$4 sm:$0xff]  }
 0x587   : > { %6164 = vmatprep.subr.bf16.mxu0 %v13601_v17  ;;  %v13652_v17 = vld [vmem:[#allocation8 + $0x3f4] ss:$8 sps:$4 sm:$0xff]  }
 0x589   : > { %5905 = vmatmul.mubr.bf16.gmra.mrb[92].mxu0 %v15056_v51 }
 0x58a   : > { %5914 = vmatprep.mubr.bf16.mxu0 %v14954_v11  ;;  %6165 = vmatpush1.bf16.msra.mxu0 %v13599_v37  ;;  %v13650_v37 = vld [vmem:[#allocation8 + $0x3f0] ss:$8 sps:$4 sm:$0xff]  }
 0x58b   : > { %6166 = vmatprep.subr.bf16.mxu0 %v13604_v38  ;;  %v13655_v38 = vld [vmem:[#allocation8 + $0x404] ss:$8 sps:$4 sm:$0xff]  }
 0x58e   : > { %6167 = vmatpush1.bf16.msra.mxu0 %v13602_v8  ;;  %v13679_v8 = vld [vmem:[#allocation9 + $0x48] sm:$0xff]  }
 0x58f   : > { %6458 = vmatprep.subr.bf16.mxu0 %v13607_v7  ;;  %v13681_v7 = vld [vmem:[#allocation9 + $0x50] sm:$0xff]  }
 0x591   : > { %5915 = vmatmul.mubr.bf16.gmra.mrb[96].mxu0 %v15063_v28 }
 0x592   : > { %5924 = vmatprep.mubr.bf16.mxu0 %v14954_v11 }
 0x599   : > { %5925 = vmatmul.mubr.bf16.gmra.mrb[100].mxu0 %v15072_v32 }
 0x59a   : > { %5934 = vmatprep.mubr.bf16.mxu0 %v14954_v11 }
 0x5a1   : > { %5935 = vmatmul.mubr.bf16.gmra.mrb[104].mxu0 %v15082_v18 }
 0x5a2   : > { %5944 = vmatprep.mubr.bf16.mxu0 %v14954_v11 }
 0x5a9   : > { %5945 = vmatmul.mubr.bf16.gmra.mrb[108].mxu0 %v15171_v42 }
 0x5aa   : > { %6184 = vmatprep.mubr.bf16.mxu0 %v14954_v11 }
 0x5b1   : > { %6185 = vmatmul.mubr.bf16.vlgmr.msra.gmra.mrb[80].mxu0 %v15092_v16  ;;  %v13617_v16 = vld [vmem:[#allocation8 + $0x340] ss:$8 sps:$4 sm:$0xff]  }
 0x5b2   : > { %6459 = vmatpush1.bf16.msra.mxu0 %v13605_v0  ;;  %6194 = vmatprep.mubr.bf16.mxu0 %v14954_v11  ;;  %v13661_v0 = vld [vmem:[#allocation8 + $0x424] ss:$8 sps:$4 sm:$0xff]  }
 0x5b3   : > { %6460 = vmatprep.subr.bf16.mxu0 %v13610_v1  ;;  %v13684_v1 = vld [vmem:[#allocation9 + $0x18] sm:$0xff]  }
 0x5b6   : > { %6461 = vmatpush1.bf16.msra.mxu0 %v13608_v58  ;;  %v13685_v58 = vld [vmem:[#allocation9 + $0x60] sm:$0xff]  }
 0x5b7   : > { %6462 = vmatprep.subr.bf16.mxu0 %v13613_v40  ;;  %v13659_v40 = vld [vmem:[#allocation8 + $0x420] ss:$8 sps:$4 sm:$0xff]  }
 0x5b9   : > { %6195 = vmatmul.mubr.bf16.gmra.mrb[84].mxu0 %v15098_v26 }
 0x5ba   : > { %6204 = vmatprep.mubr.bf16.mxu0 %v14954_v11  ;;  %6463 = vmatpush1.bf16.msra.mxu0 %v13611_v62  ;;  %v13664_v62 = vld [vmem:[#allocation8 + $0x434] ss:$8 sps:$4 sm:$0xff]  }
 0x5bb   : > { %6464 = vmatprep.subr.bf16.mxu0 %v13616_v33  ;;  %v13686_v33 = vld [vmem:[#allocation9 + $0x20] sm:$0xff]  }
 0x5be   : > { %6465 = vmatpush1.bf16.msra.mxu0 %v13614_v27  ;;  %v13662_v27 = vld [vmem:[#allocation8 + $0x430] ss:$8 sps:$4 sm:$0xff]  }
 0x5bf   : > { %6466 = vmatprep.subr.bf16.mxu0 %v13619_v2  ;;  %v13667_v2 = vld [vmem:[#allocation8 + $0x444] ss:$8 sps:$4 sm:$0xff]  }
 0x5c1   : > { %6205 = vmatmul.mubr.bf16.gmra.mrb[88].mxu0 %v15104_v22 }
 0x5c2   : > { %6214 = vmatprep.mubr.bf16.mxu0 %v14954_v11  ;;  %6467 = vmatpush1.bf16.msra.mxu0 %v13617_v16  ;;  %v13688_v16 = vld [vmem:[#allocation9 + $0x28] sm:$0xff]  }
 0x5c3   : > { %6468 = vmatprep.subr.bf16.mxu0 %v13622_v20  ;;  %v13689_v20 = vld [vmem:[#allocation9 + $0x70] sm:$0xff]  }
 0x5c6   : > { %6469 = vmatpush1.bf16.msra.mxu0 %v13620_v53  ;;  %v13665_v53 = vld [vmem:[#allocation8 + $0x440] ss:$8 sps:$4 sm:$0xff]  }
 0x5c7   : > { %6470 = vmatprep.subr.bf16.mxu0 %v13625_v3  ;;  %v13670_v3 = vld [vmem:[#allocation8 + $0x454] ss:$8 sps:$4 sm:$0xff]  }
 0x5c9   : > { %6215 = vmatmul.mubr.bf16.gmra.mrb[92].mxu0 %v15110_v9 }
 0x5ca   : > { %6224 = vmatprep.mubr.bf16.mxu0 %v14954_v11  ;;  %6471 = vmatpush1.bf16.msra.mxu0 %v13623_v10  ;;  %v13690_v10 = vld [vmem:[#allocation9 + $0x30] sm:$0xff]  }
 0x5cb   : > { %6472 = vmatprep.subr.bf16.mxu0 %v13628_v54  ;;  %v13673_v54 = vld [vmem:[#allocation8 + $0x464] ss:$8 sps:$4 sm:$0xff]  }
 0x5ce   : > { %6473 = vmatpush1.bf16.msra.mxu0 %v13626_v49  ;;  %v13671_v49 = vld [vmem:[#allocation8 + $0x460] ss:$8 sps:$4 sm:$0xff]  }
 0x5cf   : > { %6773 = vmatprep.subr.bf16.mxu0 %v13631_v44  ;;  %v13676_v44 = vld [vmem:[#allocation8 + $0x474] ss:$8 sps:$4 sm:$0xff]  }
 0x5d1   : > { %6225 = vmatmul.mubr.bf16.gmra.mrb[96].mxu0 %v15116_v63 }
 0x5d2   : > { %6234 = vmatprep.mubr.bf16.mxu0 %v14954_v11 }
 0x5d9   : > { %6235 = vmatmul.mubr.bf16.gmra.mrb[100].mxu0 %v15122_v45 }
 0x5da   : > { %6244 = vmatprep.mubr.bf16.mxu0 %v14954_v11 }
 0x5e1   : > { %6245 = vmatmul.mubr.bf16.gmra.mrb[104].mxu0 %v15130_v39 }
 0x5e2   : > { %6254 = vmatprep.mubr.bf16.mxu0 %v14954_v11  ;;  %v13632_v11 = vld [vmem:[#allocation8 + $0x390] ss:$8 sps:$4 sm:$0xff]  }
 0x5e9   : > { %6255 = vmatmul.mubr.bf16.gmra.mrb[108].mxu0 %v15197_v43 }
 0x5ea   : > { %6490 = vmatprep.mubr.bf16.mxu0 %v15189_v46 }
 0x5f1   : > { %6491 = vmatmul.mubr.bf16.vlgmr.msra.gmra.mrb[80].mxu0 %v14986_v24  ;;  %v13641_v24 = vld [vmem:[#allocation8 + $0x3c0] ss:$8 sps:$4 sm:$0xff]  }
 0x5f2   : > { %6774 = vmatpush1.bf16.msra.mxu0 %v13629_v59  ;;  %6500 = vmatprep.mubr.bf16.mxu0 %v15189_v46  ;;  %v13674_v59 = vld [vmem:[#allocation8 + $0x470] ss:$8 sps:$4 sm:$0xff]  }
 0x5f3   : > { %6775 = vmatprep.subr.bf16.mxu0 %v13634_v23 }
 0x5f6   : > { %6776 = vmatpush1.bf16.msra.mxu0 %v13632_v11 }
 0x5f7   : > { %6777 = vmatprep.subr.bf16.mxu0 %v13637_v36 }
 0x5f9   : > { %6501 = vmatmul.mubr.bf16.gmra.mrb[84].mxu0 %v14994_v60  ;;  %v13647_v60 = vld [vmem:[#allocation8 + $0x3e0] ss:$8 sps:$4 sm:$0xff]  }
 0x5fa   : > { %6510 = vmatprep.mubr.bf16.mxu0 %v15189_v46  ;;  %6778 = vmatpush1.bf16.msra.mxu0 %v13635_v30 }
 0x5fb   : > { %6779 = vmatprep.subr.bf16.mxu0 %v13640_v12 }
 0x5fe   : > { %6780 = vmatpush1.bf16.msra.mxu0 %v13638_v25 }
 0x5ff   : > { %6781 = vmatprep.subr.bf16.mxu0 %v13643_v34 }
 0x601   : > { %6511 = vmatmul.mubr.bf16.gmra.mrb[88].mxu0 %v15002_v4  ;;  %v13677_v4 = vld [vmem:[#allocation9 + $0x40] sm:$0xff]  }
 0x602   : > { %6520 = vmatprep.mubr.bf16.mxu0 %v15189_v46  ;;  %6782 = vmatpush1.bf16.msra.mxu0 %v13641_v24 }
 0x603   : > { %6783 = vmatprep.subr.bf16.mxu0 %v13646_v5  ;;  %12273 = vmatprep.subr.bf16.mxu1 %v13677_v4 }
 0x606   : > { %6784 = vmatpush1.bf16.msra.mxu0 %v13644_v21 }
 0x607   : > { %6785 = vmatprep.subr.bf16.mxu0 %v13649_v61 }
 0x609   : > { %6521 = vmatmul.mubr.bf16.gmra.mrb[92].mxu0 %v15010_v56  ;;  %v13678_v56 = vld [vmem:[#allocation9] sm:$0xff]  }
 0x60a   : > { %6530 = vmatprep.mubr.bf16.mxu0 %v15189_v46  ;;  %6786 = vmatpush1.bf16.msra.mxu0 %v13647_v60 }
 0x60b   : > { %6787 = vmatprep.subr.bf16.mxu0 %v13652_v17  ;;  %12274 = vmatpush3.bf16.msra.mxu1 %v13678_v56 }
 0x60c   : > { %12275 = vmatprep.subr.bf16.mxu1 %v13679_v8 }
 0x60e   : > { %6788 = vmatpush1.bf16.msra.mxu0 %v13650_v37 }
 0x60f   : > { %7083 = vmatprep.subr.bf16.mxu0 %v13655_v38 }
 0x611   : > { %6531 = vmatmul.mubr.bf16.gmra.mrb[96].mxu0 %v15018_v6  ;;  %v13680_v6 = vld [vmem:[#allocation9 + $0x8] sm:$0xff]  }
 0x612   : > { %6540 = vmatprep.mubr.bf16.mxu0 %v15189_v46  ;;  %12276 = vmatpush3.bf16.msra.mxu1 %v13680_v6 }
 0x613   : > { %12277 = vmatprep.subr.bf16.mxu1 %v13681_v7 }
 0x616   : > { %12278 = vmatpush3.bf16.msra.mxu1 %v13682_v29 }
 0x619   : > { %6541 = vmatmul.mubr.bf16.gmra.mrb[100].mxu0 %v15024_v57  ;;  %v13658_v57 = vld [vmem:[#allocation8 + $0x414] ss:$8 sps:$4 sm:$0xff]  }
 0x61a   : > { %6550 = vmatprep.mubr.bf16.mxu0 %v15189_v46 }
 0x621   : > { %6551 = vmatmul.mubr.bf16.gmra.mrb[104].mxu0 %v15069_v52  ;;  %v13683_v52 = vld [vmem:[#allocation9 + $0x58] sm:$0xff]  }
 0x622   : > { %6560 = vmatprep.mubr.bf16.mxu0 %v15189_v46  ;;  %12279 = vmatprep.subr.bf16.mxu1 %v13683_v52 }
 0x623   : > { %12280 = vmatpush3.bf16.msra.mxu1 %v13684_v1 }
 0x624   : > { %12281 = vmatprep.subr.bf16.mxu1 %v13685_v58 }
 0x627   : > { %12282 = vmatpush3.bf16.msra.mxu1 %v13686_v33 }
 0x629   : > { %6561 = vmatmul.mubr.bf16.gmra.mrb[108].mxu0 %v15189_v46 }
 0x62a   : > { %6805 = vmatprep.mubr.bf16.mxu0 %v15189_v46 }
 0x631   : > { %6806 = vmatmul.mubr.bf16.vlgmr.msra.gmra.mrb[80].mxu0 %v15042_v35  ;;  %v13687_v35 = vld [vmem:[#allocation9 + $0x68] sm:$0xff]  }
 0x632   : > { %7084 = vmatpush1.bf16.msra.mxu0 %v13653_v55  ;;  %6815 = vmatprep.mubr.bf16.mxu0 %v15189_v46 }
 0x633   : > { %7085 = vmatprep.subr.bf16.mxu0 %v13658_v57  ;;  %12283 = vmatprep.subr.bf16.mxu1 %v13687_v35  ;;  %v13693_v35 = vld [vmem:[#allocation11] ss:$8 sps:$4 sm:$0xff]  }
 0x634   : > { %12284 = vmatpush3.bf16.msra.mxu1 %v13688_v16  ;;  %v13698_v16 = vld [vmem:[#allocation11 + $0x14] ss:$8 sps:$4 sm:$0xff]  }
 0x635   : > { %12285 = vmatprep.subr.bf16.mxu1 %v13689_v20 }
 0x636   : > { %7086 = vmatpush1.bf16.msra.mxu0 %v13656_v47 }
 0x637   : > { %7087 = vmatprep.subr.bf16.mxu0 %v13661_v0 }
 0x638   : > { %12286 = vmatpush3.bf16.msra.mxu1 %v13690_v10 }
 0x639   : > { %6816 = vmatmul.mubr.bf16.gmra.mrb[84].mxu0 %v15049_v31  ;;  %v13668_v31 = vld [vmem:[#allocation8 + $0x450] ss:$8 sps:$4 sm:$0xff]  }
 0x63a   : > { %6825 = vmatprep.mubr.bf16.mxu0 %v15189_v46  ;;  %7088 = vmatpush1.bf16.msra.mxu0 %v13659_v40 }
 0x63b   : > { %7089 = vmatprep.subr.bf16.mxu0 %v13664_v62 }
 0x63e   : > { %7090 = vmatpush1.bf16.msra.mxu0 %v13662_v27 }
 0x63f   : > { %7091 = vmatprep.subr.bf16.mxu0 %v13667_v2 }
 0x641   : > { %6826 = vmatmul.mubr.bf16.gmra.mrb[88].mxu0 %v15056_v51  ;;  %v6684_v51 = vshrl.u32 %v15189_v46, 16 }
 0x642   : > { %6835 = vmatprep.mubr.bf16.mxu0 %v15189_v46  ;;  %7092 = vmatpush1.bf16.msra.mxu0 %v13665_v53 }
 0x643   : > { %7093 = vmatprep.subr.bf16.mxu0 %v13670_v3 }
 0x646   : > { %7094 = vmatpush1.bf16.msra.mxu0 %v13668_v31 }
 0x647   : > { %7095 = vmatprep.subr.bf16.mxu0 %v13673_v54  ;;  %v13696_v54 = vld [vmem:[#allocation11 + $0x10] ss:$8 sps:$4 sm:$0xff]  }
 0x649   : > { %6836 = vmatmul.mubr.bf16.gmra.mrb[92].mxu0 %v15063_v28  ;;  %v6686_v28 = vor.u32 %v6684_v51, %v15167_v50 }
 0x64a   : > { %6845 = vmatprep.mubr.bf16.mxu0 %v15189_v46  ;;  %7096 = vmatpush1.bf16.msra.mxu0 %v13671_v49 }
 0x64b   : > { %7097 = vmatprep.subr.bf16.mxu0 %v13676_v44  ;;  %v6691_v23 = vsel %vm1279_vm10, %v6686_v28, %v15167_v50 }
 0x64e   : > { %7098 = vmatpush1.bf16.msra.mxu0 %v13674_v59  ;;  %v13701_v59 = vld [vmem:[#allocation11 + $0x24] ss:$8 sps:$4 sm:$0xff]  }
 0x651   : > { %6846 = vmatmul.mubr.bf16.gmra.mrb[96].mxu0 %v15072_v32  ;;  %v13691_v32 = vld [vmem:[#allocation9 + $0x78] sm:$0xff]  }
 0x652   : > { %6855 = vmatprep.mubr.bf16.mxu0 %v15189_v46  ;;  %12287 = vmatprep.subr.bf16.mxu1 %v13691_v32 }
 0x659   : > { %6856 = vmatmul.mubr.bf16.gmra.mrb[100].mxu0 %v15082_v18  ;;  %v13692_v18 = vld [vmem:[#allocation9 + $0x38] sm:$0xff]  }
 0x65a   : > { %6865 = vmatprep.mubr.bf16.mxu0 %v15189_v46  ;;  %12288 = vmatpush3.bf16.msra.mxu1 %v13692_v18 }
 0x661   : > { %6866 = vmatmul.mubr.bf16.gmra.mrb[104].mxu0 %v15171_v42 }
 0x662   : > { %6875 = vmatprep.mubr.bf16.mxu0 %v15189_v46 }
 0x669   : > { %6876 = vmatmul.mubr.bf16.gmra.mrb[108].mxu0 %v6691_v23 }
 0x66a   : > { %7115 = vmatprep.mubr.bf16.mxu0 %v15189_v46 }
 0x671   : > { %7116 = vmatmul.mubr.bf16.vlgmr.msra.gmra.mrb[80].mxu0 %v15098_v26  ;;  %v13695_v26 = vld [vmem:[#allocation11 + $0x4] ss:$8 sps:$4 sm:$0xff]  }
 0x672   : > { %7125 = vmatprep.mubr.bf16.mxu0 %v15189_v46  ;;  %8071 = vmatprep.subr.bf16.mxu1 %v13695_v26 }
 0x679   : > { %7126 = vmatmul.mubr.bf16.gmra.mrb[84].mxu0 %v15104_v22  ;;  %v7292_v22 = vld [vmem:[%s16062_s8] sm:$0xf] }
 0x67a   : > { %7135 = vmatprep.mubr.bf16.mxu0 %v15189_v46 }
 0x681   : > { %7136 = vmatmul.mubr.bf16.gmra.mrb[88].mxu0 %v15110_v9  ;;  %v7329_v9 = vrot.slane %v7292_v22, %v14469_v13 }
 0x682   : > { %7145 = vmatprep.mubr.bf16.mxu0 %v15189_v46 }
 0x683   : > { %v15262_v50 = vrot.slane %v7329_v9, %v14469_v13 }
 0x689   : > { %7146 = vmatmul.mubr.bf16.gmra.mrb[92].mxu0 %v15116_v63  ;;  %v7333_v63 = vrot.slane %v7292_v22, %v14835_v41 }
 0x68a   : > { %7155 = vmatprep.mubr.bf16.mxu0 %v15189_v46 }
 0x68b   : > { %v15265_v42 = vrot.slane %v7333_v63, %v14469_v13 }
 0x691   : > { %7156 = vmatmul.mubr.bf16.gmra.mrb[96].mxu0 %v15122_v45  ;;  %v7379_v45 = vrot.slane %v7292_v22, %v14475_v15 }
 0x692   : > { %7165 = vmatprep.mubr.bf16.mxu0 %v15189_v46 }
 0x699   : > { %7166 = vmatmul.mubr.bf16.gmra.mrb[100].mxu0 %v15130_v39  ;;  %v7383_v39 = vrot.slane %v7292_v22, %v14838_v19 }
 0x69a   : > { %7175 = vmatprep.mubr.bf16.mxu0 %v15189_v46 }
 0x69b   : > { %v15271_v11 = vrot.slane %v7383_v39, %v14475_v15 }
 0x6a1   : > { %7176 = vmatmul.mubr.bf16.gmra.mrb[104].mxu0 %v15197_v43 }
 0x6a2   : > { %7185 = vmatprep.mubr.bf16.mxu0 %v15189_v46 }
 0x6a9   : > { %7186 = vmatmul.mubr.bf16.gmra.mrb[108].mxu0 %v6069_v14  ;;  %v15268_v14 = vrot.slane %v7379_v45, %v14475_v15 }
 0x744   : > { %v7117_v43 = vpop.f32.mrb[80].mxu0 }
 0x745   : > { %v7344_v36 = vmul.f32 %v15262_v50, %v7117_v43  ;;  %v7119_v30 = vpop.f32.mrb[81].mxu0 }
 0x746   : > { %v7345_v12 = vmul.f32 %v15265_v42, %v7119_v30  ;;  %v7121_v25 = vpop.f32.mrb[82].mxu0 }
 0x747   : > { %v7394_v34 = vadd.f32 %v15268_v14, %v7344_v36  ;;  %v7346_v24 = vmul.f32 %v15262_v50, %v7121_v25  ;;  %v7123_v5 = vpop.f32.mrb[83].mxu0 }
 0x748   : > { %v7395_v21 = vadd.f32 %v15271_v11, %v7345_v12  ;;  %v7347_v61 = vmul.f32 %v15265_v42, %v7123_v5  ;;  %v13699_v12 = vld [vmem:[#allocation11 + $0x20] ss:$8 sps:$4 sm:$0xff]  }
 0x749   : > { %v7458_v60 = vmul.f32 0.1, %v7394_v34  ;;  %v7396_v17 = vadd.f32 %v15268_v14, %v7346_v24  ;;  %vm7426_vm14 = vcmp.ge.f32.partialorder %v7394_v34, 0.0  ;;  %v13704_v24 = vld [vmem:[#allocation11 + $0x34] ss:$8 sps:$4 sm:$0xff]  }
 0x74a   : > { %v7459_v37 = vmul.f32 0.1, %v7395_v21  ;;  %v7397_v38 = vadd.f32 %v15271_v11, %v7347_v61  ;;  %vm7427_vm15 = vcmp.ge.f32.partialorder %v7395_v21, 0.0 }
 0x74b   : > { %vm7428_vm0 = vcmp.ge.f32.partialorder %v7396_v17, 0.0  ;;  %v7460_v4 = vmul.f32 0.1, %v7396_v17  ;;  %v7490_v6 = vsel %vm7426_vm14, %v7394_v34, %v7458_v60 }
 0x74c   : > { %vm7429_vm1 = vcmp.ge.f32.partialorder %v7397_v38, 0.0  ;;  %v7461_v56 = vmul.f32 0.1, %v7397_v38  ;;  %v7127_v8 = vpop.f32.mrb[84].mxu0  ;;  %v7491_v0 = vsel %vm7427_vm15, %v7395_v21, %v7459_v37  ;;  %v13702_v37 = vld [vmem:[#allocation11 + $0x30] ss:$8 sps:$4 sm:$0xff]  }
 0x74d   : > { %v7492_v7 = vsel %vm7428_vm0, %v7396_v17, %v7460_v4  ;;  %v7348_v55 = vmul.f32 %v15262_v50, %v7127_v8  ;;  %v7129_v57 = vpop.f32.mrb[85].mxu0 }
 0x74e   : > { %v7522_v29 = vpack.c.bf16 %v7492_v7, %v7490_v6  ;;  %v7349_v52 = vmul.f32 %v15265_v42, %v7129_v57  ;;  %v7131_v47 = vpop.f32.mrb[86].mxu0  ;;  %v7493_v1 = vsel %vm7429_vm1, %v7397_v38, %v7461_v56  ;;  %v13707_v56 = vld [vmem:[#allocation11 + $0x44] ss:$8 sps:$4 sm:$0xff]  }
 0x74f   : > { %v7398_v58 = vadd.f32 %v15268_v14, %v7348_v55  ;;  %v7350_v40 = vmul.f32 %v15262_v50, %v7131_v47  ;;  %v7133_v62 = vpop.f32.mrb[87].mxu0  ;;  %v7523_v33 = vpack.c.bf16 %v7493_v1, %v7491_v0 }
 0x750   : > { %v7399_v27 = vadd.f32 %v15271_v11, %v7349_v52  ;;  %v7351_v2 = vmul.f32 %v15265_v42, %v7133_v62 }
 0x751   : > { %v7462_v20 = vmul.f32 0.1, %v7398_v58  ;;  %v7400_v53 = vadd.f32 %v15268_v14, %v7350_v40  ;;  %7699 = vmatprep.mubr.bf16.mxu1 %v7523_v33  ;;  %vm7430_vm2 = vcmp.ge.f32.partialorder %v7398_v58, 0.0  ;;  %v13705_v33 = vld [vmem:[#allocation11 + $0x40] ss:$8 sps:$4 sm:$0xff]  }
 0x752   : > { %v7463_v3 = vmul.f32 0.1, %v7399_v27  ;;  %v7401_v10 = vadd.f32 %v15271_v11, %v7351_v2  ;;  %7700 = vmatmul.mubr.bf16.vlgmr.msra.gmra.mrb[32].mxu1 %v7522_v29  ;;  %vm7431_vm3 = vcmp.ge.f32.partialorder %v7399_v27, 0.0  ;;  %v13710_v2 = vld [vmem:[#allocation11 + $0x54] ss:$8 sps:$4 sm:$0xff]  }
 0x753   : > { %vm7432_vm5 = vcmp.ge.f32.partialorder %v7400_v53, 0.0  ;;  %v7464_v31 = vmul.f32 0.1, %v7400_v53  ;;  %8072 = vmatpush1.bf16.msra.mxu1 %v13693_v35  ;;  %v7494_v32 = vsel %vm7430_vm2, %v7398_v58, %v7462_v20 }
 0x754   : > { %vm7433_vm6 = vcmp.ge.f32.partialorder %v7401_v10, 0.0  ;;  %v7465_v49 = vmul.f32 0.1, %v7401_v10  ;;  %v7137_v44 = vpop.f32.mrb[88].mxu0  ;;  %8073 = vmatprep.subr.bf16.mxu1 %v13698_v16  ;;  %v7495_v9 = vsel %vm7431_vm3, %v7399_v27, %v7463_v3 }
 0x755   : > { %v7352_v28 = vmul.f32 %v15262_v50, %v7137_v44  ;;  %v7139_v23 = vpop.f32.mrb[89].mxu0  ;;  %v7496_v18 = vsel %vm7432_vm5, %v7400_v53, %v7464_v31  ;;  %v13708_v31 = vld [vmem:[#allocation11 + $0x50] ss:$8 sps:$4 sm:$0xff]  }
 0x756   : > { %v7353_v26 = vmul.f32 %v15265_v42, %v7139_v23  ;;  %v7141_v22 = vpop.f32.mrb[90].mxu0  ;;  %v7497_v63 = vsel %vm7433_vm6, %v7401_v10, %v7465_v49  ;;  %v7524_v45 = vpack.c.bf16 %v7496_v18, %v7494_v32 }
 0x757   : > { %v7402_v39 = vadd.f32 %v15268_v14, %v7352_v28  ;;  %v7354_v43 = vmul.f32 %v15262_v50, %v7141_v22  ;;  %v7143_v36 = vpop.f32.mrb[91].mxu0  ;;  %v7525_v30 = vpack.c.bf16 %v7497_v63, %v7495_v9  ;;  %8074 = vmatpush1.bf16.msra.mxu1 %v13696_v54 }
 0x758   : > { %v7403_v25 = vadd.f32 %v15271_v11, %v7353_v26  ;;  %v7355_v34 = vmul.f32 %v15265_v42, %v7143_v36  ;;  %8075 = vmatprep.subr.bf16.mxu1 %v13701_v59 }
 0x759   : > { %v7466_v5 = vmul.f32 0.1, %v7402_v39  ;;  %v7404_v21 = vadd.f32 %v15268_v14, %v7354_v43  ;;  %7707 = vmatprep.mubr.bf16.mxu1 %v7525_v30  ;;  %vm7434_vm7 = vcmp.ge.f32.partialorder %v7402_v39, 0.0 }
 0x75a   : > { %v7467_v61 = vmul.f32 0.1, %v7403_v25  ;;  %v7405_v60 = vadd.f32 %v15271_v11, %v7355_v34  ;;  %7708 = vmatmul.mubr.bf16.gmra.mrb[36].mxu1 %v7524_v45  ;;  %vm7435_vm8 = vcmp.ge.f32.partialorder %v7403_v25, 0.0 }
 0x75b   : > { %vm7436_vm9 = vcmp.ge.f32.partialorder %v7404_v21, 0.0  ;;  %v7468_v17 = vmul.f32 0.1, %v7404_v21  ;;  %8076 = vmatpush1.bf16.msra.mxu1 %v13699_v12  ;;  %v7498_v7 = vsel %vm7434_vm7, %v7402_v39, %v7466_v5 }
 0x75c   : > { %vm7437_vm11 = vcmp.ge.f32.partialorder %v7405_v60, 0.0  ;;  %v7469_v38 = vmul.f32 0.1, %v7405_v60  ;;  %v7147_v4 = vpop.f32.mrb[92].mxu0  ;;  %8077 = vmatprep.subr.bf16.mxu1 %v13704_v24  ;;  %v7499_v52 = vsel %vm7435_vm8, %v7403_v25, %v7467_v61 }
 0x75d   : > { %v7356_v8 = vmul.f32 %v15262_v50, %v7147_v4  ;;  %v7149_v6 = vpop.f32.mrb[93].mxu0  ;;  %v7500_v55 = vsel %vm7436_vm9, %v7404_v21, %v7468_v17 }
 0x75e   : > { %v7357_v57 = vmul.f32 %v15265_v42, %v7149_v6  ;;  %v7151_v29 = vpop.f32.mrb[94].mxu0  ;;  %v7501_v47 = vsel %vm7437_vm11, %v7405_v60, %v7469_v38  ;;  %v7526_v0 = vpack.c.bf16 %v7500_v55, %v7498_v7 }
 0x75f   : > { %v7406_v1 = vadd.f32 %v15268_v14, %v7356_v8  ;;  %v7358_v58 = vmul.f32 %v15262_v50, %v7151_v29  ;;  %v7153_v40 = vpop.f32.mrb[95].mxu0  ;;  %v7527_v62 = vpack.c.bf16 %v7501_v47, %v7499_v52  ;;  %8078 = vmatpush1.bf16.msra.mxu1 %v13702_v37 }
 0x760   : > { %v7407_v35 = vadd.f32 %v15271_v11, %v7357_v57  ;;  %v7359_v27 = vmul.f32 %v15265_v42, %v7153_v40  ;;  %8079 = vmatprep.subr.bf16.mxu1 %v13707_v56 }
 0x761   : > { %v7470_v16 = vmul.f32 0.1, %v7406_v1  ;;  %v7408_v20 = vadd.f32 %v15268_v14, %v7358_v58  ;;  %7715 = vmatprep.mubr.bf16.mxu1 %v7527_v62  ;;  %vm7438_vm13 = vcmp.ge.f32.partialorder %v7406_v1, 0.0 }
 0x762   : > { %v7471_v53 = vmul.f32 0.1, %v7407_v35  ;;  %v7409_v3 = vadd.f32 %v15271_v11, %v7359_v27  ;;  %7716 = vmatmul.mubr.bf16.gmra.mrb[40].mxu1 %v7526_v0  ;;  %vm7439_vm14 = vcmp.ge.f32.partialorder %v7407_v35, 0.0 }
 0x763   : > { %vm7440_vm15 = vcmp.ge.f32.partialorder %v7408_v20, 0.0  ;;  %v7472_v10 = vmul.f32 0.1, %v7408_v20  ;;  %8080 = vmatpush1.bf16.msra.mxu1 %v13705_v33  ;;  %v7502_v28 = vsel %vm7438_vm13, %v7406_v1, %v7470_v16 }
 0x764   : > { %vm7441_vm0 = vcmp.ge.f32.partialorder %v7409_v3, 0.0  ;;  %v7473_v54 = vmul.f32 0.1, %v7409_v3  ;;  %v7157_v49 = vpop.f32.mrb[96].mxu0  ;;  %8081 = vmatprep.subr.bf16.mxu1 %v13710_v2  ;;  %v7503_v26 = vsel %vm7439_vm14, %v7407_v35, %v7471_v53 }
 0x765   : > { %v7360_v44 = vmul.f32 %v15262_v50, %v7157_v49  ;;  %v7159_v59 = vpop.f32.mrb[97].mxu0  ;;  %v7504_v23 = vsel %vm7440_vm15, %v7408_v20, %v7472_v10 }
 0x766   : > { %v7361_v32 = vmul.f32 %v15265_v42, %v7159_v59  ;;  %v7161_v18 = vpop.f32.mrb[98].mxu0  ;;  %v7505_v22 = vsel %vm7441_vm0, %v7409_v3, %v7473_v54  ;;  %v7528_v9 = vpack.c.bf16 %v7504_v23, %v7502_v28 }
 0x767   : > { %v7410_v63 = vadd.f32 %v15268_v14, %v7360_v44  ;;  %v7362_v45 = vmul.f32 %v15262_v50, %v7161_v18  ;;  %v7163_v39 = vpop.f32.mrb[99].mxu0  ;;  %v7529_v43 = vpack.c.bf16 %v7505_v22, %v7503_v26  ;;  %8082 = vmatpush1.bf16.msra.mxu1 %v13708_v31 }
 0x768   : > { %v7411_v36 = vadd.f32 %v15271_v11, %v7361_v32  ;;  %v7363_v30 = vmul.f32 %v15265_v42, %v7163_v39 }
 0x769   : > { %v7474_v12 = vmul.f32 0.1, %v7410_v63  ;;  %v7412_v25 = vadd.f32 %v15268_v14, %v7362_v45  ;;  %7723 = vmatprep.mubr.bf16.mxu1 %v7529_v43  ;;  %vm7442_vm1 = vcmp.ge.f32.partialorder %v7410_v63, 0.0 }
 0x76a   : > { %v7475_v34 = vmul.f32 0.1, %v7411_v36  ;;  %v7413_v24 = vadd.f32 %v15271_v11, %v7363_v30  ;;  %7724 = vmatmul.mubr.bf16.gmra.mrb[44].mxu1 %v7528_v9  ;;  %vm7443_vm2 = vcmp.ge.f32.partialorder %v7411_v36, 0.0 }
 0x76b   : > { %vm7444_vm3 = vcmp.ge.f32.partialorder %v7412_v25, 0.0  ;;  %v7476_v5 = vmul.f32 0.1, %v7412_v25  ;;  %v7506_v37 = vsel %vm7442_vm1, %v7410_v63, %v7474_v12 }
 0x76c   : > { %vm7445_vm5 = vcmp.ge.f32.partialorder %v7413_v24, 0.0  ;;  %v7477_v21 = vmul.f32 0.1, %v7413_v24  ;;  %v7167_v61 = vpop.f32.mrb[100].mxu0  ;;  %v7507_v8 = vsel %vm7443_vm2, %v7411_v36, %v7475_v34 }
 0x76d   : > { %v7364_v60 = vmul.f32 %v15262_v50, %v7167_v61  ;;  %v7169_v17 = vpop.f32.mrb[101].mxu0  ;;  %v7508_v38 = vsel %vm7444_vm3, %v7412_v25, %v7476_v5 }
 0x76e   : > { %v7365_v4 = vmul.f32 %v15265_v42, %v7169_v17  ;;  %v7171_v56 = vpop.f32.mrb[102].mxu0  ;;  %v7509_v6 = vsel %vm7445_vm5, %v7413_v24, %v7477_v21  ;;  %v7530_v7 = vpack.c.bf16 %v7508_v38, %v7506_v37 }
 0x76f   : > { %v7414_v55 = vadd.f32 %v15268_v14, %v7364_v60  ;;  %v7366_v57 = vmul.f32 %v15262_v50, %v7171_v56  ;;  %v7173_v29 = vpop.f32.mrb[103].mxu0  ;;  %v7531_v52 = vpack.c.bf16 %v7509_v6, %v7507_v8 }
 0x770   : > { %v7415_v47 = vadd.f32 %v15271_v11, %v7365_v4  ;;  %v7367_v0 = vmul.f32 %v15265_v42, %v7173_v29 }
 0x771   : > { %v7478_v1 = vmul.f32 0.1, %v7414_v55  ;;  %v7416_v58 = vadd.f32 %v15268_v14, %v7366_v57  ;;  %7731 = vmatprep.mubr.bf16.mxu1 %v7531_v52  ;;  %vm7446_vm6 = vcmp.ge.f32.partialorder %v7414_v55, 0.0 }
 0x772   : > { %v7479_v40 = vmul.f32 0.1, %v7415_v47  ;;  %v7417_v62 = vadd.f32 %v15271_v11, %v7367_v0  ;;  %7732 = vmatmul.mubr.bf16.gmra.mrb[48].mxu1 %v7530_v7  ;;  %vm7447_vm7 = vcmp.ge.f32.partialorder %v7415_v47, 0.0 }
 0x773   : > { %vm7448_vm8 = vcmp.ge.f32.partialorder %v7416_v58, 0.0  ;;  %v7480_v33 = vmul.f32 0.1, %v7416_v58  ;;  %v7510_v20 = vsel %vm7446_vm6, %v7414_v55, %v7478_v1 }
 0x774   : > { %vm7449_vm9 = vcmp.ge.f32.partialorder %v7417_v62, 0.0  ;;  %v7481_v35 = vmul.f32 0.1, %v7417_v62  ;;  %v7177_v27 = vpop.f32.mrb[104].mxu0  ;;  %v7511_v31 = vsel %vm7447_vm7, %v7415_v47, %v7479_v40  ;;  %v13714_v40 = vld [vmem:[#allocation11 + $0x70] ss:$8 sps:$4 sm:$0xff]  }
 0x775   : > { %v7368_v2 = vmul.f32 %v15262_v50, %v7177_v27  ;;  %v7179_v16 = vpop.f32.mrb[105].mxu0  ;;  %v7512_v53 = vsel %vm7448_vm8, %v7416_v58, %v7480_v33  ;;  %v13713_v58 = vld [vmem:[#allocation11 + $0x64] ss:$8 sps:$4 sm:$0xff]   ;;  %v13722_v27 = vld [vmem:[#allocation11 + $0x94] ss:$8 sps:$4 sm:$0xff]  }
 0x776   : > { %v7369_v3 = vmul.f32 %v15265_v42, %v7179_v16  ;;  %v7181_v10 = vpop.f32.mrb[106].mxu0  ;;  %v7513_v54 = vsel %vm7449_vm9, %v7417_v62, %v7481_v35  ;;  %v7532_v49 = vpack.c.bf16 %v7512_v53, %v7510_v20  ;;  %8083 = vmatprep.subr.bf16.mxu1 %v13713_v58  ;;  %v13717_v62 = vld [vmem:[#allocation11 + $0x80] ss:$8 sps:$4 sm:$0xff]   ;;  %v13719_v33 = vld [vmem:[#allocation11 + $0x84] ss:$8 sps:$4 sm:$0xff]  }
 0x777   : > { %v7418_v44 = vadd.f32 %v15268_v14, %v7368_v2  ;;  %v7370_v59 = vmul.f32 %v15262_v50, %v7181_v10  ;;  %v7183_v28 = vpop.f32.mrb[107].mxu0  ;;  %v7533_v23 = vpack.c.bf16 %v7513_v54, %v7511_v31  ;;  %v13720_v35 = vld [vmem:[#allocation11 + $0x90] ss:$8 sps:$4 sm:$0xff]   ;;  %v13723_v2 = vld [vmem:[#allocation11 + $0xa0] ss:$8 sps:$4 sm:$0xff]  }
 0x778   : > { %v7419_v32 = vadd.f32 %v15271_v11, %v7369_v3  ;;  %v7371_v18 = vmul.f32 %v15265_v42, %v7183_v28  ;;  %v13725_v16 = vld [vmem:[#allocation11 + $0xa4] ss:$8 sps:$4 sm:$0xff]   ;;  %v13726_v20 = vld [vmem:[#allocation11 + $0xb0] ss:$8 sps:$4 sm:$0xff]   ;;  %v13728_v53 = vld [vmem:[#allocation11 + $0xb4] ss:$8 sps:$4 sm:$0xff]  }
 0x779   : > { %v7482_v26 = vmul.f32 0.1, %v7418_v44  ;;  %v7420_v22 = vadd.f32 %v15268_v14, %v7370_v59  ;;  %7739 = vmatprep.mubr.bf16.mxu1 %v7533_v23  ;;  %vm7450_vm11 = vcmp.ge.f32.partialorder %v7418_v44, 0.0  ;;  %v13729_v3 = vld [vmem:[#allocation11 + $0xc0] ss:$8 sps:$4 sm:$0xff]  }
 0x77a   : > { %v7483_v9 = vmul.f32 0.1, %v7419_v32  ;;  %v7421_v63 = vadd.f32 %v15271_v11, %v7371_v18  ;;  %7740 = vmatmul.mubr.bf16.gmra.mrb[52].mxu1 %v7532_v49  ;;  %vm7451_vm13 = vcmp.ge.f32.partialorder %v7419_v32, 0.0  ;;  %v13731_v10 = vld [vmem:[#allocation11 + $0xc4] ss:$8 sps:$4 sm:$0xff]  }
 0x77b   : > { %vm7452_vm14 = vcmp.ge.f32.partialorder %v7420_v22, 0.0  ;;  %v7484_v45 = vmul.f32 0.1, %v7420_v22  ;;  %v7514_v12 = vsel %vm7450_vm11, %v7418_v44, %v7482_v26  ;;  %v13732_v31 = vld [vmem:[#allocation11 + $0xd0] ss:$8 sps:$4 sm:$0xff]  }
 0x77c   : > { %vm7453_vm15 = vcmp.ge.f32.partialorder %v7421_v63, 0.0  ;;  %v7485_v39 = vmul.f32 0.1, %v7421_v63  ;;  %v7187_v43 = vpop.f32.mrb[108].mxu0  ;;  %v7515_v5 = vsel %vm7451_vm13, %v7419_v32, %v7483_v9  ;;  %v13734_v54 = vld [vmem:[#allocation11 + $0xd4] ss:$8 sps:$4 sm:$0xff]  }
 0x77d   : > { %v7372_v36 = vmul.f32 %v15262_v50, %v7187_v43  ;;  %v7189_v30 = vpop.f32.mrb[109].mxu0  ;;  %v7516_v25 = vsel %vm7452_vm14, %v7420_v22, %v7484_v45  ;;  %v13737_v49 = vld [vmem:[#allocation11 + $0xe4] ss:$8 sps:$4 sm:$0xff]   ;;  %v13735_v44 = vld [vmem:[#allocation11 + $0xe0] ss:$8 sps:$4 sm:$0xff]  }
 0x77e   : > { %v7373_v34 = vmul.f32 %v15265_v42, %v7189_v30  ;;  %v7191_v24 = vpop.f32.mrb[110].mxu0  ;;  %v7517_v21 = vsel %vm7453_vm15, %v7421_v63, %v7485_v39  ;;  %v7534_v61 = vpack.c.bf16 %v7516_v25, %v7514_v12  ;;  %v13740_v59 = vld [vmem:[#allocation11 + $0xf4] ss:$8 sps:$4 sm:$0xff]   ;;  %v13738_v28 = vld [vmem:[#allocation11 + $0xf0] ss:$8 sps:$4 sm:$0xff]  }
 0x77f   : > { %v7422_v60 = vadd.f32 %v15268_v14, %v7372_v36  ;;  %v7374_v17 = vmul.f32 %v15262_v50, %v7191_v24  ;;  %v7193_v37 = vpop.f32.mrb[111].mxu0  ;;  %v7535_v38 = vpack.c.bf16 %v7517_v21, %v7515_v5  ;;  %v13743_v23 = vld [vmem:[#allocation11 + $0x104] ss:$8 sps:$4 sm:$0xff]   ;;  %v7538_v32 = vld [vmem:[%s16064_s10] sm:$0x3] }
 0x780   : > { %v7423_v4 = vadd.f32 %v15271_v11, %v7373_v34  ;;  %v7375_v56 = vmul.f32 %v15265_v42, %v7193_v37  ;;  %v15348_v26 = vrot.slane %v7538_v32, %v14469_v13  ;;  %v15351_v63 = vrot.slane %v7538_v32, %v14475_v15 }
 0x781   : > { %v7486_v8 = vmul.f32 0.1, %v7422_v60  ;;  %v7424_v6 = vadd.f32 %v15268_v14, %v7374_v17  ;;  %7747 = vmatprep.mubr.bf16.mxu1 %v7535_v38  ;;  %vm7454_vm0 = vcmp.ge.f32.partialorder %v7422_v60, 0.0  ;;  %v13711_v14 = vld [vmem:[#allocation11 + $0x60] ss:$8 sps:$4 sm:$0xff]  }
 0x782   : > { %v7487_v7 = vmul.f32 0.1, %v7423_v4  ;;  %v7425_v55 = vadd.f32 %v15271_v11, %v7375_v56  ;;  %7748 = vmatmul.mubr.bf16.gmra.mrb[56].mxu1 %v7534_v61  ;;  %vm7455_vm1 = vcmp.ge.f32.partialorder %v7423_v4, 0.0  ;;  %v13716_v11 = vld [vmem:[#allocation11 + $0x74] ss:$8 sps:$4 sm:$0xff]  }
 0x783   : > { %vm7456_vm2 = vcmp.ge.f32.partialorder %v7424_v6, 0.0  ;;  %v7488_v57 = vmul.f32 0.1, %v7424_v6  ;;  %v7518_v29 = vsel %vm7454_vm0, %v7422_v60, %v7486_v8  ;;  %8084 = vmatpush1.bf16.msra.mxu1 %v13711_v14 }
 0x784   : > { %vm7457_vm3 = vcmp.ge.f32.partialorder %v7425_v55, 0.0  ;;  %v7489_v50 = vmul.f32 0.1, %v7425_v55  ;;  %v7519_v47 = vsel %vm7455_vm1, %v7423_v4, %v7487_v7  ;;  %8085 = vmatprep.subr.bf16.mxu1 %v13716_v11 }
 0x785   : > { %v7520_v52 = vsel %vm7456_vm2, %v7424_v6, %v7488_v57 }
 0x786   : > { %v7521_v0 = vsel %vm7457_vm3, %v7425_v55, %v7489_v50  ;;  %v7536_v1 = vpack.c.bf16 %v7520_v52, %v7518_v29 }
 0x787   : > { %v7537_v42 = vpack.c.bf16 %v7521_v0, %v7519_v47  ;;  %8086 = vmatpush1.bf16.msra.mxu1 %v13714_v40 }
 0x788   : > { %8389 = vmatprep.subr.bf16.mxu1 %v13719_v33 }
 0x789   : > { %7755 = vmatprep.mubr.bf16.mxu1 %v7537_v42  ;;  %v7940_v42 = vld [vmem:[#allocation2 + $0x8] sm:$0x1f] }
 0x78a   : > { %7756 = vmatmul.mubr.bf16.gmra.mrb[60].mxu1 %v7536_v1 }
 0x78b   : > { %8103 = vmatprep.mubr.bf16.mxu1 %v15189_v46 }
 0x792   : > { %8104 = vmatmul.mubr.bf16.vlgmr.msra.gmra.mrb[64].mxu1 %v15189_v46 }
 0x793   : > { %8113 = vmatprep.mubr.bf16.mxu1 %v15189_v46  ;;  %8390 = vmatpush1.bf16.msra.mxu1 %v13717_v62 }
 0x794   : > { %8391 = vmatprep.subr.bf16.mxu1 %v13722_v27 }
 0x797   : > { %8392 = vmatpush1.bf16.msra.mxu1 %v13720_v35 }
 0x798   : > { %8393 = vmatprep.subr.bf16.mxu1 %v13725_v16 }
 0x79b   : > { %8394 = vmatpush1.bf16.msra.mxu1 %v13723_v2 }
 0x79c   : > { %8395 = vmatprep.subr.bf16.mxu1 %v13728_v53 }
 0x79f   : > { %8396 = vmatpush1.bf16.msra.mxu1 %v13726_v20 }
 0x7a0   : > { %8397 = vmatprep.subr.bf16.mxu1 %v13731_v10 }
 0x7a3   : > { %8398 = vmatpush1.bf16.msra.mxu1 %v13729_v3 }
 0x7a4   : > { %8399 = vmatprep.subr.bf16.mxu1 %v13734_v54 }
 0x7a7   : > { %8400 = vmatpush1.bf16.msra.mxu1 %v13732_v31 }
 0x7a8   : > { %8401 = vmatprep.subr.bf16.mxu1 %v13737_v49 }
 0x7ab   : > { %8402 = vmatpush1.bf16.msra.mxu1 %v13735_v44 }
 0x7ac   : > { %8403 = vmatprep.subr.bf16.mxu1 %v13740_v59 }
 0x7af   : > { %8404 = vmatpush1.bf16.msra.mxu1 %v13738_v28 }
 0x7b0   : > { %8729 = vmatprep.subr.bf16.mxu1 %v13743_v23  ;;  %v7943_v23 = vld [vmem:[#allocation2 + $0x10] sm:$0x1f] }
 0x825   : > { %v12289_v18 = vpop.f32.mrb[32].mxu1 }
 0x826   : > { %v12290_v22 = vpop.f32.mrb[33].mxu1 }
 0x827   : > { %v12291_v9 = vadd.f32 %v12290_v22, %v12289_v18  ;;  %v12292_v45 = vpop.f32.mrb[34].mxu1 }
 0x828   : > { %v12293_v39 = vpop.f32.mrb[35].mxu1 }
 0x829   : > { %v7768_v43 = vmul.f32 %v12291_v9, %v15348_v26  ;;  %v12294_v36 = vadd.f32 %v12293_v39, %v12292_v45 }
 0x82b   : > { %v7788_v30 = vadd.f32 %v15351_v63, %v7768_v43  ;;  %v7769_v12 = vmul.f32 %v12294_v36, %v15348_v26 }
 0x82d   : > { %vm7804_vm5 = vcmp.ge.f32.partialorder %v7788_v30, 0.0  ;;  %v7820_v25 = vmul.f32 0.1, %v7788_v30  ;;  %v7789_v34 = vadd.f32 %v15351_v63, %v7769_v12  ;;  %v12295_v24 = vpop.f32.mrb[36].mxu1 }
 0x82e   : > { %v12296_v5 = vpop.f32.mrb[37].mxu1 }
 0x82f   : > { %v7836_v21 = vsel %vm7804_vm5, %v7788_v30, %v7820_v25  ;;  %vm7805_vm6 = vcmp.ge.f32.partialorder %v7789_v34, 0.0  ;;  %v7821_v61 = vmul.f32 0.1, %v7789_v34  ;;  %v12297_v60 = vadd.f32 %v12296_v5, %v12295_v24  ;;  %v12298_v17 = vpop.f32.mrb[38].mxu1  ;;  %v15385_v24 = vld [vmem:[#allocation2] sm:$0xff] }
 0x830   : > { %7852 = vst [vmem:[%s15360_s14] sm:$0xff] %v7836_v21  ;;  %v7868_v37 = vpack.c.bf16 %v7836_v21, %v7836_v21  ;;  %v12299_v38 = vpop.f32.mrb[39].mxu1 }
 0x831   : > { %v7837_v4 = vsel %vm7805_vm6, %v7789_v34, %v7821_v61  ;;  %v7770_v56 = vmul.f32 %v12297_v60, %v15348_v26  ;;  %v12300_v8 = vadd.f32 %v12299_v38, %v12298_v17 }
 0x832   : > { %v7877_v6 = vshrl.u32 %v7868_v37, 16  ;;  %7853 = vst [vmem:[%s15360_s14 + $0x8] sm:$0xff] %v7837_v4  ;;  %v7880_v50 = vshll.u32 %v7868_v37, 16 }
 0x833   : > { %v7790_v7 = vadd.f32 %v15351_v63, %v7770_v56  ;;  %v7771_v55 = vmul.f32 %v12300_v8, %v15348_v26  ;;  %v7946_v8 = vld [vmem:[#allocation2 + $0x18] sm:$0x1f] }
 0x834   : > { %v7879_v57 = vrot.slane %v7877_v6, 7 }
 0x835   : > { %vm7806_vm7 = vcmp.ge.f32.partialorder %v7790_v7, 0.0  ;;  %v7822_v29 = vmul.f32 0.1, %v7790_v7  ;;  %v7791_v52 = vadd.f32 %v15351_v63, %v7771_v55  ;;  %v12301_v47 = vpop.f32.mrb[40].mxu1 }
 0x836   : > { %v7882_v0 = vor.u32 %v7880_v50, %v7879_v57  ;;  %v12302_v1 = vpop.f32.mrb[41].mxu1 }
 0x837   : > { %v7838_v14 = vsel %vm7806_vm7, %v7790_v7, %v7822_v29  ;;  %vm7807_vm8 = vcmp.ge.f32.partialorder %v7791_v52, 0.0  ;;  %v7823_v58 = vmul.f32 0.1, %v7791_v52  ;;  %v12303_v11 = vadd.f32 %v12302_v1, %v12301_v47  ;;  %v12304_v40 = vpop.f32.mrb[42].mxu1 }
 0x838   : > { %v7941_v62 = vsel %vm14490_vm4, %v7882_v0, %v7940_v42  ;;  %7854 = vst [vmem:[%s15360_s14 + $0x10] sm:$0xff] %v7838_v14  ;;  %v7869_v33 = vpack.c.bf16 %v7838_v14, %v7838_v14  ;;  %v12305_v35 = vpop.f32.mrb[43].mxu1 }
 0x839   : > { %7942 = vst [vmem:[#allocation2 + $0x8] sm:$0x1f] %v7941_v62  ;;  %v7839_v27 = vsel %vm7807_vm8, %v7791_v52, %v7823_v58  ;;  %v7772_v2 = vmul.f32 %v12303_v11, %v15348_v26  ;;  %v12306_v16 = vadd.f32 %v12305_v35, %v12304_v40 }
 0x83a   : > { %v7884_v20 = vshrl.u32 %v7869_v33, 16  ;;  %7855 = vst [vmem:[%s15360_s14 + $0x18] sm:$0xff] %v7839_v27  ;;  %v7887_v31 = vshll.u32 %v7869_v33, 16 }
 0x83b   : > { %v7792_v53 = vadd.f32 %v15351_v63, %v7772_v2  ;;  %v7773_v3 = vmul.f32 %v12306_v16, %v15348_v26 }
 0x83c   : > { %v7886_v10 = vrot.slane %v7884_v20, 7  ;;  %v7949_v20 = vld [vmem:[#allocation2 + $0x20] sm:$0x1f] }
 0x83d   : > { %vm7808_vm9 = vcmp.ge.f32.partialorder %v7792_v53, 0.0  ;;  %v7824_v54 = vmul.f32 0.1, %v7792_v53  ;;  %v7793_v49 = vadd.f32 %v15351_v63, %v7773_v3  ;;  %v12307_v44 = vpop.f32.mrb[44].mxu1 }
 0x83e   : > { %v7889_v59 = vor.u32 %v7887_v31, %v7886_v10  ;;  %v12308_v28 = vpop.f32.mrb[45].mxu1 }
 0x83f   : > { %v7840_v32 = vsel %vm7808_vm9, %v7792_v53, %v7824_v54  ;;  %vm7809_vm11 = vcmp.ge.f32.partialorder %v7793_v49, 0.0  ;;  %v7825_v18 = vmul.f32 0.1, %v7793_v49  ;;  %v12309_v22 = vadd.f32 %v12308_v28, %v12307_v44  ;;  %v12310_v9 = vpop.f32.mrb[46].mxu1 }
 0x840   : > { %v7944_v45 = vsel %vm14490_vm4, %v7889_v59, %v7943_v23  ;;  %7856 = vst [vmem:[%s15360_s14 + $0x20] sm:$0xff] %v7840_v32  ;;  %v7870_v39 = vpack.c.bf16 %v7840_v32, %v7840_v32  ;;  %v12311_v43 = vpop.f32.mrb[47].mxu1  ;;  %v15380_v36 = vld [vmem:[#allocation2 + $0x8] sm:$0xff] }
 0x841   : > { %7945 = vst [vmem:[#allocation2 + $0x10] sm:$0x1f] %v7944_v45  ;;  %v7841_v30 = vsel %vm7809_vm11, %v7793_v49, %v7825_v18  ;;  %v7774_v12 = vmul.f32 %v12309_v22, %v15348_v26  ;;  %v12312_v25 = vadd.f32 %v12311_v43, %v12310_v9  ;;  %8114 = vmatmul.mubr.bf16.gmra.mrb[68].mxu1 %v15380_v36 }
 0x842   : > { %v7891_v34 = vshrl.u32 %v7870_v39, 16  ;;  %7857 = vst [vmem:[%s15360_s14 + $0x28] sm:$0xff] %v7841_v30  ;;  %8123 = vmatprep.mubr.bf16.mxu1 %v15385_v24  ;;  %v7894_v60 = vshll.u32 %v7870_v39, 16 }
 0x843   : > { %v7794_v5 = vadd.f32 %v15351_v63, %v7774_v12  ;;  %v7775_v21 = vmul.f32 %v12312_v25, %v15348_v26 }
 0x844   : > { %v7893_v61 = vrot.slane %v7891_v34, 7 }
 0x845   : > { %vm7810_vm13 = vcmp.ge.f32.partialorder %v7794_v5, 0.0  ;;  %v7826_v17 = vmul.f32 0.1, %v7794_v5  ;;  %v7795_v37 = vadd.f32 %v15351_v63, %v7775_v21  ;;  %v12313_v38 = vpop.f32.mrb[48].mxu1 }
 0x846   : > { %v7896_v4 = vor.u32 %v7894_v60, %v7893_v61  ;;  %v12314_v56 = vpop.f32.mrb[49].mxu1 }
 0x847   : > { %v7842_v6 = vsel %vm7810_vm13, %v7794_v5, %v7826_v17  ;;  %vm7811_vm14 = vcmp.ge.f32.partialorder %v7795_v37, 0.0  ;;  %v7827_v7 = vmul.f32 0.1, %v7795_v37  ;;  %v12315_v55 = vadd.f32 %v12314_v56, %v12313_v38  ;;  %v12316_v57 = vpop.f32.mrb[50].mxu1  ;;  %v7952_v5 = vld [vmem:[#allocation2 + $0x28] sm:$0x1f] }
 0x848   : > { %v7947_v50 = vsel %vm14490_vm4, %v7896_v4, %v7946_v8  ;;  %7858 = vst [vmem:[%s15360_s14 + $0x30] sm:$0xff] %v7842_v6  ;;  %v7871_v29 = vpack.c.bf16 %v7842_v6, %v7842_v6  ;;  %v12317_v52 = vpop.f32.mrb[51].mxu1  ;;  %v15394_v47 = vld [vmem:[#allocation2 + $0x10] sm:$0xff] }
 0x849   : > { %7948 = vst [vmem:[#allocation2 + $0x18] sm:$0x1f] %v7947_v50  ;;  %v7843_v0 = vsel %vm7811_vm14, %v7795_v37, %v7827_v7  ;;  %v7776_v1 = vmul.f32 %v12315_v55, %v15348_v26  ;;  %v12318_v42 = vadd.f32 %v12317_v52, %v12316_v57  ;;  %8124 = vmatmul.mubr.bf16.gmra.mrb[72].mxu1 %v15394_v47  ;;  %v8249_v48 = vshll.u32 %v15394_v47, 16 }
 0x84a   : > { %v7898_v14 = vshrl.u32 %v7871_v29, 16  ;;  %7859 = vst [vmem:[%s15360_s14 + $0x38] sm:$0xff] %v7843_v0  ;;  %8133 = vmatprep.mubr.bf16.mxu1 %v15385_v24  ;;  %v7901_v62 = vshll.u32 %v7871_v29, 16 }
 0x84b   : > { %v7796_v58 = vadd.f32 %v15351_v63, %v7776_v1  ;;  %v7777_v11 = vmul.f32 %v12318_v42, %v15348_v26 }
 0x84c   : > { %v7900_v40 = vrot.slane %v7898_v14, 7 }
 0x84d   : > { %vm7812_vm15 = vcmp.ge.f32.partialorder %v7796_v58, 0.0  ;;  %v7828_v33 = vmul.f32 0.1, %v7796_v58  ;;  %v7797_v35 = vadd.f32 %v15351_v63, %v7777_v11  ;;  %v12319_v27 = vpop.f32.mrb[52].mxu1  ;;  %v7955_v11 = vld [vmem:[#allocation2 + $0x30] sm:$0x1f] }
 0x84e   : > { %v7903_v2 = vor.u32 %v7901_v62, %v7900_v40  ;;  %v12320_v16 = vpop.f32.mrb[53].mxu1 }
 0x84f   : > { %v7844_v53 = vsel %vm7812_vm15, %v7796_v58, %v7828_v33  ;;  %vm7813_vm0 = vcmp.ge.f32.partialorder %v7797_v35, 0.0  ;;  %v7829_v3 = vmul.f32 0.1, %v7797_v35  ;;  %v12321_v10 = vadd.f32 %v12320_v16, %v12319_v27  ;;  %v12322_v31 = vpop.f32.mrb[54].mxu1 }
 0x850   : > { %v7950_v54 = vsel %vm14490_vm4, %v7903_v2, %v7949_v20  ;;  %7860 = vst [vmem:[%s15360_s14 + $0x40] sm:$0xff] %v7844_v53  ;;  %v7872_v49 = vpack.c.bf16 %v7844_v53, %v7844_v53  ;;  %v12323_v44 = vpop.f32.mrb[55].mxu1  ;;  %v15406_v59 = vld [vmem:[#allocation2 + $0x18] sm:$0xff] }
 0x851   : > { %7951 = vst [vmem:[#allocation2 + $0x20] sm:$0x1f] %v7950_v54  ;;  %v7845_v28 = vsel %vm7813_vm0, %v7797_v35, %v7829_v3  ;;  %v7778_v23 = vmul.f32 %v12321_v10, %v15348_v26  ;;  %v12324_v32 = vadd.f32 %v12323_v44, %v12322_v31  ;;  %8134 = vmatmul.mubr.bf16.gmra.mrb[76].mxu1 %v15406_v59 }
 0x852   : > { %v7905_v18 = vshrl.u32 %v7872_v49, 16  ;;  %7861 = vst [vmem:[%s15360_s14 + $0x48] sm:$0xff] %v7845_v28  ;;  %8143 = vmatprep.mubr.bf16.mxu1 %v15385_v24  ;;  %v7908_v39 = vshll.u32 %v7872_v49, 16 }
 0x853   : > { %v7798_v22 = vadd.f32 %v15351_v63, %v7778_v23  ;;  %v7779_v9 = vmul.f32 %v12324_v32, %v15348_v26 }
 0x854   : > { %v7907_v45 = vrot.slane %v7905_v18, 7 }
 0x855   : > { %vm7814_vm1 = vcmp.ge.f32.partialorder %v7798_v22, 0.0  ;;  %v7830_v43 = vmul.f32 0.1, %v7798_v22  ;;  %v7799_v30 = vadd.f32 %v15351_v63, %v7779_v9  ;;  %v12325_v12 = vpop.f32.mrb[56].mxu1 }
 0x856   : > { %v7910_v25 = vor.u32 %v7908_v39, %v7907_v45  ;;  %v12326_v34 = vpop.f32.mrb[57].mxu1 }
 0x857   : > { %v7846_v21 = vsel %vm7814_vm1, %v7798_v22, %v7830_v43  ;;  %vm7815_vm2 = vcmp.ge.f32.partialorder %v7799_v30, 0.0  ;;  %v7831_v61 = vmul.f32 0.1, %v7799_v30  ;;  %v12327_v60 = vadd.f32 %v12326_v34, %v12325_v12  ;;  %v12328_v17 = vpop.f32.mrb[58].mxu1  ;;  %v7958_v22 = vld [vmem:[#allocation2 + $0x38] sm:$0x1f] }
 0x858   : > { %v7953_v37 = vsel %vm14490_vm4, %v7910_v25, %v7952_v5  ;;  %7862 = vst [vmem:[%s15360_s14 + $0x50] sm:$0xff] %v7846_v21  ;;  %v7873_v38 = vpack.c.bf16 %v7846_v21, %v7846_v21  ;;  %v12329_v4 = vpop.f32.mrb[59].mxu1  ;;  %v15418_v56 = vld [vmem:[#allocation2 + $0x20] sm:$0xff] }
 0x859   : > { %7954 = vst [vmem:[#allocation2 + $0x28] sm:$0x1f] %v7953_v37  ;;  %v7847_v8 = vsel %vm7815_vm2, %v7799_v30, %v7831_v61  ;;  %v7780_v6 = vmul.f32 %v12327_v60, %v15348_v26  ;;  %v12330_v7 = vadd.f32 %v12329_v4, %v12328_v17  ;;  %8144 = vmatmul.mubr.bf16.gmra.mrb[80].mxu1 %v15418_v56  ;;  %v7961_v21 = vld [vmem:[#allocation2 + $0x40] sm:$0x1f]  ;;  %v8241_v37 = vshll.u32 %v15380_v36, 16 }
 0x85a   : > { %v7912_v55 = vshrl.u32 %v7873_v38, 16  ;;  %7863 = vst [vmem:[%s15360_s14 + $0x58] sm:$0xff] %v7847_v8  ;;  %8153 = vmatprep.mubr.bf16.mxu1 %v15385_v24  ;;  %v7915_v52 = vshll.u32 %v7873_v38, 16  ;;  %v13741_v8 = vld [vmem:[#allocation11 + $0x100] ss:$8 sps:$4 sm:$0xff]  }
 0x85b   : > { %v7800_v57 = vadd.f32 %v15351_v63, %v7780_v6  ;;  %v7781_v50 = vmul.f32 %v12330_v7, %v15348_v26  ;;  %v8243_v4 = vrot.slane %v8241_v37, 1  ;;  %v13746_v6 = vld [vmem:[#allocation11 + $0x114] ss:$8 sps:$4 sm:$0xff]  }
 0x85c   : > { %v7914_v29 = vrot.slane %v7912_v55, 7  ;;  %v13744_v55 = vld [vmem:[#allocation11 + $0x110] ss:$8 sps:$4 sm:$0xff]  }
 0x85d   : > { %vm7816_vm3 = vcmp.ge.f32.partialorder %v7800_v57, 0.0  ;;  %v7832_v0 = vmul.f32 0.1, %v7800_v57  ;;  %v7801_v1 = vadd.f32 %v15351_v63, %v7781_v50  ;;  %v12331_v42 = vpop.f32.mrb[60].mxu1  ;;  %v8245_v50 = vshrl.u32 %v15380_v36, 16 }
 0x85e   : > { %v7917_v14 = vor.u32 %v7915_v52, %v7914_v29  ;;  %v12332_v58 = vpop.f32.mrb[61].mxu1  ;;  %v8251_v29 = vrot.slane %v8249_v48, 1  ;;  %v13752_v52 = vld [vmem:[#allocation11 + $0x134] ss:$8 sps:$4 sm:$0xff]   ;;  %v8625_v48 = vrot.slane %v15380_v36, 1 }
 0x85f   : > { %v7848_v40 = vsel %vm7816_vm3, %v7800_v57, %v7832_v0  ;;  %vm7817_vm5 = vcmp.ge.f32.partialorder %v7801_v1, 0.0  ;;  %v7833_v62 = vmul.f32 0.1, %v7801_v1  ;;  %v12333_v33 = vadd.f32 %v12332_v58, %v12331_v42  ;;  %v12334_v35 = vpop.f32.mrb[62].mxu1  ;;  %v13749_v57 = vld [vmem:[#allocation11 + $0x124] ss:$8 sps:$4 sm:$0xff]  }
 0x860   : > { %v7956_v27 = vsel %vm14490_vm4, %v7917_v14, %v7955_v11  ;;  %7864 = vst [vmem:[%s15360_s14 + $0x60] sm:$0xff] %v7848_v40  ;;  %v7874_v2 = vpack.c.bf16 %v7848_v40, %v7848_v40  ;;  %v12335_v16 = vpop.f32.mrb[63].mxu1  ;;  %v15430_v20 = vld [vmem:[#allocation2 + $0x28] sm:$0xff]  ;;  %v8247_v46 = vor.u32 %v8245_v50, %v8243_v4  ;;  %v13755_v14 = vld [vmem:[#allocation11 + $0x144] ss:$8 sps:$4 sm:$0xff]   ;;  %v8253_v58 = vshrl.u32 %v15394_v47, 16 }
 0x861   : > { %7957 = vst [vmem:[#allocation2 + $0x30] sm:$0x1f] %v7956_v27  ;;  %v7849_v53 = vsel %vm7817_vm5, %v7801_v1, %v7833_v62  ;;  %v7782_v3 = vmul.f32 %v12333_v33, %v15348_v26  ;;  %v12336_v10 = vadd.f32 %v12335_v16, %v12334_v35  ;;  %8154 = vmatmul.mubr.bf16.gmra.mrb[84].mxu1 %v15430_v20  ;;  %v8257_v1 = vshll.u32 %v15406_v59, 16  ;;  %v13750_v42 = vld [vmem:[#allocation11 + $0x130] ss:$8 sps:$4 sm:$0xff]  }
 0x862   : > { %v7919_v31 = vshrl.u32 %v7874_v2, 16  ;;  %7865 = vst [vmem:[%s15360_s14 + $0x68] sm:$0xff] %v7849_v53  ;;  %8163 = vmatprep.mubr.bf16.mxu1 %v15385_v24  ;;  %v7922_v28 = vshll.u32 %v7874_v2, 16  ;;  %v15465_v0 = vsel %vm1279_vm10, %v8247_v46, %v8251_v29  ;;  %v8255_v40 = vor.u32 %v8253_v58, %v8251_v29  ;;  %v13753_v62 = vld [vmem:[#allocation11 + $0x140] ss:$8 sps:$4 sm:$0xff]  }
 0x863   : > { %v7802_v54 = vadd.f32 %v15351_v63, %v7782_v3  ;;  %v7783_v49 = vmul.f32 %v12336_v10, %v15348_v26  ;;  %v8259_v11 = vrot.slane %v8257_v1, 1  ;;  %v13758_v33 = vld [vmem:[#allocation11 + $0x154] ss:$8 sps:$4 sm:$0xff]   ;;  %v8265_v27 = vshll.u32 %v15418_v56, 16  ;;  %v13756_v2 = vld [vmem:[#allocation11 + $0x150] ss:$8 sps:$4 sm:$0xff]  }
 0x864   : > { %v7921_v44 = vrot.slane %v7919_v31, 7  ;;  %v13761_v16 = vld [vmem:[#allocation11 + $0x164] ss:$8 sps:$4 sm:$0xff]   ;;  %v8261_v53 = vshrl.u32 %v15406_v59, 16  ;;  %v13759_v31 = vld [vmem:[#allocation11 + $0x160] ss:$8 sps:$4 sm:$0xff]  }
 0x865   : > { %vm7818_vm6 = vcmp.ge.f32.partialorder %v7802_v54, 0.0  ;;  %v7834_v23 = vmul.f32 0.1, %v7802_v54  ;;  %v7803_v32 = vadd.f32 %v15351_v63, %v7783_v49  ;;  %v8236_v63 = vshll.u32 %v15385_v24, 16  ;;  %v13768_v29 = vld [vmem:[#allocation11 + $0x190] ss:$8 sps:$4 sm:$0xff]  }
 0x866   : > { %v7924_v18 = vor.u32 %v7922_v28, %v7921_v44  ;;  %v15472_v35 = vsel %vm1279_vm10, %v8255_v40, %v8259_v11  ;;  %v8267_v3 = vrot.slane %v8265_v27, 1  ;;  %v8263_v10 = vor.u32 %v8261_v53, %v8259_v11  ;;  %v13762_v28 = vld [vmem:[#allocation11 + $0x170] ss:$8 sps:$4 sm:$0xff]   ;;  %v13773_v46 = vld [vmem:[#allocation11 + $0x1a4] ss:$8 sps:$4 sm:$0xff]  }
 0x867   : > { %v7850_v9 = vsel %vm7818_vm6, %v7802_v54, %v7834_v23  ;;  %vm7819_vm7 = vcmp.ge.f32.partialorder %v7803_v32, 0.0  ;;  %v7835_v45 = vmul.f32 0.1, %v7803_v32  ;;  %v15448_v61 = vrot.slane %v8236_v63, 1  ;;  %v13764_v54 = vld [vmem:[#allocation11 + $0x174] ss:$8 sps:$4 sm:$0xff]  }
 0x868   : > { %v7959_v39 = vsel %vm14490_vm4, %v7924_v18, %v7958_v22  ;;  %7866 = vst [vmem:[%s15360_s14 + $0x70] sm:$0xff] %v7850_v9  ;;  %v7875_v43 = vpack.c.bf16 %v7850_v9, %v7850_v9  ;;  %v15442_v30 = vld [vmem:[#allocation2 + $0x30] sm:$0xff]  ;;  %v15479_v49 = vsel %vm1279_vm10, %v8263_v10, %v8267_v3  ;;  %v8273_v44 = vshll.u32 %v15430_v20, 16  ;;  %v13767_v23 = vld [vmem:[#allocation11 + $0x184] ss:$8 sps:$4 sm:$0xff]  }
 0x869   : > { %7960 = vst [vmem:[#allocation2 + $0x38] sm:$0x1f] %v7959_v39  ;;  %v7851_v26 = vsel %vm7819_vm7, %v7803_v32, %v7835_v45  ;;  %8164 = vmatmul.mubr.bf16.gmra.mrb[88].mxu1 %v15442_v30  ;;  %v8239_v38 = vor.u32 %v15448_v61, %v6684_v51  ;;  %v13747_v51 = vld [vmem:[#allocation11 + $0x120] ss:$8 sps:$4 sm:$0xff]   ;;  %v8269_v32 = vshrl.u32 %v15418_v56, 16  ;;  %v8281_v45 = vshll.u32 %v15442_v30, 16 }
 0x86a   : > { %v7926_v12 = vshrl.u32 %v7875_v43, 16  ;;  %7867 = vst [vmem:[%s15360_s14 + $0x78] sm:$0xff] %v7851_v26  ;;  %8173 = vmatprep.mubr.bf16.mxu1 %v15385_v24  ;;  %v7929_v34 = vshll.u32 %v7875_v43, 16  ;;  %v8275_v18 = vrot.slane %v8273_v44, 1  ;;  %v8277_v39 = vshrl.u32 %v15430_v20, 16 }
 0x86b   : > { %v8244_v7 = vsel %vm1279_vm10, %v8239_v38, %v8243_v4  ;;  %v8271_v22 = vor.u32 %v8269_v32, %v8267_v3  ;;  %v8283_v43 = vrot.slane %v8281_v45, 1  ;;  %v13776_v1 = vld [vmem:[#allocation11 + $0x1b4] ss:$8 sps:$4 sm:$0xff]   ;;  %v13779_v58 = vld [vmem:[#allocation11 + $0x1c4] ss:$8 sps:$4 sm:$0xff]   ;;  %v8629_v11 = vrot.slane %v15406_v59, 1 }
 0x86c   : > { %v7928_v25 = vrot.slane %v7926_v12, 7  ;;  %v8279_v26 = vor.u32 %v8277_v39, %v8275_v18  ;;  %v13777_v40 = vld [vmem:[#allocation11 + $0x1c0] ss:$8 sps:$4 sm:$0xff]   ;;  %v13780_v27 = vld [vmem:[#allocation11 + $0x1d0] ss:$8 sps:$4 sm:$0xff]   ;;  %v8633_v44 = vrot.slane %v15430_v20, 1 }
 0x86d   : > { %v15486_v9 = vsel %vm1279_vm10, %v8271_v22, %v8275_v18  ;;  %v13783_v53 = vld [vmem:[#allocation11 + $0x1e0] ss:$8 sps:$4 sm:$0xff]   ;;  %v13788_v3 = vld [vmem:[#allocation11 + $0x1f4] ss:$8 sps:$4 sm:$0xff]  }
 0x86e   : > { %v7931_v5 = vor.u32 %v7929_v34, %v7928_v25  ;;  %v15493_v12 = vsel %vm1279_vm10, %v8279_v26, %v8283_v43  ;;  %v8285_v25 = vshrl.u32 %v15442_v30, 16  ;;  %v13794_v26 = vld [vmem:[#allocation11 + $0x214] ss:$8 sps:$4 sm:$0xff]  }
 0x870   : > { %v7962_v60 = vsel %vm14490_vm4, %v7931_v5, %v7961_v21  ;;  %v15452_v17 = vld [vmem:[#allocation2 + $0x38] sm:$0xff]  ;;  %v8287_v21 = vor.u32 %v8285_v25, %v8283_v43 }
 0x871   : > { %7963 = vst [vmem:[#allocation2 + $0x40] sm:$0x1f] %v7962_v60  ;;  %8174 = vmatmul.mubr.bf16.gmra.mrb[92].mxu1 %v15452_v17  ;;  %v8289_v63 = vshll.u32 %v15452_v17, 16  ;;  %v8293_v38 = vshrl.u32 %v15452_v17, 16  ;;  %v8637_v18 = vrot.slane %v15452_v17, 1 }
 0x872   : > { %8421 = vmatprep.mubr.bf16.mxu1 %v15385_v24  ;;  %v13789_v43 = vld [vmem:[#allocation11 + $0x200] ss:$8 sps:$4 sm:$0xff]   ;;  %v13797_v25 = vld [vmem:[#allocation11 + $0x224] ss:$8 sps:$4 sm:$0xff]  }
 0x873   : > { %v8291_v34 = vrot.slane %v8289_v63, 1  ;;  %v13792_v63 = vld [vmem:[#allocation11 + $0x210] ss:$8 sps:$4 sm:$0xff]  }
 0x875   : > { %v15502_v60 = vsel %vm1279_vm10, %v8287_v21, %v8291_v34  ;;  %v13800_v21 = vld [vmem:[#allocation11 + $0x234] ss:$8 sps:$4 sm:$0xff]  }
 0x878   : > { %v15499_v5 = vld [vmem:[#allocation2 + $0x40] sm:$0xff] }
 0x879   : > { %8422 = vmatmul.mubr.bf16.vlgmr.msra.gmra.mrb[64].mxu1 %v8244_v7  ;;  %v8297_v37 = vshll.u32 %v15499_v5, 16  ;;  %v15517_v7 = vrot.slane %v15385_v24, 1  ;;  %v8639_v45 = vrot.slane %v15499_v5, 1 }
 0x87a   : > { %8730 = vmatpush1.bf16.msra.mxu1 %v13741_v8  ;;  %8431 = vmatprep.mubr.bf16.mxu1 %v15385_v24  ;;  %v8295_v8 = vor.u32 %v8293_v38, %v8291_v34  ;;  %v13795_v34 = vld [vmem:[#allocation11 + $0x220] ss:$8 sps:$4 sm:$0xff]   ;;  %v13803_v38 = vld [vmem:[#allocation11 + $0x244] ss:$8 sps:$4 sm:$0xff]  }
 0x87b   : > { %8731 = vmatprep.subr.bf16.mxu1 %v13746_v6  ;;  %v15508_v4 = vrot.slane %v8297_v37, 1  ;;  %v8626_v50 = vsel %vm1671_vm12, %v15517_v7, %v8625_v48  ;;  %v15563_v39 = vsel %vm1671_vm12, %v8637_v18, %v8639_v45  ;;  %v13798_v37 = vld [vmem:[#allocation11 + $0x230] ss:$8 sps:$4 sm:$0xff]  }
 0x87d   : > { %v15512_v6 = vsel %vm1279_vm10, %v8295_v8, %v15508_v4  ;;  %v13806_v8 = vld [vmem:[#allocation11 + $0x254] ss:$8 sps:$4 sm:$0xff]  }
 0x87e   : > { %8732 = vmatpush1.bf16.msra.mxu1 %v13744_v55  ;;  %v13765_v55 = vld [vmem:[#allocation11 + $0x180] ss:$8 sps:$4 sm:$0xff]  }
 0x87f   : > { %8733 = vmatprep.subr.bf16.mxu1 %v13749_v57  ;;  %v13770_v57 = vld [vmem:[#allocation11 + $0x194] ss:$8 sps:$4 sm:$0xff]  }
 0x881   : > { %8432 = vmatmul.mubr.bf16.gmra.mrb[68].mxu1 %v15465_v0 }
 0x882   : > { %8441 = vmatprep.mubr.bf16.mxu1 %v15385_v24  ;;  %8734 = vmatpush1.bf16.msra.mxu1 %v13747_v51  ;;  %v8627_v51 = vrot.slane %v15394_v47, 1 }
 0x883   : > { %8735 = vmatprep.subr.bf16.mxu1 %v13752_v52  ;;  %v13771_v52 = vld [vmem:[#allocation11 + $0x1a0] ss:$8 sps:$4 sm:$0xff]  }
 0x886   : > { %8736 = vmatpush1.bf16.msra.mxu1 %v13750_v42  ;;  %v15525_v42 = vsel %vm1671_vm12, %v8625_v48, %v8627_v51  ;;  %v13804_v48 = vld [vmem:[#allocation11 + $0x250] ss:$8 sps:$4 sm:$0xff]  }
 0x887   : > { %8737 = vmatprep.subr.bf16.mxu1 %v13755_v14  ;;  %v13774_v14 = vld [vmem:[#allocation11 + $0x1b0] ss:$8 sps:$4 sm:$0xff]  }
 0x889   : > { %8442 = vmatmul.mubr.bf16.gmra.mrb[72].mxu1 %v15472_v35 }
 0x88a   : > { %8451 = vmatprep.mubr.bf16.mxu1 %v15385_v24  ;;  %8738 = vmatpush1.bf16.msra.mxu1 %v13753_v62  ;;  %v13782_v62 = vld [vmem:[#allocation11 + $0x1d4] ss:$8 sps:$4 sm:$0xff]  }
 0x88b   : > { %8739 = vmatprep.subr.bf16.mxu1 %v13758_v33  ;;  %v15531_v33 = vsel %vm1671_vm12, %v8627_v51, %v8629_v11  ;;  %v13813_v51 = vld [vmem:[#allocation11 + $0x280] ss:$8 sps:$4 sm:$0xff]  }
 0x88e   : > { %8740 = vmatpush1.bf16.msra.mxu1 %v13756_v2  ;;  %v13785_v2 = vld [vmem:[#allocation11 + $0x1e4] ss:$8 sps:$4 sm:$0xff]  }
 0x88f   : > { %8741 = vmatprep.subr.bf16.mxu1 %v13761_v16  ;;  %v8631_v16 = vrot.slane %v15418_v56, 1 }
 0x891   : > { %8452 = vmatmul.mubr.bf16.gmra.mrb[76].mxu1 %v15479_v49  ;;  %v15537_v10 = vsel %vm1671_vm12, %v8629_v11, %v8631_v16  ;;  %v13824_v11 = vld [vmem:[#allocation11 + $0x2b4] ss:$8 sps:$4 sm:$0xff]  }
 0x892   : > { %8461 = vmatprep.mubr.bf16.mxu1 %v15385_v24  ;;  %8742 = vmatpush1.bf16.msra.mxu1 %v13759_v31  ;;  %v13786_v31 = vld [vmem:[#allocation11 + $0x1f0] ss:$8 sps:$4 sm:$0xff]  }
 0x893   : > { %8743 = vmatprep.subr.bf16.mxu1 %v13764_v54  ;;  %v13791_v54 = vld [vmem:[#allocation11 + $0x204] ss:$8 sps:$4 sm:$0xff]  }
 0x896   : > { %8744 = vmatpush1.bf16.msra.mxu1 %v13762_v28  ;;  %v15543_v28 = vsel %vm1671_vm12, %v8631_v16, %v8633_v44  ;;  %v13833_v16 = vld [vmem:[#allocation11 + $0x2e4] ss:$8 sps:$4 sm:$0xff]  }
 0x897   : > { %9035 = vmatprep.subr.bf16.mxu1 %v13767_v23  ;;  %v8635_v23 = vrot.slane %v15442_v30, 1 }
 0x899   : > { %8462 = vmatmul.mubr.bf16.gmra.mrb[80].mxu1 %v15486_v9  ;;  %v15549_v32 = vsel %vm1671_vm12, %v8633_v44, %v8635_v23  ;;  %v15555_v22 = vsel %vm1671_vm12, %v8635_v23, %v8637_v18  ;;  %v9261_v44 = vshrl.u32 %v15499_v5, 16 }
 0x89a   : > { %8471 = vmatprep.mubr.bf16.mxu1 %v15385_v24 }
 0x89b   : > { %v9263_v23 = vor.u32 %v9261_v44, %v15508_v4  ;;  %v13843_v4 = vld [vmem:[#allocation11 + $0x320] ss:$8 sps:$4 sm:$0xff]   ;;  %v13888_v44 = vld [vmem:[#allocation11 + $0x410] ss:$8 sps:$4 sm:$0xff]  }
 0x89d   : > { %v15601_v18 = vsel %vm1279_vm10, %v9263_v23, %v15448_v61  ;;  %v13893_v23 = vld [vmem:[#allocation11 + $0x424] ss:$8 sps:$4 sm:$0xff]  }
 0x8a1   : > { %8472 = vmatmul.mubr.bf16.gmra.mrb[84].mxu1 %v15493_v12 }
 0x8a2   : > { %8481 = vmatprep.mubr.bf16.mxu1 %v15385_v24 }
 0x8a9   : > { %8482 = vmatmul.mubr.bf16.gmra.mrb[88].mxu1 %v15502_v60 }
 0x8aa   : > { %8491 = vmatprep.mubr.bf16.mxu1 %v15385_v24 }
 0x8b1   : > { %8492 = vmatmul.mubr.bf16.gmra.mrb[92].mxu1 %v15512_v6 }
 0x8b2   : > { %8761 = vmatprep.mubr.bf16.mxu1 %v15385_v24 }
 0x8b9   : > { %8762 = vmatmul.mubr.bf16.vlgmr.msra.gmra.mrb[64].mxu1 %v8626_v50  ;;  %v13812_v50 = vld [vmem:[#allocation11 + $0x274] ss:$8 sps:$4 sm:$0xff]  }
 0x8ba   : > { %9036 = vmatpush1.bf16.msra.mxu1 %v13765_v55  ;;  %8771 = vmatprep.mubr.bf16.mxu1 %v15385_v24  ;;  %v13809_v55 = vld [vmem:[#allocation11 + $0x264] ss:$8 sps:$4 sm:$0xff]  }
 0x8bb   : > { %9037 = vmatprep.subr.bf16.mxu1 %v13770_v57  ;;  %v13807_v57 = vld [vmem:[#allocation11 + $0x260] ss:$8 sps:$4 sm:$0xff]  }
 0x8be   : > { %9038 = vmatpush1.bf16.msra.mxu1 %v13768_v29  ;;  %v13810_v29 = vld [vmem:[#allocation11 + $0x270] ss:$8 sps:$4 sm:$0xff]  }
 0x8bf   : > { %9039 = vmatprep.subr.bf16.mxu1 %v13773_v46  ;;  %v13815_v46 = vld [vmem:[#allocation11 + $0x284] ss:$8 sps:$4 sm:$0xff]  }
 0x8c1   : > { %8772 = vmatmul.mubr.bf16.gmra.mrb[68].mxu1 %v15525_v42 }
 0x8c2   : > { %8781 = vmatprep.mubr.bf16.mxu1 %v15385_v24  ;;  %9040 = vmatpush1.bf16.msra.mxu1 %v13771_v52  ;;  %v13818_v52 = vld [vmem:[#allocation11 + $0x294] ss:$8 sps:$4 sm:$0xff]  }
 0x8c3   : > { %9041 = vmatprep.subr.bf16.mxu1 %v13776_v1  ;;  %v13816_v1 = vld [vmem:[#allocation11 + $0x290] ss:$8 sps:$4 sm:$0xff]  }
 0x8c6   : > { %9042 = vmatpush1.bf16.msra.mxu1 %v13774_v14  ;;  %v13821_v14 = vld [vmem:[#allocation11 + $0x2a4] ss:$8 sps:$4 sm:$0xff]  }
 0x8c7   : > { %9043 = vmatprep.subr.bf16.mxu1 %v13779_v58  ;;  %v13819_v58 = vld [vmem:[#allocation11 + $0x2a0] ss:$8 sps:$4 sm:$0xff]  }
 0x8c9   : > { %8782 = vmatmul.mubr.bf16.gmra.mrb[72].mxu1 %v15531_v33 }
 0x8ca   : > { %8791 = vmatprep.mubr.bf16.mxu1 %v15385_v24  ;;  %9044 = vmatpush1.bf16.msra.mxu1 %v13777_v40  ;;  %v13822_v40 = vld [vmem:[#allocation11 + $0x2b0] ss:$8 sps:$4 sm:$0xff]  }
 0x8cb   : > { %9045 = vmatprep.subr.bf16.mxu1 %v13782_v62  ;;  %v13827_v62 = vld [vmem:[#allocation11 + $0x2c4] ss:$8 sps:$4 sm:$0xff]  }
 0x8ce   : > { %9046 = vmatpush1.bf16.msra.mxu1 %v13780_v27  ;;  %v13830_v27 = vld [vmem:[#allocation11 + $0x2d4] ss:$8 sps:$4 sm:$0xff]  }
 0x8cf   : > { %9047 = vmatprep.subr.bf16.mxu1 %v13785_v2  ;;  %v13828_v2 = vld [vmem:[#allocation11 + $0x2d0] ss:$8 sps:$4 sm:$0xff]  }
 0x8d1   : > { %8792 = vmatmul.mubr.bf16.gmra.mrb[76].mxu1 %v15537_v10 }
 0x8d2   : > { %8801 = vmatprep.mubr.bf16.mxu1 %v15385_v24  ;;  %9048 = vmatpush1.bf16.msra.mxu1 %v13783_v53  ;;  %v13831_v53 = vld [vmem:[#allocation11 + $0x2e0] ss:$8 sps:$4 sm:$0xff]  }
 0x8d3   : > { %9049 = vmatprep.subr.bf16.mxu1 %v13788_v3  ;;  %v13836_v3 = vld [vmem:[#allocation11 + $0x2f4] ss:$8 sps:$4 sm:$0xff]  }
 0x8d6   : > { %9050 = vmatpush1.bf16.msra.mxu1 %v13786_v31  ;;  %v13834_v31 = vld [vmem:[#allocation11 + $0x2f0] ss:$8 sps:$4 sm:$0xff]  }
 0x8d7   : > { %9350 = vmatprep.subr.bf16.mxu1 %v13791_v54  ;;  %v13839_v54 = vld [vmem:[#allocation11 + $0x304] ss:$8 sps:$4 sm:$0xff]  }
 0x8d9   : > { %8802 = vmatmul.mubr.bf16.gmra.mrb[80].mxu1 %v15543_v28 }
 0x8da   : > { %8811 = vmatprep.mubr.bf16.mxu1 %v15385_v24 }
 0x8e1   : > { %8812 = vmatmul.mubr.bf16.gmra.mrb[84].mxu1 %v15549_v32 }
 0x8e2   : > { %8821 = vmatprep.mubr.bf16.mxu1 %v15385_v24 }
 0x8e9   : > { %8822 = vmatmul.mubr.bf16.gmra.mrb[88].mxu1 %v15555_v22 }
 0x8ea   : > { %8831 = vmatprep.mubr.bf16.mxu1 %v15385_v24 }
 0x8f1   : > { %8832 = vmatmul.mubr.bf16.gmra.mrb[92].mxu1 %v15563_v39 }
 0x8f2   : > { %9067 = vmatprep.mubr.bf16.mxu1 %v15385_v24 }
 0x8f9   : > { %9068 = vmatmul.mubr.bf16.vlgmr.msra.gmra.mrb[64].mxu1 %v15380_v36  ;;  %v13801_v36 = vld [vmem:[#allocation11 + $0x240] ss:$8 sps:$4 sm:$0xff]  }
 0x8fa   : > { %9351 = vmatpush1.bf16.msra.mxu1 %v13789_v43  ;;  %9077 = vmatprep.mubr.bf16.mxu1 %v15385_v24  ;;  %v13837_v43 = vld [vmem:[#allocation11 + $0x300] ss:$8 sps:$4 sm:$0xff]  }
 0x8fb   : > { %9352 = vmatprep.subr.bf16.mxu1 %v13794_v26  ;;  %v13842_v26 = vld [vmem:[#allocation11 + $0x314] ss:$8 sps:$4 sm:$0xff]  }
 0x8fe   : > { %9353 = vmatpush1.bf16.msra.mxu1 %v13792_v63  ;;  %v13840_v63 = vld [vmem:[#allocation11 + $0x310] ss:$8 sps:$4 sm:$0xff]  }
 0x8ff   : > { %9354 = vmatprep.subr.bf16.mxu1 %v13797_v25  ;;  %v13845_v25 = vld [vmem:[#allocation11 + $0x324] ss:$8 sps:$4 sm:$0xff]  }
 0x901   : > { %9078 = vmatmul.mubr.bf16.gmra.mrb[68].mxu1 %v15394_v47 }
 0x902   : > { %9087 = vmatprep.mubr.bf16.mxu1 %v15385_v24  ;;  %9355 = vmatpush1.bf16.msra.mxu1 %v13795_v34  ;;  %v13848_v34 = vld [vmem:[#allocation11 + $0x334] ss:$8 sps:$4 sm:$0xff]  }
 0x903   : > { %9356 = vmatprep.subr.bf16.mxu1 %v13800_v21  ;;  %v13846_v21 = vld [vmem:[#allocation11 + $0x330] ss:$8 sps:$4 sm:$0xff]  }
 0x906   : > { %9357 = vmatpush1.bf16.msra.mxu1 %v13798_v37  ;;  %v13851_v37 = vld [vmem:[#allocation11 + $0x344] ss:$8 sps:$4 sm:$0xff]  }
 0x907   : > { %9358 = vmatprep.subr.bf16.mxu1 %v13803_v38  ;;  %v13854_v38 = vld [vmem:[#allocation11 + $0x354] ss:$8 sps:$4 sm:$0xff]  }
 0x909   : > { %9088 = vmatmul.mubr.bf16.gmra.mrb[72].mxu1 %v15406_v59 }
 0x90a   : > { %9097 = vmatprep.mubr.bf16.mxu1 %v15385_v24  ;;  %9359 = vmatpush1.bf16.msra.mxu1 %v13801_v36  ;;  %v13852_v36 = vld [vmem:[#allocation11 + $0x350] ss:$8 sps:$4 sm:$0xff]  }
 0x90b   : > { %9360 = vmatprep.subr.bf16.mxu1 %v13806_v8  ;;  %v13857_v8 = vld [vmem:[#allocation11 + $0x364] ss:$8 sps:$4 sm:$0xff]  }
 0x90e   : > { %9361 = vmatpush1.bf16.msra.mxu1 %v13804_v48  ;;  %v13855_v48 = vld [vmem:[#allocation11 + $0x360] ss:$8 sps:$4 sm:$0xff]  }
 0x90f   : > { %9362 = vmatprep.subr.bf16.mxu1 %v13809_v55  ;;  %v13860_v55 = vld [vmem:[#allocation11 + $0x374] ss:$8 sps:$4 sm:$0xff]  }
 0x911   : > { %9098 = vmatmul.mubr.bf16.gmra.mrb[76].mxu1 %v15418_v56 }
 0x912   : > { %9107 = vmatprep.mubr.bf16.mxu1 %v15385_v24  ;;  %9363 = vmatpush1.bf16.msra.mxu1 %v13807_v57  ;;  %v13858_v57 = vld [vmem:[#allocation11 + $0x370] ss:$8 sps:$4 sm:$0xff]  }
 0x913   : > { %9364 = vmatprep.subr.bf16.mxu1 %v13812_v50  ;;  %v13863_v50 = vld [vmem:[#allocation11 + $0x384] ss:$8 sps:$4 sm:$0xff]  }
 0x916   : > { %9365 = vmatpush1.bf16.msra.mxu1 %v13810_v29  ;;  %v15623_v29 = vsel %vm1671_vm12, %v8639_v45, %v15517_v7  ;;  %v13870_v45 = vld [vmem:[#allocation11 + $0x3b0] ss:$8 sps:$4 sm:$0xff]  }
 0x917   : > { %9660 = vmatprep.subr.bf16.mxu1 %v13815_v46  ;;  %v13861_v46 = vld [vmem:[#allocation11 + $0x380] ss:$8 sps:$4 sm:$0xff]  }
 0x919   : > { %9108 = vmatmul.mubr.bf16.gmra.mrb[80].mxu1 %v15430_v20 }
 0x91a   : > { %9117 = vmatprep.mubr.bf16.mxu1 %v15385_v24 }
 0x921   : > { %9118 = vmatmul.mubr.bf16.gmra.mrb[84].mxu1 %v15442_v30 }
 0x922   : > { %9127 = vmatprep.mubr.bf16.mxu1 %v15385_v24 }
 0x929   : > { %9128 = vmatmul.mubr.bf16.gmra.mrb[88].mxu1 %v15452_v17 }
 0x92a   : > { %9137 = vmatprep.mubr.bf16.mxu1 %v15385_v24 }
 0x931   : > { %9138 = vmatmul.mubr.bf16.gmra.mrb[92].mxu1 %v15499_v5 }
 0x932   : > { %9382 = vmatprep.mubr.bf16.mxu1 %v15385_v24 }
 0x939   : > { %9383 = vmatmul.mubr.bf16.vlgmr.msra.gmra.mrb[64].mxu1 %v15465_v0  ;;  %v13825_v0 = vld [vmem:[#allocation11 + $0x2c0] ss:$8 sps:$4 sm:$0xff]  }
 0x93a   : > { %9661 = vmatpush1.bf16.msra.mxu1 %v13813_v51  ;;  %9392 = vmatprep.mubr.bf16.mxu1 %v15385_v24  ;;  %v13866_v51 = vld [vmem:[#allocation11 + $0x394] ss:$8 sps:$4 sm:$0xff]  }
 0x93b   : > { %9662 = vmatprep.subr.bf16.mxu1 %v13818_v52  ;;  %v13864_v52 = vld [vmem:[#allocation11 + $0x390] ss:$8 sps:$4 sm:$0xff]  }
 0x93e   : > { %9663 = vmatpush1.bf16.msra.mxu1 %v13816_v1  ;;  %v13869_v1 = vld [vmem:[#allocation11 + $0x3a4] ss:$8 sps:$4 sm:$0xff]  }
 0x93f   : > { %9664 = vmatprep.subr.bf16.mxu1 %v13821_v14  ;;  %v13867_v14 = vld [vmem:[#allocation11 + $0x3a0] ss:$8 sps:$4 sm:$0xff]  }
 0x941   : > { %9393 = vmatmul.mubr.bf16.gmra.mrb[68].mxu1 %v15472_v35 }
 0x942   : > { %9402 = vmatprep.mubr.bf16.mxu1 %v15385_v24  ;;  %9665 = vmatpush1.bf16.msra.mxu1 %v13819_v58  ;;  %v13872_v58 = vld [vmem:[#allocation11 + $0x3b4] ss:$8 sps:$4 sm:$0xff]  }
 0x943   : > { %9666 = vmatprep.subr.bf16.mxu1 %v13824_v11  ;;  %v13875_v11 = vld [vmem:[#allocation11 + $0x3c4] ss:$8 sps:$4 sm:$0xff]  }
 0x946   : > { %9667 = vmatpush1.bf16.msra.mxu1 %v13822_v40  ;;  %v13878_v40 = vld [vmem:[#allocation11 + $0x3d4] ss:$8 sps:$4 sm:$0xff]  }
 0x947   : > { %9668 = vmatprep.subr.bf16.mxu1 %v13827_v62  ;;  %v13876_v62 = vld [vmem:[#allocation11 + $0x3d0] ss:$8 sps:$4 sm:$0xff]  }
 0x949   : > { %9403 = vmatmul.mubr.bf16.gmra.mrb[72].mxu1 %v15479_v49 }
 0x94a   : > { %9412 = vmatprep.mubr.bf16.mxu1 %v15385_v24  ;;  %9669 = vmatpush1.bf16.msra.mxu1 %v13825_v0  ;;  %v13881_v0 = vld [vmem:[#allocation11 + $0x3e4] ss:$8 sps:$4 sm:$0xff]  }
 0x94b   : > { %9670 = vmatprep.subr.bf16.mxu1 %v13830_v27  ;;  %v13884_v27 = vld [vmem:[#allocation11 + $0x3f4] ss:$8 sps:$4 sm:$0xff]  }
 0x94e   : > { %9671 = vmatpush1.bf16.msra.mxu1 %v13828_v2  ;;  %v13882_v2 = vld [vmem:[#allocation11 + $0x3f0] ss:$8 sps:$4 sm:$0xff]  }
 0x94f   : > { %9672 = vmatprep.subr.bf16.mxu1 %v13833_v16  ;;  %v13887_v16 = vld [vmem:[#allocation11 + $0x404] ss:$8 sps:$4 sm:$0xff]  }
 0x951   : > { %9413 = vmatmul.mubr.bf16.gmra.mrb[76].mxu1 %v15486_v9 }
 0x952   : > { %9422 = vmatprep.mubr.bf16.mxu1 %v15385_v24  ;;  %9673 = vmatpush1.bf16.msra.mxu1 %v13831_v53  ;;  %v13890_v53 = vld [vmem:[#allocation11 + $0x414] ss:$8 sps:$4 sm:$0xff]  }
 0x953   : > { %9674 = vmatprep.subr.bf16.mxu1 %v13836_v3  ;;  %v15675_v3 = vld [vmem:[%s16067_s13 + $0x20] ss:$8 sps:$4 sm:$0xff]  }
 0x956   : > { %9675 = vmatpush1.bf16.msra.mxu1 %v13834_v31  ;;  %v15682_v31 = vld [vmem:[%s16067_s13 + $0x34] ss:$8 sps:$4 sm:$0xff]  }
 0x957   : > { %9966 = vmatprep.subr.bf16.mxu1 %v13839_v54  ;;  %v15684_v54 = vld [vmem:[#allocation2] sm:$0xff] }
 0x959   : > { %9423 = vmatmul.mubr.bf16.gmra.mrb[80].mxu1 %v15493_v12 }
 0x95a   : > { %9432 = vmatprep.mubr.bf16.mxu1 %v15385_v24 }
 0x961   : > { %9433 = vmatmul.mubr.bf16.gmra.mrb[84].mxu1 %v15502_v60 }
 0x962   : > { %9442 = vmatprep.mubr.bf16.mxu1 %v15385_v24 }
 0x969   : > { %9443 = vmatmul.mubr.bf16.gmra.mrb[88].mxu1 %v15512_v6 }
 0x96a   : > { %9452 = vmatprep.mubr.bf16.mxu1 %v15385_v24 }
 0x971   : > { %9453 = vmatmul.mubr.bf16.gmra.mrb[92].mxu1 %v15601_v18 }
 0x972   : > { %9692 = vmatprep.mubr.bf16.mxu1 %v15385_v24 }
 0x979   : > { %9693 = vmatmul.mubr.bf16.vlgmr.msra.gmra.mrb[64].mxu1 %v15525_v42  ;;  %v13849_v42 = vld [vmem:[#allocation11 + $0x340] ss:$8 sps:$4 sm:$0xff]  }
 0x97a   : > { %9967 = vmatpush1.bf16.msra.mxu1 %v13837_v43  ;;  %9702 = vmatprep.mubr.bf16.mxu1 %v15385_v24  ;;  %v15697_v43 = vld [vmem:[%s16067_s13 + $0x44] ss:$8 sps:$4 sm:$0xff]  }
 0x97b   : > { %9968 = vmatprep.subr.bf16.mxu1 %v13842_v26  ;;  %v13891_v26 = vld [vmem:[#allocation11 + $0x420] ss:$8 sps:$4 sm:$0xff]  }
 0x97e   : > { %9969 = vmatpush1.bf16.msra.mxu1 %v13840_v63  ;;  %v13896_v63 = vld [vmem:[#allocation11 + $0x434] ss:$8 sps:$4 sm:$0xff]  }
 0x97f   : > { %9970 = vmatprep.subr.bf16.mxu1 %v13845_v25  ;;  %v15703_v25 = vld [vmem:[%s16067_s13 + $0x40] ss:$8 sps:$4 sm:$0xff]  }
 0x981   : > { %9703 = vmatmul.mubr.bf16.gmra.mrb[68].mxu1 %v15531_v33 }
 0x982   : > { %9712 = vmatprep.mubr.bf16.mxu1 %v15385_v24  ;;  %9971 = vmatpush1.bf16.msra.mxu1 %v13843_v4  ;;  %v15710_v4 = vld [vmem:[%s16067_s13 + $0x54] ss:$8 sps:$4 sm:$0xff]  }
 0x983   : > { %9972 = vmatprep.subr.bf16.mxu1 %v13848_v34  ;;  %v13894_v34 = vld [vmem:[#allocation11 + $0x430] ss:$8 sps:$4 sm:$0xff]  }
 0x986   : > { %9973 = vmatpush1.bf16.msra.mxu1 %v13846_v21  ;;  %v13899_v21 = vld [vmem:[#allocation11 + $0x444] ss:$8 sps:$4 sm:$0xff]  }
 0x987   : > { %9974 = vmatprep.subr.bf16.mxu1 %v13851_v37  ;;  %v15717_v37 = vld [vmem:[%s16067_s13 + $0x50] ss:$8 sps:$4 sm:$0xff]  }
 0x989   : > { %9713 = vmatmul.mubr.bf16.gmra.mrb[72].mxu1 %v15537_v10 }
 0x98a   : > { %9722 = vmatprep.mubr.bf16.mxu1 %v15385_v24  ;;  %9975 = vmatpush1.bf16.msra.mxu1 %v13849_v42  ;;  %v13897_v42 = vld [vmem:[#allocation11 + $0x440] ss:$8 sps:$4 sm:$0xff]  }
 0x98b   : > { %9976 = vmatprep.subr.bf16.mxu1 %v13854_v38  ;;  %v13902_v38 = vld [vmem:[#allocation11 + $0x454] ss:$8 sps:$4 sm:$0xff]  }
 0x98e   : > { %9977 = vmatpush1.bf16.msra.mxu1 %v13852_v36  ;;  %v15729_v36 = vld [vmem:[%s16067_s13 + $0x60] ss:$8 sps:$4 sm:$0xff]  }
 0x98f   : > { %9978 = vmatprep.subr.bf16.mxu1 %v13857_v8  ;;  %v15736_v8 = vld [vmem:[%s16067_s13 + $0x74] ss:$8 sps:$4 sm:$0xff]  }
 0x991   : > { %9723 = vmatmul.mubr.bf16.gmra.mrb[76].mxu1 %v15543_v28 }
 0x992   : > { %9732 = vmatprep.mubr.bf16.mxu1 %v15385_v24  ;;  %9979 = vmatpush1.bf16.msra.mxu1 %v13855_v48  ;;  %v13900_v48 = vld [vmem:[#allocation11 + $0x450] ss:$8 sps:$4 sm:$0xff]  }
 0x993   : > { %9980 = vmatprep.subr.bf16.mxu1 %v13860_v55  ;;  %v13905_v55 = vld [vmem:[#allocation11 + $0x464] ss:$8 sps:$4 sm:$0xff]  }
 0x996   : > { %9981 = vmatpush1.bf16.msra.mxu1 %v13858_v57  ;;  %v15743_v57 = vld [vmem:[%s16067_s13 + $0x70] ss:$8 sps:$4 sm:$0xff]  }
 0x997   : > { %10281 = vmatprep.subr.bf16.mxu1 %v13863_v50  ;;  %v13903_v50 = vld [vmem:[#allocation11 + $0x460] ss:$8 sps:$4 sm:$0xff]  }
 0x999   : > { %9733 = vmatmul.mubr.bf16.gmra.mrb[80].mxu1 %v15549_v32 }
 0x99a   : > { %9742 = vmatprep.mubr.bf16.mxu1 %v15385_v24 }
 0x9a1   : > { %9743 = vmatmul.mubr.bf16.gmra.mrb[84].mxu1 %v15555_v22 }
 0x9a2   : > { %9752 = vmatprep.mubr.bf16.mxu1 %v15385_v24 }
 0x9a9   : > { %9753 = vmatmul.mubr.bf16.gmra.mrb[88].mxu1 %v15563_v39 }
 0x9aa   : > { %9762 = vmatprep.mubr.bf16.mxu1 %v15385_v24 }
 0x9b1   : > { %9763 = vmatmul.mubr.bf16.gmra.mrb[92].mxu1 %v15623_v29 }
 0x9b2   : > { %9998 = vmatprep.mubr.bf16.mxu1 %v15385_v24 }
 0x9b9   : > { %9999 = vmatmul.mubr.bf16.vlgmr.msra.gmra.mrb[64].mxu1 %v15394_v47  ;;  %v13873_v47 = vld [vmem:[#allocation11 + $0x3c0] ss:$8 sps:$4 sm:$0xff]  }
 0x9ba   : > { %10282 = vmatpush1.bf16.msra.mxu1 %v13861_v46  ;;  %10008 = vmatprep.mubr.bf16.mxu1 %v15385_v24  ;;  %v13908_v46 = vld [vmem:[#allocation11 + $0x474] ss:$8 sps:$4 sm:$0xff]  }
 0x9bb   : > { %10283 = vmatprep.subr.bf16.mxu1 %v13866_v51  ;;  %v15755_v51 = vld [vmem:[%s16067_s13 + $0x80] ss:$8 sps:$4 sm:$0xff]  }
 0x9be   : > { %10284 = vmatpush1.bf16.msra.mxu1 %v13864_v52  ;;  %v13938_v52 = vld [vmem:[%s16067_s13 + $0x94] ss:$8 sps:$4 sm:$0xff]  }
 0x9bf   : > { %10285 = vmatprep.subr.bf16.mxu1 %v13869_v1  ;;  %v13906_v1 = vld [vmem:[#allocation11 + $0x470] ss:$8 sps:$4 sm:$0xff]  }
 0x9c1   : > { %10009 = vmatmul.mubr.bf16.gmra.mrb[68].mxu1 %v15406_v59  ;;  %v13879_v59 = vld [vmem:[#allocation11 + $0x3e0] ss:$8 sps:$4 sm:$0xff]  }
 0x9c2   : > { %10018 = vmatprep.mubr.bf16.mxu1 %v15385_v24  ;;  %10286 = vmatpush1.bf16.msra.mxu1 %v13867_v14  ;;  %v13936_v14 = vld [vmem:[%s16067_s13 + $0x90] ss:$8 sps:$4 sm:$0xff]  }
 0x9c3   : > { %10287 = vmatprep.subr.bf16.mxu1 %v13872_v58  ;;  %v13939_v58 = vld [vmem:[%s16067_s13 + $0xa0] ss:$8 sps:$4 sm:$0xff]  }
 0x9c6   : > { %10288 = vmatpush1.bf16.msra.mxu1 %v13870_v45  ;;  %v13944_v45 = vld [vmem:[%s16067_s13 + $0xb4] ss:$8 sps:$4 sm:$0xff]  }
 0x9c7   : > { %10289 = vmatprep.subr.bf16.mxu1 %v13875_v11  ;;  %v13942_v11 = vld [vmem:[%s16067_s13 + $0xb0] ss:$8 sps:$4 sm:$0xff]  }
 0x9c9   : > { %10019 = vmatmul.mubr.bf16.gmra.mrb[72].mxu1 %v15418_v56  ;;  %v15645_v56 = vld [vmem:[%s16067_s13] ss:$8 sps:$4 sm:$0xff]  }
 0x9ca   : > { %10028 = vmatprep.mubr.bf16.mxu1 %v15385_v24  ;;  %10290 = vmatpush1.bf16.msra.mxu1 %v13873_v47  ;;  %v13947_v47 = vld [vmem:[%s16067_s13 + $0xc4] ss:$8 sps:$4 sm:$0xff]  }
 0x9cb   : > { %10291 = vmatprep.subr.bf16.mxu1 %v13878_v40  ;;  %v10192_v40 = vshrl.u32 %v15684_v54, 16 }
 0x9ce   : > { %10292 = vmatpush1.bf16.msra.mxu1 %v13876_v62  ;;  %v10196_v62 = vshll.u32 %v15684_v54, 16 }
 0x9cf   : > { %10293 = vmatprep.subr.bf16.mxu1 %v13881_v0  ;;  %v10194_v0 = vor.u32 %v10192_v40, %v15448_v61  ;;  %v13948_v61 = vld [vmem:[%s16067_s13 + $0xd0] ss:$8 sps:$4 sm:$0xff]  }
 0x9d1   : > { %10029 = vmatmul.mubr.bf16.gmra.mrb[76].mxu1 %v15430_v20  ;;  %v15650_v20 = vld [vmem:[%s16067_s13 + $0x4] ss:$8 sps:$4 sm:$0xff]  }
 0x9d2   : > { %10038 = vmatprep.mubr.bf16.mxu1 %v15385_v24  ;;  %10294 = vmatpush1.bf16.msra.mxu1 %v13879_v59  ;;  %v10198_v59 = vrot.slane %v10196_v62, 1 }
 0x9d3   : > { %10295 = vmatprep.subr.bf16.mxu1 %v13884_v27  ;;  %11239 = vmatprep.subr.bf16.mxu0 %v15650_v20 }
 0x9d4   : > { %11240 = vmatpush1.bf16.msra.mxu0 %v15645_v56  ;;  %v10199_v27 = vsel %vm1279_vm10, %v10194_v0, %v10198_v59 }
 0x9d6   : > { %10296 = vmatpush1.bf16.msra.mxu1 %v13882_v2 }
 0x9d7   : > { %10591 = vmatprep.subr.bf16.mxu1 %v13887_v16 }
 0x9d9   : > { %10039 = vmatmul.mubr.bf16.gmra.mrb[80].mxu1 %v15442_v30  ;;  %v15656_v30 = vld [vmem:[%s16067_s13 + $0x14] ss:$8 sps:$4 sm:$0xff]  }
 0x9da   : > { %10048 = vmatprep.mubr.bf16.mxu1 %v15385_v24  ;;  %11241 = vmatprep.subr.bf16.mxu0 %v15656_v30 }
 0x9e1   : > { %10049 = vmatmul.mubr.bf16.gmra.mrb[84].mxu1 %v15452_v17  ;;  %v15663_v17 = vld [vmem:[%s16067_s13 + $0x10] ss:$8 sps:$4 sm:$0xff]  }
 0x9e2   : > { %10058 = vmatprep.mubr.bf16.mxu1 %v15385_v24  ;;  %11242 = vmatpush1.bf16.msra.mxu0 %v15663_v17 }
 0x9e9   : > { %10059 = vmatmul.mubr.bf16.gmra.mrb[88].mxu1 %v15499_v5  ;;  %v13885_v5 = vld [vmem:[#allocation11 + $0x400] ss:$8 sps:$4 sm:$0xff]  }
 0x9ea   : > { %10068 = vmatprep.mubr.bf16.mxu1 %v15385_v24 }
 0x9f1   : > { %10069 = vmatmul.mubr.bf16.gmra.mrb[92].mxu1 %v15385_v24 }
 0x9f2   : > { %10313 = vmatprep.mubr.bf16.mxu1 %v15385_v24  ;;  %v15669_v24 = vld [vmem:[%s16067_s13 + $0x24] ss:$8 sps:$4 sm:$0xff]  }
 0x9f3   : > { %11243 = vmatprep.subr.bf16.mxu0 %v15669_v24 }
 0x9f4   : > { %11244 = vmatpush1.bf16.msra.mxu0 %v15675_v3 }
 0x9f5   : > { %11245 = vmatprep.subr.bf16.mxu0 %v15682_v31 }
 0x9f9   : > { %10314 = vmatmul.mubr.bf16.vlgmr.msra.gmra.mrb[64].mxu1 %v15472_v35  ;;  %v15691_v35 = vld [vmem:[%s16067_s13 + $0x30] ss:$8 sps:$4 sm:$0xff]  }
 0x9fa   : > { %10592 = vmatpush1.bf16.msra.mxu1 %v13885_v5  ;;  %10323 = vmatprep.mubr.bf16.mxu1 %v15684_v54 }
 0x9fb   : > { %10593 = vmatprep.subr.bf16.mxu1 %v13890_v53  ;;  %11246 = vmatpush1.bf16.msra.mxu0 %v15691_v35 }
 0x9fc   : > { %11247 = vmatprep.subr.bf16.mxu0 %v15697_v43 }
 0x9fe   : > { %10594 = vmatpush1.bf16.msra.mxu1 %v13888_v44 }
 0x9ff   : > { %10595 = vmatprep.subr.bf16.mxu1 %v13893_v23  ;;  %11248 = vmatpush1.bf16.msra.mxu0 %v15703_v25 }
 0xa00   : > { %11249 = vmatprep.subr.bf16.mxu0 %v15710_v4 }
 0xa01   : > { %10324 = vmatmul.mubr.bf16.gmra.mrb[68].mxu1 %v15479_v49  ;;  %v15723_v49 = vld [vmem:[%s16067_s13 + $0x64] ss:$8 sps:$4 sm:$0xff]  }
 0xa02   : > { %10333 = vmatprep.mubr.bf16.mxu1 %v15684_v54  ;;  %10596 = vmatpush1.bf16.msra.mxu1 %v13891_v26 }
 0xa03   : > { %10597 = vmatprep.subr.bf16.mxu1 %v13896_v63  ;;  %11250 = vmatpush1.bf16.msra.mxu0 %v15717_v37 }
 0xa04   : > { %11251 = vmatprep.subr.bf16.mxu0 %v15723_v49 }
 0xa06   : > { %10598 = vmatpush1.bf16.msra.mxu1 %v13894_v34 }
 0xa07   : > { %10599 = vmatprep.subr.bf16.mxu1 %v13899_v21  ;;  %11252 = vmatpush1.bf16.msra.mxu0 %v15729_v36 }
 0xa08   : > { %11253 = vmatprep.subr.bf16.mxu0 %v15736_v8 }
 0xa09   : > { %10334 = vmatmul.mubr.bf16.gmra.mrb[72].mxu1 %v15486_v9  ;;  %v15749_v9 = vld [vmem:[%s16067_s13 + $0x84] ss:$8 sps:$4 sm:$0xff]  }
 0xa0a   : > { %10343 = vmatprep.mubr.bf16.mxu1 %v15684_v54  ;;  %10600 = vmatpush1.bf16.msra.mxu1 %v13897_v42 }
 0xa0b   : > { %10601 = vmatprep.subr.bf16.mxu1 %v13902_v38  ;;  %11254 = vmatpush1.bf16.msra.mxu0 %v15743_v57 }
 0xa0c   : > { %11255 = vmatprep.subr.bf16.mxu0 %v15749_v9 }
 0xa0e   : > { %10602 = vmatpush1.bf16.msra.mxu1 %v13900_v48 }
 0xa0f   : > { %10603 = vmatprep.subr.bf16.mxu1 %v13905_v55  ;;  %11256 = vmatpush1.bf16.msra.mxu0 %v15755_v51 }
 0xa10   : > { %11257 = vmatprep.subr.bf16.mxu0 %v13938_v52 }
 0xa11   : > { %10344 = vmatmul.mubr.bf16.gmra.mrb[76].mxu1 %v15493_v12  ;;  %v13941_v12 = vld [vmem:[%s16067_s13 + $0xa4] ss:$8 sps:$4 sm:$0xff]  }
 0xa12   : > { %10353 = vmatprep.mubr.bf16.mxu1 %v15684_v54  ;;  %10604 = vmatpush1.bf16.msra.mxu1 %v13903_v50 }
 0xa13   : > { %10605 = vmatprep.subr.bf16.mxu1 %v13908_v46  ;;  %11258 = vmatpush1.bf16.msra.mxu0 %v13936_v14 }
 0xa14   : > { %11259 = vmatprep.subr.bf16.mxu0 %v13941_v12 }
 0xa16   : > { %10606 = vmatpush1.bf16.msra.mxu1 %v13906_v1 }
 0xa17   : > { %12337 = vmatprep.subr.bf16.mxu1 %v15650_v20  ;;  %11260 = vmatpush1.bf16.msra.mxu0 %v13939_v58 }
 0xa18   : > { %11261 = vmatprep.subr.bf16.mxu0 %v13944_v45 }
 0xa19   : > { %10354 = vmatmul.mubr.bf16.gmra.mrb[80].mxu1 %v15502_v60  ;;  %v13945_v60 = vld [vmem:[%s16067_s13 + $0xc0] ss:$8 sps:$4 sm:$0xff]  }
 0xa1a   : > { %10363 = vmatprep.mubr.bf16.mxu1 %v15684_v54 }
 0xa1b   : > { %11262 = vmatpush1.bf16.msra.mxu0 %v13942_v11 }
 0xa1c   : > { %11263 = vmatprep.subr.bf16.mxu0 %v13947_v47 }
 0xa1f   : > { %11264 = vmatpush1.bf16.msra.mxu0 %v13945_v60 }
 0xa21   : > { %10364 = vmatmul.mubr.bf16.gmra.mrb[84].mxu1 %v15512_v6  ;;  %v13950_v6 = vld [vmem:[%s16067_s13 + $0xd4] ss:$8 sps:$4 sm:$0xff]  }
 0xa22   : > { %10373 = vmatprep.mubr.bf16.mxu1 %v15684_v54  ;;  %11265 = vmatprep.subr.bf16.mxu0 %v13950_v6 }
 0xa23   : > { %11266 = vmatpush1.bf16.msra.mxu0 %v13948_v61 }
 0xa29   : > { %10374 = vmatmul.mubr.bf16.gmra.mrb[88].mxu1 %v15601_v18 }
 0xa2a   : > { %10383 = vmatprep.mubr.bf16.mxu1 %v15684_v54 }
 0xa31   : > { %10384 = vmatmul.mubr.bf16.gmra.mrb[92].mxu1 %v10199_v27 }
 0xa32   : > { %10623 = vmatprep.mubr.bf16.mxu1 %v15684_v54 }
 0xa39   : > { %10624 = vmatmul.mubr.bf16.vlgmr.msra.gmra.mrb[64].mxu1 %v15531_v33  ;;  %v13953_v33 = vld [vmem:[%s16067_s13 + $0xe4] ss:$8 sps:$4 sm:$0xff]  }
 0xa3a   : > { %10633 = vmatprep.mubr.bf16.mxu1 %v15684_v54  ;;  %12353 = vmatpush1.bf16.msra.mxu1 %v15645_v56 }
 0xa3b   : > { %12338 = vmatprep.subr.bf16.mxu1 %v15656_v30  ;;  %11267 = vmatprep.subr.bf16.mxu0 %v13953_v33 }
 0xa3e   : > { %12354 = vmatpush1.bf16.msra.mxu1 %v15663_v17 }
 0xa3f   : > { %12339 = vmatprep.subr.bf16.mxu1 %v15669_v24 }
 0xa41   : > { %10634 = vmatmul.mubr.bf16.gmra.mrb[68].mxu1 %v15537_v10  ;;  %v13951_v10 = vld [vmem:[%s16067_s13 + $0xe0] ss:$8 sps:$4 sm:$0xff]  }
 0xa42   : > { %10643 = vmatprep.mubr.bf16.mxu1 %v15684_v54  ;;  %12355 = vmatpush1.bf16.msra.mxu1 %v15675_v3 }
 0xa43   : > { %12340 = vmatprep.subr.bf16.mxu1 %v15682_v31  ;;  %11268 = vmatpush1.bf16.msra.mxu0 %v13951_v10 }
 0xa46   : > { %12356 = vmatpush1.bf16.msra.mxu1 %v15691_v35 }
 0xa47   : > { %12341 = vmatprep.subr.bf16.mxu1 %v15697_v43 }
 0xa49   : > { %10644 = vmatmul.mubr.bf16.gmra.mrb[72].mxu1 %v15543_v28  ;;  %v13954_v28 = vld [vmem:[%s16067_s13 + $0xf0] ss:$8 sps:$4 sm:$0xff]  }
 0xa4a   : > { %10653 = vmatprep.mubr.bf16.mxu1 %v15684_v54  ;;  %12357 = vmatpush1.bf16.msra.mxu1 %v15703_v25 }
 0xa4b   : > { %12342 = vmatprep.subr.bf16.mxu1 %v15710_v4 }
 0xa4e   : > { %12358 = vmatpush1.bf16.msra.mxu1 %v15717_v37 }
 0xa4f   : > { %12343 = vmatprep.subr.bf16.mxu1 %v15723_v49 }
 0xa51   : > { %10654 = vmatmul.mubr.bf16.gmra.mrb[76].mxu1 %v15549_v32  ;;  %v10800_v32 = vld [vmem:[%s16092_s12] sm:$0xf] }
 0xa52   : > { %10663 = vmatprep.mubr.bf16.mxu1 %v15684_v54  ;;  %12359 = vmatpush1.bf16.msra.mxu1 %v15729_v36  ;;  %v10887_v18 = vrot.slane %v10800_v32, %v14475_v15 }
 0xa53   : > { %12344 = vmatprep.subr.bf16.mxu1 %v15736_v8 }
 0xa54   : > { %v15861_v56 = vrot.slane %v10887_v18, %v14475_v15 }
 0xa56   : > { %12360 = vmatpush1.bf16.msra.mxu1 %v15743_v57 }
 0xa57   : > { %12345 = vmatprep.subr.bf16.mxu1 %v15749_v9 }
 0xa59   : > { %10664 = vmatmul.mubr.bf16.gmra.mrb[80].mxu1 %v15555_v22  ;;  %v10837_v22 = vrot.slane %v10800_v32, %v14469_v13 }
 0xa5a   : > { %10673 = vmatprep.mubr.bf16.mxu1 %v15684_v54  ;;  %12361 = vmatpush1.bf16.msra.mxu1 %v15755_v51 }
 0xa5b   : > { %12346 = vmatprep.subr.bf16.mxu1 %v13938_v52  ;;  %v15855_v2 = vrot.slane %v10837_v22, %v14469_v13 }
 0xa5e   : > { %12362 = vmatpush1.bf16.msra.mxu1 %v13936_v14 }
 0xa5f   : > { %12347 = vmatprep.subr.bf16.mxu1 %v13941_v12 }
 0xa61   : > { %10674 = vmatmul.mubr.bf16.gmra.mrb[84].mxu1 %v15563_v39  ;;  %v10841_v39 = vrot.slane %v10800_v32, %v14835_v41 }
 0xa62   : > { %10683 = vmatprep.mubr.bf16.mxu1 %v15684_v54  ;;  %12363 = vmatpush1.bf16.msra.mxu1 %v13939_v58 }
 0xa63   : > { %12348 = vmatprep.subr.bf16.mxu1 %v13944_v45  ;;  %v15858_v16 = vrot.slane %v10841_v39, %v14469_v13 }
 0xa66   : > { %12364 = vmatpush1.bf16.msra.mxu1 %v13942_v11 }
 0xa67   : > { %12349 = vmatprep.subr.bf16.mxu1 %v13947_v47 }
 0xa69   : > { %10684 = vmatmul.mubr.bf16.gmra.mrb[88].mxu1 %v15623_v29  ;;  %v10891_v29 = vrot.slane %v10800_v32, %v14838_v19 }
 0xa6a   : > { %10693 = vmatprep.mubr.bf16.mxu1 %v15684_v54  ;;  %12365 = vmatpush1.bf16.msra.mxu1 %v13945_v60 }
 0xa6b   : > { %12350 = vmatprep.subr.bf16.mxu1 %v13950_v6  ;;  %v15864_v30 = vrot.slane %v10891_v29, %v14475_v15 }
 0xa6e   : > { %12366 = vmatpush1.bf16.msra.mxu1 %v13948_v61 }
 0xa6f   : > { %12351 = vmatprep.subr.bf16.mxu1 %v13953_v33 }
 0xa71   : > { %10694 = vmatmul.mubr.bf16.gmra.mrb[92].mxu1 %v15517_v7  ;;  %v13956_v7 = vld [vmem:[%s16067_s13 + $0xf4] ss:$8 sps:$4 sm:$0xff]  }
 0xa72   : > { %12367 = vmatpush1.bf16.msra.mxu1 %v13951_v10  ;;  %11269 = vmatprep.subr.bf16.mxu0 %v13956_v7 }
 0xa73   : > { %12352 = vmatprep.subr.bf16.mxu1 %v13956_v7  ;;  %11270 = vmatpush1.bf16.msra.mxu0 %v13954_v28 }
 0xa76   : > { %12368 = vmatpush1.bf16.msra.mxu1 %v13954_v28 }
 0xb0c   : > { %v10625_v20 = vpop.f32.mrb[64].mxu1 }
 0xb0d   : > { %v10852_v17 = vmul.f32 %v15855_v2, %v10625_v20  ;;  %v10627_v24 = vpop.f32.mrb[65].mxu1 }
 0xb0e   : > { %v10853_v5 = vmul.f32 %v15858_v16, %v10627_v24  ;;  %v10629_v53 = vpop.f32.mrb[66].mxu1 }
 0xb0f   : > { %v10902_v3 = vadd.f32 %v15861_v56, %v10852_v17  ;;  %v10854_v31 = vmul.f32 %v15855_v2, %v10629_v53  ;;  %v10631_v54 = vpop.f32.mrb[67].mxu1 }
 0xb10   : > { %v10903_v44 = vadd.f32 %v15864_v30, %v10853_v5  ;;  %v10855_v23 = vmul.f32 %v15858_v16, %v10631_v54 }
 0xb11   : > { %v10966_v35 = vmul.f32 0.1, %v10902_v3  ;;  %v10904_v43 = vadd.f32 %v15861_v56, %v10854_v31  ;;  %vm10934_vm4 = vcmp.ge.f32.partialorder %v10902_v3, 0.0 }
 0xb12   : > { %v10967_v26 = vmul.f32 0.1, %v10903_v44  ;;  %v10905_v63 = vadd.f32 %v15864_v30, %v10855_v23  ;;  %vm10935_vm10 = vcmp.ge.f32.partialorder %v10903_v44, 0.0 }
 0xb13   : > { %vm10936_vm12 = vcmp.ge.f32.partialorder %v10904_v43, 0.0  ;;  %v10968_v25 = vmul.f32 0.1, %v10904_v43  ;;  %v10998_v21 = vsel %vm10934_vm4, %v10902_v3, %v10966_v35 }
 0xb14   : > { %vm10937_vm8 = vcmp.ge.f32.partialorder %v10905_v63, 0.0  ;;  %v10969_v4 = vmul.f32 0.1, %v10905_v63  ;;  %v10635_v34 = vpop.f32.mrb[68].mxu1  ;;  %v10999_v48 = vsel %vm10935_vm10, %v10903_v44, %v10967_v26 }
 0xb15   : > { %v11000_v37 = vsel %vm10936_vm12, %v10904_v43, %v10968_v25  ;;  %v10856_v49 = vmul.f32 %v15855_v2, %v10635_v34  ;;  %v10637_v42 = vpop.f32.mrb[69].mxu1 }
 0xb16   : > { %v11030_v38 = vpack.c.bf16 %v11000_v37, %v10998_v21  ;;  %v10857_v36 = vmul.f32 %v15858_v16, %v10637_v42  ;;  %v10639_v8 = vpop.f32.mrb[70].mxu1  ;;  %v11001_v55 = vsel %vm10937_vm8, %v10905_v63, %v10969_v4 }
 0xb17   : > { %v10906_v57 = vadd.f32 %v15861_v56, %v10856_v49  ;;  %v10858_v9 = vmul.f32 %v15855_v2, %v10639_v8  ;;  %v10641_v50 = vpop.f32.mrb[71].mxu1  ;;  %v11031_v46 = vpack.c.bf16 %v11001_v55, %v10999_v48 }
 0xb18   : > { %v10907_v51 = vadd.f32 %v15864_v30, %v10857_v36  ;;  %v10859_v52 = vmul.f32 %v15858_v16, %v10641_v50 }
 0xb19   : > { %v10970_v1 = vmul.f32 0.1, %v10906_v57  ;;  %v10908_v14 = vadd.f32 %v15861_v56, %v10858_v9  ;;  %11271 = vmatprep.mubr.bf16.mxu0 %v11031_v46  ;;  %vm10938_vm9 = vcmp.ge.f32.partialorder %v10906_v57, 0.0 }
 0xb1a   : > { %v10971_v12 = vmul.f32 0.1, %v10907_v51  ;;  %v10909_v58 = vadd.f32 %v15864_v30, %v10859_v52  ;;  %11272 = vmatmul.mubr.bf16.vlgmr.msra.gmra.mrb[112].mxu0 %v11030_v38  ;;  %vm10939_vm11 = vcmp.ge.f32.partialorder %v10907_v51, 0.0 }
 0xb1b   : > { %vm10940_vm13 = vcmp.ge.f32.partialorder %v10908_v14, 0.0  ;;  %v10972_v45 = vmul.f32 0.1, %v10908_v14  ;;  %v11002_v62 = vsel %vm10938_vm9, %v10906_v57, %v10970_v1 }
 0xb1c   : > { %vm10941_vm14 = vcmp.ge.f32.partialorder %v10909_v58, 0.0  ;;  %v10973_v11 = vmul.f32 0.1, %v10909_v58  ;;  %v10645_v47 = vpop.f32.mrb[72].mxu1  ;;  %v11003_v61 = vsel %vm10939_vm11, %v10907_v51, %v10971_v12 }
 0xb1d   : > { %v10860_v60 = vmul.f32 %v15855_v2, %v10645_v47  ;;  %v10647_v40 = vpop.f32.mrb[73].mxu1  ;;  %v11004_v0 = vsel %vm10940_vm13, %v10908_v14, %v10972_v45 }
 0xb1e   : > { %v10861_v59 = vmul.f32 %v15858_v16, %v10647_v40  ;;  %v10649_v27 = vpop.f32.mrb[74].mxu1  ;;  %v11005_v6 = vsel %vm10941_vm14, %v10909_v58, %v10973_v11  ;;  %v11032_v33 = vpack.c.bf16 %v11004_v0, %v11002_v62 }
 0xb1f   : > { %v10910_v10 = vadd.f32 %v15861_v56, %v10860_v60  ;;  %v10862_v7 = vmul.f32 %v15855_v2, %v10649_v27  ;;  %v10651_v28 = vpop.f32.mrb[75].mxu1  ;;  %v11033_v32 = vpack.c.bf16 %v11005_v6, %v11003_v61 }
 0xb20   : > { %v10911_v22 = vadd.f32 %v15864_v30, %v10861_v59  ;;  %v10863_v39 = vmul.f32 %v15858_v16, %v10651_v28 }
 0xb21   : > { %v10974_v18 = vmul.f32 0.1, %v10910_v10  ;;  %v10912_v29 = vadd.f32 %v15861_v56, %v10862_v7  ;;  %11281 = vmatprep.mubr.bf16.mxu0 %v11033_v32  ;;  %vm10942_vm15 = vcmp.ge.f32.partialorder %v10910_v10, 0.0 }
 0xb22   : > { %v10975_v20 = vmul.f32 0.1, %v10911_v22  ;;  %v10913_v17 = vadd.f32 %v15864_v30, %v10863_v39  ;;  %11282 = vmatmul.mubr.bf16.gmra.mrb[116].mxu0 %v11032_v33  ;;  %vm10943_vm0 = vcmp.ge.f32.partialorder %v10911_v22, 0.0 }
 0xb23   : > { %vm10944_vm1 = vcmp.ge.f32.partialorder %v10912_v29, 0.0  ;;  %v10976_v24 = vmul.f32 0.1, %v10912_v29  ;;  %v11006_v54 = vsel %vm10942_vm15, %v10910_v10, %v10974_v18 }
 0xb24   : > { %vm10945_vm2 = vcmp.ge.f32.partialorder %v10913_v17, 0.0  ;;  %v10977_v5 = vmul.f32 0.1, %v10913_v17  ;;  %v10655_v53 = vpop.f32.mrb[76].mxu1  ;;  %v11007_v43 = vsel %vm10943_vm0, %v10911_v22, %v10975_v20 }
 0xb25   : > { %v10864_v3 = vmul.f32 %v15855_v2, %v10655_v53  ;;  %v10657_v31 = vpop.f32.mrb[77].mxu1  ;;  %v11008_v44 = vsel %vm10944_vm1, %v10912_v29, %v10976_v24 }
 0xb26   : > { %v10865_v23 = vmul.f32 %v15858_v16, %v10657_v31  ;;  %v10659_v35 = vpop.f32.mrb[78].mxu1  ;;  %v11009_v26 = vsel %vm10945_vm2, %v10913_v17, %v10977_v5  ;;  %v11034_v63 = vpack.c.bf16 %v11008_v44, %v11006_v54 }
 0xb27   : > { %v10914_v25 = vadd.f32 %v15861_v56, %v10864_v3  ;;  %v10866_v4 = vmul.f32 %v15855_v2, %v10659_v35  ;;  %v10661_v34 = vpop.f32.mrb[79].mxu1  ;;  %v11035_v21 = vpack.c.bf16 %v11009_v26, %v11007_v43 }
 0xb28   : > { %v10915_v37 = vadd.f32 %v15864_v30, %v10865_v23  ;;  %v10867_v49 = vmul.f32 %v15858_v16, %v10661_v34 }
 0xb29   : > { %v10978_v42 = vmul.f32 0.1, %v10914_v25  ;;  %v10916_v38 = vadd.f32 %v15861_v56, %v10866_v4  ;;  %11291 = vmatprep.mubr.bf16.mxu0 %v11035_v21  ;;  %vm10946_vm3 = vcmp.ge.f32.partialorder %v10914_v25, 0.0 }
 0xb2a   : > { %v10979_v36 = vmul.f32 0.1, %v10915_v37  ;;  %v10917_v8 = vadd.f32 %v15864_v30, %v10867_v49  ;;  %11292 = vmatmul.mubr.bf16.gmra.mrb[120].mxu0 %v11034_v63  ;;  %vm10947_vm5 = vcmp.ge.f32.partialorder %v10915_v37, 0.0 }
 0xb2b   : > { %vm10948_vm6 = vcmp.ge.f32.partialorder %v10916_v38, 0.0  ;;  %v10980_v48 = vmul.f32 0.1, %v10916_v38  ;;  %v11010_v46 = vsel %vm10946_vm3, %v10914_v25, %v10978_v42 }
 0xb2c   : > { %vm10949_vm7 = vcmp.ge.f32.partialorder %v10917_v8, 0.0  ;;  %v10981_v55 = vmul.f32 0.1, %v10917_v8  ;;  %v10665_v57 = vpop.f32.mrb[80].mxu1  ;;  %v11011_v14 = vsel %vm10947_vm5, %v10915_v37, %v10979_v36 }
 0xb2d   : > { %v10868_v9 = vmul.f32 %v15855_v2, %v10665_v57  ;;  %v10667_v50 = vpop.f32.mrb[81].mxu1  ;;  %v11012_v51 = vsel %vm10948_vm6, %v10916_v38, %v10980_v48 }
 0xb2e   : > { %v10869_v52 = vmul.f32 %v15858_v16, %v10667_v50  ;;  %v10669_v1 = vpop.f32.mrb[82].mxu1  ;;  %v11013_v12 = vsel %vm10949_vm7, %v10917_v8, %v10981_v55  ;;  %v11036_v58 = vpack.c.bf16 %v11012_v51, %v11010_v46 }
 0xb2f   : > { %v10918_v45 = vadd.f32 %v15861_v56, %v10868_v9  ;;  %v10870_v11 = vmul.f32 %v15855_v2, %v10669_v1  ;;  %v10671_v47 = vpop.f32.mrb[83].mxu1  ;;  %v11037_v60 = vpack.c.bf16 %v11013_v12, %v11011_v14 }
 0xb30   : > { %v10919_v40 = vadd.f32 %v15864_v30, %v10869_v52  ;;  %v10871_v62 = vmul.f32 %v15858_v16, %v10671_v47 }
 0xb31   : > { %v10982_v0 = vmul.f32 0.1, %v10918_v45  ;;  %v10920_v59 = vadd.f32 %v15861_v56, %v10870_v11  ;;  %11301 = vmatprep.mubr.bf16.mxu0 %v11037_v60  ;;  %vm10950_vm4 = vcmp.ge.f32.partialorder %v10918_v45, 0.0 }
 0xb32   : > { %v10983_v27 = vmul.f32 0.1, %v10919_v40  ;;  %v10921_v61 = vadd.f32 %v15864_v30, %v10871_v62  ;;  %11302 = vmatmul.mubr.bf16.gmra.mrb[124].mxu0 %v11036_v58  ;;  %vm10951_vm10 = vcmp.ge.f32.partialorder %v10919_v40, 0.0 }
 0xb33   : > { %vm10952_vm12 = vcmp.ge.f32.partialorder %v10920_v59, 0.0  ;;  %v10984_v6 = vmul.f32 0.1, %v10920_v59  ;;  %v11014_v32 = vsel %vm10950_vm4, %v10918_v45, %v10982_v0 }
 0xb34   : > { %vm10953_vm8 = vcmp.ge.f32.partialorder %v10921_v61, 0.0  ;;  %v10985_v33 = vmul.f32 0.1, %v10921_v61  ;;  %v10675_v10 = vpop.f32.mrb[84].mxu1  ;;  %v11015_v29 = vsel %vm10951_vm10, %v10919_v40, %v10983_v27 }
 0xb35   : > { %v10872_v7 = vmul.f32 %v15855_v2, %v10675_v10  ;;  %v10677_v28 = vpop.f32.mrb[85].mxu1  ;;  %v11016_v22 = vsel %vm10952_vm12, %v10920_v59, %v10984_v6 }
 0xb36   : > { %v10873_v39 = vmul.f32 %v15858_v16, %v10677_v28  ;;  %v10679_v18 = vpop.f32.mrb[86].mxu1  ;;  %v11017_v20 = vsel %vm10953_vm8, %v10921_v61, %v10985_v33  ;;  %v11038_v17 = vpack.c.bf16 %v11016_v22, %v11014_v32 }
 0xb37   : > { %v10922_v24 = vadd.f32 %v15861_v56, %v10872_v7  ;;  %v10874_v5 = vmul.f32 %v15855_v2, %v10679_v18  ;;  %v10681_v53 = vpop.f32.mrb[87].mxu1  ;;  %v11039_v3 = vpack.c.bf16 %v11017_v20, %v11015_v29 }
 0xb38   : > { %v10923_v31 = vadd.f32 %v15864_v30, %v10873_v39  ;;  %v10875_v54 = vmul.f32 %v15858_v16, %v10681_v53 }
 0xb39   : > { %v10986_v44 = vmul.f32 0.1, %v10922_v24  ;;  %v10924_v23 = vadd.f32 %v15861_v56, %v10874_v5  ;;  %11311 = vmatprep.mubr.bf16.mxu0 %v11039_v3  ;;  %vm10954_vm9 = vcmp.ge.f32.partialorder %v10922_v24, 0.0 }
 0xb3a   : > { %v10987_v35 = vmul.f32 0.1, %v10923_v31  ;;  %v10925_v43 = vadd.f32 %v15864_v30, %v10875_v54  ;;  %11312 = vmatmul.mubr.bf16.gmra.mrb[128].mxu0 %v11038_v17  ;;  %vm10955_vm11 = vcmp.ge.f32.partialorder %v10923_v31, 0.0 }
 0xb3b   : > { %vm10956_vm13 = vcmp.ge.f32.partialorder %v10924_v23, 0.0  ;;  %v10988_v26 = vmul.f32 0.1, %v10924_v23  ;;  %v11018_v21 = vsel %vm10954_vm9, %v10922_v24, %v10986_v44 }
 0xb3c   : > { %vm10957_vm14 = vcmp.ge.f32.partialorder %v10925_v43, 0.0  ;;  %v10989_v63 = vmul.f32 0.1, %v10925_v43  ;;  %v10685_v25 = vpop.f32.mrb[88].mxu1  ;;  %v11019_v38 = vsel %vm10955_vm11, %v10923_v31, %v10987_v35 }
 0xb3d   : > { %v10876_v4 = vmul.f32 %v15855_v2, %v10685_v25  ;;  %v10687_v34 = vpop.f32.mrb[89].mxu1  ;;  %v11020_v37 = vsel %vm10956_vm13, %v10924_v23, %v10988_v26 }
 0xb3e   : > { %v10877_v49 = vmul.f32 %v15858_v16, %v10687_v34  ;;  %v10689_v42 = vpop.f32.mrb[90].mxu1  ;;  %v11021_v36 = vsel %vm10957_vm14, %v10925_v43, %v10989_v63  ;;  %v11040_v8 = vpack.c.bf16 %v11020_v37, %v11018_v21 }
 0xb3f   : > { %v10926_v48 = vadd.f32 %v15861_v56, %v10876_v4  ;;  %v10878_v55 = vmul.f32 %v15855_v2, %v10689_v42  ;;  %v10691_v57 = vpop.f32.mrb[91].mxu1  ;;  %v11041_v9 = vpack.c.bf16 %v11021_v36, %v11019_v38 }
 0xb40   : > { %v10927_v50 = vadd.f32 %v15864_v30, %v10877_v49  ;;  %v10879_v46 = vmul.f32 %v15858_v16, %v10691_v57 }
 0xb41   : > { %v10990_v51 = vmul.f32 0.1, %v10926_v48  ;;  %v10928_v52 = vadd.f32 %v15861_v56, %v10878_v55  ;;  %11321 = vmatprep.mubr.bf16.mxu0 %v11041_v9  ;;  %vm10958_vm15 = vcmp.ge.f32.partialorder %v10926_v48, 0.0 }
 0xb42   : > { %v10991_v1 = vmul.f32 0.1, %v10927_v50  ;;  %v10929_v14 = vadd.f32 %v15864_v30, %v10879_v46  ;;  %11322 = vmatmul.mubr.bf16.gmra.mrb[132].mxu0 %v11040_v8  ;;  %vm10959_vm0 = vcmp.ge.f32.partialorder %v10927_v50, 0.0 }
 0xb43   : > { %vm10960_vm1 = vcmp.ge.f32.partialorder %v10928_v52, 0.0  ;;  %v10992_v12 = vmul.f32 0.1, %v10928_v52  ;;  %v11022_v11 = vsel %vm10958_vm15, %v10926_v48, %v10990_v51 }
 0xb44   : > { %vm10961_vm2 = vcmp.ge.f32.partialorder %v10929_v14, 0.0  ;;  %v10993_v58 = vmul.f32 0.1, %v10929_v14  ;;  %v10695_v45 = vpop.f32.mrb[92].mxu1  ;;  %v11023_v27 = vsel %vm10959_vm0, %v10927_v50, %v10991_v1 }
 0xb45   : > { %v11024_v47 = vsel %vm10960_vm1, %v10928_v52, %v10992_v12  ;;  %v10880_v60 = vmul.f32 %v15855_v2, %v10695_v45  ;;  %v10697_v40 = vpop.f32.mrb[93].mxu1 }
 0xb46   : > { %v11042_v62 = vpack.c.bf16 %v11024_v47, %v11022_v11  ;;  %v10881_v0 = vmul.f32 %v15858_v16, %v10697_v40  ;;  %v10699_v59 = vpop.f32.mrb[94].mxu1  ;;  %v11025_v61 = vsel %vm10961_vm2, %v10929_v14, %v10993_v58 }
 0xb47   : > { %v10930_v6 = vadd.f32 %v15861_v56, %v10880_v60  ;;  %v10882_v33 = vmul.f32 %v15855_v2, %v10699_v59  ;;  %v10701_v10 = vpop.f32.mrb[95].mxu1  ;;  %v11043_v7 = vpack.c.bf16 %v11025_v61, %v11023_v27 }
 0xb48   : > { %v10931_v28 = vadd.f32 %v15864_v30, %v10881_v0  ;;  %v10883_v32 = vmul.f32 %v15858_v16, %v10701_v10 }
 0xb49   : > { %v10994_v22 = vmul.f32 0.1, %v10930_v6  ;;  %v10932_v39 = vadd.f32 %v15861_v56, %v10882_v33  ;;  %11331 = vmatprep.mubr.bf16.mxu1 %v11043_v7  ;;  %vm10962_vm3 = vcmp.ge.f32.partialorder %v10930_v6, 0.0  ;;  %v11046_v56 = vld [vmem:[%s16093_s28] sm:$0xf] }
 0xb4a   : > { %v10995_v18 = vmul.f32 0.1, %v10931_v28  ;;  %v10933_v29 = vadd.f32 %v15864_v30, %v10883_v32  ;;  %11332 = vmatmul.mubr.bf16.vlgmr.msra.gmra.mrb[96].mxu1 %v11042_v62  ;;  %vm10963_vm5 = vcmp.ge.f32.partialorder %v10931_v28, 0.0  ;;  %v11356_v30 = vrot.slane %v11046_v56, %v14469_v13 }
 0xb4b   : > { %vm10964_vm6 = vcmp.ge.f32.partialorder %v10932_v39, 0.0  ;;  %v10996_v20 = vmul.f32 0.1, %v10932_v39  ;;  %v11026_v17 = vsel %vm10962_vm3, %v10930_v6, %v10994_v22  ;;  %v11360_v31 = vrot.slane %v11046_v56, %v14835_v41 }
 0xb4c   : > { %vm10965_vm7 = vcmp.ge.f32.partialorder %v10933_v29, 0.0  ;;  %v10997_v2 = vmul.f32 0.1, %v10933_v29  ;;  %v11027_v5 = vsel %vm10963_vm5, %v10931_v28, %v10995_v18  ;;  %v11406_v54 = vrot.slane %v11046_v56, %v14475_v15 }
 0xb4d   : > { %v11028_v24 = vsel %vm10964_vm6, %v10932_v39, %v10996_v20  ;;  %v11410_v44 = vrot.slane %v11046_v56, %v14838_v19  ;;  %v15938_v23 = vrot.slane %v11356_v30, %v14469_v13  ;;  %v15941_v35 = vrot.slane %v11360_v31, %v14469_v13 }
 0xb4e   : > { %v11029_v53 = vsel %vm10965_vm7, %v10933_v29, %v10997_v2  ;;  %v11044_v16 = vpack.c.bf16 %v11028_v24, %v11026_v17  ;;  %v15945_v43 = vrot.slane %v11406_v54, %v14475_v15 }
 0xb4f   : > { %v11045_v3 = vpack.c.bf16 %v11029_v53, %v11027_v5  ;;  %v15948_v63 = vrot.slane %v11410_v44, %v14475_v15 }
 0xb51   : > { %11341 = vmatprep.mubr.bf16.mxu1 %v11045_v3 }
 0xb52   : > { %11342 = vmatmul.mubr.bf16.gmra.mrb[100].mxu1 %v11044_v16 }
 0xbed   : > { %v11273_v26 = vpop.f32.mrb[112].mxu0 }
 0xbee   : > { %v11371_v41 = vmul.f32 %v15938_v23, %v11273_v26  ;;  %v11275_v25 = vpop.f32.mrb[113].mxu0 }
 0xbef   : > { %v11372_v13 = vmul.f32 %v15941_v35, %v11275_v25  ;;  %v11277_v19 = vpop.f32.mrb[114].mxu0 }
 0xbf0   : > { %v11421_v4 = vadd.f32 %v15945_v43, %v11371_v41  ;;  %v11373_v15 = vmul.f32 %v15938_v23, %v11277_v19  ;;  %v11279_v34 = vpop.f32.mrb[115].mxu0 }
 0xbf1   : > { %v11422_v21 = vadd.f32 %v15948_v63, %v11372_v13  ;;  %v11374_v37 = vmul.f32 %v15941_v35, %v11279_v34 }
 0xbf2   : > { %11453 = vst [vmem:[%s15954_s21] sm:$0xff] %v11421_v4  ;;  %v11423_v49 = vadd.f32 %v15945_v43, %v11373_v15 }
 0xbf3   : > { %11454 = vst [vmem:[%s15954_s21 + $0x8] sm:$0xff] %v11422_v21  ;;  %v11424_v42 = vadd.f32 %v15948_v63, %v11374_v37 }
 0xbf4   : > { %11455 = vst [vmem:[%s15954_s21 + $0x10] sm:$0xff] %v11423_v49 }
 0xbf5   : > { %11456 = vst [vmem:[%s15954_s21 + $0x18] sm:$0xff] %v11424_v42  ;;  %v11283_v38 = vpop.f32.mrb[116].mxu0 }
 0xbf6   : > { %v11375_v36 = vmul.f32 %v15938_v23, %v11283_v38  ;;  %v11285_v8 = vpop.f32.mrb[117].mxu0 }
 0xbf7   : > { %v11376_v48 = vmul.f32 %v15941_v35, %v11285_v8  ;;  %v11287_v55 = vpop.f32.mrb[118].mxu0 }
 0xbf8   : > { %v11425_v57 = vadd.f32 %v15945_v43, %v11375_v36  ;;  %v11377_v9 = vmul.f32 %v15938_v23, %v11287_v55  ;;  %v11289_v50 = vpop.f32.mrb[119].mxu0 }
 0xbf9   : > { %v11426_v46 = vadd.f32 %v15948_v63, %v11376_v48  ;;  %v11378_v51 = vmul.f32 %v15941_v35, %v11289_v50 }
 0xbfa   : > { %11457 = vst [vmem:[%s15954_s21 + $0x20] sm:$0xff] %v11425_v57  ;;  %v11427_v52 = vadd.f32 %v15945_v43, %v11377_v9 }
 0xbfb   : > { %11458 = vst [vmem:[%s15954_s21 + $0x28] sm:$0xff] %v11426_v46  ;;  %v11428_v1 = vadd.f32 %v15948_v63, %v11378_v51 }
 0xbfc   : > { %11459 = vst [vmem:[%s15954_s21 + $0x30] sm:$0xff] %v11427_v52 }
 0xbfd   : > { %11460 = vst [vmem:[%s15954_s21 + $0x38] sm:$0xff] %v11428_v1  ;;  %v11293_v14 = vpop.f32.mrb[120].mxu0 }
 0xbfe   : > { %v11379_v12 = vmul.f32 %v15938_v23, %v11293_v14  ;;  %v11295_v58 = vpop.f32.mrb[121].mxu0 }
 0xbff   : > { %v11380_v45 = vmul.f32 %v15941_v35, %v11295_v58  ;;  %v11297_v11 = vpop.f32.mrb[122].mxu0 }
 0xc00   : > { %v11429_v47 = vadd.f32 %v15945_v43, %v11379_v12  ;;  %v11381_v60 = vmul.f32 %v15938_v23, %v11297_v11  ;;  %v11299_v40 = vpop.f32.mrb[123].mxu0 }
 0xc01   : > { %v11430_v62 = vadd.f32 %v15948_v63, %v11380_v45  ;;  %v11382_v0 = vmul.f32 %v15941_v35, %v11299_v40 }
 0xc02   : > { %11461 = vst [vmem:[%s15954_s21 + $0x40] sm:$0xff] %v11429_v47  ;;  %v11431_v59 = vadd.f32 %v15945_v43, %v11381_v60 }
 0xc03   : > { %11462 = vst [vmem:[%s15954_s21 + $0x48] sm:$0xff] %v11430_v62  ;;  %v11432_v27 = vadd.f32 %v15948_v63, %v11382_v0 }
 0xc04   : > { %11463 = vst [vmem:[%s15954_s21 + $0x50] sm:$0xff] %v11431_v59 }
 0xc05   : > { %11464 = vst [vmem:[%s15954_s21 + $0x58] sm:$0xff] %v11432_v27  ;;  %v11303_v61 = vpop.f32.mrb[124].mxu0 }
 0xc06   : > { %v11383_v6 = vmul.f32 %v15938_v23, %v11303_v61  ;;  %v11305_v33 = vpop.f32.mrb[125].mxu0 }
 0xc07   : > { %v11384_v10 = vmul.f32 %v15941_v35, %v11305_v33  ;;  %v11307_v7 = vpop.f32.mrb[126].mxu0 }
 0xc08   : > { %v11433_v28 = vadd.f32 %v15945_v43, %v11383_v6  ;;  %v11385_v32 = vmul.f32 %v15938_v23, %v11307_v7  ;;  %v11309_v22 = vpop.f32.mrb[127].mxu0 }
 0xc09   : > { %v11434_v39 = vadd.f32 %v15948_v63, %v11384_v10  ;;  %v11386_v18 = vmul.f32 %v15941_v35, %v11309_v22 }
 0xc0a   : > { %11465 = vst [vmem:[%s15954_s21 + $0x60] sm:$0xff] %v11433_v28  ;;  %v11435_v29 = vadd.f32 %v15945_v43, %v11385_v32 }
 0xc0b   : > { %11466 = vst [vmem:[%s15954_s21 + $0x68] sm:$0xff] %v11434_v39  ;;  %v11436_v20 = vadd.f32 %v15948_v63, %v11386_v18 }
 0xc0c   : > { %11467 = vst [vmem:[%s15954_s21 + $0x70] sm:$0xff] %v11435_v29 }
 0xc0d   : > { %11468 = vst [vmem:[%s15954_s21 + $0x78] sm:$0xff] %v11436_v20  ;;  %v11313_v2 = vpop.f32.mrb[128].mxu0 }
 0xc0e   : > { %v11387_v17 = vmul.f32 %v15938_v23, %v11313_v2  ;;  %v11315_v24 = vpop.f32.mrb[129].mxu0 }
 0xc0f   : > { %v11388_v5 = vmul.f32 %v15941_v35, %v11315_v24  ;;  %v11317_v53 = vpop.f32.mrb[130].mxu0 }
 0xc10   : > { %v11437_v16 = vadd.f32 %v15945_v43, %v11387_v17  ;;  %v11389_v3 = vmul.f32 %v15938_v23, %v11317_v53  ;;  %v11319_v56 = vpop.f32.mrb[131].mxu0 }
 0xc11   : > { %v11438_v30 = vadd.f32 %v15948_v63, %v11388_v5  ;;  %v11390_v31 = vmul.f32 %v15941_v35, %v11319_v56 }
 0xc12   : > { %11469 = vst [vmem:[%s15954_s21 + $0x80] sm:$0xff] %v11437_v16  ;;  %v11439_v54 = vadd.f32 %v15945_v43, %v11389_v3 }
 0xc13   : > { %11470 = vst [vmem:[%s15954_s21 + $0x88] sm:$0xff] %v11438_v30  ;;  %v11440_v44 = vadd.f32 %v15948_v63, %v11390_v31 }
 0xc14   : > { %11471 = vst [vmem:[%s15954_s21 + $0x90] sm:$0xff] %v11439_v54 }
 0xc15   : > { %11472 = vst [vmem:[%s15954_s21 + $0x98] sm:$0xff] %v11440_v44  ;;  %v11323_v26 = vpop.f32.mrb[132].mxu0 }
 0xc16   : > { %v11391_v41 = vmul.f32 %v15938_v23, %v11323_v26  ;;  %v11325_v25 = vpop.f32.mrb[133].mxu0 }
 0xc17   : > { %v11392_v13 = vmul.f32 %v15941_v35, %v11325_v25  ;;  %v11327_v19 = vpop.f32.mrb[134].mxu0 }
 0xc18   : > { %v11441_v4 = vadd.f32 %v15945_v43, %v11391_v41  ;;  %v11393_v15 = vmul.f32 %v15938_v23, %v11327_v19  ;;  %v11329_v34 = vpop.f32.mrb[135].mxu0 }
 0xc19   : > { %v11442_v21 = vadd.f32 %v15948_v63, %v11392_v13  ;;  %v11394_v37 = vmul.f32 %v15941_v35, %v11329_v34 }
 0xc1a   : > { %11473 = vst [vmem:[%s15954_s21 + $0xa0] sm:$0xff] %v11441_v4  ;;  %v11443_v49 = vadd.f32 %v15945_v43, %v11393_v15 }
 0xc1b   : > { %11474 = vst [vmem:[%s15954_s21 + $0xa8] sm:$0xff] %v11442_v21  ;;  %v11444_v42 = vadd.f32 %v15948_v63, %v11394_v37 }
 0xc1c   : > { %11475 = vst [vmem:[%s15954_s21 + $0xb0] sm:$0xff] %v11443_v49 }
 0xc1d   : > { %11476 = vst [vmem:[%s15954_s21 + $0xb8] sm:$0xff] %v11444_v42  ;;  %v11333_v38 = vpop.f32.mrb[96].mxu1 }
 0xc1e   : > { %v11395_v36 = vmul.f32 %v15938_v23, %v11333_v38  ;;  %v11335_v8 = vpop.f32.mrb[97].mxu1 }
 0xc1f   : > { %v11396_v48 = vmul.f32 %v15941_v35, %v11335_v8  ;;  %v11337_v55 = vpop.f32.mrb[98].mxu1 }
 0xc20   : > { %v11445_v57 = vadd.f32 %v15945_v43, %v11395_v36  ;;  %v11397_v9 = vmul.f32 %v15938_v23, %v11337_v55  ;;  %v11339_v50 = vpop.f32.mrb[99].mxu1 }
 0xc21   : > { %v11446_v46 = vadd.f32 %v15948_v63, %v11396_v48  ;;  %v11398_v51 = vmul.f32 %v15941_v35, %v11339_v50 }
 0xc22   : > { %11477 = vst [vmem:[%s15954_s21 + $0xc0] sm:$0xff] %v11445_v57  ;;  %v11447_v52 = vadd.f32 %v15945_v43, %v11397_v9 }
 0xc23   : > { %11478 = vst [vmem:[%s15954_s21 + $0xc8] sm:$0xff] %v11446_v46  ;;  %v11448_v1 = vadd.f32 %v15948_v63, %v11398_v51 }
 0xc24   : > { %11479 = vst [vmem:[%s15954_s21 + $0xd0] sm:$0xff] %v11447_v52 }
 0xc25   : > { %11480 = vst [vmem:[%s15954_s21 + $0xd8] sm:$0xff] %v11448_v1  ;;  %v11343_v14 = vpop.f32.mrb[100].mxu1 }
 0xc26   : > { %v11399_v12 = vmul.f32 %v15938_v23, %v11343_v14  ;;  %v11345_v58 = vpop.f32.mrb[101].mxu1 }
 0xc27   : > { %v11400_v45 = vmul.f32 %v15941_v35, %v11345_v58  ;;  %v11347_v11 = vpop.f32.mrb[102].mxu1 }
 0xc28   : > { %v11449_v47 = vadd.f32 %v15945_v43, %v11399_v12  ;;  %v11401_v60 = vmul.f32 %v15938_v23, %v11347_v11  ;;  %v11349_v40 = vpop.f32.mrb[103].mxu1 }
 0xc29   : > { %v11450_v62 = vadd.f32 %v15948_v63, %v11400_v45  ;;  %v11402_v0 = vmul.f32 %v15941_v35, %v11349_v40 }
 0xc2a   : > { %11481 = vst [vmem:[%s15954_s21 + $0xe0] sm:$0xff] %v11449_v47  ;;  %v11451_v59 = vadd.f32 %v15945_v43, %v11401_v60 }
 0xc2b   : > { %11482 = vst [vmem:[%s15954_s21 + $0xe8] sm:$0xff] %v11450_v62  ;;  %v11452_v27 = vadd.f32 %v15948_v63, %v11402_v0 }
 0xc2c   : > { %11483 = vst [vmem:[%s15954_s21 + $0xf0] sm:$0xff] %v11451_v59 }
 0xc2d   : > { %11484 = vst [vmem:[%s15954_s21 + $0xf8] sm:$0xff] %v11452_v27 }
 0xc2e PF: > { %s16095_s24 = sld [smem:[#allocation15_spill]] }
 0xc34   : > { %s30_s21 = sadd.s32 1, %s16095_s24  }
 0xc35   : > { %p27_p6 = scmp.ge.s32.totalorder %s30_s21, 4  }
 0xc37   :  { %29 = sbr.rel (!%p27_p6) target bundleno = 8 (0x8), region = 168 }
 0xc3e   :  { %11522 = vsyncpa [#allocation5], 1 }
 0xc3f   :  { %11524 = vsyncpa [#allocation5 + $0x1], 1 }
 0xc40   :  { %11525 = vsyncpa [#allocation7], 1 }
 0xc41   :  { %11526 = vsyncpa [#allocation10], 1 }

</bundles_post_ra>
